<compile_context>
chip_gen: v5e
topology: v5e:2x2
jax: 0.10.0
libtpu: 0.0.40
codegen_flags: <defaults>
</compile_context>

<pallas_src>
import jax
import jax.numpy as jnp
import numpy as np
from jax.experimental import pallas as pl
from jax.experimental.pallas import tpu as pltpu


def _round_up(x: int, m: int) -> int:
    return (x + m - 1) // m * m


def _sine_kernel(x_ref, w_ref, b_ref, o_ref):
    # x_ref: (tm, Din) bf16, w_ref: (Din, tn) bf16 (omega_0 already folded in),
    # b_ref: (1, tn) f32 (omega_0 folded in), o_ref: (tm, tn) f32.
    z = jnp.dot(x_ref[...], w_ref[...], preferred_element_type=jnp.float32)
    o_ref[...] = jnp.sin(z + b_ref[...])


def prepare_sine_layer_params(weight, bias, omega_0, *, tn_max=1024,
                              matmul_dtype=jnp.bfloat16):
    """One-time parameter prep (call at init, NOT per forward):
    transpose, fold omega_0 into W and b, pad Dout to a lane-dense multiple of
    128 (tiled by tn), cast the matmul operand to bf16 (kernel keeps f32 acc)."""
    Dout, Din = weight.shape
    if bias is None:
        bias = jnp.zeros((Dout,), dtype=jnp.float32)

    Dout_128 = _round_up(max(Dout, 1), 128)
    tn = min(tn_max, Dout_128)                 # tn is a multiple of 128
    Dout_pad = _round_up(Dout_128, tn)

    w_t = jnp.float32(omega_0) * weight.T.astype(jnp.float32)          # (Din, Dout)
    b_row = (jnp.float32(omega_0) * bias.astype(jnp.float32)).reshape(1, Dout)
    if Dout_pad != Dout:
        w_t = jnp.pad(w_t, ((0, 0), (0, Dout_pad - Dout)))
        b_row = jnp.pad(b_row, ((0, 0), (0, Dout_pad - Dout)))

    return {
        "w_t": w_t.astype(matmul_dtype),   # (Din, Dout_pad), omega folded, bf16
        "b_row": b_row,                    # (1, Dout_pad) f32, omega folded
        "Din": int(Din), "Dout": int(Dout), "Dout_pad": int(Dout_pad),
        "tn": int(tn), "matmul_dtype": matmul_dtype,
    }


def sine_layer_forward(x, params, *, tm_max=512):
    """x: (..., Din). Returns sin(omega_0 * (x @ W^T + b)) with shape (..., Dout)."""
    *lead, Din = x.shape
    assert Din == params["Din"], "in_features mismatch"
    Dout, Dout_pad, tn = params["Dout"], params["Dout_pad"], params["tn"]
    M = int(np.prod(lead)) if lead else 1

    if M == 0:                                 # empty batch guard
        return jnp.zeros((*lead, Dout), dtype=jnp.float32)

    x2 = x.reshape(M, Din).astype(params["matmul_dtype"])

    # Row tiling: pad M only minimally; aim for >= 4 (even) grid steps so both
    # v7x TensorCores get pipelined work (also deepens the pipeline on v5e/v6e).
    M8 = _round_up(M, 8)
    if M8 >= 4 * tm_max:
        tm = tm_max
    elif M8 >= 32:
        tm = _round_up(pl.cdiv(M8, 4), 8)      # ~4 row tiles
    else:
        tm = M8                                # single small tile
    M_pad = _round_up(M8, tm)
    if M_pad != M:
        x2 = jnp.pad(x2, ((0, M_pad - M), (0, 0)))

    grid = (M_pad // tm, Dout_pad // tn)

    # VMEM budget (double-buffered x/out, small resident w/b) -> explicit limit.
    itm = jnp.dtype(params["matmul_dtype"]).itemsize
    est_vmem = (2 * tm * Din * itm          # x blocks
                + 2 * Din * tn * itm        # w blocks
                + 2 * 1 * tn * 4            # bias blocks
                + 2 * tm * tn * 4)          # output blocks
    vmem_limit = int(min(96 * 2**20, max(32 * 2**20, 2 * est_vmem)))

    cost = pl.CostEstimate(
        flops=2 * M_pad * Din * Dout_pad,
        transcendentals=M_pad * Dout_pad,
        bytes_accessed=(M_pad * Din * itm + Din * Dout_pad * itm
                        + Dout_pad * 4 + M_pad * Dout_pad * 4),
    )

    out = pl.pallas_call(
        _sine_kernel,
        grid=grid,
        in_specs=[
            pl.BlockSpec((tm, Din), lambda i, j: (i, 0)),
            pl.BlockSpec((Din, tn), lambda i, j: (0, j)),
            pl.BlockSpec((1, tn), lambda i, j: (0, j)),
        ],
        out_specs=pl.BlockSpec((tm, tn), lambda i, j: (i, j)),
        out_shape=jax.ShapeDtypeStruct((M_pad, Dout_pad), jnp.float32),
        compiler_params=pltpu.CompilerParams(
            dimension_semantics=("parallel", "parallel"),
            vmem_limit_bytes=vmem_limit),
        cost_estimate=cost,
    )(x2, params["w_t"], params["b_row"])

    if M_pad != M or Dout_pad != Dout:         # skip the slice copy when aligned
        out = out[:M, :Dout]
    return out.reshape(*lead, Dout)

# TODO(synk): forward_with_intermediate (returning the pre-sin activation) is
# not exposed; only the module's forward() is implemented here.


if __name__ == "__main__":
    # SIREN hidden layer (is_first=False): batch=2, points=512, Din=16, Dout=128.
    B, N, Din, Dout = 2, 512, 16, 128
    omega0 = 30.0

    key = jax.random.PRNGKey(0)
    kx, kw, kb = jax.random.split(key, 3)

    # SIREN init for a non-first layer + nn.Linear default bias range.
    w_bound = np.sqrt(6.0 / Din) / omega0
    b_bound = 1.0 / np.sqrt(Din)

    x = jax.random.normal(kx, (B, N, Din), jnp.float32) * 0.5
    weight = jax.random.uniform(kw, (Dout, Din), jnp.float32, -w_bound, w_bound)
    bias = jax.random.uniform(kb, (Dout,), jnp.float32, -b_bound, b_bound)

    params = prepare_sine_layer_params(weight, bias, omega0)   # once, at "init"
    out = sine_layer_forward(x, params)
    out = jax.block_until_ready(out)
    out_np = np.asarray(out)

    assert out.shape == (B, N, Dout) and out.dtype == jnp.float32

    # Reference 1: same bf16-rounded operands, f32 math (tight tolerance).
    x_bf = np.asarray(x.reshape(-1, Din).astype(jnp.bfloat16).astype(jnp.float32))
    w_used = np.asarray(params["w_t"].astype(jnp.float32))[:, :Dout]
    b_used = np.asarray(params["b_row"])[:, :Dout]
    ref_consistent = np.sin(x_bf @ w_used + b_used).reshape(B, N, Dout)
    np.testing.assert_allclose(out_np, ref_consistent, rtol=2e-3, atol=2e-3)

    # Reference 2: exact f32 module semantics (loose tol covers bf16 operands).
    ref_exact = np.sin(
        omega0 * (np.asarray(x).reshape(-1, Din) @ np.asarray(weight).T
                  + np.asarray(bias))).reshape(B, N, Dout).astype(np.float32)
    np.testing.assert_allclose(out_np, ref_exact, rtol=5e-2, atol=5e-2)

    print("KERNEL_OK")
</pallas_src>

<mosaic_0001>
module attributes {stable_mosaic.version = 11 : i64} {
  func.func @_sine_kernel(%arg0: i32, %arg1: i32, %arg2: memref<256x16xbf16, #tpu.memory_space<vmem>>, %arg3: memref<16x128xbf16, #tpu.memory_space<vmem>>, %arg4: memref<1x128xf32, #tpu.memory_space<vmem>>, %arg5: memref<256x128xf32, #tpu.memory_space<vmem>>) attributes {dimension_semantics = [#tpu.dimension_semantics<parallel>, #tpu.dimension_semantics<parallel>], iteration_bounds = array<i64: 4, 1>, scalar_prefetch = 0 : i64, scratch_operands = 0 : i64, tpu.core_type = #tpu.core_type<tc>, window_params = [{transform_indices = @transform_0, window_bounds = array<i64: 256, 16>}, {transform_indices = @transform_1, window_bounds = array<i64: 16, 128>}, {transform_indices = @transform_2, window_bounds = array<i64: 1, 128>}, {transform_indices = @transform_3, window_bounds = array<i64: 256, 128>}]} {
    %c0 = arith.constant 0 : index
    %c0_0 = arith.constant 0 : index
    %0 = vector.load %arg2[%c0, %c0_0] : memref<256x16xbf16, #tpu.memory_space<vmem>>, vector<256x16xbf16>
    %c0_1 = arith.constant 0 : index
    %c0_2 = arith.constant 0 : index
    %1 = vector.load %arg3[%c0_1, %c0_2] : memref<16x128xbf16, #tpu.memory_space<vmem>>, vector<16x128xbf16>
    %cst = arith.constant dense<0.000000e+00> : vector<256x128xf32>
    %2 = tpu.matmul %0, %1, %cst {dimension_numbers = #tpu.dot_dimension_numbers<[1], [0], [0], [1], [0, 0, 1, 1], [], []>} : vector<256x16xbf16>, vector<16x128xbf16>, vector<256x128xf32> -> vector<256x128xf32>
    %c0_3 = arith.constant 0 : index
    %c0_4 = arith.constant 0 : index
    %3 = vector.load %arg4[%c0_3, %c0_4] : memref<1x128xf32, #tpu.memory_space<vmem>>, vector<1x128xf32>
    %4 = vector.broadcast %3 : vector<1x128xf32> to vector<256x128xf32>
    %5 = arith.addf %2, %4 : vector<256x128xf32>
    %6 = math.sin %5 : vector<256x128xf32>
    %c0_5 = arith.constant 0 : index
    %c0_6 = arith.constant 0 : index
    %7 = vector.load %arg5[%c0_5, %c0_6] : memref<256x128xf32, #tpu.memory_space<vmem>>, vector<256x128xf32>
    tpu.vector_store %arg5[%c0_5, %c0_6], %6 {strides = array<i32>} : memref<256x128xf32, #tpu.memory_space<vmem>>, vector<256x128xf32>,
    return
  }
  func.func @transform_0(%arg0: i32, %arg1: i32) -> (i32, i32) {
    %c0_i32 = arith.constant 0 : i32
    %c0_i32_0 = arith.constant 0 : i32
    return %arg0, %c0_i32 : i32, i32
  }
  func.func @transform_1(%arg0: i32, %arg1: i32) -> (i32, i32) {
    %c0_i32 = arith.constant 0 : i32
    %c0_i32_0 = arith.constant 0 : i32
    return %c0_i32, %arg1 : i32, i32
  }
  func.func @transform_2(%arg0: i32, %arg1: i32) -> (i32, i32) {
    %c0_i32 = arith.constant 0 : i32
    %c0_i32_0 = arith.constant 0 : i32
    return %c0_i32, %arg1 : i32, i32
  }
  func.func @transform_3(%arg0: i32, %arg1: i32) -> (i32, i32) {
    %c0_i32 = arith.constant 0 : i32
    return %arg0, %arg1 : i32, i32
  }
}

</mosaic_0001>

<bundles_post_ra>
// kernel: tpu_custom_call.1
= control target key start
LH: loop header
LB: loop body
LE: loop exit
PB: predicated region body
PF: predicated region fallthrough
CT: control target
= control target key end

     0   :  { %8 = vsyncpa [#allocation3], 0  ;;  %s9894_s0 = inlined_call_operand.vmem [shape: bf16[1024,16], index: 0, kind: input, shape index: {}]   ;;  %s9895_s1 = inlined_call_operand.vmem [shape: bf16[16,128], index: 1, kind: input, shape index: {}]   ;;  %s9896_s2 = inlined_call_operand.vmem [shape: f32[1,128], index: 2, kind: input, shape index: {}]   ;;  %s9897_s3 = inlined_call_operand.hbm [shape: f32[1024,128], index: 3, kind: output, shape index: {}]  }
   0x1   :  { %10 = vsyncpa [#allocation3 + $0x1], 0  ;;  %s5985_s12 = smov 0   ;;  %s5987_s13 = smov 0  }
   0x2   :  { %s5989_s14 = smov 0   ;;  %s5991_s15 = smov 0  }
   0x3   :  { %s5993_s16 = smov 0   ;;  %s5995_s17 = smov 0  }
   0x4 LB: > { %s5588_s18 = sadd.s32 4294967295, %s5954_s17   ;;  %s5589_s19 = sadd.s32 4294967294, %s5954_s17   ;;  %s5954_s17 = sphi %s5995_s17, %s16_s17   ;;  %s5950_s16 = sphi %s5993_s16, %s9958_s16   ;;  %s5946_s15 = sphi %s5991_s15, %s9957_s15   ;;  %s5942_s14 = sphi %s5989_s14, %s9956_s14   ;;  %s5938_s13 = sphi %s5987_s13, %s9955_s13   ;;  %s5934_s12 = sphi %s5985_s12, %s9954_s12  }
   0x5   : > { %s28_s20 = sadd.s32 1, %s5950_s16  ;;  %s115_s21 = sadd.s32 1, %s5942_s14 }
   0x6   : > { %p30_p0 = scmp.ge.s32.totalorder %s28_s20, 4  ;;  %p125_p1 = scmp.ne.s32.totalorder %s5942_s14, %s5938_s13 }
   0x7   : > { %p126_p2 = scmp.eq.s32.totalorder %s5588_s18, 3  ;;  %p131_p3 = scmp.ne.s32.totalorder %s5938_s13, %s5934_s12 }
   0x8   : > { %s9960_s20 = smov (%p30_p0, %s28_s20), 0  ;;  %p132_p5 = scmp.eq.s32.totalorder %s5589_s19, 3 }
   0x9   : > { %p6025_p4 = por %p126_p2, %p125_p1  ;;  %s110_s23 = ssub.s32 %s5950_s16, %s9960_s20 }
   0xa   : > { %p5594_p6 = scmp.ge.s32.totalorder %s5954_s17, 1  ;;  %p113_p7 = scmp.eq.s32.totalorder %s110_s23, 0 }
   0xb   : > { %p6032_p8 = por %p132_p5, %p131_p3  ;;  %p172_p9 = scmp.lt.s32.totalorder %s5954_s17, 5 }
   0xc   : > { %s6038_s25 = scalar_select %p113_p7, %s5942_s14, %s115_s21  }
   0xd   : > { %p173_p10 = pnand %p5594_p6, %p172_p9 }
   0xe   : > { %s5596_s26 = sshll.u32 (!%p173_p10), %s5946_s15, 5  ;;  %s200_s8 = sand.u32 (!%p173_p10), 1, %s5938_s13  }
   0xf   : > { %176 = sbr.rel (%p173_p10) target bundleno = 1394 (0x572), region = 32  ;;  %p204_p11 = scmp.lt.s32.totalorder (!%p173_p10), %s5596_s26, 127 }
  0x10   : > { %s5595_s9 = sshll.u32 (!%p173_p10), %s200_s8, 8  ;;  %s5896_s30 = scalar_lea.hbm (!%p173_p10), %s9897_s3, 1024 }
  0x11   : > { %s6343_s10 = scalar_lea.vmem (!%p173_p10), [#allocation2], %s5595_s9  ;;  %s5800_s9 = sshll.u32 (!%p173_p10), %s5946_s15, 8 }
  0x12   : > { %s5485_s19 = scalar_lea.hbm (!%p173_p10), %s9897_s3, %s5800_s9  ;;  %s5486_s21 = sshll.u32 (!%p173_p10), %s6343_s10, 4  ;;  %s5487_s21 = int_to_ptr.vmem [resolvable:$true] %s5486_s21 }
  0x13   : > { %s5488_s23 = sshll.u32 (!%p173_p10), %s5485_s19, 4  ;;  %s5473_s15 = scalar_lea.sflag (!%p173_p10), [#allocation3], %s200_s8  ;;  %s5489_s23 = int_to_ptr.hbm [resolvable:$true] %s5488_s23 }
  0x14   : > { %v5799_v0 = vld [vmem:[%s9895_s1] sm:$0xff]  ;;  %s9962_s26 = smov (!%p204_p11, %s5596_s26), 127  ;;  %vm342_vm0 = vcmask 130048   ;;  %v5956_v33 = vmov 683565275  }
  0x15   : > { %398 = vmatpush.bf16.msra.mxu0 %v5799_v0  ;;  %5801 = vmatpush.bf16.msra.mxu1 %v5799_v0  ;;  %s5597_s29 = sshll.u32 %s9962_s26, 2  ;;  %v6066_v17 = vld [vmem:[%s9896_s2] ss:$0 sm:$0xff]  ;;  %v5957_v35 = vmov 2475754826   ;;  %s5890_s26 = sshra.s32 %s5489_s23, 4  ;;  %s5891_s26 = int_to_ptr.hbm [resolvable:$true] %s5890_s26 }
  0x16   : > { %5802 = vmatpush.bf16.msra.mxu2 %v5799_v0  ;;  %5803 = vmatpush.bf16.msra.mxu3 %v5799_v0  ;;  %s207_s5 = scalar_lea.vmem %s9894_s0, %s5597_s29  ;;  %v5958_v37 = vmov 2131351028   ;;  %v5959_v39 = vmov 2102212464   ;;  %v5960_v43 = vmov 920167782   ;;  %p5897_p1 = scmp.lt.s32.totalorder %s5891_s26, %s9897_s3 }
  0x17   : > { %v5783_v1 = vld [vmem:[%s207_s5] sm:$0xff]  ;;  %v5784_v5 = vld [vmem:[%s207_s5 + $0x8] sm:$0xff]  ;;  %v5785_v9 = vld [vmem:[%s207_s5 + $0x10] sm:$0xff]  ;;  %v5961_v50 = vmov 1326507024   ;;  %s5892_s27 = scalar_lea.hbm %s5891_s26, 256 }
  0x18   : > { %v5787_v2 = vld [vmem:[%s207_s5 + $0x20] sm:$0xff]  ;;  %5666 = vmatmul.msk.bf16.vlgmr.msra.gmra.mxu0 %vm342_vm0, %v5783_v1  ;;  %v5788_v6 = vld [vmem:[%s207_s5 + $0x28] sm:$0xff]  ;;  %v5789_v10 = vld [vmem:[%s207_s5 + $0x30] sm:$0xff]  ;;  %p5893_p12 = scmp.ne.s32.totalorder %s5891_s26, %s5892_s27  ;;  %p5898_p2 = scmp.lt.s32.totalorder %s5896_s30, %s5892_s27 }
  0x19   : > { %v5791_v3 = vld [vmem:[%s207_s5 + $0x40] sm:$0xff]  ;;  %5670 = vmatmul.msk.bf16.vlgmr.msra.gmra.mxu1 %vm342_vm0, %v5787_v2  ;;  %v5792_v7 = vld [vmem:[%s207_s5 + $0x48] sm:$0xff]  ;;  %v5793_v11 = vld [vmem:[%s207_s5 + $0x50] sm:$0xff] }
  0x1a   : > { %v5795_v4 = vld [vmem:[%s207_s5 + $0x60] sm:$0xff]  ;;  %5674 = vmatmul.msk.bf16.vlgmr.msra.gmra.mxu2 %vm342_vm0, %v5791_v3  ;;  %v5796_v8 = vld [vmem:[%s207_s5 + $0x68] sm:$0xff]  ;;  %v5797_v12 = vld [vmem:[%s207_s5 + $0x70] sm:$0xff]  ;;  %p5894_p13 = pnand %p5893_p12, %p6025_p4  ;;  %p5899_p3 = por %p5898_p2, %p5897_p1 }
  0x1b   : > { %5678 = vmatmul.msk.bf16.vlgmr.msra.gmra.mxu3 %vm342_vm0, %v5795_v4  ;;  %v5786_v13 = vld [vmem:[%s207_s5 + $0x18] sm:$0xff] }
  0x1c   : > { %v5790_v14 = vld [vmem:[%s207_s5 + $0x38] sm:$0xff]  ;;  %p5895_p0 = pneg %p5894_p13 }
  0x1d   : > { %v5794_v15 = vld [vmem:[%s207_s5 + $0x58] sm:$0xff] }
  0x1e   : > { %v5798_v16 = vld [vmem:[%s207_s5 + $0x78] sm:$0xff]  ;;  %p5900_p5 = pnand %p5899_p3, %p5895_p0 }
  0x28   : > { %5667 = vmatmul.msk.bf16.gmra.mxu0 %vm342_vm0, %v5784_v5 }
  0x29   : > { %5671 = vmatmul.msk.bf16.gmra.mxu1 %vm342_vm0, %v5788_v6 }
  0x2a   : > { %5675 = vmatmul.msk.bf16.gmra.mxu2 %vm342_vm0, %v5792_v7 }
  0x2b   : > { %5679 = vmatmul.msk.bf16.gmra.mxu3 %vm342_vm0, %v5796_v8 }
  0x38   : > { %5668 = vmatmul.msk.bf16.gmra.mxu0 %vm342_vm0, %v5785_v9 }
  0x39   : > { %5672 = vmatmul.msk.bf16.gmra.mxu1 %vm342_vm0, %v5789_v10 }
  0x3a   : > { %5676 = vmatmul.msk.bf16.gmra.mxu2 %vm342_vm0, %v5793_v11 }
  0x3b   : > { %5680 = vmatmul.msk.bf16.gmra.mxu3 %vm342_vm0, %v5797_v12 }
  0x48   : > { %5669 = vmatmul.msk.bf16.gmra.mxu0 %vm342_vm0, %v5786_v13 }
  0x49   : > { %5673 = vmatmul.msk.bf16.gmra.mxu1 %vm342_vm0, %v5790_v14 }
  0x4a   : > { %5677 = vmatmul.msk.bf16.gmra.mxu2 %vm342_vm0, %v5794_v15 }
  0x4b   : > { %5681 = vmatmul.msk.bf16.gmra.mxu3 %vm342_vm0, %v5798_v16 }
  0x95   : > { %v400_v18 = vpop.f32.mrf.mxu0 }
  0x96   : > { %v6069_v19 = vadd.f32 %v6066_v17, %v400_v18 }
  0x98   : > { %v483_v20 = vand.u32 2139095040, %v6069_v19  ;;  %v480_v24 = vand.u32 2147483647, %v6069_v19 }
  0x9a   : > { %v484_v21 = vshrl.u32 %v483_v20, 23  ;;  %v487_v28 = vand.u32 8388607, %v480_v24 }
  0x9c   : > { %v5682_v22 = vadd.s32 4294967169, %v484_v21  ;;  %v488_v41 = vor.u32 8388608, %v487_v28 }
  0x9d   : > { %v402_v23 = vpop.f32.mrf.mxu0 }
  0x9e   : > { %v490_v25 = vadd.s32 1, %v5682_v22  ;;  %v6074_v26 = vadd.f32 %v6066_v17, %v402_v23  ;;  %v6096_v56 = vshll.u32 %v488_v41, 8 }
  0xa0   : > { %vm491_vm1 = vcmp.gt.s32.totalorder %v490_v25, 0  ;;  %v638_v30 = vand.u32 2139095040, %v6074_v26  ;;  %v529_v2 = vand.u32 65535, %v6096_v56  ;;  %v530_v3 = vshrl.u32 %v6096_v56, 16 }
  0xa1   : > { %v492_v27 = vsel %vm491_vm1, %v490_v25, 0  ;;  %v635_v7 = vand.u32 2147483647, %v6074_v26  ;;  %vm482_vm1 = vcmp.lt.s32.totalorder %v6069_v19, 0 }
  0xa2   : > { %v494_v29 = vand.u32 31, %v492_v27  ;;  %v6079_v31 = vshrl.u32 %v492_v27, 5  ;;  %v639_v48 = vshrl.u32 %v638_v30, 23  ;;  %v5962_v27 = vmov 0  }
  0xa3   : > { %v642_v16 = vand.u32 8388607, %v635_v7 }
  0xa4   : > { %v495_v32 = vsub.s32 32, %v494_v29  ;;  %v497_v34 = vshll.u32 %v5956_v33, %v494_v29  ;;  %v500_v36 = vshll.u32 %v5957_v35, %v494_v29  ;;  %v503_v38 = vshll.u32 %v5958_v37, %v494_v29 }
  0xa5   : > { %v506_v40 = vshll.u32 %v5959_v39, %v494_v29  ;;  %v509_v44 = vshll.u32 %v5960_v43, %v494_v29  ;;  %vm512_vm2 = vcmp.lt.s32.totalorder %v6079_v31, 1  ;;  %vm514_vm3 = vcmp.lt.s32.totalorder %v6079_v31, 3 }
  0xa6   : > { %v498_v42 = vshrl.u32 %v5957_v35, %v495_v32  ;;  %v501_v45 = vshrl.u32 %v5958_v37, %v495_v32  ;;  %v504_v46 = vshrl.u32 %v5959_v39, %v495_v32  ;;  %v507_v47 = vshrl.u32 %v5960_v43, %v495_v32 }
  0xa7   : > { %v510_v51 = vshrl.u32 %v5961_v50, %v495_v32  ;;  %vm515_vm4 = vcmp.lt.s32.totalorder %v6079_v31, 4  ;;  %vm513_vm5 = vcmp.lt.s32.totalorder %v6079_v31, 2  ;;  %v5685_v62 = vadd.s32 4294967169, %v639_v48 }
  0xa8   : > { %v499_v49 = vor.u32 %v498_v42, %v497_v34  ;;  %v6093_v52 = vor.u32 %v501_v45, %v500_v36  ;;  %v505_v53 = vor.u32 %v504_v46, %v503_v38  ;;  %v508_v54 = vor.u32 %v507_v47, %v506_v40 }
  0xa9   : > { %v511_v55 = vor.u32 %v510_v51, %v509_v44  ;;  %v645_v9 = vadd.s32 1, %v5685_v62  ;;  %v496_v13 = vshrl.u32 %v5956_v33, %v495_v32  ;;  %v643_v48 = vor.u32 8388608, %v642_v16 }
  0xaa   : > { %v520_v57 = vsel %vm512_vm2, %v499_v49, %v6093_v52  ;;  %v521_v58 = vsel %vm515_vm4, %v508_v54, 920167782  ;;  %v524_v59 = vsel %vm512_vm2, %v6093_v52, %v505_v53  ;;  %v517_v42 = vsel %vm515_vm4, %v505_v53, 2102212464 }
  0xab   : > { %v522_v60 = vsel %vm514_vm3, %v505_v53, %v521_v58  ;;  %v525_v61 = vsel %vm515_vm4, %v511_v55, 1326507024  ;;  %vm646_vm6 = vcmp.gt.s32.totalorder %v645_v9, 0  ;;  %v516_v47 = vsel %vm512_vm2, %v496_v13, %v499_v49 }
  0xac   : > { %v523_v63 = vsel %vm513_vm5, %v520_v57, %v522_v60  ;;  %v526_v0 = vsel %vm514_vm3, %v508_v54, %v525_v61  ;;  %v647_v30 = vsel %vm646_vm6, %v645_v9, 0  ;;  %v518_v58 = vsel %vm514_vm3, %v6093_v52, %v517_v42 }
  0xad   : > { %v527_v1 = vsel %vm513_vm5, %v524_v59, %v526_v0  ;;  %v554_v6 = vshrl.u32 %v523_v63, 16  ;;  %v553_v8 = vand.u32 65535, %v523_v63  ;;  %v649_v46 = vand.u32 31, %v647_v30 }
  0xae   : > { %v531_v4 = vand.u32 65535, %v527_v1  ;;  %v532_v5 = vshrl.u32 %v527_v1, 16  ;;  %v519_v52 = vsel %vm513_vm5, %v516_v47, %v518_v58  ;;  %vm6197_vm3 = vcmp.le.f32.partialorder %v480_v24, 0.7853982 }
  0xaf   : > { %v556_v12 = vmul.u32 %v554_v6, %v529_v2  ;;  %v555_v18 = vmul.u32 %v553_v8, %v529_v2  ;;  %v557_v20 = vmul.u32 %v553_v8, %v530_v3  ;;  %v558_v29 = vmul.u32 %v554_v6, %v530_v3 }
  0xb0   : > { %v534_v10 = vmul.u32 %v532_v5, %v529_v2  ;;  %v535_v11 = vmul.u32 %v531_v4, %v530_v3  ;;  %v533_v14 = vmul.u32 %v531_v4, %v529_v2  ;;  %v536_v22 = vmul.u32 %v532_v5, %v530_v3 }
  0xb1   : > { %v559_v21 = vshll.u32 %v556_v12, 16  ;;  %v561_v38 = vshll.u32 %v557_v20, 16  ;;  %v650_v57 = vsub.s32 32, %v649_v46  ;;  %v560_v59 = vshrl.u32 %v556_v12, 16 }
  0xb2   : > { %v537_v15 = vshll.u32 %v534_v10, 16  ;;  %v539_v23 = vshll.u32 %v535_v11, 16  ;;  %v538_v44 = vshrl.u32 %v534_v10, 16  ;;  %v540_v51 = vshrl.u32 %v535_v11, 16 }
  0xb3   : > { %vm563_vm8 = vc.u32 %v555_v18, %v559_v21  ;;  %v565_v40 = vadd.s32 %v559_v21, %v555_v18  ;;  %v562_v60 = vshrl.u32 %v557_v20, 16  ;;  %v652_v62 = vshll.u32 %v5956_v33, %v649_v46 }
  0xb4   : > { %vm541_vm7 = vc.u32 %v533_v14, %v537_v15  ;;  %v543_v25 = vadd.s32 %v537_v15, %v533_v14  ;;  %v564_v34 = vsel %vm563_vm8, 1, %v5962_v27  ;;  %v653_v49 = vshrl.u32 %v5957_v35, %v650_v57 }
  0xb5   : > { %v542_v28 = vsel %vm541_vm7, 1, %v5962_v27  ;;  %v566_v41 = vadd.s32 %v564_v34, %v558_v29  ;;  %vm567_vm10 = vc.u32 %v565_v40, %v561_v38  ;;  %v656_v63 = vshrl.u32 %v5958_v37, %v650_v57 }
  0xb6   : > { %v544_v32 = vadd.s32 %v542_v28, %v536_v22  ;;  %vm545_vm9 = vc.u32 %v543_v25, %v539_v23  ;;  %v568_v55 = vsel %vm567_vm10, 1, %v5962_v27  ;;  %v655_v1 = vshll.u32 %v5957_v35, %v649_v46 }
  0xb7   : > { %v546_v36 = vsel %vm545_vm9, 1, %v5962_v27  ;;  %v570_v53 = vadd.s32 %v568_v55, %v566_v41  ;;  %v658_v2 = vshll.u32 %v5958_v37, %v649_v46  ;;  %v659_v3 = vshrl.u32 %v5959_v39, %v650_v57 }
  0xb8   : > { %v548_v45 = vadd.s32 %v546_v36, %v544_v32  ;;  %v6144_v4 = vadd.s32 %v565_v40, %v561_v38  ;;  %v6146_v5 = vshrl.u32 %v647_v30, 5  ;;  %v661_v6 = vshll.u32 %v5959_v39, %v649_v46 }
  0xb9   : > { %v571_v0 = vadd.s32 %v570_v53, %v560_v59  ;;  %v654_v9 = vor.u32 %v653_v49, %v652_v62  ;;  %v6149_v10 = vor.u32 %v656_v63, %v655_v1  ;;  %v660_v11 = vor.u32 %v659_v3, %v658_v2 }
  0xba   : > { %v549_v54 = vadd.s32 %v548_v45, %v538_v44  ;;  %v662_v12 = vshrl.u32 %v5960_v43, %v650_v57  ;;  %v664_v13 = vshll.u32 %v5960_v43, %v649_v46  ;;  %v665_v31 = vshrl.u32 %v5961_v50, %v650_v57  ;;  %v405_v45 = vpop.f32.mrf.mxu0 }
  0xbb   : > { %v572_v8 = vadd.s32 %v571_v0, %v562_v60  ;;  %v6156_v15 = vshll.u32 %v643_v48, 8  ;;  %v573_v16 = vmul.u32 %v6096_v56, %v519_v52  ;;  %vm667_vm12 = vcmp.lt.s32.totalorder %v6146_v5, 1 }
  0xbc   : > { %v6134_v61 = vadd.s32 %v549_v54, %v540_v51  ;;  %v663_v18 = vor.u32 %v662_v12, %v661_v6  ;;  %v666_v20 = vor.u32 %v665_v31, %v664_v13  ;;  %vm670_vm13 = vcmp.lt.s32.totalorder %v6146_v5, 4 }
  0xbd   : > { %v576_v14 = vadd.s32 1, %v572_v8  ;;  %v675_v22 = vsel %vm667_vm12, %v654_v9, %v6149_v10  ;;  %v679_v23 = vsel %vm667_vm12, %v6149_v10, %v660_v11  ;;  %vm669_vm14 = vcmp.lt.s32.totalorder %v6146_v5, 3 }
  0xbe   : > { %vm575_vm11 = vc.u32 %v6134_v61, %v6144_v4  ;;  %v676_v56 = vsel %vm670_vm13, %v663_v18, 920167782  ;;  %v680_v28 = vsel %vm670_vm13, %v666_v20, 1326507024  ;;  %vm668_vm15 = vcmp.lt.s32.totalorder %v6146_v5, 2 }
  0xbf   : > { %v577_v21 = vsel %vm575_vm11, %v576_v14, %v572_v8  ;;  %v677_v29 = vsel %vm669_vm14, %v660_v11, %v676_v56  ;;  %v681_v30 = vsel %vm669_vm14, %v663_v18, %v680_v28  ;;  %v684_v38 = vand.u32 65535, %v6156_v15 }
  0xc0   : > { %v578_v25 = vadd.s32 %v577_v21, %v573_v16  ;;  %v678_v34 = vsel %vm668_vm15, %v675_v22, %v677_v29  ;;  %v682_v36 = vsel %vm668_vm15, %v679_v23, %v681_v30  ;;  %v685_v46 = vshrl.u32 %v6156_v15, 16 }
  0xc1   : > { %v686_v40 = vand.u32 65535, %v682_v36  ;;  %v687_v41 = vshrl.u32 %v682_v36, 16  ;;  %v709_v44 = vshrl.u32 %v678_v34, 16  ;;  %v6186_v59 = vadd.f32 %v6066_v17, %v405_v45 }
  0xc2   : > { %v579_v32 = vadd.s32 536870912, %v578_v25  ;;  %v708_v53 = vand.u32 65535, %v678_v34  ;;  %v651_v62 = vshrl.u32 %v5956_v33, %v650_v57  ;;  %v672_v63 = vsel %vm670_vm13, %v660_v11, 2102212464 }
  0xc3   : > { %v689_v47 = vmul.u32 %v687_v41, %v684_v38  ;;  %v688_v51 = vmul.u32 %v686_v40, %v684_v38  ;;  %v690_v54 = vmul.u32 %v686_v40, %v685_v46  ;;  %v6183_v58 = vmul.u32 %v709_v44, %v684_v38 }
  0xc4   : > { %v580_v42 = vshrl.u32 %v579_v32, 30  ;;  %v691_v0 = vmul.u32 %v687_v41, %v685_v46  ;;  %v712_v12 = vmul.u32 %v708_v53, %v685_v46  ;;  %v793_v57 = vand.u32 2139095040, %v6186_v59 }
  0xc5   : > { %v692_v55 = vshll.u32 %v689_v47, 16  ;;  %v694_v1 = vshll.u32 %v690_v54, 16  ;;  %v714_v52 = vshll.u32 %v6183_v58, 16  ;;  %v671_v11 = vsel %vm667_vm12, %v651_v62, %v654_v9 }
  0xc6   : > { %v581_v48 = vshll.u32 %v580_v42, 30  ;;  %v710_v14 = vmul.u32 %v708_v53, %v684_v38  ;;  %v604_v16 = vsub.s32 4, %v580_v42  ;;  %v673_v18 = vsel %vm669_vm14, %v6149_v10, %v672_v63 }
  0xc7   : > { %vm696_vm0 = vc.u32 %v688_v51, %v692_v55  ;;  %v698_v3 = vadd.s32 %v692_v55, %v688_v51  ;;  %v713_v21 = vmul.u32 %v709_v44, %v685_v46  ;;  %v716_v56 = vshll.u32 %v712_v12, 16 }
  0xc8   : > { %v582_v60 = vsub.s32 %v578_v25, %v581_v48  ;;  %v697_v2 = vsel %vm696_vm0, 1, %v5962_v27  ;;  %vm718_vm5 = vc.u32 %v710_v14, %v714_v52  ;;  %v720_v24 = vadd.s32 %v714_v52, %v710_v14  ;;  %v407_v14 = vpop.f32.mrf.mxu0 }
  0xc9   : > { %v699_v8 = vadd.s32 %v697_v2, %v691_v0  ;;  %vm700_vm4 = vc.u32 %v698_v3, %v694_v1  ;;  %v693_v25 = vshrl.u32 %v689_v47, 16  ;;  %v719_v28 = vsel %vm718_vm5, 1, %v5962_v27 }
  0xca   : > { %vm583_vm2 = vcmp.lt.s32.totalorder %v582_v60, 0  ;;  %v584_v49 = vsub.s32 0, %v582_v60  ;;  %v701_v20 = vsel %vm700_vm4, 1, %v5962_v27  ;;  %v794_v29 = vshrl.u32 %v793_v57, 23 }
  0xcb   : > { %v703_v23 = vadd.s32 %v701_v20, %v699_v8  ;;  %v574_v9 = vadd.s32 %v6144_v4, %v6134_v61  ;;  %v721_v30 = vadd.s32 %v719_v28, %v713_v21  ;;  %v790_v32 = vand.u32 2147483647, %v6186_v59 }
  0xcc   : > { %v585_v6 = vsel %vm583_vm2, %v584_v49, %v582_v60  ;;  %vm722_vm7 = vc.u32 %v720_v24, %v716_v56  ;;  %v5688_v36 = vadd.s32 4294967169, %v794_v29  ;;  %v605_v41 = vsel %vm482_vm1, %v604_v16, %v580_v42 }
  0xcd   : > { %v586_v31 = vclz %v585_v6  ;;  %v704_v34 = vadd.s32 %v703_v23, %v693_v25  ;;  %v674_v44 = vsel %vm668_vm15, %v671_v11, %v673_v18  ;;  %v695_v45 = vshrl.u32 %v690_v54, 16 }
  0xce   : > { %v715_v46 = vshrl.u32 %v6183_v58, 16  ;;  %v723_v61 = vsel %vm722_vm7, 1, %v5962_v27  ;;  %v800_v4 = vadd.s32 1, %v5688_v36  ;;  %v607_v53 = vsel %vm6197_vm3, 0, %v605_v41 }
  0xcf   : > { %v5683_v22 = vadd.s32 4294967294, %v586_v31  ;;  %v725_v55 = vadd.s32 %v723_v61, %v721_v30  ;;  %v6219_v62 = vadd.s32 %v704_v34, %v695_v45  ;;  %v717_v49 = vshrl.u32 %v712_v12, 16 }
  0xd0   : > { %vm801_vm8 = vcmp.gt.s32.totalorder %v800_v4, 0  ;;  %v6221_v0 = vadd.s32 %v720_v24, %v716_v56  ;;  %v728_v58 = vmul.u32 %v6156_v15, %v674_v44  ;;  %v624_v2 = vadd.s32 3, %v607_v53 }
  0xd1   : > { %vm5684_vm6 = vcmp.lt.s32.totalorder %v5683_v22, 0  ;;  %v726_v63 = vadd.s32 %v725_v55, %v715_v46  ;;  %v802_v54 = vsel %vm801_vm8, %v800_v4, 0  ;;  %v797_v52 = vand.u32 8388607, %v790_v32 }
  0xd2   : > { %v589_v10 = vsel %vm5684_vm6, 0, %v5683_v22  ;;  %v804_v1 = vand.u32 31, %v802_v54  ;;  %vm730_vm9 = vc.u32 %v6219_v62, %v6221_v0  ;;  %v6233_v16 = vshrl.u32 %v802_v54, 5 }
  0xd3   : > { %v590_v38 = vsub.s32 32, %v589_v10  ;;  %v594_v40 = vsub.s32 4294967266, %v589_v10  ;;  %v591_v47 = vshll.u32 %v582_v60, %v589_v10  ;;  %v727_v3 = vadd.s32 %v726_v63, %v717_v49  ;;  %v410_v63 = vpop.f32.mrf.mxu0 }
  0xd4   : > { %v6228_v8 = vsub.s32 32, %v804_v1  ;;  %v810_v12 = vshll.u32 %v5957_v35, %v804_v1  ;;  %v813_v11 = vshll.u32 %v5958_v37, %v804_v1  ;;  %v816_v15 = vshll.u32 %v5959_v39, %v804_v1 }
  0xd5   : > { %v592_v48 = vshrl.u32 %v574_v9, %v590_v38  ;;  %v595_v51 = vadd.s32 127, %v594_v40  ;;  %v731_v31 = vadd.s32 1, %v727_v3  ;;  %v819_v21 = vshll.u32 %v5960_v43, %v804_v1 }
  0xd6   : > { %v811_v18 = vshrl.u32 %v5958_v37, %v6228_v8  ;;  %v814_v20 = vshrl.u32 %v5959_v39, %v6228_v8  ;;  %v817_v24 = vshrl.u32 %v5960_v43, %v6228_v8  ;;  %v820_v25 = vshrl.u32 %v5961_v50, %v6228_v8 }
  0xd7   : > { %v593_v42 = vor.u32 %v592_v48, %v591_v47  ;;  %v596_v5 = vshll.u32 %v595_v51, 23  ;;  %v732_v23 = vsel %vm730_vm9, %v731_v31, %v727_v3  ;;  %v798_v28 = vor.u32 8388608, %v797_v52 }
  0xd8   : > { %v733_v56 = vadd.s32 %v732_v23, %v728_v58  ;;  %v807_v29 = vshll.u32 %v5956_v33, %v804_v1  ;;  %v808_v9 = vshrl.u32 %v5957_v35, %v6228_v8  ;;  %v6247_v10 = vor.u32 %v811_v18, %v810_v12 }
  0xd9   : > { %v597_v60 = vor.u32 4788187, %v596_v5  ;;  %v600_v6 = vcvt.s32.f32 %v593_v42  ;;  %v6249_v34 = vor.u32 %v814_v20, %v813_v11  ;;  %v818_v36 = vor.u32 %v817_v24, %v816_v15 }
  0xda   : > { %v734_v38 = vadd.s32 536870912, %v733_v56  ;;  %v821_v40 = vor.u32 %v820_v25, %v819_v21  ;;  %vm822_vm10 = vcmp.lt.s32.totalorder %v6233_v16, 1  ;;  %vm825_vm11 = vcmp.lt.s32.totalorder %v6233_v16, 4 }
  0xdb   : > { %v598_v57 = vand.u32 2147483647, %v597_v60  ;;  %v6262_v46 = vor.u32 %v808_v9, %v807_v29  ;;  %vm824_vm12 = vcmp.lt.s32.totalorder %v6233_v16, 3  ;;  %v831_v4 = vsel %vm825_vm11, %v818_v36, 920167782 }
  0xdc   : > { %v6260_v45 = vshrl.u32 %v734_v38, 30  ;;  %v834_v47 = vsel %vm822_vm10, %v6247_v10, %v6249_v34  ;;  %v6273_v13 = vshll.u32 %v798_v28, 8  ;;  %v6276_v48 = vadd.f32 %v6066_v17, %v407_v14 }
  0xdd   : > { %v601_v22 = vmul.f32 %v600_v6, %v598_v57  ;;  %v6278_v51 = vand.u32 3, %v624_v2  ;;  %v835_v53 = vsel %vm825_vm11, %v821_v40, 1326507024  ;;  %vm823_vm13 = vcmp.lt.s32.totalorder %v6233_v16, 2 }
  0xde   : > { %v736_v55 = vshll.u32 %v6260_v45, 30  ;;  %v836_v5 = vsel %vm824_vm12, %v818_v36, %v835_v53  ;;  %v830_v58 = vsel %vm822_vm10, %v6262_v46, %v6247_v10  ;;  %v832_v1 = vsel %vm824_vm12, %v6249_v34, %v831_v4 }
  0xdf   : > { %v602_v30 = vxor.u32 2147483648, %v601_v22  ;;  %v837_v60 = vsel %vm823_vm13, %v834_v47, %v836_v5  ;;  %v839_v52 = vand.u32 65535, %v6273_v13  ;;  %v840_v57 = vshrl.u32 %v6273_v13, 16 }
  0xe0   : > { %v6286_v54 = vsub.s32 %v733_v56, %v736_v55  ;;  %v841_v6 = vand.u32 65535, %v837_v60  ;;  %v842_v31 = vshrl.u32 %v837_v60, 16  ;;  %v6302_v11 = vadd.f32 %v6066_v17, %v410_v63 }
  0xe1   : > { %v603_v41 = vsel %vm482_vm1, %v602_v30, %v601_v22  ;;  %v833_v18 = vsel %vm823_vm13, %v830_v58, %v832_v1  ;;  %v945_v23 = vand.u32 2147483647, %v6276_v48  ;;  %v729_v56 = vadd.s32 %v6221_v0, %v6219_v62 }
  0xe2   : > { %v6258_v44 = vsel %vm6197_vm3, %v6069_v19, %v603_v41  ;;  %vm738_vm14 = vcmp.lt.s32.totalorder %v6286_v54, 0  ;;  %v739_v12 = vsub.s32 0, %v6286_v54  ;;  %v844_v21 = vmul.u32 %v842_v31, %v839_v52 }
  0xe3   : > { %v608_v61 = vmul.f32 %v6258_v44, %v6258_v44  ;;  %v6307_v22 = vmul.u32 %v841_v6, %v840_v57  ;;  %vm627_vm15 = vcmp.eq.s32.totalorder %v6278_v51, 0  ;;  %vm630_vm0 = vcmp.eq.s32.totalorder %v6278_v51, 2 }
  0xe4   : > { %v740_v20 = vsel %vm738_vm14, %v739_v12, %v6286_v54  ;;  %v806_v17 = vshrl.u32 %v5956_v33, %v6228_v8  ;;  %v843_v29 = vmul.u32 %v841_v6, %v839_v52  ;;  %v847_v9 = vshll.u32 %v844_v21, 16 }
  0xe5   : > { %v609_v49 = vmul.f32 -0.001358992, %v608_v61  ;;  %v616_v42 = vmul.f32 -0.00019511016, %v608_v61  ;;  %v741_v28 = vclz %v740_v20  ;;  %v864_v30 = vshrl.u32 %v833_v18, 16 }
  0xe6   : > { %vm626_vm1 = vcmp.lt.s32.totalorder %v6278_v51, 2  ;;  %v863_v41 = vand.u32 65535, %v833_v18  ;;  %vm623_vm2 = vweird.f32 %v6069_v19  ;;  %v846_v62 = vmul.u32 %v842_v31, %v840_v57 }
  0xe7   : > { %v610_v2 = vadd.f32 0.041655596, %v609_v49  ;;  %v617_v3 = vadd.f32 0.008332121, %v616_v42  ;;  %v5686_v40 = vadd.s32 4294967294, %v741_v28  ;;  %v849_v0 = vshll.u32 %v6307_v22, 16 }
  0xe8   : > { %vm851_vm3 = vc.u32 %v843_v29, %v847_v9  ;;  %v853_v4 = vadd.s32 %v847_v9, %v843_v29  ;;  %v866_v49 = vmul.u32 %v864_v30, %v839_v52  ;;  %v827_v58 = vsel %vm825_vm11, %v6249_v34, 2102212464 }
  0xe9   : > { %v611_v15 = vmul.f32 %v610_v2, %v608_v61  ;;  %v618_v14 = vmul.f32 %v617_v3, %v608_v61  ;;  %vm5687_vm4 = vcmp.lt.s32.totalorder %v5686_v40, 0  ;;  %v852_v55 = vsel %vm851_vm3, 1, %v5962_v27 }
  0xea   : > { %v744_v53 = vsel %vm5687_vm4, 0, %v5686_v40  ;;  %vm855_vm5 = vc.u32 %v853_v4, %v849_v0  ;;  %vm637_vm6 = vcmp.lt.s32.totalorder %v6074_v26, 0  ;;  %v848_v60 = vshrl.u32 %v844_v21, 16 }
  0xeb   : > { %v612_v24 = vadd.f32 -0.4999988, %v611_v15  ;;  %v619_v25 = vadd.f32 -0.16666654, %v618_v14  ;;  %v745_v63 = vsub.s32 32, %v744_v53  ;;  %v749_v1 = vsub.s32 4294967266, %v744_v53 }
  0xec   : > { %v856_v2 = vsel %vm855_vm5, 1, %v5962_v27  ;;  %v867_v3 = vmul.u32 %v863_v41, %v840_v57  ;;  %v746_v12 = vshll.u32 %v6286_v54, %v744_v53  ;;  %v865_v14 = vmul.u32 %v863_v41, %v839_v52 }
  0xed   : > { %v613_v36 = vmul.f32 %v612_v24, %v608_v61  ;;  %v620_v38 = vmul.f32 %v619_v25, %v608_v61  ;;  %v854_v61 = vadd.s32 %v852_v55, %v846_v62  ;;  %v747_v31 = vshrl.u32 %v729_v56, %v745_v63 }
  0xee   : > { %v750_v15 = vadd.s32 127, %v749_v1  ;;  %v868_v18 = vmul.u32 %v864_v30, %v840_v57  ;;  %v869_v20 = vshll.u32 %v866_v49, 16  ;;  %v871_v21 = vshll.u32 %v867_v3, 16 }
  0xef   : > { %v614_v47 = vadd.f32 1.0, %v613_v36  ;;  %v621_v8 = vadd.f32 1.0, %v620_v38  ;;  %v748_v25 = vor.u32 %v747_v31, %v746_v12  ;;  %v759_v52 = vsub.s32 4, %v6260_v45 }
  0xf0   : > { %v751_v29 = vshll.u32 %v750_v15, 23  ;;  %vm873_vm7 = vc.u32 %v865_v14, %v869_v20  ;;  %v875_v54 = vadd.s32 %v869_v20, %v865_v14  ;;  %v826_v36 = vsel %vm822_vm10, %v806_v17, %v6262_v46 }
  0xf1   : > { %v622_v42 = vmul.f32 %v621_v8, %v6258_v44  ;;  %v631_v5 = vxor.u32 2147483648, %v614_v47  ;;  %v858_v44 = vadd.s32 %v856_v2, %v854_v61  ;;  %v874_v9 = vsel %vm873_vm7, 1, %v5962_v27 }
  0xf2   : > { %v752_v30 = vor.u32 4788187, %v751_v29  ;;  %v876_v38 = vadd.s32 %v874_v9, %v868_v18  ;;  %vm877_vm8 = vc.u32 %v875_v54, %v871_v21  ;;  %v828_v19 = vsel %vm824_vm12, %v6247_v10, %v827_v58 }
  0xf3   : > { %v628_v6 = vxor.u32 2147483648, %v622_v42  ;;  %v632_v24 = vsel %vm630_vm0, %v631_v5, %v622_v42  ;;  %v859_v57 = vadd.s32 %v858_v44, %v848_v60  ;;  %v850_v51 = vshrl.u32 %v6307_v22, 16 }
  0xf4   : > { %v878_v40 = vsel %vm877_vm8, 1, %v5962_v27  ;;  %v948_v41 = vand.u32 2139095040, %v6276_v48  ;;  %v753_v62 = vand.u32 2147483647, %v752_v30  ;;  %v755_v0 = vcvt.s32.f32 %v748_v25 }
  0xf5   : > { %v629_v34 = vsel %vm627_vm15, %v614_v47, %v628_v6  ;;  %v870_v4 = vshrl.u32 %v866_v49, 16  ;;  %v880_v46 = vadd.s32 %v878_v40, %v876_v38  ;;  %v760_v17 = vsel %vm637_vm6, %v759_v52, %v6260_v45 }
  0xf6   : > { %v633_v28 = vsel %vm626_vm1, %v629_v34, %v632_v24  ;;  %v860_v47 = vadd.s32 %v859_v57, %v850_v51  ;;  %v949_v8 = vshrl.u32 %v948_v41, 23  ;;  %v952_v55 = vand.u32 8388607, %v945_v23 }
  0xf7   : > { %v634_v56 = vsel %vm623_vm2, nan, %v633_v28  ;;  %v756_v10 = vmul.f32 %v755_v0, %v753_v62  ;;  %v872_v53 = vshrl.u32 %v867_v3, 16  ;;  %v881_v22 = vadd.s32 %v880_v46, %v870_v4 }
  0xf8   : > { %5440 = vst [vmem:[%s6343_s10] sm:$0xff] %v634_v56  ;;  %v1103_v61 = vand.u32 2139095040, %v6302_v11  ;;  %vm636_vm9 = vcmp.le.f32.partialorder %v635_v7, 0.7853982  ;;  %v829_v49 = vsel %vm823_vm13, %v826_v36, %v828_v19  ;;  %v879_v42 = vadd.s32 %v875_v54, %v871_v21 }
  0xf9   : > { %v5691_v5 = vadd.s32 4294967169, %v949_v8  ;;  %v757_v63 = vxor.u32 2147483648, %v756_v10  ;;  %v762_v45 = vsel %vm636_vm9, 0, %v760_v17  ;;  %v882_v58 = vadd.s32 %v881_v22, %v872_v53 }
  0xfa   : > { %v953_v1 = vor.u32 8388608, %v952_v55  ;;  %vm885_vm10 = vc.u32 %v860_v47, %v879_v42  ;;  %v1104_v2 = vshrl.u32 %v1103_v61, 23  ;;  %v779_v7 = vadd.s32 3, %v762_v45 }
  0xfb   : > { %v955_v60 = vadd.s32 1, %v5691_v5  ;;  %v758_v3 = vsel %vm637_vm6, %v757_v63, %v756_v10  ;;  %v886_v6 = vadd.s32 1, %v882_v58  ;;  %v883_v16 = vmul.u32 %v6273_v13, %v829_v49 }
  0xfc   : > { %v6365_v12 = vsel %vm636_vm9, %v6074_v26, %v758_v3  ;;  %v6370_v14 = vshll.u32 %v953_v1, 8  ;;  %v5694_v34 = vadd.s32 4294967169, %v1104_v2  ;;  %v6372_v21 = vand.u32 3, %v779_v7 }
  0xfd   : > { %vm956_vm11 = vcmp.gt.s32.totalorder %v955_v60, 0  ;;  %v763_v31 = vmul.f32 %v6365_v12, %v6365_v12  ;;  %v887_v44 = vsel %vm885_vm10, %v886_v6, %v882_v58  ;;  %v1100_v54 = vand.u32 2147483647, %v6302_v11 }
  0xfe   : > { %v957_v15 = vsel %vm956_vm11, %v955_v60, 0  ;;  %v888_v18 = vadd.s32 %v887_v44, %v883_v16  ;;  %v6375_v52 = vadd.s32 %v879_v42, %v860_v47  ;;  %v6378_v57 = vand.u32 65535, %v6370_v14 }
  0xff   : > { %v959_v20 = vand.u32 31, %v957_v15  ;;  %v764_v24 = vmul.f32 -0.001358992, %v763_v31  ;;  %v771_v25 = vmul.f32 -0.00019511016, %v763_v31  ;;  %v6380_v30 = vshrl.u32 %v957_v15, 5 }
 0x100   : > { %v889_v28 = vadd.s32 536870912, %v888_v18  ;;  %v6383_v36 = vshrl.u32 %v6370_v14, 16  ;;  %v6385_v38 = vadd.s32 1, %v5694_v34  ;;  %vm792_vm12 = vcmp.lt.s32.totalorder %v6186_v59, 0 }
 0x101   : > { %v960_v29 = vsub.s32 32, %v959_v20  ;;  %v765_v13 = vadd.f32 0.041655596, %v764_v24  ;;  %v772_v56 = vadd.f32 0.008332121, %v771_v25  ;;  %v962_v40 = vshll.u32 %v5956_v33, %v959_v20 }
 0x102   : > { %v890_v9 = vshrl.u32 %v889_v28, 30  ;;  %vm785_vm13 = vcmp.eq.s32.totalorder %v6372_v21, 2  ;;  %v965_v4 = vshll.u32 %v5957_v35, %v959_v20  ;;  %v968_v46 = vshll.u32 %v5958_v37, %v959_v20 }
 0x103   : > { %v766_v19 = vmul.f32 %v765_v13, %v763_v31  ;;  %v773_v51 = vmul.f32 %v772_v56, %v763_v31  ;;  %v969_v41 = vshrl.u32 %v5959_v39, %v960_v29  ;;  %v963_v0 = vshrl.u32 %v5957_v35, %v960_v29 }
 0x104   : > { %v891_v62 = vshll.u32 %v890_v9, 30  ;;  %v966_v8 = vshrl.u32 %v5958_v37, %v960_v29  ;;  %v972_v55 = vshrl.u32 %v5960_v43, %v960_v29  ;;  %vm782_vm14 = vcmp.eq.s32.totalorder %v6372_v21, 0 }
 0x105   : > { %v767_v17 = vadd.f32 -0.4999988, %v766_v19  ;;  %v774_v47 = vadd.f32 -0.16666654, %v773_v51  ;;  %v961_v53 = vshrl.u32 %v5956_v33, %v960_v29  ;;  %v971_v22 = vshll.u32 %v5959_v39, %v959_v20 }
 0x106   : > { %v6397_v10 = vsub.s32 %v888_v18, %v891_v62  ;;  %v975_v61 = vshrl.u32 %v5961_v50, %v960_v29  ;;  %vm781_vm15 = vcmp.lt.s32.totalorder %v6372_v21, 2  ;;  %v914_v5 = vsub.s32 4, %v890_v9 }
 0x107   : > { %v768_v49 = vmul.f32 %v767_v17, %v763_v31  ;;  %v775_v42 = vmul.f32 %v774_v47, %v763_v31  ;;  %v970_v63 = vor.u32 %v969_v41, %v968_v46  ;;  %vm778_vm0 = vweird.f32 %v6074_v26 }
 0x108   : > { %vm6406_vm1 = vcmp.le.f32.partialorder %v790_v32, 0.7853982  ;;  %vm893_vm2 = vcmp.lt.s32.totalorder %v6397_v10, 0  ;;  %v894_v58 = vsub.s32 0, %v6397_v10  ;;  %v964_v1 = vor.u32 %v963_v0, %v962_v40 }
 0x109   : > { %v974_v60 = vshll.u32 %v5960_v43, %v959_v20  ;;  %v769_v2 = vadd.f32 1.0, %v768_v49  ;;  %v776_v3 = vadd.f32 1.0, %v775_v42  ;;  %v967_v6 = vor.u32 %v966_v8, %v965_v4 }
 0x10a   : > { %v973_v7 = vor.u32 %v972_v55, %v971_v22  ;;  %v895_v16 = vsel %vm893_vm2, %v894_v58, %v6397_v10  ;;  %vm977_vm3 = vcmp.lt.s32.totalorder %v6380_v30, 1  ;;  %vm980_vm4 = vcmp.lt.s32.totalorder %v6380_v30, 4 }
 0x10b   : > { %v976_v31 = vor.u32 %v975_v61, %v974_v60  ;;  %v777_v32 = vmul.f32 %v776_v3, %v6365_v12  ;;  %v786_v44 = vxor.u32 2147483648, %v769_v2  ;;  %v896_v15 = vclz %v895_v16 }
 0x10c   : > { %v982_v18 = vsel %vm980_vm4, %v970_v63, 2102212464  ;;  %vm1111_vm5 = vcmp.gt.s32.totalorder %v6385_v38, 0  ;;  %v915_v20 = vsel %vm792_vm12, %v914_v5, %v890_v9  ;;  %vm978_vm6 = vcmp.lt.s32.totalorder %v6380_v30, 2 }
 0x10d   : > { %vm979_vm7 = vcmp.lt.s32.totalorder %v6380_v30, 3  ;;  %v981_v34 = vsel %vm977_vm3, %v961_v53, %v964_v1  ;;  %v783_v24 = vxor.u32 2147483648, %v777_v32  ;;  %v787_v12 = vsel %vm785_vm13, %v786_v44, %v777_v32 }
 0x10e   : > { %v5689_v25 = vadd.s32 4294967294, %v896_v15  ;;  %v983_v28 = vsel %vm979_vm7, %v967_v6, %v982_v18  ;;  %v985_v29 = vsel %vm977_vm3, %v964_v1, %v967_v6  ;;  %v986_v13 = vsel %vm980_vm4, %v973_v7, 920167782 }
 0x10f   : > { %v989_v56 = vsel %vm977_vm3, %v967_v6, %v970_v63  ;;  %v990_v9 = vsel %vm980_vm4, %v976_v31, 1326507024  ;;  %v784_v19 = vsel %vm782_vm14, %v769_v2, %v783_v24  ;;  %v987_v51 = vsel %vm979_vm7, %v970_v63, %v986_v13 }
 0x110   : > { %vm5690_vm8 = vcmp.lt.s32.totalorder %v5689_v25, 0  ;;  %v991_v40 = vsel %vm979_vm7, %v973_v7, %v990_v9  ;;  %v788_v41 = vsel %vm781_vm15, %v784_v19, %v787_v12  ;;  %v988_v0 = vsel %vm978_vm6, %v985_v29, %v987_v51 }
 0x111   : > { %v899_v62 = vsel %vm5690_vm8, 0, %v5689_v25  ;;  %v992_v4 = vsel %vm978_vm6, %v989_v56, %v991_v40  ;;  %v789_v46 = vsel %vm778_vm0, nan, %v788_v41  ;;  %v917_v8 = vsel %vm6406_vm1, 0, %v915_v20 }
 0x112   : > { %v900_v17 = vsub.s32 32, %v899_v62  ;;  %v904_v47 = vsub.s32 4294967266, %v899_v62  ;;  %v6450_v55 = vsel %vm978_vm6, %v981_v34, %v983_v28  ;;  %v996_v21 = vand.u32 65535, %v992_v4  ;;  %5441 = vst [vmem:[%s6343_s10 + $0x8] sm:$0xff] %v789_v46 }
 0x113   : > { %v997_v53 = vshrl.u32 %v992_v4, 16  ;;  %v1019_v22 = vshrl.u32 %v988_v0, 16  ;;  %v901_v61 = vshll.u32 %v6397_v10, %v899_v62  ;;  %v1018_v26 = vand.u32 65535, %v988_v0 }
 0x114   : > { %v902_v49 = vshrl.u32 %v6375_v52, %v900_v17  ;;  %v905_v42 = vadd.s32 127, %v904_v47  ;;  %v6455_v5 = vadd.s32 3, %v917_v8  ;;  %v1000_v58 = vmul.u32 %v996_v21, %v6383_v36 }
 0x115   : > { %v999_v63 = vmul.u32 %v997_v53, %v6378_v57  ;;  %v6461_v30 = vand.u32 8388607, %v1100_v54  ;;  %v1021_v2 = vmul.u32 %v1019_v22, %v6378_v57  ;;  %v1038_v10 = vmul.u32 %v6370_v14, %v6450_v55 }
 0x116   : > { %v903_v1 = vor.u32 %v902_v49, %v901_v61  ;;  %v906_v60 = vshll.u32 %v905_v42, 23  ;;  %v998_v52 = vmul.u32 %v996_v21, %v6378_v57  ;;  %v1001_v3 = vmul.u32 %v997_v53, %v6383_v36 }
 0x117   : > { %v1002_v6 = vshll.u32 %v999_v63, 16  ;;  %v1112_v7 = vsel %vm1111_vm5, %v6385_v38, 0  ;;  %v1004_v31 = vshll.u32 %v1000_v58, 16  ;;  %v1020_v32 = vmul.u32 %v1018_v26, %v6378_v57 }
 0x118   : > { %v907_v16 = vor.u32 4788187, %v906_v60  ;;  %v1022_v44 = vmul.u32 %v1018_v26, %v6383_v36  ;;  %v910_v15 = vcvt.s32.f32 %v903_v1  ;;  %v1024_v20 = vshll.u32 %v1021_v2, 16 }
 0x119   : > { %vm1006_vm9 = vc.u32 %v998_v52, %v1002_v6  ;;  %v1008_v18 = vadd.s32 %v1002_v6, %v998_v52  ;;  %v1023_v12 = vmul.u32 %v1019_v22, %v6383_v36  ;;  %v1003_v13 = vshrl.u32 %v999_v63, 16 }
 0x11a   : > { %v908_v34 = vand.u32 2147483647, %v907_v16  ;;  %v1007_v24 = vsel %vm1006_vm9, 1, %v5962_v27  ;;  %v1026_v25 = vshll.u32 %v1022_v44, 16  ;;  %vm1028_vm11 = vc.u32 %v1020_v32, %v1024_v20 }
 0x11b   : > { %v1009_v28 = vadd.s32 %v1007_v24, %v1001_v3  ;;  %vm1010_vm10 = vc.u32 %v1008_v18, %v1004_v31  ;;  %v1030_v38 = vadd.s32 %v1024_v20, %v1020_v32  ;;  %v1029_v56 = vsel %vm1028_vm11, 1, %v5962_v27 }
 0x11c   : > { %v911_v29 = vmul.f32 %v910_v15, %v908_v34  ;;  %v1011_v57 = vsel %vm1010_vm10, 1, %v5962_v27  ;;  %v1005_v9 = vshrl.u32 %v1000_v58, 16  ;;  %v1031_v51 = vadd.s32 %v1029_v56, %v1023_v12 }
 0x11d   : > { %v1013_v19 = vadd.s32 %v1011_v57, %v1009_v28  ;;  %vm1032_vm13 = vc.u32 %v1030_v38, %v1026_v25  ;;  %v6478_v62 = vshrl.u32 %v1112_v7, 5  ;;  %v1114_v36 = vand.u32 31, %v1112_v7 }
 0x11e   : > { %v912_v40 = vxor.u32 2147483648, %v911_v29  ;;  %v1033_v41 = vsel %vm1032_vm13, 1, %v5962_v27  ;;  %v1025_v4 = vshrl.u32 %v1021_v2, 16  ;;  %v1027_v46 = vshrl.u32 %v1022_v44, 16 }
 0x11f   : > { %v1014_v0 = vadd.s32 %v1013_v19, %v1003_v13  ;;  %v1035_v17 = vadd.s32 %v1033_v41, %v1031_v51  ;;  %v6482_v8 = vadd.s32 %v1030_v38, %v1026_v25  ;;  %v6484_v21 = vsub.s32 32, %v1114_v36 }
 0x120   : > { %v913_v47 = vsel %vm792_vm12, %v912_v40, %v911_v29  ;;  %v1117_v53 = vshll.u32 %v5956_v33, %v1114_v36  ;;  %v1120_v42 = vshll.u32 %v5957_v35, %v1114_v36  ;;  %vm1132_vm12 = vcmp.lt.s32.totalorder %v6478_v62, 1 }
 0x121   : > { %v916_v22 = vsel %vm6406_vm1, %v6186_v59, %v913_v47  ;;  %v6490_v61 = vadd.s32 %v1014_v0, %v1005_v9  ;;  %v1036_v49 = vadd.s32 %v1035_v17, %v1025_v4  ;;  %v1118_v63 = vshrl.u32 %v5957_v35, %v6484_v21 }
 0x122   : > { %v918_v26 = vmul.f32 %v916_v22, %v916_v22  ;;  %v1121_v58 = vshrl.u32 %v5958_v37, %v6484_v21  ;;  %v1123_v60 = vshll.u32 %v5958_v37, %v1114_v36  ;;  %v1124_v45 = vshrl.u32 %v5959_v39, %v6484_v21 }
 0x123   : > { %v1037_v1 = vadd.s32 %v1036_v49, %v1027_v46  ;;  %vm1134_vm14 = vcmp.lt.s32.totalorder %v6478_v62, 3  ;;  %vm1040_vm15 = vc.u32 %v6490_v61, %v6482_v8  ;;  %v6504_v3 = vor.u32 %v1118_v63, %v1117_v53  ;;  %v6550_v53 = vld [vmem:[%s9896_s2] ss:$0 sm:$0xff] }
 0x124   : > { %v919_v2 = vmul.f32 -0.001358992, %v918_v26  ;;  %v926_v52 = vmul.f32 -0.00019511016, %v918_v26  ;;  %v6506_v7 = vor.u32 %v1121_v58, %v1120_v42  ;;  %v1126_v16 = vshll.u32 %v5959_v39, %v1114_v36 }
 0x125   : > { %v1041_v6 = vadd.s32 1, %v1037_v1  ;;  %v1127_v31 = vshrl.u32 %v5960_v43, %v6484_v21  ;;  %v1129_v15 = vshll.u32 %v5960_v43, %v1114_v36  ;;  %v1130_v18 = vshrl.u32 %v5961_v50, %v6484_v21 }
 0x126   : > { %v920_v32 = vadd.f32 0.041655596, %v919_v2  ;;  %v927_v44 = vadd.f32 0.008332121, %v926_v52  ;;  %v6514_v34 = vor.u32 %v1124_v45, %v1123_v60  ;;  %vm1135_vm0 = vcmp.lt.s32.totalorder %v6478_v62, 4 }
 0x127   : > { %v1042_v20 = vsel %vm1040_vm15, %v1041_v6, %v1037_v1  ;;  %v1128_v24 = vor.u32 %v1127_v31, %v1126_v16  ;;  %v1131_v38 = vor.u32 %v1130_v18, %v1129_v15  ;;  %v1108_v29 = vor.u32 8388608, %v6461_v30 }
 0x128   : > { %v921_v12 = vmul.f32 %v920_v32, %v918_v26  ;;  %v928_v25 = vmul.f32 %v927_v44, %v918_v26  ;;  %v1043_v28 = vadd.s32 %v1042_v20, %v1038_v10  ;;  %v1140_v13 = vsel %vm1132_vm12, %v6504_v3, %v6506_v7  ;;  %v412_v10 = vpop.f32.mrf.mxu0 }
 0x129   : > { %v1141_v57 = vsel %vm1135_vm0, %v1128_v24, 920167782  ;;  %v935_v19 = vand.u32 3, %v6455_v5  ;;  %vm1133_vm1 = vcmp.lt.s32.totalorder %v6478_v62, 2  ;;  %v1144_v55 = vsel %vm1132_vm12, %v6506_v7, %v6514_v34 }
 0x12a   : > { %v922_v56 = vadd.f32 -0.4999988, %v921_v12  ;;  %v929_v9 = vadd.f32 -0.16666654, %v928_v25  ;;  %v1044_v51 = vadd.s32 536870912, %v1043_v28  ;;  %v1142_v14 = vsel %vm1134_vm14, %v6514_v34, %v1141_v57 }
 0x12b   : > { %v1145_v30 = vsel %vm1135_vm0, %v1131_v38, 1326507024  ;;  %v1143_v5 = vsel %vm1133_vm1, %v1140_v13, %v1142_v14  ;;  %v6544_v4 = vshll.u32 %v1108_v29, 8  ;;  %v6553_v49 = vadd.f32 %v6550_v53, %v412_v10 }
 0x12c   : > { %v923_v40 = vmul.f32 %v922_v56, %v918_v26  ;;  %v930_v41 = vmul.f32 %v929_v9, %v918_v26  ;;  %v6538_v36 = vshrl.u32 %v1044_v51, 30  ;;  %v1146_v0 = vsel %vm1134_vm14, %v1128_v24, %v1145_v30 }
 0x12d   : > { %v1147_v42 = vsel %vm1133_vm1, %v1144_v55, %v1146_v0  ;;  %v1174_v26 = vshrl.u32 %v1143_v5, 16  ;;  %vm936_vm2 = vcmp.lt.s32.totalorder %v935_v19, 2  ;;  %vm937_vm3 = vcmp.eq.s32.totalorder %v935_v19, 0 }
 0x12e   : > { %v924_v46 = vadd.f32 1.0, %v923_v40  ;;  %v931_v17 = vadd.f32 1.0, %v930_v41  ;;  %v1046_v47 = vshll.u32 %v6538_v36, 30  ;;  %v1149_v60 = vand.u32 65535, %v6544_v4 }
 0x12f   : > { %v1151_v45 = vand.u32 65535, %v1147_v42  ;;  %v1152_v2 = vshrl.u32 %v1147_v42, 16  ;;  %v1150_v16 = vshrl.u32 %v6544_v4, 16  ;;  %vm940_vm5 = vcmp.eq.s32.totalorder %v935_v19, 2 }
 0x130   : > { %v932_v63 = vmul.f32 %v931_v17, %v916_v22  ;;  %v941_v58 = vxor.u32 2147483648, %v924_v46  ;;  %v1047_v1 = vsub.s32 %v1043_v28, %v1046_v47  ;;  %v1173_v32 = vand.u32 65535, %v1143_v5 }
 0x131   : > { %v1154_v31 = vmul.u32 %v1152_v2, %v1149_v60  ;;  %v1176_v44 = vmul.u32 %v1174_v26, %v1149_v60  ;;  %v1155_v20 = vmul.u32 %v1151_v45, %v1150_v16  ;;  %vm933_vm6 = vweird.f32 %v6186_v59 }
 0x132   : > { %v938_v52 = vxor.u32 2147483648, %v932_v63  ;;  %vm1048_vm4 = vcmp.lt.s32.totalorder %v1047_v1, 0  ;;  %v1049_v6 = vsub.s32 0, %v1047_v1  ;;  %v942_v22 = vsel %vm940_vm5, %v941_v58, %v932_v63 }
 0x133   : > { %v1157_v25 = vshll.u32 %v1154_v31, 16  ;;  %v1039_v38 = vadd.s32 %v6482_v8, %v6490_v61  ;;  %v1116_v29 = vshrl.u32 %v5956_v33, %v6484_v21  ;;  %v1153_v13 = vmul.u32 %v1151_v45, %v1149_v60 }
 0x134   : > { %v939_v15 = vsel %vm937_vm3, %v924_v46, %v938_v52  ;;  %v1050_v18 = vsel %vm1048_vm4, %v1049_v6, %v1047_v1  ;;  %v1156_v56 = vmul.u32 %v1152_v2, %v1150_v16  ;;  %v1175_v9 = vmul.u32 %v1173_v32, %v1149_v60  ;;  %v415_v52 = vpop.f32.mrf.mxu0 }
 0x135   : > { %v943_v24 = vsel %vm936_vm2, %v939_v15, %v942_v22  ;;  %v1051_v12 = vclz %v1050_v18  ;;  %v1177_v51 = vmul.u32 %v1173_v32, %v1150_v16  ;;  %vm947_vm7 = vcmp.lt.s32.totalorder %v6276_v48, 0 }
 0x136   : > { %v944_v28 = vsel %vm933_vm6, nan, %v943_v24  ;;  %v1159_v59 = vshll.u32 %v1155_v20, 16  ;;  %vm1161_vm8 = vc.u32 %v1153_v13, %v1157_v25  ;;  %v1163_v19 = vadd.s32 %v1157_v25, %v1153_v13 }
 0x137   : > { %v5692_v57 = vadd.s32 4294967294, %v1051_v12  ;;  %5442 = vst [vmem:[%s6343_s10 + $0x10] sm:$0xff] %v944_v28  ;;  %v1179_v14 = vshll.u32 %v1176_v44, 16  ;;  %v1069_v55 = vsub.s32 4, %v6538_v36  ;;  %v1162_v8 = vsel %vm1161_vm8, 1, %v5962_v27 }
 0x138   : > { %v1178_v61 = vmul.u32 %v1174_v26, %v1150_v16  ;;  %v1164_v21 = vadd.s32 %v1162_v8, %v1156_v56  ;;  %vm1165_vm10 = vc.u32 %v1163_v19, %v1159_v59  ;;  %v1158_v41 = vshrl.u32 %v1154_v31, 16 }
 0x139   : > { %vm5693_vm9 = vcmp.lt.s32.totalorder %v5692_v57, 0  ;;  %vm1183_vm11 = vc.u32 %v1175_v9, %v1179_v14  ;;  %v1166_v5 = vsel %vm1165_vm10, 1, %v5962_v27  ;;  %v1181_v46 = vshll.u32 %v1177_v51, 16 }
 0x13a   : > { %v1054_v30 = vsel %vm5693_vm9, 0, %v5692_v57  ;;  %v1168_v0 = vadd.s32 %v1166_v5, %v1164_v21  ;;  %v1184_v17 = vsel %vm1183_vm11, 1, %v5962_v27  ;;  %v1185_v47 = vadd.s32 %v1179_v14, %v1175_v9 }
 0x13b   : > { %v1055_v10 = vsub.s32 32, %v1054_v30  ;;  %v1059_v40 = vsub.s32 4294967266, %v1054_v30  ;;  %v1056_v42 = vshll.u32 %v1047_v1, %v1054_v30  ;;  %v1186_v60 = vadd.s32 %v1184_v17, %v1178_v61  ;;  %v420_v61 = vpop.f32.mrf.mxu1 }
 0x13c   : > { %v1137_v26 = vsel %vm1135_vm0, %v6514_v34, 2102212464  ;;  %v1169_v45 = vadd.s32 %v1168_v0, %v1158_v41  ;;  %vm1187_vm13 = vc.u32 %v1185_v47, %v1181_v46  ;;  %v1255_v2 = vand.u32 2147483647, %v6553_v49  ;;  %v417_v21 = vpop.f32.mrf.mxu0 }
 0x13d   : > { %v1057_v63 = vshrl.u32 %v1039_v38, %v1055_v10  ;;  %v1060_v58 = vadd.s32 127, %v1059_v40  ;;  %v1160_v31 = vshrl.u32 %v1155_v20, 16  ;;  %v1188_v32 = vsel %vm1187_vm13, 1, %v5962_v27 }
 0x13e   : > { %v1136_v1 = vsel %vm1132_vm12, %v1116_v29, %v6504_v3  ;;  %v1180_v15 = vshrl.u32 %v1176_v44, 16  ;;  %v1190_v22 = vadd.s32 %v1188_v32, %v1186_v60  ;;  %v1258_v18 = vand.u32 2139095040, %v6553_v49 }
 0x13f   : > { %v1058_v6 = vor.u32 %v1057_v63, %v1056_v42  ;;  %v1061_v16 = vshll.u32 %v1060_v58, 23  ;;  %v1070_v34 = vsel %vm947_vm7, %v1069_v55, %v6538_v36  ;;  %v1138_v12 = vsel %vm1134_vm14, %v6506_v7, %v1137_v26 }
 0x140   : > { %v1170_v20 = vadd.s32 %v1169_v45, %v1160_v31  ;;  %v1182_v25 = vshrl.u32 %v1177_v51, 16  ;;  %v1191_v28 = vadd.s32 %v1190_v22, %v1180_v15  ;;  %v1259_v38 = vshrl.u32 %v1258_v18, 23 }
 0x141   : > { %v1062_v24 = vor.u32 4788187, %v1061_v16  ;;  %v1262_v3 = vand.u32 8388607, %v1255_v2  ;;  %v1065_v29 = vcvt.s32.f32 %v1058_v6  ;;  %v1189_v13 = vadd.s32 %v1185_v47, %v1181_v46 }
 0x142   : > { %vm6590_vm12 = vcmp.le.f32.partialorder %v945_v23, 0.7853982  ;;  %v1139_v36 = vsel %vm1133_vm1, %v1136_v1, %v1138_v12  ;;  %v1192_v7 = vadd.s32 %v1191_v28, %v1182_v25  ;;  %v5697_v56 = vadd.s32 4294967169, %v1259_v38 }
 0x143   : > { %v1063_v44 = vand.u32 2147483647, %v1062_v24  ;;  %v1072_v51 = vsel %vm6590_vm12, 0, %v1070_v34  ;;  %vm1195_vm14 = vc.u32 %v1170_v20, %v1189_v13  ;;  %v6599_v59 = vadd.f32 %v6550_v53, %v415_v52 }
 0x144   : > { %v1196_v19 = vadd.s32 1, %v1192_v7  ;;  %v1263_v14 = vor.u32 8388608, %v1262_v3  ;;  %v1265_v55 = vadd.s32 1, %v5697_v56  ;;  %v1193_v8 = vmul.u32 %v6544_v4, %v1139_v36 }
 0x145   : > { %v1066_v9 = vmul.f32 %v1065_v29, %v1063_v44  ;;  %v1089_v30 = vadd.s32 3, %v1072_v51  ;;  %v1410_v5 = vand.u32 2147483647, %v6599_v59  ;;  %v1413_v4 = vand.u32 2139095040, %v6599_v59 }
 0x146   : > { %v1197_v62 = vsel %vm1195_vm14, %v1196_v19, %v1192_v7  ;;  %vm1266_vm15 = vcmp.gt.s32.totalorder %v1265_v55, 0  ;;  %v6610_v17 = vshll.u32 %v1263_v14, 8  ;;  %v6614_v47 = vadd.f32 %v6550_v53, %v420_v61 }
 0x147   : > { %v1067_v23 = vxor.u32 2147483648, %v1066_v9  ;;  %v1198_v40 = vadd.s32 %v1197_v62, %v1193_v8  ;;  %v1267_v41 = vsel %vm1266_vm15, %v1265_v55, 0  ;;  %v6619_v58 = vadd.f32 %v6550_v53, %v417_v21 }
 0x148   : > { %v1269_v46 = vand.u32 31, %v1267_v41  ;;  %v6621_v60 = vand.u32 3, %v1089_v30  ;;  %vm1102_vm0 = vcmp.lt.s32.totalorder %v6302_v11, 0  ;;  %v6626_v6 = vadd.s32 %v1189_v13, %v1170_v20 }
 0x149   : > { %v1068_v10 = vsel %vm947_vm7, %v1067_v23, %v1066_v9  ;;  %v1199_v63 = vadd.s32 536870912, %v1198_v40  ;;  %vm6630_vm1 = vcmp.le.f32.partialorder %v1100_v54, 0.7853982  ;;  %v6635_v53 = vand.u32 65535, %v6610_v17 }
 0x14a   : > { %v6608_v0 = vsel %vm6590_vm12, %v6276_v48, %v1068_v10  ;;  %v6624_v26 = vsub.s32 32, %v1269_v46  ;;  %v6638_v32 = vshrl.u32 %v6610_v17, 16  ;;  %v1414_v1 = vshrl.u32 %v1413_v4, 23 }
 0x14b   : > { %v1073_v42 = vmul.f32 %v6608_v0, %v6608_v0  ;;  %v1200_v16 = vshrl.u32 %v1199_v63, 30  ;;  %v6642_v15 = vand.u32 8388607, %v1410_v5  ;;  %v6644_v34 = vshrl.u32 %v1267_v41, 5 }
 0x14c   : > { %v1272_v12 = vshll.u32 %v5956_v33, %v1269_v46  ;;  %v1273_v20 = vshrl.u32 %v5957_v35, %v6624_v26  ;;  %v1276_v25 = vshrl.u32 %v5958_v37, %v6624_v26  ;;  %v1282_v44 = vshrl.u32 %v5960_v43, %v6624_v26 }
 0x14d   : > { %v1074_v45 = vmul.f32 -0.001358992, %v1073_v42  ;;  %v1081_v52 = vmul.f32 -0.00019511016, %v1073_v42  ;;  %v1201_v24 = vshll.u32 %v1200_v16, 30  ;;  %v1224_v54 = vsub.s32 4, %v1200_v16 }
 0x14e   : > { %vm1095_vm2 = vcmp.eq.s32.totalorder %v6621_v60, 2  ;;  %v1275_v29 = vshll.u32 %v5957_v35, %v1269_v46  ;;  %v1278_v13 = vshll.u32 %v5958_v37, %v1269_v46  ;;  %v1279_v57 = vshrl.u32 %v5959_v39, %v6624_v26 }
 0x14f   : > { %v1075_v22 = vadd.f32 0.041655596, %v1074_v45  ;;  %v1082_v18 = vadd.f32 0.008332121, %v1081_v52  ;;  %v6651_v3 = vsub.s32 %v1198_v40, %v1201_v24  ;;  %v1281_v36 = vshll.u32 %v5959_v39, %v1269_v46 }
 0x150   : > { %vm1092_vm4 = vcmp.eq.s32.totalorder %v6621_v60, 0  ;;  %v1225_v51 = vsel %vm1102_vm0, %v1224_v54, %v1200_v16  ;;  %v1274_v19 = vor.u32 %v1273_v20, %v1272_v12  ;;  %v6666_v14 = vor.u32 %v1276_v25, %v1275_v29 }
 0x151   : > { %v1076_v28 = vmul.f32 %v1075_v22, %v1073_v42  ;;  %v1083_v38 = vmul.f32 %v1082_v18, %v1073_v42  ;;  %vm1203_vm3 = vcmp.lt.s32.totalorder %v6651_v3, 0  ;;  %v1204_v9 = vsub.s32 0, %v6651_v3 }
 0x152   : > { %v1285_v55 = vshrl.u32 %v5961_v50, %v6624_v26  ;;  %vm1091_vm5 = vcmp.lt.s32.totalorder %v6621_v60, 2  ;;  %v1283_v30 = vor.u32 %v1282_v44, %v1281_v36  ;;  %vm1088_vm6 = vweird.f32 %v6276_v48 }
 0x153   : > { %v1077_v7 = vadd.f32 -0.4999988, %v1076_v28  ;;  %v1084_v56 = vadd.f32 -0.16666654, %v1083_v38  ;;  %v1205_v61 = vsel %vm1203_vm3, %v1204_v9, %v6651_v3  ;;  %v6673_v21 = vor.u32 %v1279_v57, %v1278_v13 }
 0x154   : > { %v1206_v62 = vclz %v1205_v61  ;;  %v1284_v10 = vshll.u32 %v5960_v43, %v1269_v46  ;;  %v5700_v40 = vadd.s32 4294967169, %v1414_v1  ;;  %v1227_v63 = vsel %vm6630_vm1, 0, %v1225_v51 }
 0x155   : > { %v1078_v23 = vmul.f32 %v1077_v7, %v1073_v42  ;;  %v1085_v8 = vmul.f32 %v1084_v56, %v1073_v42  ;;  %vm1287_vm7 = vcmp.lt.s32.totalorder %v6644_v34, 1  ;;  %vm1290_vm8 = vcmp.lt.s32.totalorder %v6644_v34, 4 }
 0x156   : > { %v5695_v42 = vadd.s32 4294967294, %v1206_v62  ;;  %v1286_v45 = vor.u32 %v1285_v55, %v1284_v10  ;;  %v1295_v52 = vsel %vm1287_vm7, %v1274_v19, %v6666_v14  ;;  %vm1289_vm9 = vcmp.lt.s32.totalorder %v6644_v34, 3 }
 0x157   : > { %v1079_v41 = vadd.f32 1.0, %v1078_v23  ;;  %v1086_v4 = vadd.f32 1.0, %v1085_v8  ;;  %v1296_v46 = vsel %vm1290_vm8, %v1283_v30, 920167782  ;;  %vm1288_vm11 = vcmp.lt.s32.totalorder %v6644_v34, 2 }
 0x158   : > { %vm5696_vm10 = vcmp.lt.s32.totalorder %v5695_v42, 0  ;;  %v1297_v1 = vsel %vm1289_vm9, %v6673_v21, %v1296_v46  ;;  %v1299_v18 = vsel %vm1287_vm7, %v6666_v14, %v6673_v21  ;;  %v1300_v38 = vsel %vm1290_vm8, %v1286_v45, 1326507024 }
 0x159   : > { %v1087_v16 = vmul.f32 %v1086_v4, %v6608_v0  ;;  %v1096_v22 = vxor.u32 2147483648, %v1079_v41  ;;  %v1209_v54 = vsel %vm5696_vm10, 0, %v5695_v42  ;;  %v1298_v12 = vsel %vm1288_vm11, %v1295_v52, %v1297_v1 }
 0x15a   : > { %v1210_v20 = vsub.s32 32, %v1209_v54  ;;  %v1211_v25 = vshll.u32 %v6651_v3, %v1209_v54  ;;  %v1214_v28 = vsub.s32 4294967266, %v1209_v54  ;;  %v1301_v29 = vsel %vm1289_vm9, %v1283_v30, %v1300_v38 }
 0x15b   : > { %v1093_v24 = vxor.u32 2147483648, %v1087_v16  ;;  %v1097_v0 = vsel %vm1095_vm2, %v1096_v22, %v1087_v16  ;;  %v1328_v13 = vand.u32 65535, %v1298_v12  ;;  %v1329_v57 = vshrl.u32 %v1298_v12, 16 }
 0x15c   : > { %v1212_v7 = vshrl.u32 %v6626_v6, %v1210_v20  ;;  %v1215_v56 = vadd.s32 127, %v1214_v28  ;;  %v1302_v3 = vsel %vm1288_vm11, %v1299_v18, %v1301_v29  ;;  %v1271_v51 = vshrl.u32 %v5956_v33, %v6624_v26 }
 0x15d   : > { %v1094_v44 = vsel %vm1092_vm4, %v1079_v41, %v1093_v24  ;;  %v1306_v55 = vand.u32 65535, %v1302_v3  ;;  %v1307_v23 = vshrl.u32 %v1302_v3, 16  ;;  %v1331_v30 = vmul.u32 %v1329_v57, %v6635_v53 }
 0x15e   : > { %v1098_v36 = vsel %vm1091_vm5, %v1094_v44, %v1097_v0  ;;  %v1213_v8 = vor.u32 %v1212_v7, %v1211_v25  ;;  %v1216_v61 = vshll.u32 %v1215_v56, 23  ;;  %v1332_v60 = vmul.u32 %v1328_v13, %v6638_v32 }
 0x15f   : > { %v1099_v9 = vsel %vm1088_vm6, nan, %v1098_v36  ;;  %v1244_v6 = vadd.s32 3, %v1227_v63  ;;  %v1309_v62 = vmul.u32 %v1307_v23, %v6635_v53  ;;  %v1310_v10 = vmul.u32 %v1306_v55, %v6638_v32 }
 0x160   : > { %5443 = vst [vmem:[%s6343_s10 + $0x18] sm:$0xff] %v1099_v9  ;;  %v1420_v41 = vadd.s32 1, %v5700_v40  ;;  %v1217_v48 = vor.u32 4788187, %v1216_v61  ;;  %v1291_v4 = vsel %vm1287_vm7, %v1271_v51, %v1274_v19  ;;  %v1330_v26 = vmul.u32 %v1328_v13, %v6635_v53 }
 0x161   : > { %v1334_v42 = vshll.u32 %v1331_v30, 16  ;;  %v1220_v45 = vcvt.s32.f32 %v1213_v8  ;;  %v1308_v52 = vmul.u32 %v1306_v55, %v6635_v53  ;;  %v1311_v16 = vmul.u32 %v1307_v23, %v6638_v32 }
 0x162   : > { %v1312_v22 = vshll.u32 %v1309_v62, 16  ;;  %v1218_v46 = vand.u32 2147483647, %v1217_v48  ;;  %v1314_v63 = vshll.u32 %v1310_v10, 16  ;;  %v1333_v1 = vmul.u32 %v1329_v57, %v6638_v32 }
 0x163   : > { %v1336_v18 = vshll.u32 %v1332_v60, 16  ;;  %vm1338_vm12 = vc.u32 %v1330_v26, %v1334_v42  ;;  %v1340_v24 = vadd.s32 %v1334_v42, %v1330_v26  ;;  %v1292_v19 = vsel %vm1290_vm8, %v6673_v21, 2102212464 }
 0x164   : > { %vm1316_vm13 = vc.u32 %v1308_v52, %v1312_v22  ;;  %v1318_v40 = vadd.s32 %v1312_v22, %v1308_v52  ;;  %v1221_v0 = vmul.f32 %v1220_v45, %v1218_v46  ;;  %v1339_v53 = vsel %vm1338_vm12, 1, %v5962_v27 }
 0x165   : > { %v1317_v54 = vsel %vm1316_vm13, 1, %v5962_v27  ;;  %v1341_v20 = vadd.s32 %v1339_v53, %v1333_v1  ;;  %vm1342_vm15 = vc.u32 %v1340_v24, %v1336_v18  ;;  %v1313_v32 = vshrl.u32 %v1309_v62, 16 }
 0x166   : > { %v1319_v12 = vadd.s32 %v1317_v54, %v1311_v16  ;;  %vm1320_vm14 = vc.u32 %v1318_v40, %v1314_v63  ;;  %v1222_v25 = vxor.u32 2147483648, %v1221_v0  ;;  %v1343_v38 = vsel %vm1342_vm15, 1, %v5962_v27 }
 0x167   : > { %v1321_v28 = vsel %vm1320_vm14, 1, %v5962_v27  ;;  %v1335_v29 = vshrl.u32 %v1331_v30, 16  ;;  %v1345_v13 = vadd.s32 %v1343_v38, %v1341_v20  ;;  %vm1421_vm2 = vcmp.gt.s32.totalorder %v1420_v41, 0 }
 0x168   : > { %v1323_v44 = vadd.s32 %v1321_v28, %v1319_v12  ;;  %v1223_v21 = vsel %vm1102_vm0, %v1222_v25, %v1221_v0  ;;  %v1293_v57 = vsel %vm1289_vm9, %v6666_v14, %v1292_v19  ;;  %v1315_v36 = vshrl.u32 %v1310_v10, 16 }
 0x169   : > { %v1422_v7 = vsel %vm1421_vm2, %v1420_v41, 0  ;;  %v1226_v56 = vsel %vm6630_vm1, %v6302_v11, %v1223_v21  ;;  %v1337_v9 = vshrl.u32 %v1332_v60, 16  ;;  %v1346_v51 = vadd.s32 %v1345_v13, %v1335_v29 }
 0x16a   : > { %v1324_v3 = vadd.s32 %v1323_v44, %v1313_v32  ;;  %v1228_v55 = vmul.f32 %v1226_v56, %v1226_v56  ;;  %v6741_v23 = vand.u32 3, %v1244_v6  ;;  %v1418_v8 = vor.u32 8388608, %v6642_v15 }
 0x16b   : > { %v1424_v61 = vand.u32 31, %v1422_v7  ;;  %v1294_v30 = vsel %vm1288_vm11, %v1291_v4, %v1293_v57  ;;  %v6748_v14 = vadd.s32 %v1340_v24, %v1336_v18  ;;  %v1347_v10 = vadd.s32 %v1346_v51, %v1337_v9 }
 0x16c   : > { %v6746_v62 = vadd.s32 %v1324_v3, %v1315_v36  ;;  %v1229_v41 = vmul.f32 -0.001358992, %v1228_v55  ;;  %v1236_v31 = vmul.f32 -0.00019511016, %v1228_v55  ;;  %v6750_v48 = vshrl.u32 %v1422_v7, 5 }
 0x16d   : > { %v6752_v60 = vsub.s32 32, %v1424_v61  ;;  %v1351_v6 = vadd.s32 1, %v1347_v10  ;;  %v1427_v15 = vshll.u32 %v5956_v33, %v1424_v61  ;;  %v1430_v34 = vshll.u32 %v5957_v35, %v1424_v61 }
 0x16e   : > { %vm1350_vm0 = vc.u32 %v6746_v62, %v6748_v14  ;;  %v1230_v4 = vadd.f32 0.041655596, %v1229_v41  ;;  %v1237_v26 = vadd.f32 0.008332121, %v1236_v31  ;;  %v1348_v42 = vmul.u32 %v6610_v17, %v1294_v30 }
 0x16f   : > { %v1428_v45 = vshrl.u32 %v5957_v35, %v6752_v60  ;;  %v1352_v52 = vsel %vm1350_vm0, %v1351_v6, %v1347_v10  ;;  %v1431_v16 = vshrl.u32 %v5958_v37, %v6752_v60  ;;  %v1433_v22 = vshll.u32 %v5958_v37, %v1424_v61 }
 0x170   : > { %v1434_v46 = vshrl.u32 %v5959_v39, %v6752_v60  ;;  %v1231_v63 = vmul.f32 %v1230_v4, %v1228_v55  ;;  %v1238_v1 = vmul.f32 %v1237_v26, %v1228_v55  ;;  %v1353_v18 = vadd.s32 %v1352_v52, %v1348_v42 }
 0x171   : > { %vm1442_vm1 = vcmp.lt.s32.totalorder %v6750_v48, 1  ;;  %v6767_v40 = vor.u32 %v1428_v45, %v1427_v15  ;;  %v6769_v17 = vor.u32 %v1431_v16, %v1430_v34  ;;  %v1436_v24 = vshll.u32 %v5959_v39, %v1424_v61 }
 0x172   : > { %v1437_v0 = vshrl.u32 %v5960_v43, %v6752_v60  ;;  %v1232_v19 = vadd.f32 -0.4999988, %v1231_v63  ;;  %v1239_v54 = vadd.f32 -0.16666654, %v1238_v1  ;;  %v1354_v53 = vadd.s32 536870912, %v1353_v18 }
 0x173   : > { %v1439_v12 = vshll.u32 %v5960_v43, %v1424_v61  ;;  %v1435_v20 = vor.u32 %v1434_v46, %v1433_v22  ;;  %v1440_v32 = vshrl.u32 %v5961_v50, %v6752_v60  ;;  %vm1445_vm3 = vcmp.lt.s32.totalorder %v6750_v48, 4 }
 0x174   : > { %v1438_v25 = vor.u32 %v1437_v0, %v1436_v24  ;;  %v1233_v28 = vmul.f32 %v1232_v19, %v1228_v55  ;;  %v1240_v38 = vmul.f32 %v1239_v54, %v1228_v55  ;;  %v6778_v44 = vshrl.u32 %v1354_v53, 30 }
 0x175   : > { %vm1444_vm4 = vcmp.lt.s32.totalorder %v6750_v48, 3  ;;  %vm1243_vm5 = vweird.f32 %v6302_v11  ;;  %v1441_v29 = vor.u32 %v1440_v32, %v1439_v12  ;;  %v6784_v21 = vshll.u32 %v1418_v8, 8 }
 0x176   : > { %v1451_v13 = vsel %vm1445_vm3, %v1438_v25, 920167782  ;;  %v1723_v57 = vand.u32 2139095040, %v6614_v47  ;;  %v1234_v36 = vadd.f32 1.0, %v1233_v28  ;;  %v1241_v7 = vadd.f32 1.0, %v1240_v38 }
 0x177   : > { %v1356_v3 = vshll.u32 %v6778_v44, 30  ;;  %v1450_v9 = vsel %vm1442_vm1, %v6767_v40, %v6769_v17  ;;  %vm1246_vm6 = vcmp.lt.s32.totalorder %v6741_v23, 2  ;;  %vm1443_vm7 = vcmp.lt.s32.totalorder %v6750_v48, 2 }
 0x178   : > { %v1452_v51 = vsel %vm1444_vm4, %v1435_v20, %v1451_v13  ;;  %v1455_v55 = vsel %vm1445_vm3, %v1441_v29, 1326507024  ;;  %v1242_v8 = vmul.f32 %v1241_v7, %v1226_v56  ;;  %v1251_v61 = vxor.u32 2147483648, %v1234_v36 }
 0x179   : > { %v1357_v30 = vsub.s32 %v1353_v18, %v1356_v3  ;;  %v1454_v10 = vsel %vm1442_vm1, %v6769_v17, %v1435_v20  ;;  %vm1247_vm8 = vcmp.eq.s32.totalorder %v6741_v23, 0  ;;  %vm1250_vm9 = vcmp.eq.s32.totalorder %v6741_v23, 2 }
 0x17a   : > { %v1453_v41 = vsel %vm1443_vm7, %v1450_v9, %v1452_v51  ;;  %v1456_v31 = vsel %vm1444_vm4, %v1438_v25, %v1455_v55  ;;  %v1248_v6 = vxor.u32 2147483648, %v1242_v8  ;;  %v1459_v56 = vand.u32 65535, %v6784_v21 }
 0x17b   : > { %vm1358_vm10 = vcmp.lt.s32.totalorder %v1357_v30, 0  ;;  %v1359_v15 = vsub.s32 0, %v1357_v30  ;;  %v1252_v34 = vsel %vm1250_vm9, %v1251_v61, %v1242_v8  ;;  %v1457_v4 = vsel %vm1443_vm7, %v1454_v10, %v1456_v31 }
 0x17c   : > { %v1460_v26 = vshrl.u32 %v6784_v21, 16  ;;  %v1483_v42 = vand.u32 65535, %v1453_v41  ;;  %v1249_v45 = vsel %vm1247_vm8, %v1234_v36, %v1248_v6  ;;  %v1461_v16 = vand.u32 65535, %v1457_v4 }
 0x17d   : > { %v1360_v52 = vsel %vm1358_vm10, %v1359_v15, %v1357_v30  ;;  %v1462_v22 = vshrl.u32 %v1457_v4, 16  ;;  %v1253_v46 = vsel %vm1246_vm6, %v1249_v45, %v1252_v34  ;;  %v1484_v1 = vshrl.u32 %v1453_v41, 16 }
 0x17e   : > { %v1361_v63 = vclz %v1360_v52  ;;  %v1724_v18 = vshrl.u32 %v1723_v57, 23  ;;  %v1254_v24 = vsel %vm1243_vm5, nan, %v1253_v46  ;;  %v1465_v19 = vmul.u32 %v1461_v16, %v1460_v26 }
 0x17f   : > { %v1464_v0 = vmul.u32 %v1462_v22, %v1459_v56  ;;  %v1565_v54 = vand.u32 2147483647, %v6619_v58  ;;  %v1349_v53 = vadd.s32 %v6748_v14, %v6746_v62  ;;  %v1426_v25 = vshrl.u32 %v5956_v33, %v6752_v60  ;;  %5444 = vst [vmem:[%s6343_s10 + $0x20] sm:$0xff] %v1254_v24 }
 0x180   : > { %v5698_v12 = vadd.s32 4294967294, %v1361_v63  ;;  %v1447_v23 = vsel %vm1445_vm3, %v1435_v20, 2102212464  ;;  %vm1257_vm11 = vcmp.lt.s32.totalorder %v6553_v49, 0  ;;  %v1379_v11 = vsub.s32 4, %v6778_v44 }
 0x181   : > { %v1463_v32 = vmul.u32 %v1461_v16, %v1459_v56  ;;  %v1467_v28 = vshll.u32 %v1464_v0, 16  ;;  %v1485_v38 = vmul.u32 %v1483_v42, %v1459_v56  ;;  %v1466_v29 = vmul.u32 %v1462_v22, %v1460_v26 }
 0x182   : > { %vm5699_vm13 = vcmp.lt.s32.totalorder %v5698_v12, 0  ;;  %v1469_v13 = vshll.u32 %v1465_v19, 16  ;;  %v1486_v57 = vmul.u32 %v1484_v1, %v1459_v56  ;;  %v1487_v36 = vmul.u32 %v1483_v42, %v1460_v26 }
 0x183   : > { %v1364_v62 = vsel %vm5699_vm13, 0, %v5698_v12  ;;  %vm1471_vm12 = vc.u32 %v1463_v32, %v1467_v28  ;;  %v1473_v14 = vadd.s32 %v1467_v28, %v1463_v32  ;;  %v1468_v3 = vshrl.u32 %v1464_v0, 16 }
 0x184   : > { %v1365_v60 = vsub.s32 32, %v1364_v62  ;;  %v1369_v7 = vsub.s32 4294967266, %v1364_v62  ;;  %v1472_v20 = vsel %vm1471_vm12, 1, %v5962_v27  ;;  %v1488_v51 = vmul.u32 %v1484_v1, %v1460_v26 }
 0x185   : > { %v1474_v9 = vadd.s32 %v1472_v20, %v1466_v29  ;;  %vm1475_vm14 = vc.u32 %v1473_v14, %v1469_v13  ;;  %v1489_v55 = vshll.u32 %v1486_v57, 16  ;;  %v1366_v8 = vshll.u32 %v1357_v30, %v1364_v62 }
 0x186   : > { %v1367_v61 = vshrl.u32 %v1349_v53, %v1365_v60  ;;  %v1370_v10 = vadd.s32 127, %v1369_v7  ;;  %v1476_v41 = vsel %vm1475_vm14, 1, %v5962_v27  ;;  %v1491_v6 = vshll.u32 %v1487_v36, 16 }
 0x187   : > { %v1478_v31 = vadd.s32 %v1476_v41, %v1474_v9  ;;  %vm1493_vm15 = vc.u32 %v1485_v38, %v1489_v55  ;;  %v1495_v15 = vadd.s32 %v1489_v55, %v1485_v38  ;;  %v1446_v4 = vsel %vm1442_vm1, %v1426_v25, %v6767_v40 }
 0x188   : > { %v1368_v56 = vor.u32 %v1367_v61, %v1366_v8  ;;  %v1371_v34 = vshll.u32 %v1370_v10, 23  ;;  %v1494_v42 = vsel %vm1493_vm15, 1, %v5962_v27  ;;  %v1448_v30 = vsel %vm1444_vm4, %v6769_v17, %v1447_v23 }
 0x189   : > { %v1479_v26 = vadd.s32 %v1478_v31, %v1468_v3  ;;  %v1496_v45 = vadd.s32 %v1494_v42, %v1488_v51  ;;  %vm1497_vm2 = vc.u32 %v1495_v15, %v1491_v6  ;;  %v1380_v16 = vsel %vm1257_vm11, %v1379_v11, %v6778_v44 }
 0x18a   : > { %v1372_v52 = vor.u32 4788187, %v1371_v34  ;;  %v1470_v22 = vshrl.u32 %v1465_v19, 16  ;;  %v1498_v46 = vsel %vm1497_vm2, 1, %v5962_v27  ;;  %v1375_v63 = vcvt.s32.f32 %v1368_v56 }
 0x18b   : > { %v1490_v1 = vshrl.u32 %v1486_v57, 16  ;;  %v1500_v40 = vadd.s32 %v1498_v46, %v1496_v45  ;;  %v1568_v24 = vand.u32 2139095040, %v6619_v58  ;;  %v1572_v17 = vand.u32 8388607, %v1565_v54 }
 0x18c   : > { %v1373_v0 = vand.u32 2147483647, %v1372_v52  ;;  %v1480_v53 = vadd.s32 %v1479_v26, %v1470_v22  ;;  %v5706_v12 = vadd.s32 4294967169, %v1724_v18  ;;  %v1492_v25 = vshrl.u32 %v1487_v36, 16 }
 0x18d   : > { %v1501_v23 = vadd.s32 %v1500_v40, %v1490_v1  ;;  %v1569_v32 = vshrl.u32 %v1568_v24, 23  ;;  %vm6843_vm0 = vcmp.le.f32.partialorder %v1255_v2, 0.7853982  ;;  %v1499_v11 = vadd.s32 %v1495_v15, %v1491_v6 }
 0x18e   : > { %v1376_v19 = vmul.f32 %v1375_v63, %v1373_v0  ;;  %v1730_v28 = vadd.s32 1, %v5706_v12  ;;  %v1382_v38 = vsel %vm6843_vm0, 0, %v1380_v16  ;;  %v1449_v29 = vsel %vm1443_vm7, %v1446_v4, %v1448_v30 }
 0x18f   : > { %v1502_v13 = vadd.s32 %v1501_v23, %v1492_v25  ;;  %v5703_v18 = vadd.s32 4294967169, %v1569_v32  ;;  %vm1505_vm1 = vc.u32 %v1480_v53, %v1499_v11  ;;  %v1573_v62 = vor.u32 8388608, %v1572_v17 }
 0x190   : > { %v1377_v57 = vxor.u32 2147483648, %v1376_v19  ;;  %vm1731_vm3 = vcmp.gt.s32.totalorder %v1730_v28, 0  ;;  %v1503_v60 = vmul.u32 %v6784_v21, %v1449_v29  ;;  %v1720_v7 = vand.u32 2147483647, %v6614_v47 }
 0x191   : > { %v1506_v14 = vadd.s32 1, %v1502_v13  ;;  %v1575_v2 = vadd.s32 1, %v5703_v18  ;;  %v1732_v3 = vsel %vm1731_vm3, %v1730_v28, 0  ;;  %v1399_v20 = vadd.s32 3, %v1382_v38 }
 0x192   : > { %v1378_v36 = vsel %vm1257_vm11, %v1377_v57, %v1376_v19  ;;  %v6862_v61 = vshll.u32 %v1573_v62, 8  ;;  %v6864_v21 = vand.u32 31, %v1732_v3  ;;  %vm1412_vm5 = vcmp.lt.s32.totalorder %v6599_v59, 0 }
 0x193   : > { %v6858_v48 = vsel %vm6843_vm0, %v6553_v49, %v1378_v36  ;;  %v1507_v9 = vsel %vm1505_vm1, %v1506_v14, %v1502_v13  ;;  %vm1576_vm4 = vcmp.gt.s32.totalorder %v1575_v2, 0  ;;  %v6867_v15 = vand.u32 3, %v1399_v20 }
 0x194   : > { %v1383_v51 = vmul.f32 %v6858_v48, %v6858_v48  ;;  %v1508_v55 = vadd.s32 %v1507_v9, %v1503_v60  ;;  %v1577_v8 = vsel %vm1576_vm4, %v1575_v2, 0  ;;  %v6869_v56 = vadd.s32 %v1499_v11, %v1480_v53 }
 0x195   : > { %v1579_v10 = vand.u32 31, %v1577_v8  ;;  %v6875_v4 = vand.u32 8388607, %v1720_v7  ;;  %v6878_v45 = vand.u32 65535, %v6862_v61  ;;  %v6880_v52 = vshrl.u32 %v1577_v8, 5 }
 0x196   : > { %v1384_v41 = vmul.f32 -0.001358992, %v1383_v51  ;;  %v1391_v31 = vmul.f32 -0.00019511016, %v1383_v51  ;;  %v1509_v6 = vadd.s32 536870912, %v1508_v55  ;;  %v6883_v16 = vshrl.u32 %v6862_v61, 16 }
 0x197   : > { %v6871_v34 = vsub.s32 32, %v1579_v10  ;;  %v6885_v22 = vshrl.u32 %v1732_v3, 5  ;;  %v6888_v46 = vsub.s32 32, %v6864_v21  ;;  %vm6892_vm6 = vcmp.le.f32.partialorder %v1410_v5, 0.7853982 }
 0x198   : > { %v1385_v42 = vadd.f32 0.041655596, %v1384_v41  ;;  %v1392_v30 = vadd.f32 0.008332121, %v1391_v31  ;;  %v1510_v26 = vshrl.u32 %v1509_v6, 30  ;;  %v1582_v0 = vshll.u32 %v5956_v33, %v1579_v10 }
 0x199   : > { %v1583_v17 = vshrl.u32 %v5957_v35, %v6871_v34  ;;  %v1586_v12 = vshrl.u32 %v5958_v37, %v6871_v34  ;;  %v1592_v25 = vshrl.u32 %v5960_v43, %v6871_v34  ;;  %vm1405_vm7 = vcmp.eq.s32.totalorder %v6867_v15, 2 }
 0x19a   : > { %v1386_v63 = vmul.f32 %v1385_v42, %v1383_v51  ;;  %v1393_v1 = vmul.f32 %v1392_v30, %v1383_v51  ;;  %v1511_v24 = vshll.u32 %v1510_v26, 30  ;;  %v1534_v53 = vsub.s32 4, %v1510_v26 }
 0x19b   : > { %v1585_v44 = vshll.u32 %v5957_v35, %v1579_v10  ;;  %vm1402_vm8 = vcmp.eq.s32.totalorder %v6867_v15, 0  ;;  %v1588_v19 = vshll.u32 %v5958_v37, %v1579_v10  ;;  %v1589_v11 = vshrl.u32 %v5959_v39, %v6871_v34 }
 0x19c   : > { %v1387_v23 = vadd.f32 -0.4999988, %v1386_v63  ;;  %v1394_v32 = vadd.f32 -0.16666654, %v1393_v1  ;;  %v6904_v5 = vsub.s32 %v1508_v55, %v1511_v24  ;;  %v1591_v28 = vshll.u32 %v5959_v39, %v1579_v10 }
 0x19d   : > { %v1595_v38 = vshrl.u32 %v5961_v50, %v6871_v34  ;;  %vm1401_vm9 = vcmp.lt.s32.totalorder %v6867_v15, 2  ;;  %vm1398_vm11 = vweird.f32 %v6553_v49  ;;  %v1535_v57 = vsel %vm1412_vm5, %v1534_v53, %v1510_v26 }
 0x19e   : > { %v1388_v29 = vmul.f32 %v1387_v23, %v1383_v51  ;;  %v1395_v13 = vmul.f32 %v1394_v32, %v1383_v51  ;;  %vm1513_vm10 = vcmp.lt.s32.totalorder %v6904_v5, 0  ;;  %v1514_v18 = vsub.s32 0, %v6904_v5 }
 0x19f   : > { %v1584_v62 = vor.u32 %v1583_v17, %v1582_v0  ;;  %v1587_v14 = vor.u32 %v1586_v12, %v1585_v44  ;;  %v1593_v2 = vor.u32 %v1592_v25, %v1591_v28  ;;  %v1594_v20 = vshll.u32 %v5960_v43, %v1579_v10 }
 0x1a0   : > { %v1389_v36 = vadd.f32 1.0, %v1388_v29  ;;  %v1396_v60 = vadd.f32 1.0, %v1395_v13  ;;  %v1515_v3 = vsel %vm1513_vm10, %v1514_v18, %v6904_v5  ;;  %v1590_v51 = vor.u32 %v1589_v11, %v1588_v19 }
 0x1a1   : > { %v1516_v9 = vclz %v1515_v3  ;;  %v6924_v55 = vshll.u32 %v5956_v33, %v6864_v21  ;;  %v6928_v8 = vshll.u32 %v5957_v35, %v6864_v21  ;;  %v1596_v6 = vor.u32 %v1595_v38, %v1594_v20 }
 0x1a2   : > { %v1397_v41 = vmul.f32 %v1396_v60, %v6858_v48  ;;  %v1406_v31 = vxor.u32 2147483648, %v1389_v36  ;;  %vm1597_vm13 = vcmp.lt.s32.totalorder %v6880_v52, 1  ;;  %v1537_v10 = vsel %vm6892_vm6, 0, %v1535_v57 }
 0x1a3   : > { %v5701_v42 = vadd.s32 4294967294, %v1516_v9  ;;  %vm1600_vm12 = vcmp.lt.s32.totalorder %v6880_v52, 4  ;;  %v1605_v30 = vsel %vm1597_vm13, %v1584_v62, %v1587_v14  ;;  %vm1598_vm14 = vcmp.lt.s32.totalorder %v6880_v52, 2 }
 0x1a4   : > { %v1403_v26 = vxor.u32 2147483648, %v1397_v41  ;;  %vm1599_vm15 = vcmp.lt.s32.totalorder %v6880_v52, 3  ;;  %v1606_v48 = vsel %vm1600_vm12, %v1593_v2, 920167782  ;;  %v1407_v63 = vsel %vm1405_vm7, %v1406_v31, %v1397_v41 }
 0x1a5   : > { %vm5702_vm2 = vcmp.lt.s32.totalorder %v5701_v42, 0  ;;  %v1607_v1 = vsel %vm1599_vm15, %v1590_v51, %v1606_v48  ;;  %v1609_v24 = vsel %vm1597_vm13, %v1587_v14, %v1590_v51  ;;  %v1610_v12 = vsel %vm1600_vm12, %v1596_v6, 1326507024 }
 0x1a6   : > { %v1404_v0 = vsel %vm1402_vm8, %v1389_v36, %v1403_v26  ;;  %v1519_v53 = vsel %vm5702_vm2, 0, %v5701_v42  ;;  %v1608_v17 = vsel %vm1598_vm14, %v1605_v30, %v1607_v1  ;;  %v1602_v44 = vsel %vm1600_vm12, %v1590_v51, 2102212464 }
 0x1a7   : > { %v1408_v25 = vsel %vm1401_vm9, %v1404_v0, %v1407_v63  ;;  %v1520_v23 = vsub.s32 32, %v1519_v53  ;;  %v1524_v32 = vsub.s32 4294967266, %v1519_v53  ;;  %v1611_v11 = vsel %vm1599_vm15, %v1593_v2, %v1610_v12 }
 0x1a8   : > { %v1409_v19 = vsel %vm1398_vm11, nan, %v1408_v25  ;;  %v1638_v28 = vand.u32 65535, %v1608_v17  ;;  %v1639_v38 = vshrl.u32 %v1608_v17, 16  ;;  %v1521_v29 = vshll.u32 %v6904_v5, %v1519_v53 }
 0x1a9   : > { %v1522_v13 = vshrl.u32 %v6869_v56, %v1520_v23  ;;  %v1525_v18 = vadd.s32 127, %v1524_v32  ;;  %v1612_v15 = vsel %vm1598_vm14, %v1609_v24, %v1611_v11  ;;  %5445 = vst [vmem:[%s6343_s10 + $0x28] sm:$0xff] %v1409_v19  ;;  %v1581_v57 = vshrl.u32 %v5956_v33, %v6871_v34 }
 0x1aa   : > { %v1616_v36 = vand.u32 65535, %v1612_v15  ;;  %v1617_v49 = vshrl.u32 %v1612_v15, 16  ;;  %v1641_v60 = vmul.u32 %v1639_v38, %v6878_v45  ;;  %v6969_v20 = vadd.s32 3, %v1537_v10 }
 0x1ab   : > { %v1523_v3 = vor.u32 %v1522_v13, %v1521_v29  ;;  %v1526_v2 = vshll.u32 %v1525_v18, 23  ;;  %v1642_v5 = vmul.u32 %v1638_v28, %v6883_v16  ;;  %v1601_v56 = vsel %vm1597_vm13, %v1581_v57, %v1584_v62 }
 0x1ac   : > { %v1603_v9 = vsel %vm1599_vm15, %v1587_v14, %v1602_v44  ;;  %v1619_v51 = vmul.u32 %v1617_v49, %v6878_v45  ;;  %v1620_v34 = vmul.u32 %v1616_v36, %v6883_v16  ;;  %v1640_v31 = vmul.u32 %v1638_v28, %v6878_v45 }
 0x1ad   : > { %v1527_v41 = vor.u32 4788187, %v1526_v2  ;;  %v1643_v6 = vmul.u32 %v1639_v38, %v6883_v16  ;;  %v1644_v42 = vshll.u32 %v1641_v60, 16  ;;  %v1530_v10 = vcvt.s32.f32 %v1523_v3 }
 0x1ae   : > { %v1618_v30 = vmul.u32 %v1616_v36, %v6878_v45  ;;  %v1621_v26 = vmul.u32 %v1617_v49, %v6883_v16  ;;  %v1622_v48 = vshll.u32 %v1619_v51, 16  ;;  %v1624_v63 = vshll.u32 %v1620_v34, 16 }
 0x1af   : > { %v1528_v62 = vand.u32 2147483647, %v1527_v41  ;;  %v1646_v1 = vshll.u32 %v1642_v5, 16  ;;  %vm1648_vm0 = vc.u32 %v1640_v31, %v1644_v42  ;;  %v1650_v0 = vadd.s32 %v1644_v42, %v1640_v31 }
 0x1b0   : > { %vm1626_vm1 = vc.u32 %v1618_v30, %v1622_v48  ;;  %v1628_v14 = vadd.s32 %v1622_v48, %v1618_v30  ;;  %v1649_v24 = vsel %vm1648_vm0, 1, %v5962_v27  ;;  %v1604_v17 = vsel %vm1598_vm14, %v1601_v56, %v1603_v9 }
 0x1b1   : > { %v1531_v53 = vmul.f32 %v1530_v10, %v1528_v62  ;;  %v1627_v12 = vsel %vm1626_vm1, 1, %v5962_v27  ;;  %v1651_v25 = vadd.s32 %v1649_v24, %v1643_v6  ;;  %v1645_v16 = vshrl.u32 %v1641_v60, 16 }
 0x1b2   : > { %v1629_v45 = vadd.s32 %v1627_v12, %v1621_v26  ;;  %vm1630_vm3 = vc.u32 %v1628_v14, %v1624_v63  ;;  %vm1652_vm4 = vc.u32 %v1650_v0, %v1646_v1  ;;  %v1623_v32 = vshrl.u32 %v1619_v51, 16 }
 0x1b3   : > { %v1532_v23 = vxor.u32 2147483648, %v1531_v53  ;;  %v1631_v44 = vsel %vm1630_vm3, 1, %v5962_v27  ;;  %v1653_v19 = vsel %vm1652_vm4, 1, %v5962_v27  ;;  %v1625_v11 = vshrl.u32 %v1620_v34, 16 }
 0x1b4   : > { %v1633_v28 = vadd.s32 %v1631_v44, %v1629_v45  ;;  %v1647_v38 = vshrl.u32 %v1642_v5, 16  ;;  %v1655_v29 = vadd.s32 %v1653_v19, %v1651_v25  ;;  %v6990_v13 = vadd.s32 %v1650_v0, %v1646_v1 }
 0x1b5   : > { %v1533_v52 = vsel %vm1412_vm5, %v1532_v23, %v1531_v53  ;;  %v1741_v18 = vshrl.u32 %v5958_v37, %v6888_v46  ;;  %v1743_v15 = vshll.u32 %v5958_v37, %v6864_v21  ;;  %v1744_v60 = vshrl.u32 %v5959_v39, %v6888_v46 }
 0x1b6   : > { %v1536_v57 = vsel %vm6892_vm6, %v6599_v59, %v1533_v52  ;;  %v1634_v36 = vadd.s32 %v1633_v28, %v1623_v32  ;;  %v1656_v49 = vadd.s32 %v1655_v29, %v1645_v16  ;;  %v1738_v2 = vshrl.u32 %v5957_v35, %v6888_v46 }
 0x1b7   : > { %v1538_v3 = vmul.f32 %v1536_v57, %v1536_v57  ;;  %v1746_v5 = vshll.u32 %v5959_v39, %v6864_v21  ;;  %v1749_v56 = vshll.u32 %v5960_v43, %v6864_v21  ;;  %v1747_v40 = vshrl.u32 %v5960_v43, %v6888_v46 }
 0x1b8   : > { %v7007_v9 = vadd.s32 %v1634_v36, %v1625_v11  ;;  %v1657_v51 = vadd.s32 %v1656_v49, %v1647_v38  ;;  %v1750_v34 = vshrl.u32 %v5961_v50, %v6888_v46  ;;  %v1658_v6 = vmul.u32 %v6862_v61, %v1604_v17 }
 0x1b9   : > { %v1539_v41 = vmul.f32 -0.001358992, %v1538_v3  ;;  %v1546_v31 = vmul.f32 -0.00019511016, %v1538_v3  ;;  %v7015_v42 = vor.u32 %v1741_v18, %v6928_v8  ;;  %v7019_v10 = vor.u32 %v1744_v60, %v1743_v15 }
 0x1ba   : > { %vm1660_vm5 = vc.u32 %v7007_v9, %v6990_v13  ;;  %v1661_v21 = vadd.s32 1, %v1657_v51  ;;  %v1751_v30 = vor.u32 %v1750_v34, %v1749_v56  ;;  %vm1752_vm6 = vcmp.lt.s32.totalorder %v6885_v22, 1 }
 0x1bb   : > { %v1540_v26 = vadd.f32 0.041655596, %v1539_v41  ;;  %v1547_v48 = vadd.f32 0.008332121, %v1546_v31  ;;  %vm1755_vm7 = vcmp.lt.s32.totalorder %v6885_v22, 4  ;;  %v1728_v63 = vor.u32 8388608, %v6875_v4 }
 0x1bc   : > { %v1662_v62 = vsel %vm1660_vm5, %v1661_v21, %v1657_v51  ;;  %v7025_v61 = vor.u32 %v1738_v2, %v6924_v55  ;;  %v1748_v8 = vor.u32 %v1747_v40, %v1746_v5  ;;  %vm1754_vm8 = vcmp.lt.s32.totalorder %v6885_v22, 3 }
 0x1bd   : > { %v1541_v1 = vmul.f32 %v1540_v26, %v1538_v3  ;;  %v1548_v14 = vmul.f32 %v1547_v48, %v1538_v3  ;;  %v1663_v24 = vadd.s32 %v1662_v62, %v1658_v6  ;;  %v1555_v0 = vand.u32 3, %v6969_v20  ;;  %v422_v26 = vpop.f32.mrf.mxu1 }
 0x1be   : > { %v1764_v53 = vsel %vm1752_vm6, %v7015_v42, %v7019_v10  ;;  %v1765_v17 = vsel %vm1755_vm7, %v1751_v30, 1326507024  ;;  %vm1753_vm9 = vcmp.lt.s32.totalorder %v6885_v22, 2  ;;  %v1760_v25 = vsel %vm1752_vm6, %v7025_v61, %v7015_v42 }
 0x1bf   : > { %v1542_v4 = vadd.f32 -0.4999988, %v1541_v1  ;;  %v1549_v12 = vadd.f32 -0.16666654, %v1548_v14  ;;  %v1664_v55 = vadd.s32 536870912, %v1663_v24  ;;  %v1766_v45 = vsel %vm1754_vm8, %v1748_v8, %v1765_v17 }
 0x1c0   : > { %v1761_v20 = vsel %vm1755_vm7, %v1748_v8, 920167782  ;;  %v7044_v16 = vshll.u32 %v1728_v63, 8  ;;  %v1767_v19 = vsel %vm1753_vm9, %v1764_v53, %v1766_v45  ;;  %vm1556_vm10 = vcmp.lt.s32.totalorder %v1555_v0, 2  ;;  %v7068_v17 = vld [vmem:[%s9896_s2] ss:$0 sm:$0xff] }
 0x1c1   : > { %v1543_v23 = vmul.f32 %v1542_v4, %v1538_v3  ;;  %v1550_v32 = vmul.f32 %v1549_v12, %v1538_v3  ;;  %v7046_v44 = vshrl.u32 %v1664_v55, 30  ;;  %v1771_v38 = vand.u32 65535, %v1767_v19 }
 0x1c2   : > { %v1769_v11 = vand.u32 65535, %v7044_v16  ;;  %v1770_v28 = vshrl.u32 %v7044_v16, 16  ;;  %v1772_v29 = vshrl.u32 %v1767_v19, 16  ;;  %v1762_v36 = vsel %vm1754_vm8, %v7019_v10, %v1761_v20 }
 0x1c3   : > { %v1544_v52 = vadd.f32 1.0, %v1543_v23  ;;  %v1551_v18 = vadd.f32 1.0, %v1550_v32  ;;  %v1666_v15 = vshll.u32 %v7046_v44, 30  ;;  %vm1557_vm11 = vcmp.eq.s32.totalorder %v1555_v0, 0 }
 0x1c4   : > { %v1774_v49 = vmul.u32 %v1772_v29, %v1769_v11  ;;  %v7056_v60 = vmul.u32 %v1771_v38, %v1770_v28  ;;  %vm1560_vm13 = vcmp.eq.s32.totalorder %v1555_v0, 2  ;;  %v1763_v56 = vsel %vm1753_vm9, %v1760_v25, %v1762_v36 }
 0x1c5   : > { %v1552_v3 = vmul.f32 %v1551_v18, %v1536_v57  ;;  %v1561_v2 = vxor.u32 2147483648, %v1544_v52  ;;  %v1667_v5 = vsub.s32 %v1663_v24, %v1666_v15  ;;  %v1773_v51 = vmul.u32 %v1771_v38, %v1769_v11 }
 0x1c6   : > { %v1777_v40 = vshll.u32 %v1774_v49, 16  ;;  %v1776_v31 = vmul.u32 %v1772_v29, %v1770_v28  ;;  %v1779_v21 = vshll.u32 %v7056_v60, 16  ;;  %v1793_v63 = vand.u32 65535, %v1763_v56 }
 0x1c7   : > { %v1558_v34 = vxor.u32 2147483648, %v1552_v3  ;;  %vm1668_vm12 = vcmp.lt.s32.totalorder %v1667_v5, 0  ;;  %v1669_v41 = vsub.s32 0, %v1667_v5  ;;  %v1562_v6 = vsel %vm1560_vm13, %v1561_v2, %v1552_v3 }
 0x1c8   : > { %vm1781_vm14 = vc.u32 %v1773_v51, %v1777_v40  ;;  %v1783_v30 = vadd.s32 %v1777_v40, %v1773_v51  ;;  %vm1553_vm15 = vweird.f32 %v6599_v59  ;;  %v1794_v53 = vshrl.u32 %v1763_v56, 16 }
 0x1c9   : > { %v1559_v57 = vsel %vm1557_vm11, %v1544_v52, %v1558_v34  ;;  %v1670_v48 = vsel %vm1668_vm12, %v1669_v41, %v1667_v5  ;;  %v1782_v62 = vsel %vm1781_vm14, 1, %v5962_v27  ;;  %v7071_v4 = vadd.f32 %v7068_v17, %v422_v26 }
 0x1ca   : > { %v1563_v8 = vsel %vm1556_vm10, %v1559_v57, %v1562_v6  ;;  %v1671_v1 = vclz %v1670_v48  ;;  %v1784_v14 = vadd.s32 %v1782_v62, %v1776_v31  ;;  %vm1785_vm2 = vc.u32 %v1783_v30, %v1779_v21 }
 0x1cb   : > { %v1564_v24 = vsel %vm1553_vm15, nan, %v1563_v8  ;;  %vm1567_vm0 = vcmp.lt.s32.totalorder %v6619_v58, 0  ;;  %v1736_v59 = vshrl.u32 %v5956_v33, %v6888_v46  ;;  %v1786_v0 = vsel %vm1785_vm2, 1, %v5962_v27 }
 0x1cc   : > { %v5704_v12 = vadd.s32 4294967294, %v1671_v1  ;;  %5446 = vst [vmem:[%s6343_s10 + $0x30] sm:$0xff] %v1564_v24  ;;  %v1796_v55 = vmul.u32 %v1794_v53, %v1769_v11  ;;  %v1797_v25 = vmul.u32 %v1793_v63, %v1770_v28  ;;  %v1659_v20 = vadd.s32 %v6990_v13, %v7007_v9 }
 0x1cd   : > { %v1757_v45 = vsel %vm1755_vm7, %v7019_v10, 2102212464  ;;  %v1788_v23 = vadd.s32 %v1786_v0, %v1784_v14  ;;  %v1689_v19 = vsub.s32 4, %v7046_v44  ;;  %v1795_v38 = vmul.u32 %v1793_v63, %v1769_v11 }
 0x1ce   : > { %vm5705_vm1 = vcmp.lt.s32.totalorder %v5704_v12, 0  ;;  %v1799_v29 = vshll.u32 %v1796_v55, 16  ;;  %v1778_v18 = vshrl.u32 %v1774_v49, 16  ;;  %v1798_v15 = vmul.u32 %v1794_v53, %v1770_v28 }
 0x1cf   : > { %v1674_v32 = vsel %vm5705_vm1, 0, %v5704_v12  ;;  %v1801_v3 = vshll.u32 %v1797_v25, 16  ;;  %v1756_v10 = vsel %vm1752_vm6, %v1736_v59, %v7025_v61  ;;  %v1780_v11 = vshrl.u32 %v7056_v60, 16 }
 0x1d0   : > { %v1675_v52 = vsub.s32 32, %v1674_v32  ;;  %v1679_v46 = vsub.s32 4294967266, %v1674_v32  ;;  %v1676_v36 = vshll.u32 %v1667_v5, %v1674_v32  ;;  %vm1803_vm3 = vc.u32 %v1795_v38, %v1799_v29 }
 0x1d1   : > { %v1805_v2 = vadd.s32 %v1799_v29, %v1795_v38  ;;  %v1789_v56 = vadd.s32 %v1788_v23, %v1778_v18  ;;  %v1804_v51 = vsel %vm1803_vm3, 1, %v5962_v27  ;;  %v1878_v5 = vand.u32 2139095040, %v7071_v4 }
 0x1d2   : > { %v1677_v13 = vshrl.u32 %v1659_v20, %v1675_v52  ;;  %v1680_v9 = vadd.s32 127, %v1679_v46  ;;  %v1806_v40 = vadd.s32 %v1804_v51, %v1798_v15  ;;  %v1690_v41 = vsel %vm1567_vm0, %v1689_v19, %v7046_v44  ;;  %v425_v44 = vpop.f32.mrf.mxu1 }
 0x1d3   : > { %vm1807_vm4 = vc.u32 %v1805_v2, %v1801_v3  ;;  %v1758_v31 = vsel %vm1754_vm8, %v7015_v42, %v1757_v45  ;;  %v1800_v6 = vshrl.u32 %v1796_v55, 16  ;;  %v1790_v60 = vadd.s32 %v1789_v56, %v1780_v11 }
 0x1d4   : > { %v1678_v34 = vor.u32 %v1677_v13, %v1676_v36  ;;  %v1681_v49 = vshll.u32 %v1680_v9, 23  ;;  %v1808_v28 = vsel %vm1807_vm4, 1, %v5962_v27  ;;  %v1875_v30 = vand.u32 2147483647, %v7071_v4 }
 0x1d5   : > { %v1810_v61 = vadd.s32 %v1808_v28, %v1806_v40  ;;  %v1879_v26 = vshrl.u32 %v1878_v5, 23  ;;  %vm7100_vm5 = vcmp.le.f32.partialorder %v1565_v54, 0.7853982  ;;  %v1802_v48 = vshrl.u32 %v1797_v25, 16 }
 0x1d6   : > { %v1682_v21 = vor.u32 4788187, %v1681_v49  ;;  %v1685_v8 = vcvt.s32.f32 %v1678_v34  ;;  %v1809_v1 = vadd.s32 %v1805_v2, %v1801_v3  ;;  %v1692_v14 = vsel %vm7100_vm5, 0, %v1690_v41 }
 0x1d7   : > { %v1811_v62 = vadd.s32 %v1810_v61, %v1800_v6  ;;  %v5709_v42 = vadd.s32 4294967169, %v1879_v26  ;;  %v1759_v24 = vsel %vm1753_vm9, %v1756_v10, %v1758_v31  ;;  %v1882_v54 = vand.u32 8388607, %v1875_v30 }
 0x1d8   : > { %v1683_v63 = vand.u32 2147483647, %v1682_v21  ;;  %vm1815_vm6 = vc.u32 %v1790_v60, %v1809_v1  ;;  %v7111_v0 = vadd.f32 %v7068_v17, %v425_v44  ;;  %v1813_v20 = vmul.u32 %v7044_v16, %v1759_v24 }
 0x1d9   : > { %v1812_v53 = vadd.s32 %v1811_v62, %v1802_v48  ;;  %v1885_v59 = vadd.s32 1, %v5709_v42  ;;  %v1709_v45 = vadd.s32 3, %v1692_v14  ;;  %v1883_v29 = vor.u32 8388608, %v1882_v54 }
 0x1da   : > { %v1686_v12 = vmul.f32 %v1685_v8, %v1683_v63  ;;  %v2030_v22 = vand.u32 2147483647, %v7111_v0  ;;  %v2033_v18 = vand.u32 2139095040, %v7111_v0  ;;  %v7125_v2 = vadd.s32 %v1809_v1, %v1790_v60 }
 0x1db   : > { %v1816_v55 = vadd.s32 1, %v1812_v53  ;;  %vm1886_vm7 = vcmp.gt.s32.totalorder %v1885_v59, 0  ;;  %v7123_v3 = vand.u32 3, %v1709_v45  ;;  %v7131_v10 = vshll.u32 %v1883_v29, 8 }
 0x1dc   : > { %v1687_v25 = vxor.u32 2147483648, %v1686_v12  ;;  %v1887_v32 = vsel %vm1886_vm7, %v1885_v59, 0  ;;  %v7129_v13 = vand.u32 8388607, %v2030_v22  ;;  %v2034_v49 = vshrl.u32 %v2033_v18, 23 }
 0x1dd   : > { %v1817_v23 = vsel %vm1815_vm6, %v1816_v55, %v1812_v53  ;;  %v1889_v52 = vand.u32 31, %v1887_v32  ;;  %vm1722_vm8 = vcmp.lt.s32.totalorder %v6614_v47, 0  ;;  %v7140_v31 = vshrl.u32 %v1887_v32, 5 }
 0x1de   : > { %v1688_v19 = vsel %vm1567_vm0, %v1687_v25, %v1686_v12  ;;  %v1818_v38 = vadd.s32 %v1817_v23, %v1813_v20  ;;  %vm1715_vm9 = vcmp.eq.s32.totalorder %v7123_v3, 2  ;;  %vm1712_vm11 = vcmp.eq.s32.totalorder %v7123_v3, 0 }
 0x1df   : > { %v1691_v46 = vsel %vm7100_vm5, %v6619_v58, %v1688_v19  ;;  %v7121_v36 = vsub.s32 32, %v1889_v52  ;;  %v1892_v6 = vshll.u32 %v5956_v33, %v1889_v52  ;;  %v1895_v61 = vshll.u32 %v5957_v35, %v1889_v52 }
 0x1e0   : > { %v1693_v15 = vmul.f32 %v1691_v46, %v1691_v46  ;;  %v1819_v16 = vadd.s32 536870912, %v1818_v38  ;;  %v1898_v21 = vshll.u32 %v5958_v37, %v1889_v52  ;;  %v1901_v60 = vshll.u32 %v5959_v39, %v1889_v52 }
 0x1e1   : > { %v1893_v11 = vshrl.u32 %v5957_v35, %v7121_v36  ;;  %v1896_v40 = vshrl.u32 %v5958_v37, %v7121_v36  ;;  %v1902_v34 = vshrl.u32 %v5960_v43, %v7121_v36  ;;  %v1899_v62 = vshrl.u32 %v5959_v39, %v7121_v36 }
 0x1e2   : > { %v1694_v9 = vmul.f32 -0.001358992, %v1693_v15  ;;  %v1701_v56 = vmul.f32 -0.00019511016, %v1693_v15  ;;  %v1820_v51 = vshrl.u32 %v1819_v16, 30  ;;  %v1905_v1 = vshrl.u32 %v5961_v50, %v7121_v36 }
 0x1e3   : > { %v7151_v44 = vor.u32 %v1893_v11, %v1892_v6  ;;  %v7153_v63 = vor.u32 %v1896_v40, %v1895_v61  ;;  %v1903_v8 = vor.u32 %v1902_v34, %v1901_v60  ;;  %v1904_v12 = vshll.u32 %v5960_v43, %v1889_v52 }
 0x1e4   : > { %v1695_v28 = vadd.f32 0.041655596, %v1694_v9  ;;  %v1702_v5 = vadd.f32 0.008332121, %v1701_v56  ;;  %v1821_v41 = vshll.u32 %v1820_v51, 30  ;;  %v1844_v53 = vsub.s32 4, %v1820_v51 }
 0x1e5   : > { %v7162_v54 = vand.u32 65535, %v7131_v10  ;;  %v7165_v59 = vshrl.u32 %v7131_v10, 16  ;;  %vm1711_vm13 = vcmp.lt.s32.totalorder %v7123_v3, 2  ;;  %v1900_v45 = vor.u32 %v1899_v62, %v1898_v21 }
 0x1e6   : > { %v1696_v26 = vmul.f32 %v1695_v28, %v1693_v15  ;;  %v1703_v57 = vmul.f32 %v1702_v5, %v1693_v15  ;;  %v7146_v48 = vsub.s32 %v1818_v38, %v1821_v41  ;;  %vm1708_vm12 = vweird.f32 %v6619_v58 }
 0x1e7   : > { %v1906_v32 = vor.u32 %v1905_v1, %v1904_v12  ;;  %vm1907_vm14 = vcmp.lt.s32.totalorder %v7140_v31, 1  ;;  %vm1910_vm15 = vcmp.lt.s32.totalorder %v7140_v31, 4  ;;  %vm7174_vm2 = vcmp.le.f32.partialorder %v1720_v7, 0.7853982 }
 0x1e8   : > { %v1697_v42 = vadd.f32 -0.4999988, %v1696_v26  ;;  %v1704_v14 = vadd.f32 -0.16666654, %v1703_v57  ;;  %vm1823_vm10 = vcmp.lt.s32.totalorder %v7146_v48, 0  ;;  %v1824_v24 = vsub.s32 0, %v7146_v48 }
 0x1e9   : > { %v1915_v52 = vsel %vm1907_vm14, %v7151_v44, %v7153_v63  ;;  %v1916_v18 = vsel %vm1910_vm15, %v1903_v8, 920167782  ;;  %v7186_v16 = vsel %vm1722_vm8, %v1844_v53, %v1820_v51  ;;  %vm1909_vm0 = vcmp.lt.s32.totalorder %v7140_v31, 3 }
 0x1ea   : > { %v1698_v55 = vmul.f32 %v1697_v42, %v1693_v15  ;;  %v1705_v25 = vmul.f32 %v1704_v14, %v1693_v15  ;;  %v1825_v20 = vsel %vm1823_vm10, %v1824_v24, %v7146_v48  ;;  %v5712_v9 = vadd.s32 4294967169, %v2034_v49 }
 0x1eb   : > { %v1826_v23 = vclz %v1825_v20  ;;  %vm1908_vm1 = vcmp.lt.s32.totalorder %v7140_v31, 2  ;;  %v1917_v11 = vsel %vm1909_vm0, %v1900_v45, %v1916_v18  ;;  %v1919_v34 = vsel %vm1907_vm14, %v7153_v63, %v1900_v45 }
 0x1ec   : > { %v1699_v19 = vadd.f32 1.0, %v1698_v55  ;;  %v1706_v38 = vadd.f32 1.0, %v1705_v25  ;;  %v1918_v40 = vsel %vm1908_vm1, %v1915_v52, %v1917_v11  ;;  %v1920_v51 = vsel %vm1910_vm15, %v1906_v32, 1326507024 }
 0x1ed   : > { %v5707_v15 = vadd.s32 4294967294, %v1826_v23  ;;  %v1921_v5 = vsel %vm1909_vm0, %v1903_v8, %v1920_v51  ;;  %v1948_v62 = vand.u32 65535, %v1918_v40  ;;  %v1949_v14 = vshrl.u32 %v1918_v40, 16 }
 0x1ee   : > { %v1707_v7 = vmul.f32 %v1706_v38, %v1691_v46  ;;  %v1716_v56 = vxor.u32 2147483648, %v1699_v19  ;;  %v1922_v21 = vsel %vm1908_vm1, %v1919_v34, %v1921_v5  ;;  %v1891_v24 = vshrl.u32 %v5956_v33, %v7121_v36 }
 0x1ef   : > { %vm5708_vm3 = vcmp.lt.s32.totalorder %v5707_v15, 0  ;;  %v1926_v26 = vand.u32 65535, %v1922_v21  ;;  %v1927_v57 = vshrl.u32 %v1922_v21, 16  ;;  %v1847_v3 = vsel %vm7174_vm2, 0, %v7186_v16 }
 0x1f0   : > { %v1713_v28 = vxor.u32 2147483648, %v1707_v7  ;;  %v1717_v46 = vsel %vm1715_vm9, %v1716_v56, %v1707_v7  ;;  %v1829_v49 = vsel %vm5708_vm3, 0, %v5707_v15  ;;  %v2040_v20 = vadd.s32 1, %v5712_v9 }
 0x1f1   : > { %v1830_v41 = vsub.s32 32, %v1829_v49  ;;  %v1831_v6 = vshll.u32 %v7146_v48, %v1829_v49  ;;  %v1834_v61 = vsub.s32 4294967266, %v1829_v49  ;;  %v1929_v53 = vmul.u32 %v1927_v57, %v7162_v54 }
 0x1f2   : > { %v1714_v60 = vsel %vm1712_vm11, %v1699_v19, %v1713_v28  ;;  %v1930_v12 = vmul.u32 %v1926_v26, %v7165_v59  ;;  %v1911_v58 = vsel %vm1907_vm14, %v1891_v24, %v7151_v44  ;;  %v1928_v36 = vmul.u32 %v1926_v26, %v7162_v54 }
 0x1f3   : > { %v1718_v1 = vsel %vm1711_vm13, %v1714_v60, %v1717_v46  ;;  %v1832_v42 = vshrl.u32 %v7125_v2, %v1830_v41  ;;  %v1835_v8 = vadd.s32 127, %v1834_v61  ;;  %v1912_v2 = vsel %vm1910_vm15, %v1900_v45, 2102212464 }
 0x1f4   : > { %v1719_v48 = vsel %vm1708_vm12, nan, %v1718_v1  ;;  %v1932_v23 = vshll.u32 %v1929_v53, 16  ;;  %v1931_v19 = vmul.u32 %v1927_v57, %v7165_v59  ;;  %v1951_v38 = vmul.u32 %v1949_v14, %v7162_v54 }
 0x1f5   : > { %v1833_v55 = vor.u32 %v1832_v42, %v1831_v6  ;;  %v1836_v25 = vshll.u32 %v1835_v8, 23  ;;  %5447 = vst [vmem:[%s6343_s10 + $0x38] sm:$0xff] %v1719_v48  ;;  %v1952_v52 = vmul.u32 %v1948_v62, %v7165_v59  ;;  %v1934_v18 = vshll.u32 %v1930_v12, 16 }
 0x1f6   : > { %vm1936_vm4 = vc.u32 %v1928_v36, %v1932_v23  ;;  %v1938_v15 = vadd.s32 %v1932_v23, %v1928_v36  ;;  %v1950_v16 = vmul.u32 %v1948_v62, %v7162_v54  ;;  %v1954_v45 = vshll.u32 %v1951_v38, 16 }
 0x1f7   : > { %v1837_v32 = vor.u32 4788187, %v1836_v25  ;;  %v1840_v44 = vcvt.s32.f32 %v1833_v55  ;;  %v1937_v7 = vsel %vm1936_vm4, 1, %v5962_v27  ;;  %v1953_v11 = vmul.u32 %v1949_v14, %v7165_v59 }
 0x1f8   : > { %v1939_v56 = vadd.s32 %v1937_v7, %v1931_v19  ;;  %vm1940_vm5 = vc.u32 %v1938_v15, %v1934_v18  ;;  %v1956_v40 = vshll.u32 %v1952_v52, 16  ;;  %vm1958_vm6 = vc.u32 %v1950_v16, %v1954_v45 }
 0x1f9   : > { %v1838_v9 = vand.u32 2147483647, %v1837_v32  ;;  %v1941_v51 = vsel %vm1940_vm5, 1, %v5962_v27  ;;  %v1960_v28 = vadd.s32 %v1954_v45, %v1950_v16  ;;  %v1933_v46 = vshrl.u32 %v1929_v53, 16 }
 0x1fa   : > { %v1943_v49 = vadd.s32 %v1941_v51, %v1939_v56  ;;  %v1959_v5 = vsel %vm1958_vm6, 1, %v5962_v27  ;;  %vm2041_vm7 = vcmp.gt.s32.totalorder %v2040_v20, 0  ;;  %v1913_v41 = vsel %vm1909_vm0, %v7153_v63, %v1912_v2 }
 0x1fb   : > { %v1841_v34 = vmul.f32 %v1840_v44, %v1838_v9  ;;  %v1961_v6 = vadd.s32 %v1959_v5, %v1953_v11  ;;  %vm1962_vm9 = vc.u32 %v1960_v28, %v1956_v40  ;;  %v1935_v61 = vshrl.u32 %v1930_v12, 16  ;;  %v427_v44 = vpop.f32.mrf.mxu1 }
 0x1fc   : > { %v1944_v59 = vadd.s32 %v1943_v49, %v1933_v46  ;;  %v1963_v21 = vsel %vm1962_vm9, 1, %v5962_v27  ;;  %v2042_v60 = vsel %vm2041_vm7, %v2040_v20, 0  ;;  %v1955_v57 = vshrl.u32 %v1951_v38, 16 }
 0x1fd   : > { %v1842_v54 = vxor.u32 2147483648, %v1841_v34  ;;  %v1965_v62 = vadd.s32 %v1963_v21, %v1961_v6  ;;  %v2044_v1 = vand.u32 31, %v2042_v60  ;;  %v7248_v63 = vadd.s32 %v1960_v28, %v1956_v40 }
 0x1fe   : > { %v7246_v8 = vadd.s32 %v1944_v59, %v1935_v61  ;;  %v2038_v14 = vor.u32 8388608, %v7129_v13  ;;  %v1957_v24 = vshrl.u32 %v1952_v52, 16  ;;  %v1864_v55 = vadd.s32 3, %v1847_v3 }
 0x1ff   : > { %v1843_v26 = vsel %vm1722_vm8, %v1842_v54, %v1841_v34  ;;  %v1966_v53 = vadd.s32 %v1965_v62, %v1955_v57  ;;  %v7253_v12 = vsub.s32 32, %v2044_v1  ;;  %v1914_v25 = vsel %vm1908_vm1, %v1911_v58, %v1913_v41 }
 0x200   : > { %v7244_v42 = vsel %vm7174_vm2, %v6614_v47, %v1843_v26  ;;  %vm1970_vm8 = vc.u32 %v7246_v8, %v7248_v63  ;;  %v7259_v29 = vshrl.u32 %v2042_v60, 5  ;;  %v2050_v13 = vshll.u32 %v5957_v35, %v2044_v1 }
 0x201   : > { %v1848_v48 = vmul.f32 %v7244_v42, %v7244_v42  ;;  %v1967_v36 = vadd.s32 %v1966_v53, %v1957_v24  ;;  %v2051_v23 = vshrl.u32 %v5958_v37, %v7253_v12  ;;  %v2053_v32 = vshll.u32 %v5958_v37, %v2044_v1 }
 0x202   : > { %v2054_v3 = vshrl.u32 %v5959_v39, %v7253_v12  ;;  %v2056_v31 = vshll.u32 %v5959_v39, %v2044_v1  ;;  %v2057_v52 = vshrl.u32 %v5960_v43, %v7253_v12  ;;  %v1968_v18 = vmul.u32 %v7131_v10, %v1914_v25 }
 0x203   : > { %v1849_v20 = vmul.f32 -0.001358992, %v1848_v48  ;;  %v1856_v2 = vmul.f32 -0.00019511016, %v1848_v48  ;;  %v1971_v38 = vadd.s32 1, %v1967_v36  ;;  %v2047_v15 = vshll.u32 %v5956_v33, %v2044_v1 }
 0x204   : > { %v2048_v16 = vshrl.u32 %v5957_v35, %v7253_v12  ;;  %v2059_v9 = vshll.u32 %v5960_v43, %v2044_v1  ;;  %v7278_v11 = vor.u32 %v2051_v23, %v2050_v13  ;;  %v7280_v34 = vor.u32 %v2054_v3, %v2053_v32 }
 0x205   : > { %v1850_v58 = vadd.f32 0.041655596, %v1849_v20  ;;  %v1857_v19 = vadd.f32 0.008332121, %v1856_v2  ;;  %v1972_v56 = vsel %vm1970_vm8, %v1971_v38, %v1967_v36  ;;  %v2058_v10 = vor.u32 %v2057_v52, %v2056_v31  ;;  %v430_v38 = vpop.f32.mrf.mxu1 }
 0x206   : > { %v1973_v40 = vadd.s32 %v1972_v56, %v1968_v18  ;;  %v2060_v51 = vshrl.u32 %v5961_v50, %v7253_v12  ;;  %vm2062_vm10 = vcmp.lt.s32.totalorder %v7259_v29, 1  ;;  %vm2065_vm11 = vcmp.lt.s32.totalorder %v7259_v29, 4 }
 0x207   : > { %v1851_v7 = vmul.f32 %v1850_v58, %v1848_v48  ;;  %v1858_v45 = vmul.f32 %v1857_v19, %v1848_v48  ;;  %v7287_v49 = vadd.f32 %v7068_v17, %v427_v44  ;;  %v2049_v54 = vor.u32 %v2048_v16, %v2047_v15 }
 0x208   : > { %v1974_v5 = vadd.s32 536870912, %v1973_v40  ;;  %v2061_v41 = vor.u32 %v2060_v51, %v2059_v9  ;;  %v1865_v59 = vand.u32 3, %v1864_v55  ;;  %vm2064_vm13 = vcmp.lt.s32.totalorder %v7259_v29, 3 }
 0x209   : > { %v1852_v28 = vadd.f32 -0.4999988, %v1851_v7  ;;  %v1859_v46 = vadd.f32 -0.16666654, %v1858_v45  ;;  %vm1863_vm12 = vweird.f32 %v6614_v47  ;;  %v2071_v60 = vsel %vm2065_vm11, %v2058_v10, 920167782 }
 0x20a   : > { %v7291_v21 = vshrl.u32 %v1974_v5, 30  ;;  %v2074_v26 = vsel %vm2062_vm10, %v7278_v11, %v7280_v34  ;;  %v7299_v57 = vshll.u32 %v2038_v14, 8  ;;  %vm2063_vm14 = vcmp.lt.s32.totalorder %v7259_v29, 2 }
 0x20b   : > { %v1853_v6 = vmul.f32 %v1852_v28, %v1848_v48  ;;  %v1860_v61 = vmul.f32 %v1859_v46, %v1848_v48  ;;  %v2075_v48 = vsel %vm2065_vm11, %v2061_v41, 1326507024  ;;  %v2070_v53 = vsel %vm2062_vm10, %v2049_v54, %v7278_v11 }
 0x20c   : > { %v1976_v24 = vshll.u32 %v7291_v21, 30  ;;  %v2072_v55 = vsel %vm2064_vm13, %v7280_v34, %v2071_v60  ;;  %v2076_v14 = vsel %vm2064_vm13, %v2058_v10, %v2075_v48  ;;  %vm1866_vm15 = vcmp.lt.s32.totalorder %v1865_v59, 2 }
 0x20d   : > { %v1854_v62 = vadd.f32 1.0, %v1853_v6  ;;  %v1861_v1 = vadd.f32 1.0, %v1860_v61  ;;  %v2077_v2 = vsel %vm2063_vm14, %v2074_v26, %v2076_v14  ;;  %vm1867_vm2 = vcmp.eq.s32.totalorder %v1865_v59, 0 }
 0x20e   : > { %v1977_v36 = vsub.s32 %v1973_v40, %v1976_v24  ;;  %v2081_v13 = vand.u32 65535, %v2077_v2  ;;  %v2082_v23 = vshrl.u32 %v2077_v2, 16  ;;  %v2073_v3 = vsel %vm2063_vm14, %v2070_v53, %v2072_v55 }
 0x20f   : > { %v1862_v25 = vmul.f32 %v1861_v1, %v7244_v42  ;;  %v1871_v20 = vxor.u32 2147483648, %v1854_v62  ;;  %v2079_v31 = vand.u32 65535, %v7299_v57  ;;  %v2080_v58 = vshrl.u32 %v7299_v57, 16 }
 0x210   : > { %vm1870_vm0 = vcmp.eq.s32.totalorder %v1865_v59, 2  ;;  %vm1978_vm1 = vcmp.lt.s32.totalorder %v1977_v36, 0  ;;  %v1979_v42 = vsub.s32 0, %v1977_v36  ;;  %v2046_v19 = vshrl.u32 %v5956_v33, %v7253_v12 }
 0x211   : > { %v1868_v32 = vxor.u32 2147483648, %v1862_v25  ;;  %v1872_v18 = vsel %vm1870_vm0, %v1871_v20, %v1862_v25  ;;  %v2084_v15 = vmul.u32 %v2082_v23, %v2079_v31  ;;  %v2085_v16 = vmul.u32 %v2081_v13, %v2080_v58 }
 0x212   : > { %v1980_v44 = vsel %vm1978_vm1, %v1979_v42, %v1977_v36  ;;  %v2103_v7 = vand.u32 65535, %v2073_v3  ;;  %v2104_v45 = vshrl.u32 %v2073_v3, 16  ;;  %v2083_v10 = vmul.u32 %v2081_v13, %v2079_v31 }
 0x213   : > { %v1869_v52 = vsel %vm1867_vm2, %v1854_v62, %v1868_v32  ;;  %v1981_v40 = vclz %v1980_v44  ;;  %v2087_v51 = vshll.u32 %v2084_v15, 16  ;;  %v7326_v28 = vadd.f32 %v7068_v17, %v430_v38 }
 0x214   : > { %v1873_v9 = vsel %vm1866_vm15, %v1869_v52, %v1872_v18  ;;  %v1969_v12 = vadd.s32 %v7248_v63, %v7246_v8  ;;  %v2066_v46 = vsel %vm2062_vm10, %v2046_v19, %v2049_v54  ;;  %v2086_v5 = vmul.u32 %v2082_v23, %v2080_v58 }
 0x215   : > { %v1874_v56 = vsel %vm1863_vm12, nan, %v1873_v9  ;;  %v5710_v41 = vadd.s32 4294967294, %v1981_v40  ;;  %v2089_v6 = vshll.u32 %v2085_v16, 16  ;;  %vm2091_vm3 = vc.u32 %v2083_v10, %v2087_v51 }
 0x216   : > { %5448 = vst [vmem:[%s6343_s10 + $0x40] sm:$0xff] %v1874_v56  ;;  %v2093_v61 = vadd.s32 %v2087_v51, %v2083_v10  ;;  %v2067_v47 = vsel %vm2065_vm11, %v7280_v34, 2102212464  ;;  %v2092_v59 = vsel %vm2091_vm3, 1, %v5962_v27  ;;  %v2106_v17 = vmul.u32 %v2104_v45, %v2079_v31 }
 0x217   : > { %v2107_v60 = vmul.u32 %v2103_v7, %v2080_v58  ;;  %vm5711_vm4 = vcmp.lt.s32.totalorder %v5710_v41, 0  ;;  %v2094_v26 = vadd.s32 %v2092_v59, %v2086_v5  ;;  %v2105_v8 = vmul.u32 %v2103_v7, %v2079_v31 }
 0x218   : > { %vm2095_vm5 = vc.u32 %v2093_v61, %v2089_v6  ;;  %v1984_v63 = vsel %vm5711_vm4, 0, %v5710_v41  ;;  %v2088_v54 = vshrl.u32 %v2084_v15, 16  ;;  %v2109_v1 = vshll.u32 %v2106_v17, 16 }
 0x219   : > { %v2096_v62 = vsel %vm2095_vm5, 1, %v5962_v27  ;;  %v1985_v48 = vsub.s32 32, %v1984_v63  ;;  %v1989_v24 = vsub.s32 4294967266, %v1984_v63  ;;  %v2108_v55 = vmul.u32 %v2104_v45, %v2080_v58 }
 0x21a   : > { %v2098_v53 = vadd.s32 %v2096_v62, %v2094_v26  ;;  %v1986_v14 = vshll.u32 %v1977_v36, %v1984_v63  ;;  %v2111_v25 = vshll.u32 %v2107_v60, 16  ;;  %vm2113_vm6 = vc.u32 %v2105_v8, %v2109_v1 }
 0x21b   : > { %v2115_v34 = vadd.s32 %v2109_v1, %v2105_v8  ;;  %v1987_v20 = vshrl.u32 %v1969_v12, %v1985_v48  ;;  %v1990_v2 = vadd.s32 127, %v1989_v24  ;;  %v2114_v23 = vsel %vm2113_vm6, 1, %v5962_v27 }
 0x21c   : > { %v2099_v13 = vadd.s32 %v2098_v53, %v2088_v54  ;;  %v2068_v32 = vsel %vm2064_vm13, %v7278_v11, %v2067_v47  ;;  %v2116_v3 = vadd.s32 %v2114_v23, %v2108_v55  ;;  %v2185_v31 = vand.u32 2147483647, %v7287_v49 }
 0x21d   : > { %vm2117_vm7 = vc.u32 %v2115_v34, %v2111_v25  ;;  %v1988_v42 = vor.u32 %v1987_v20, %v1986_v14  ;;  %v1991_v19 = vshll.u32 %v1990_v2, 23  ;;  %v2090_v58 = vshrl.u32 %v2085_v16, 16 }
 0x21e   : > { %v2118_v36 = vsel %vm2117_vm7, 1, %v5962_v27  ;;  %v1999_v38 = vsub.s32 4, %v7291_v21  ;;  %v2110_v52 = vshrl.u32 %v2106_v17, 16  ;;  %v2188_v15 = vand.u32 2139095040, %v7287_v49 }
 0x21f   : > { %v2120_v18 = vadd.s32 %v2118_v36, %v2116_v3  ;;  %vm1877_vm9 = vcmp.lt.s32.totalorder %v7071_v4, 0  ;;  %v1992_v9 = vor.u32 4788187, %v1991_v19  ;;  %v2100_v44 = vadd.s32 %v2099_v13, %v2090_v58 }
 0x220   : > { %v2112_v11 = vshrl.u32 %v2107_v60, 16  ;;  %v2189_v45 = vshrl.u32 %v2188_v15, 23  ;;  %v2192_v56 = vand.u32 8388607, %v2185_v31  ;;  %v1995_v16 = vcvt.s32.f32 %v1988_v42 }
 0x221   : > { %v2121_v7 = vadd.s32 %v2120_v18, %v2110_v52  ;;  %v1993_v40 = vand.u32 2147483647, %v1992_v9  ;;  %v2069_v10 = vsel %vm2063_vm14, %v2066_v46, %v2068_v32  ;;  %v2119_v51 = vadd.s32 %v2115_v34, %v2111_v25 }
 0x222   : > { %v2000_v12 = vsel %vm1877_vm9, %v1999_v38, %v7291_v21  ;;  %v5715_v41 = vadd.s32 4294967169, %v2189_v45  ;;  %v2343_v6 = vand.u32 2139095040, %v7326_v28  ;;  %vm1876_vm10 = vcmp.le.f32.partialorder %v1875_v30, 0.7853982 }
 0x223   : > { %v2122_v5 = vadd.s32 %v2121_v7, %v2112_v11  ;;  %v1996_v61 = vmul.f32 %v1995_v16, %v1993_v40  ;;  %vm2125_vm8 = vc.u32 %v2100_v44, %v2119_v51  ;;  %v2193_v59 = vor.u32 8388608, %v2192_v56 }
 0x224   : > { %v2195_v17 = vadd.s32 1, %v5715_v41  ;;  %v2002_v29 = vsel %vm1876_vm10, 0, %v2000_v12  ;;  %v2123_v46 = vmul.u32 %v7299_v57, %v2069_v10  ;;  %v2344_v8 = vshrl.u32 %v2343_v6, 23 }
 0x225   : > { %v2126_v47 = vadd.s32 1, %v2122_v5  ;;  %v1997_v60 = vxor.u32 2147483648, %v1996_v61  ;;  %v2019_v1 = vadd.s32 3, %v2002_v29  ;;  %v7361_v30 = vshll.u32 %v2193_v59, 8 }
 0x226   : > { %vm2196_vm11 = vcmp.gt.s32.totalorder %v2195_v17, 0  ;;  %v5718_v14 = vadd.s32 4294967169, %v2344_v8  ;;  %v7367_v2 = vadd.s32 %v2119_v51, %v2100_v44  ;;  %v2340_v23 = vand.u32 2147483647, %v7326_v28 }
 0x227   : > { %v2127_v26 = vsel %vm2125_vm8, %v2126_v47, %v2122_v5  ;;  %v1998_v21 = vsel %vm1877_vm9, %v1997_v60, %v1996_v61  ;;  %v2197_v54 = vsel %vm2196_vm11, %v2195_v17, 0  ;;  %v7365_v20 = vand.u32 3, %v2019_v1 }
 0x228   : > { %v2128_v63 = vadd.s32 %v2127_v26, %v2123_v46  ;;  %v2001_v62 = vsel %vm1876_vm10, %v7071_v4, %v1998_v21  ;;  %v2199_v48 = vand.u32 31, %v2197_v54  ;;  %v7370_v13 = vand.u32 65535, %v7361_v30 }
 0x229   : > { %v2003_v24 = vmul.f32 %v2001_v62, %v2001_v62  ;;  %v7375_v19 = vshrl.u32 %v7361_v30, 16  ;;  %v7377_v58 = vshrl.u32 %v2197_v54, 5  ;;  %v7381_v52 = vadd.s32 1, %v5718_v14 }
 0x22a   : > { %v2129_v53 = vadd.s32 536870912, %v2128_v63  ;;  %v2200_v55 = vsub.s32 32, %v2199_v48  ;;  %vm2025_vm13 = vcmp.eq.s32.totalorder %v7365_v20, 2  ;;  %v2202_v11 = vshll.u32 %v5956_v33, %v2199_v48 }
 0x22b   : > { %v2004_v25 = vmul.f32 -0.001358992, %v2003_v24  ;;  %v2011_v57 = vmul.f32 -0.00019511016, %v2003_v24  ;;  %v2205_v7 = vshll.u32 %v5957_v35, %v2199_v48  ;;  %v2211_v56 = vshll.u32 %v5959_v39, %v2199_v48 }
 0x22c   : > { %v7363_v34 = vshrl.u32 %v2129_v53, 30  ;;  %v2203_v36 = vshrl.u32 %v5957_v35, %v2200_v55  ;;  %v2206_v38 = vshrl.u32 %v5958_v37, %v2200_v55  ;;  %v2212_v44 = vshrl.u32 %v5960_v43, %v2200_v55 }
 0x22d   : > { %v2005_v32 = vadd.f32 0.041655596, %v2004_v25  ;;  %v2012_v3 = vadd.f32 0.008332121, %v2011_v57  ;;  %v2209_v45 = vshrl.u32 %v5959_v39, %v2200_v55  ;;  %vm2022_vm14 = vcmp.eq.s32.totalorder %v7365_v20, 0 }
 0x22e   : > { %v2131_v42 = vshll.u32 %v7363_v34, 30  ;;  %v2204_v51 = vor.u32 %v2203_v36, %v2202_v11  ;;  %v7394_v12 = vor.u32 %v2206_v38, %v2205_v7  ;;  %v2208_v5 = vshll.u32 %v5958_v37, %v2199_v48 }
 0x22f   : > { %v2006_v18 = vmul.f32 %v2005_v32, %v2003_v24  ;;  %v2013_v15 = vmul.f32 %v2012_v3, %v2003_v24  ;;  %v2215_v41 = vshrl.u32 %v5961_v50, %v2200_v55  ;;  %vm2021_vm15 = vcmp.lt.s32.totalorder %v7365_v20, 2 }
 0x230   : > { %v7383_v9 = vsub.s32 %v2128_v63, %v2131_v42  ;;  %v2213_v59 = vor.u32 %v2212_v44, %v2211_v56  ;;  %vm2018_vm2 = vweird.f32 %v7071_v4  ;;  %v2201_v60 = vshrl.u32 %v5956_v33, %v2200_v55 }
 0x231   : > { %v2007_v40 = vadd.f32 -0.4999988, %v2006_v18  ;;  %v2014_v16 = vadd.f32 -0.16666654, %v2013_v15  ;;  %v2210_v29 = vor.u32 %v2209_v45, %v2208_v5  ;;  %v2214_v46 = vshll.u32 %v5960_v43, %v2199_v48 }
 0x232   : > { %vm2133_vm12 = vcmp.lt.s32.totalorder %v7383_v9, 0  ;;  %v2134_v10 = vsub.s32 0, %v7383_v9  ;;  %v2154_v21 = vsub.s32 4, %v7363_v34  ;;  %vm2217_vm0 = vcmp.lt.s32.totalorder %v7377_v58, 1 }
 0x233   : > { %v2008_v6 = vmul.f32 %v2007_v40, %v2003_v24  ;;  %v2015_v61 = vmul.f32 %v2014_v16, %v2003_v24  ;;  %vm2032_vm1 = vcmp.lt.s32.totalorder %v7111_v0, 0  ;;  %v2216_v54 = vor.u32 %v2215_v41, %v2214_v46 }
 0x234   : > { %v2135_v47 = vsel %vm2133_vm12, %v2134_v10, %v7383_v9  ;;  %vm2220_vm3 = vcmp.lt.s32.totalorder %v7377_v58, 4  ;;  %v2225_v1 = vsel %vm2217_vm0, %v2204_v51, %v7394_v12  ;;  %vm2219_vm4 = vcmp.lt.s32.totalorder %v7377_v58, 3 }
 0x235   : > { %v2136_v17 = vclz %v2135_v47  ;;  %v2009_v26 = vadd.f32 1.0, %v2008_v6  ;;  %v2016_v8 = vadd.f32 1.0, %v2015_v61  ;;  %v2226_v48 = vsel %vm2220_vm3, %v2213_v59, 920167782 }
 0x236   : > { %vm2218_vm6 = vcmp.lt.s32.totalorder %v7377_v58, 2  ;;  %v2227_v55 = vsel %vm2219_vm4, %v2210_v29, %v2226_v48  ;;  %v2229_v14 = vsel %vm2217_vm0, %v7394_v12, %v2210_v29  ;;  %v2230_v38 = vsel %vm2220_vm3, %v2216_v54, 1326507024 }
 0x237   : > { %v5713_v63 = vadd.s32 4294967294, %v2136_v17  ;;  %v2017_v24 = vmul.f32 %v2016_v8, %v2001_v62  ;;  %v2026_v53 = vxor.u32 2147483648, %v2009_v26  ;;  %v2228_v32 = vsel %vm2218_vm6, %v2225_v1, %v2227_v55 }
 0x238   : > { %v2231_v15 = vsel %vm2219_vm4, %v2213_v59, %v2230_v38  ;;  %v2258_v44 = vand.u32 65535, %v2228_v32  ;;  %v2259_v11 = vshrl.u32 %v2228_v32, 16  ;;  %vm2351_vm7 = vcmp.gt.s32.totalorder %v7381_v52, 0 }
 0x239   : > { %vm5714_vm5 = vcmp.lt.s32.totalorder %v5713_v63, 0  ;;  %v2023_v25 = vxor.u32 2147483648, %v2017_v24  ;;  %v2027_v62 = vsel %vm2025_vm13, %v2026_v53, %v2017_v24  ;;  %v2222_v16 = vsel %vm2220_vm3, %v2210_v29, 2102212464 }
 0x23a   : > { %v2139_v57 = vsel %vm5714_vm5, 0, %v5713_v63  ;;  %v2261_v20 = vmul.u32 %v2259_v11, %v7370_v13  ;;  %v7446_v61 = vsel %vm2032_vm1, %v2154_v21, %v7363_v34  ;;  %v2221_v4 = vsel %vm2217_vm0, %v2201_v60, %v2204_v51 }
 0x23b   : > { %v2140_v3 = vsub.s32 32, %v2139_v57  ;;  %v2141_v42 = vshll.u32 %v7383_v9, %v2139_v57  ;;  %v2144_v36 = vsub.s32 4294967266, %v2139_v57  ;;  %v2024_v18 = vsel %vm2022_vm14, %v2009_v26, %v2023_v25 }
 0x23c   : > { %v2028_v7 = vsel %vm2021_vm15, %v2024_v18, %v2027_v62  ;;  %v2232_v9 = vsel %vm2218_vm6, %v2229_v14, %v2231_v15  ;;  %vm7454_vm9 = vcmp.le.f32.partialorder %v2030_v22, 0.7853982  ;;  %v2223_v46 = vsel %vm2219_vm4, %v7394_v12, %v2222_v16 }
 0x23d   : > { %v2142_v45 = vshrl.u32 %v7367_v2, %v2140_v3  ;;  %v2145_v56 = vadd.s32 127, %v2144_v36  ;;  %v2029_v40 = vsel %vm2018_vm2, nan, %v2028_v7  ;;  %v2236_v10 = vand.u32 65535, %v2232_v9 }
 0x23e   : > { %v2237_v5 = vshrl.u32 %v2232_v9, 16  ;;  %v2262_v2 = vmul.u32 %v2258_v44, %v7375_v19  ;;  %5449 = vst [vmem:[%s6343_s10 + $0x48] sm:$0xff] %v2029_v40  ;;  %v2260_v34 = vmul.u32 %v2258_v44, %v7370_v13  ;;  %v2264_v26 = vshll.u32 %v2261_v20, 16 }
 0x23f   : > { %v2143_v41 = vor.u32 %v2142_v45, %v2141_v42  ;;  %v2146_v6 = vshll.u32 %v2145_v56, 23  ;;  %v2240_v59 = vmul.u32 %v2236_v10, %v7375_v19  ;;  %v2238_v51 = vmul.u32 %v2236_v10, %v7370_v13 }
 0x240   : > { %v2239_v47 = vmul.u32 %v2237_v5, %v7370_v13  ;;  %v2241_v60 = vmul.u32 %v2237_v5, %v7375_v19  ;;  %v2263_v22 = vmul.u32 %v2259_v11, %v7375_v19  ;;  %v2266_v1 = vshll.u32 %v2262_v2, 16 }
 0x241   : > { %v2147_v29 = vor.u32 4788187, %v2146_v6  ;;  %v2150_v8 = vcvt.s32.f32 %v2143_v41  ;;  %v2244_v54 = vshll.u32 %v2240_v59, 16  ;;  %vm2268_vm10 = vc.u32 %v2260_v34, %v2264_v26 }
 0x242   : > { %v2242_v21 = vshll.u32 %v2239_v47, 16  ;;  %v2270_v53 = vadd.s32 %v2264_v26, %v2260_v34  ;;  %v2224_v12 = vsel %vm2218_vm6, %v2221_v4, %v2223_v46  ;;  %v2269_v13 = vsel %vm2268_vm10, 1, %v5962_v27 }
 0x243   : > { %v2148_v63 = vand.u32 2147483647, %v2147_v29  ;;  %v2271_v25 = vadd.s32 %v2269_v13, %v2263_v22  ;;  %v2243_v57 = vshrl.u32 %v2239_v47, 16  ;;  %v2265_v42 = vshrl.u32 %v2261_v20, 16 }
 0x244   : > { %vm2246_vm8 = vc.u32 %v2238_v51, %v2242_v21  ;;  %v2248_v24 = vadd.s32 %v2242_v21, %v2238_v51  ;;  %vm2272_vm13 = vc.u32 %v2270_v53, %v2266_v1  ;;  %v2352_v58 = vsel %vm2351_vm7, %v7381_v52, 0 }
 0x245   : > { %v2151_v48 = vmul.f32 %v2150_v8, %v2148_v63  ;;  %v2247_v55 = vsel %vm2246_vm8, 1, %v5962_v27  ;;  %v2273_v32 = vsel %vm2272_vm13, 1, %v5962_v27  ;;  %v2245_v18 = vshrl.u32 %v2240_v59, 16 }
 0x246   : > { %v2249_v14 = vadd.s32 %v2247_v55, %v2241_v60  ;;  %vm2250_vm11 = vc.u32 %v2248_v24, %v2244_v54  ;;  %v2275_v36 = vadd.s32 %v2273_v32, %v2271_v25  ;;  %v2347_v15 = vand.u32 8388607, %v2340_v23 }
 0x247   : > { %v2152_v62 = vxor.u32 2147483648, %v2151_v48  ;;  %v2251_v19 = vsel %vm2250_vm11, 1, %v5962_v27  ;;  %v2354_v44 = vand.u32 31, %v2352_v58  ;;  %v2267_v45 = vshrl.u32 %v2262_v2, 16 }
 0x248   : > { %v2253_v3 = vadd.s32 %v2251_v19, %v2249_v14  ;;  %v2276_v56 = vadd.s32 %v2275_v36, %v2265_v42  ;;  %v2157_v9 = vsel %vm7454_vm9, 0, %v7446_v61  ;;  %v2278_v40 = vmul.u32 %v7361_v30, %v2224_v12  ;;  %v432_v12 = vpop.f32.mrf.mxu1 }
 0x249   : > { %v2153_v38 = vsel %vm2032_vm1, %v2152_v62, %v2151_v48  ;;  %v7485_v16 = vsub.s32 32, %v2354_v44  ;;  %v7489_v5 = vadd.s32 %v2270_v53, %v2266_v1  ;;  %v7491_v6 = vshrl.u32 %v2352_v58, 5 }
 0x24a   : > { %v2156_v11 = vsel %vm7454_vm9, %v7111_v0, %v2153_v38  ;;  %v2254_v7 = vadd.s32 %v2253_v3, %v2243_v57  ;;  %v2277_v41 = vadd.s32 %v2276_v56, %v2267_v45  ;;  %v2357_v2 = vshll.u32 %v5956_v33, %v2354_v44 }
 0x24b   : > { %v2158_v52 = vmul.f32 %v2156_v11, %v2156_v11  ;;  %v2360_v47 = vshll.u32 %v5957_v35, %v2354_v44  ;;  %v2361_v30 = vshrl.u32 %v5958_v37, %v7485_v16  ;;  %v2366_v59 = vshll.u32 %v5959_v39, %v2354_v44 }
 0x24c   : > { %v7487_v10 = vadd.s32 %v2254_v7, %v2245_v18  ;;  %v2281_v61 = vadd.s32 1, %v2277_v41  ;;  %v2363_v46 = vshll.u32 %v5958_v37, %v2354_v44  ;;  %v2364_v34 = vshrl.u32 %v5959_v39, %v7485_v16 }
 0x24d   : > { %v2159_v20 = vmul.f32 -0.001358992, %v2158_v52  ;;  %v2166_v4 = vmul.f32 -0.00019511016, %v2158_v52  ;;  %v2358_v8 = vshrl.u32 %v5957_v35, %v7485_v16  ;;  %v2367_v51 = vshrl.u32 %v5960_v43, %v7485_v16 }
 0x24e   : > { %vm2280_vm12 = vc.u32 %v7487_v10, %v7489_v5  ;;  %v2369_v60 = vshll.u32 %v5960_v43, %v2354_v44  ;;  %v2348_v22 = vor.u32 8388608, %v2347_v15  ;;  %v2174_v1 = vadd.s32 3, %v2157_v9 }
 0x24f   : > { %v2160_v17 = vadd.f32 0.041655596, %v2159_v20  ;;  %v2167_v29 = vadd.f32 0.008332121, %v2166_v4  ;;  %v2282_v26 = vsel %vm2280_vm12, %v2281_v61, %v2277_v41  ;;  %v7508_v24 = vor.u32 %v2361_v30, %v2360_v47  ;;  %v7543_v20 = vld [vmem:[%s9896_s2] ss:$0 sm:$0xff] }
 0x250   : > { %v2283_v54 = vadd.s32 %v2282_v26, %v2278_v40  ;;  %v2368_v53 = vor.u32 %v2367_v51, %v2366_v59  ;;  %v2370_v48 = vshrl.u32 %v5961_v50, %v7485_v16  ;;  %v2365_v25 = vor.u32 %v2364_v34, %v2363_v46 }
 0x251   : > { %v2161_v21 = vmul.f32 %v2160_v17, %v2158_v52  ;;  %v2168_v63 = vmul.f32 %v2167_v29, %v2158_v52  ;;  %v7512_v62 = vor.u32 %v2358_v8, %v2357_v2  ;;  %vm2372_vm14 = vcmp.lt.s32.totalorder %v7491_v6, 1  ;;  %v435_v29 = vpop.f32.mrf.mxu1 }
 0x252   : > { %v2284_v14 = vadd.s32 536870912, %v2283_v54  ;;  %v2371_v57 = vor.u32 %v2370_v48, %v2369_v60  ;;  %vm2375_vm15 = vcmp.lt.s32.totalorder %v7491_v6, 4  ;;  %vm2374_vm2 = vcmp.lt.s32.totalorder %v7491_v6, 3 }
 0x253   : > { %v2162_v55 = vadd.f32 -0.4999988, %v2161_v21  ;;  %v2169_v13 = vadd.f32 -0.16666654, %v2168_v63  ;;  %v2175_v42 = vand.u32 3, %v2174_v1  ;;  %v2384_v44 = vsel %vm2372_vm14, %v7508_v24, %v2365_v25 }
 0x254   : > { %v7516_v3 = vshrl.u32 %v2284_v14, 30  ;;  %v2381_v36 = vsel %vm2375_vm15, %v2368_v53, 920167782  ;;  %v2385_v58 = vsel %vm2375_vm15, %v2371_v57, 1326507024  ;;  %v2380_v7 = vsel %vm2372_vm14, %v7512_v62, %v7508_v24 }
 0x255   : > { %v2163_v19 = vmul.f32 %v2162_v55, %v2158_v52  ;;  %v2170_v32 = vmul.f32 %v2169_v13, %v2158_v52  ;;  %v2382_v45 = vsel %vm2374_vm2, %v2365_v25, %v2381_v36  ;;  %v2386_v56 = vsel %vm2374_vm2, %v2368_v53, %v2385_v58 }
 0x256   : > { %v2286_v15 = vshll.u32 %v7516_v3, 30  ;;  %v7535_v9 = vshll.u32 %v2348_v22, 8  ;;  %vm2373_vm0 = vcmp.lt.s32.totalorder %v7491_v6, 2  ;;  %v7546_v4 = vadd.f32 %v7543_v20, %v432_v12 }
 0x257   : > { %v2164_v38 = vadd.f32 1.0, %v2163_v19  ;;  %v2171_v18 = vadd.f32 1.0, %v2170_v32  ;;  %vm2176_vm1 = vcmp.lt.s32.totalorder %v2175_v42, 2  ;;  %vm2177_vm3 = vcmp.eq.s32.totalorder %v2175_v42, 0 }
 0x258   : > { %v7537_v41 = vsub.s32 %v2283_v54, %v2286_v15  ;;  %v2387_v2 = vsel %vm2373_vm0, %v2384_v44, %v2386_v56  ;;  %v2383_v61 = vsel %vm2373_vm0, %v2380_v7, %v2382_v45  ;;  %vm2180_vm5 = vcmp.eq.s32.totalorder %v2175_v42, 2 }
 0x259   : > { %v2172_v52 = vmul.f32 %v2171_v18, %v2156_v11  ;;  %v2181_v40 = vxor.u32 2147483648, %v2164_v38  ;;  %v2389_v30 = vand.u32 65535, %v7535_v9  ;;  %v2391_v59 = vand.u32 65535, %v2387_v2 }
 0x25a   : > { %vm2288_vm4 = vcmp.lt.s32.totalorder %v7537_v41, 0  ;;  %v2289_v11 = vsub.s32 0, %v7537_v41  ;;  %v2392_v17 = vshrl.u32 %v2387_v2, 16  ;;  %v2390_v8 = vshrl.u32 %v7535_v9, 16 }
 0x25b   : > { %v2178_v47 = vxor.u32 2147483648, %v2172_v52  ;;  %v2182_v34 = vsel %vm2180_vm5, %v2181_v40, %v2172_v52  ;;  %vm2173_vm6 = vweird.f32 %v7111_v0  ;;  %v2414_v21 = vshrl.u32 %v2383_v61, 16 }
 0x25c   : > { %v2290_v26 = vsel %vm2288_vm4, %v2289_v11, %v7537_v41  ;;  %v2394_v54 = vmul.u32 %v2392_v17, %v2389_v30  ;;  %v2395_v22 = vmul.u32 %v2391_v59, %v2390_v8  ;;  %v2413_v1 = vand.u32 65535, %v2383_v61 }
 0x25d   : > { %v2179_v46 = vsel %vm2177_vm3, %v2164_v38, %v2178_v47  ;;  %v2291_v60 = vclz %v2290_v26  ;;  %v7560_v53 = vadd.f32 %v7543_v20, %v435_v29  ;;  %v2279_v48 = vadd.s32 %v7489_v5, %v7487_v10 }
 0x25e   : > { %v2183_v51 = vsel %vm2176_vm1, %v2179_v46, %v2182_v34  ;;  %v2356_v55 = vshrl.u32 %v5956_v33, %v7485_v16  ;;  %v2377_v0 = vsel %vm2375_vm15, %v2365_v25, 2102212464  ;;  %v2393_v13 = vmul.u32 %v2391_v59, %v2389_v30 }
 0x25f   : > { %v2184_v63 = vsel %vm2173_vm6, nan, %v2183_v51  ;;  %v5716_v12 = vadd.s32 4294967294, %v2291_v60  ;;  %v2396_v14 = vmul.u32 %v2392_v17, %v2390_v8  ;;  %v2397_v57 = vshll.u32 %v2394_v54, 16 }
 0x260   : > { %5450 = vst [vmem:[%s6343_s10 + $0x50] sm:$0xff] %v2184_v63  ;;  %v2398_v19 = vshrl.u32 %v2394_v54, 16  ;;  %v2399_v32 = vshll.u32 %v2395_v22, 16  ;;  %v2416_v42 = vmul.u32 %v2414_v21, %v2389_v30  ;;  %vm2187_vm9 = vcmp.lt.s32.totalorder %v7287_v49, 0 }
 0x261   : > { %vm5717_vm7 = vcmp.lt.s32.totalorder %v5716_v12, 0  ;;  %vm2401_vm8 = vc.u32 %v2393_v13, %v2397_v57  ;;  %v2403_v10 = vadd.s32 %v2397_v57, %v2393_v13  ;;  %v2417_v5 = vmul.u32 %v2413_v1, %v2390_v8 }
 0x262   : > { %v2294_v36 = vsel %vm5717_vm7, 0, %v5716_v12  ;;  %v2402_v16 = vsel %vm2401_vm8, 1, %v5962_v27  ;;  %v2415_v18 = vmul.u32 %v2413_v1, %v2389_v30  ;;  %v2418_v25 = vmul.u32 %v2414_v21, %v2390_v8 }
 0x263   : > { %v2295_v58 = vsub.s32 32, %v2294_v36  ;;  %v2299_v38 = vsub.s32 4294967266, %v2294_v36  ;;  %v2404_v15 = vadd.s32 %v2402_v16, %v2396_v14  ;;  %vm2405_vm10 = vc.u32 %v2403_v10, %v2399_v32 }
 0x264   : > { %v2419_v44 = vshll.u32 %v2416_v42, 16  ;;  %v2296_v7 = vshll.u32 %v7537_v41, %v2294_v36  ;;  %v2406_v52 = vsel %vm2405_vm10, 1, %v5962_v27  ;;  %v2421_v2 = vshll.u32 %v2417_v5, 16 }
 0x265   : > { %v2297_v45 = vshrl.u32 %v2279_v48, %v2295_v58  ;;  %v2300_v56 = vadd.s32 127, %v2299_v38  ;;  %v2408_v40 = vadd.s32 %v2406_v52, %v2404_v15  ;;  %v2309_v59 = vsub.s32 4, %v7516_v3 }
 0x266   : > { %vm2423_vm11 = vc.u32 %v2415_v18, %v2419_v44  ;;  %v2425_v47 = vadd.s32 %v2419_v44, %v2415_v18  ;;  %v2495_v46 = vand.u32 2147483647, %v7546_v4  ;;  %v2376_v34 = vsel %vm2372_vm14, %v2356_v55, %v7512_v62 }
 0x267   : > { %v2298_v11 = vor.u32 %v2297_v45, %v2296_v7  ;;  %v2301_v61 = vshll.u32 %v2300_v56, 23  ;;  %v2424_v30 = vsel %vm2423_vm11, 1, %v5962_v27  ;;  %v2409_v17 = vadd.s32 %v2408_v40, %v2398_v19 }
 0x268   : > { %v2426_v29 = vadd.s32 %v2424_v30, %v2418_v25  ;;  %vm2427_vm13 = vc.u32 %v2425_v47, %v2421_v2  ;;  %v2400_v26 = vshrl.u32 %v2395_v22, 16  ;;  %v2378_v51 = vsel %vm2374_vm2, %v7508_v24, %v2377_v0 }
 0x269   : > { %v2302_v41 = vor.u32 4788187, %v2301_v61  ;;  %v2428_v8 = vsel %vm2427_vm13, 1, %v5962_v27  ;;  %v2420_v60 = vshrl.u32 %v2416_v42, 16  ;;  %v2498_v63 = vand.u32 2139095040, %v7546_v4 }
 0x26a   : > { %v2430_v21 = vadd.s32 %v2428_v8, %v2426_v29  ;;  %v2305_v1 = vcvt.s32.f32 %v2298_v11  ;;  %v2310_v48 = vsel %vm2187_vm9, %v2309_v59, %v7516_v3  ;;  %v2410_v12 = vadd.s32 %v2409_v17, %v2400_v26 }
 0x26b   : > { %v2303_v54 = vand.u32 2147483647, %v2302_v41  ;;  %v2422_v13 = vshrl.u32 %v2417_v5, 16  ;;  %v2499_v22 = vshrl.u32 %v2498_v63, 23  ;;  %v2502_v55 = vand.u32 8388607, %v2495_v46 }
 0x26c   : > { %v2431_v62 = vadd.s32 %v2430_v21, %v2420_v60  ;;  %v2429_v57 = vadd.s32 %v2425_v47, %v2421_v2  ;;  %vm2186_vm12 = vcmp.le.f32.partialorder %v2185_v31, 0.7853982  ;;  %v2379_v24 = vsel %vm2373_vm0, %v2376_v34, %v2378_v51 }
 0x26d   : > { %v2306_v14 = vmul.f32 %v2305_v1, %v2303_v54  ;;  %v5721_v19 = vadd.s32 4294967169, %v2499_v22  ;;  %v2312_v42 = vsel %vm2186_vm12, 0, %v2310_v48  ;;  %v2503_v36 = vor.u32 8388608, %v2502_v55 }
 0x26e   : > { %v2432_v0 = vadd.s32 %v2431_v62, %v2422_v13  ;;  %vm2435_vm14 = vc.u32 %v2410_v12, %v2429_v57  ;;  %v2653_v5 = vand.u32 2139095040, %v7560_v53  ;;  %v2433_v38 = vmul.u32 %v7535_v9, %v2379_v24 }
 0x26f   : > { %v2307_v32 = vxor.u32 2147483648, %v2306_v14  ;;  %v2505_v10 = vadd.s32 1, %v5721_v19  ;;  %v2329_v16 = vadd.s32 3, %v2312_v42  ;;  %v7598_v7 = vshll.u32 %v2503_v36, 8 }
 0x270   : > { %v2436_v3 = vadd.s32 1, %v2432_v0  ;;  %v2650_v45 = vand.u32 2147483647, %v7560_v53  ;;  %v2654_v56 = vshrl.u32 %v2653_v5, 23  ;;  %vm2342_vm2 = vcmp.lt.s32.totalorder %v7326_v28, 0 }
 0x271   : > { %v2308_v58 = vsel %vm2187_vm9, %v2307_v32, %v2306_v14  ;;  %vm2506_vm15 = vcmp.gt.s32.totalorder %v2505_v10, 0  ;;  %v7601_v47 = vand.u32 3, %v2329_v16  ;;  %v7606_v59 = vadd.s32 %v2429_v57, %v2410_v12 }
 0x272   : > { %v2311_v31 = vsel %vm2186_vm12, %v7287_v49, %v2308_v58  ;;  %v2437_v6 = vsel %vm2435_vm14, %v2436_v3, %v2432_v0  ;;  %v2507_v25 = vsel %vm2506_vm15, %v2505_v10, 0  ;;  %v7611_v29 = vand.u32 65535, %v7598_v7 }
 0x273   : > { %v2313_v18 = vmul.f32 %v2311_v31, %v2311_v31  ;;  %v2438_v15 = vadd.s32 %v2437_v6, %v2433_v38  ;;  %v2509_v44 = vand.u32 31, %v2507_v25  ;;  %v7608_v17 = vshrl.u32 %v2507_v25, 5 }
 0x274   : > { %v5724_v41 = vadd.s32 4294967169, %v2654_v56  ;;  %v7615_v34 = vand.u32 8388607, %v2650_v45  ;;  %vm7619_vm0 = vcmp.le.f32.partialorder %v2340_v23, 0.7853982  ;;  %vm2335_vm1 = vcmp.eq.s32.totalorder %v7601_v47, 2 }
 0x275   : > { %v2314_v52 = vmul.f32 -0.001358992, %v2313_v18  ;;  %v2321_v40 = vmul.f32 -0.00019511016, %v2313_v18  ;;  %v2439_v2 = vadd.s32 536870912, %v2438_v15  ;;  %v7604_v9 = vsub.s32 32, %v2509_v44 }
 0x276   : > { %v2512_v21 = vshll.u32 %v5956_v33, %v2509_v44  ;;  %v2515_v62 = vshll.u32 %v5957_v35, %v2509_v44  ;;  %vm2332_vm3 = vcmp.eq.s32.totalorder %v7601_v47, 0  ;;  %v2518_v22 = vshll.u32 %v5958_v37, %v2509_v44 }
 0x277   : > { %v2315_v11 = vadd.f32 0.041655596, %v2314_v52  ;;  %v2322_v61 = vadd.f32 0.008332121, %v2321_v40  ;;  %v2440_v30 = vshrl.u32 %v2439_v2, 30  ;;  %v2513_v54 = vshrl.u32 %v5957_v35, %v7604_v9 }
 0x278   : > { %v2516_v1 = vshrl.u32 %v5958_v37, %v7604_v9  ;;  %v2522_v48 = vshrl.u32 %v5960_v43, %v7604_v9  ;;  %v2519_v55 = vshrl.u32 %v5959_v39, %v7604_v9  ;;  %v2521_v14 = vshll.u32 %v5959_v39, %v2509_v44 }
 0x279   : > { %v2316_v26 = vmul.f32 %v2315_v11, %v2313_v18  ;;  %v2323_v8 = vmul.f32 %v2322_v61, %v2313_v18  ;;  %v2441_v60 = vshll.u32 %v2440_v30, 30  ;;  %v2464_v63 = vsub.s32 4, %v2440_v30 }
 0x27a   : > { %v2525_v57 = vshrl.u32 %v5961_v50, %v7604_v9  ;;  %vm2331_vm4 = vcmp.lt.s32.totalorder %v7601_v47, 2  ;;  %vm2328_vm6 = vweird.f32 %v7287_v49  ;;  %v2514_v42 = vor.u32 %v2513_v54, %v2512_v21 }
 0x27b   : > { %v2317_v12 = vadd.f32 -0.4999988, %v2316_v26  ;;  %v2324_v13 = vadd.f32 -0.16666654, %v2323_v8  ;;  %v7631_v23 = vsub.s32 %v2438_v15, %v2441_v60  ;;  %v2465_v32 = vsel %vm2342_vm2, %v2464_v63, %v2440_v30 }
 0x27c   : > { %v2517_v3 = vor.u32 %v2516_v1, %v2515_v62  ;;  %v2523_v36 = vor.u32 %v2522_v48, %v2521_v14  ;;  %v2524_v38 = vshll.u32 %v5960_v43, %v2509_v44  ;;  %v2520_v6 = vor.u32 %v2519_v55, %v2518_v22 }
 0x27d   : > { %v2318_v24 = vmul.f32 %v2317_v12, %v2313_v18  ;;  %v2325_v0 = vmul.f32 %v2324_v13, %v2313_v18  ;;  %vm2443_vm5 = vcmp.lt.s32.totalorder %v7631_v23, 0  ;;  %v2444_v19 = vsub.s32 0, %v7631_v23 }
 0x27e   : > { %v2545_v18 = vshrl.u32 %v7598_v7, 16  ;;  %v7650_v15 = vadd.s32 1, %v5724_v41  ;;  %v2526_v52 = vor.u32 %v2525_v57, %v2524_v38  ;;  %vm2527_vm7 = vcmp.lt.s32.totalorder %v7608_v17, 1 }
 0x27f   : > { %v2319_v10 = vadd.f32 1.0, %v2318_v24  ;;  %v2326_v5 = vadd.f32 1.0, %v2325_v0  ;;  %v2445_v58 = vsel %vm2443_vm5, %v2444_v19, %v7631_v23  ;;  %v2467_v2 = vsel %vm7619_vm0, 0, %v2465_v32 }
 0x280   : > { %v2446_v16 = vclz %v2445_v58  ;;  %vm2530_vm9 = vcmp.lt.s32.totalorder %v7608_v17, 4  ;;  %v2535_v44 = vsel %vm2527_vm7, %v2514_v42, %v2517_v3  ;;  %vm2528_vm8 = vcmp.lt.s32.totalorder %v7608_v17, 2 }
 0x281   : > { %v2327_v25 = vmul.f32 %v2326_v5, %v2311_v31  ;;  %v2336_v56 = vxor.u32 2147483648, %v2319_v10  ;;  %vm2529_vm10 = vcmp.lt.s32.totalorder %v7608_v17, 3  ;;  %v2536_v31 = vsel %vm2530_vm9, %v2523_v36, 920167782 }
 0x282   : > { %v5719_v40 = vadd.s32 4294967294, %v2446_v16  ;;  %v2537_v30 = vsel %vm2529_vm10, %v2520_v6, %v2536_v31  ;;  %v2539_v41 = vsel %vm2527_vm7, %v2517_v3, %v2520_v6  ;;  %v2540_v21 = vsel %vm2530_vm9, %v2526_v52, 1326507024 }
 0x283   : > { %v2333_v11 = vxor.u32 2147483648, %v2327_v25  ;;  %v2337_v61 = vsel %vm2335_vm1, %v2336_v56, %v2327_v25  ;;  %v2538_v60 = vsel %vm2528_vm8, %v2535_v44, %v2537_v30  ;;  %vm2661_vm13 = vcmp.gt.s32.totalorder %v7650_v15, 0 }
 0x284   : > { %vm5720_vm11 = vcmp.lt.s32.totalorder %v5719_v40, 0  ;;  %v2532_v48 = vsel %vm2530_vm9, %v2520_v6, 2102212464  ;;  %v2541_v13 = vsel %vm2529_vm10, %v2523_v36, %v2540_v21  ;;  %v2568_v62 = vand.u32 65535, %v2538_v60 }
 0x285   : > { %v2334_v26 = vsel %vm2332_vm3, %v2319_v10, %v2333_v11  ;;  %v2449_v8 = vsel %vm5720_vm11, 0, %v5719_v40  ;;  %v2569_v22 = vshrl.u32 %v2538_v60, 16  ;;  %v2542_v47 = vsel %vm2528_vm8, %v2539_v41, %v2541_v13 }
 0x286   : > { %v2338_v63 = vsel %vm2331_vm4, %v2334_v26, %v2337_v61  ;;  %v2450_v54 = vsub.s32 32, %v2449_v8  ;;  %v2454_v1 = vsub.s32 4294967266, %v2449_v8  ;;  %v2451_v55 = vshll.u32 %v7631_v23, %v2449_v8 }
 0x287   : > { %v2339_v12 = vsel %vm2328_vm6, nan, %v2338_v63  ;;  %v2511_v24 = vshrl.u32 %v5956_v33, %v7604_v9  ;;  %v2546_v0 = vand.u32 65535, %v2542_v47  ;;  %v2547_v49 = vshrl.u32 %v2542_v47, 16 }
 0x288   : > { %v2452_v14 = vshrl.u32 %v7606_v59, %v2450_v54  ;;  %v2455_v57 = vadd.s32 127, %v2454_v1  ;;  %5451 = vst [vmem:[%s6343_s10 + $0x58] sm:$0xff] %v2339_v12  ;;  %v2571_v19 = vmul.u32 %v2569_v22, %v7611_v29  ;;  %v7691_v10 = vadd.s32 3, %v2467_v2 }
 0x289   : > { %v2572_v5 = vmul.u32 %v2568_v62, %v2545_v18  ;;  %v2531_v59 = vsel %vm2527_vm7, %v2511_v24, %v2514_v42  ;;  %v2533_v23 = vsel %vm2529_vm10, %v2517_v3, %v2532_v48  ;;  %v2549_v58 = vmul.u32 %v2547_v49, %v7611_v29 }
 0x28a   : > { %v2453_v32 = vor.u32 %v2452_v14, %v2451_v55  ;;  %v2456_v36 = vshll.u32 %v2455_v57, 23  ;;  %v2550_v38 = vmul.u32 %v2546_v0, %v2545_v18  ;;  %v2570_v9 = vmul.u32 %v2568_v62, %v7611_v29 }
 0x28b   : > { %v2573_v6 = vmul.u32 %v2569_v22, %v2545_v18  ;;  %v2574_v25 = vshll.u32 %v2571_v19, 16  ;;  %v2548_v52 = vmul.u32 %v2546_v0, %v7611_v29  ;;  %v2551_v40 = vmul.u32 %v2547_v49, %v2545_v18 }
 0x28c   : > { %v2457_v16 = vor.u32 4788187, %v2456_v36  ;;  %v2460_v56 = vcvt.s32.f32 %v2453_v32  ;;  %v2552_v2 = vshll.u32 %v2549_v58, 16  ;;  %v2554_v11 = vshll.u32 %v2550_v38, 16 }
 0x28d   : > { %v2576_v31 = vshll.u32 %v2572_v5, 16  ;;  %vm2578_vm12 = vc.u32 %v2570_v9, %v2574_v25  ;;  %v2580_v61 = vadd.s32 %v2574_v25, %v2570_v9  ;;  %v2662_v8 = vsel %vm2661_vm13, %v7650_v15, 0 }
 0x28e   : > { %v2458_v44 = vand.u32 2147483647, %v2457_v16  ;;  %vm2556_vm14 = vc.u32 %v2548_v52, %v2552_v2  ;;  %v2558_v42 = vadd.s32 %v2552_v2, %v2548_v52  ;;  %v2579_v3 = vsel %vm2578_vm12, 1, %v5962_v27 }
 0x28f   : > { %v2557_v41 = vsel %vm2556_vm14, 1, %v5962_v27  ;;  %v2581_v26 = vadd.s32 %v2579_v3, %v2573_v6  ;;  %v2534_v29 = vsel %vm2528_vm8, %v2531_v59, %v2533_v23  ;;  %vm2582_vm1 = vc.u32 %v2580_v61, %v2576_v31 }
 0x290   : > { %v2461_v30 = vmul.f32 %v2460_v56, %v2458_v44  ;;  %v2559_v18 = vadd.s32 %v2557_v41, %v2551_v40  ;;  %vm2560_vm15 = vc.u32 %v2558_v42, %v2554_v11  ;;  %v2575_v63 = vshrl.u32 %v2571_v19, 16  ;;  %v440_v11 = vpop.f32.mrf.mxu2 }
 0x291   : > { %v2561_v21 = vsel %vm2560_vm15, 1, %v5962_v27  ;;  %v2583_v54 = vsel %vm2582_vm1, 1, %v5962_v27  ;;  %v2553_v1 = vshrl.u32 %v2549_v58, 16  ;;  %v2664_v13 = vand.u32 31, %v2662_v8 }
 0x292   : > { %v2462_v60 = vxor.u32 2147483648, %v2461_v30  ;;  %v2563_v48 = vadd.s32 %v2561_v21, %v2559_v18  ;;  %v2585_v12 = vadd.s32 %v2583_v54, %v2581_v26  ;;  %v2555_v15 = vshrl.u32 %v2550_v38, 16  ;;  %v437_v54 = vpop.f32.mrf.mxu1 }
 0x293   : > { %v2577_v22 = vshrl.u32 %v2572_v5, 16  ;;  %v7711_v17 = vshrl.u32 %v2662_v8, 5  ;;  %v7716_v47 = vsub.s32 32, %v2664_v13  ;;  %v2588_v0 = vmul.u32 %v7598_v7, %v2534_v29 }
 0x294   : > { %v2463_v62 = vsel %vm2342_vm2, %v2462_v60, %v2461_v30  ;;  %v2564_v14 = vadd.s32 %v2563_v48, %v2553_v1  ;;  %v2586_v57 = vadd.s32 %v2585_v12, %v2575_v63  ;;  %v2667_v49 = vshll.u32 %v5956_v33, %v2664_v13 }
 0x295   : > { %v2466_v55 = vsel %vm7619_vm0, %v7326_v28, %v2463_v62  ;;  %v2670_v19 = vshll.u32 %v5957_v35, %v2664_v13  ;;  %v7723_v36 = vadd.s32 %v2580_v61, %v2576_v31  ;;  %v2668_v51 = vshrl.u32 %v5957_v35, %v7716_v47 }
 0x296   : > { %v2468_v24 = vmul.f32 %v2466_v55, %v2466_v55  ;;  %v7721_v32 = vadd.s32 %v2564_v14, %v2555_v15  ;;  %v2587_v5 = vadd.s32 %v2586_v57, %v2577_v22  ;;  %v2671_v58 = vshrl.u32 %v5958_v37, %v7716_v47 }
 0x297   : > { %vm2682_vm2 = vcmp.lt.s32.totalorder %v7711_v17, 1  ;;  %v2673_v38 = vshll.u32 %v5958_v37, %v2664_v13  ;;  %v2674_v16 = vshrl.u32 %v5959_v39, %v7716_v47  ;;  %v7735_v25 = vor.u32 %v2668_v51, %v2667_v49 }
 0x298   : > { %v2469_v59 = vmul.f32 -0.001358992, %v2468_v24  ;;  %v2476_v23 = vmul.f32 -0.00019511016, %v2468_v24  ;;  %vm2590_vm0 = vc.u32 %v7721_v32, %v7723_v36  ;;  %v2591_v7 = vadd.s32 1, %v2587_v5 }
 0x299   : > { %v7737_v56 = vor.u32 %v2671_v58, %v2670_v19  ;;  %v2676_v40 = vshll.u32 %v5959_v39, %v2664_v13  ;;  %v2677_v2 = vshrl.u32 %v5960_v43, %v7716_v47  ;;  %v2679_v44 = vshll.u32 %v5960_v43, %v2664_v13 }
 0x29a   : > { %v2470_v9 = vadd.f32 0.041655596, %v2469_v59  ;;  %v2477_v6 = vadd.f32 0.008332121, %v2476_v23  ;;  %v2592_v52 = vsel %vm2590_vm0, %v2591_v7, %v2587_v5  ;;  %v2680_v61 = vshrl.u32 %v5961_v50, %v7716_v47 }
 0x29b   : > { %v2593_v3 = vadd.s32 %v2592_v52, %v2588_v0  ;;  %v7745_v30 = vor.u32 %v2674_v16, %v2673_v38  ;;  %v2678_v41 = vor.u32 %v2677_v2, %v2676_v40  ;;  %vm2684_vm3 = vcmp.lt.s32.totalorder %v7711_v17, 3 }
 0x29c   : > { %v2471_v31 = vmul.f32 %v2470_v9, %v2468_v24  ;;  %v2478_v42 = vmul.f32 %v2477_v6, %v2468_v24  ;;  %vm2685_vm4 = vcmp.lt.s32.totalorder %v7711_v17, 4  ;;  %v2681_v18 = vor.u32 %v2680_v61, %v2679_v44 }
 0x29d   : > { %v2594_v29 = vadd.s32 536870912, %v2593_v3  ;;  %v7750_v60 = vadd.f32 %v7543_v20, %v440_v11  ;;  %v2658_v21 = vor.u32 8388608, %v7615_v34  ;;  %v2691_v63 = vsel %vm2685_vm4, %v2678_v41, 920167782 }
 0x29e   : > { %v2472_v26 = vadd.f32 -0.4999988, %v2471_v31  ;;  %v2479_v8 = vadd.f32 -0.16666654, %v2478_v42  ;;  %v2690_v13 = vsel %vm2682_vm2, %v7735_v25, %v7737_v56  ;;  %v2485_v62 = vand.u32 3, %v7691_v10 }
 0x29f   : > { %v7755_v12 = vshrl.u32 %v2594_v29, 30  ;;  %vm2683_vm5 = vcmp.lt.s32.totalorder %v7711_v17, 2  ;;  %v2692_v34 = vsel %vm2684_vm3, %v7745_v30, %v2691_v63  ;;  %v2695_v15 = vsel %vm2685_vm4, %v2681_v18, 1326507024 }
 0x2a0   : > { %v2473_v1 = vmul.f32 %v2472_v26, %v2468_v24  ;;  %v2480_v48 = vmul.f32 %v2479_v8, %v2468_v24  ;;  %v2694_v24 = vsel %vm2682_vm2, %v7737_v56, %v7745_v30  ;;  %v7774_v10 = vadd.f32 %v7543_v20, %v437_v54 }
 0x2a1   : > { %v2596_v57 = vshll.u32 %v7755_v12, 30  ;;  %v2693_v0 = vsel %vm2683_vm5, %v2690_v13, %v2692_v34  ;;  %v2696_v49 = vsel %vm2684_vm3, %v2678_v41, %v2695_v15  ;;  %v7780_v19 = vshll.u32 %v2658_v21, 8 }
 0x2a2   : > { %v2474_v22 = vadd.f32 1.0, %v2473_v1  ;;  %v2481_v14 = vadd.f32 1.0, %v2480_v48  ;;  %vm2483_vm6 = vweird.f32 %v7326_v28  ;;  %vm2486_vm7 = vcmp.lt.s32.totalorder %v2485_v62, 2 }
 0x2a3   : > { %v2597_v59 = vsub.s32 %v2593_v3, %v2596_v57  ;;  %vm2487_vm9 = vcmp.eq.s32.totalorder %v2485_v62, 0  ;;  %v2697_v23 = vsel %vm2683_vm5, %v2694_v24, %v2696_v49  ;;  %v2724_v20 = vshrl.u32 %v2693_v0, 16 }
 0x2a4   : > { %v2482_v5 = vmul.f32 %v2481_v14, %v2466_v55  ;;  %v2491_v51 = vxor.u32 2147483648, %v2474_v22  ;;  %vm2490_vm8 = vcmp.eq.s32.totalorder %v2485_v62, 2  ;;  %v2699_v38 = vand.u32 65535, %v7780_v19 }
 0x2a5   : > { %vm2598_vm10 = vcmp.lt.s32.totalorder %v2597_v59, 0  ;;  %v2599_v7 = vsub.s32 0, %v2597_v59  ;;  %v2700_v16 = vshrl.u32 %v7780_v19, 16  ;;  %v2701_v9 = vand.u32 65535, %v2697_v23 }
 0x2a6   : > { %v2488_v58 = vxor.u32 2147483648, %v2482_v5  ;;  %v2702_v55 = vshrl.u32 %v2697_v23, 16  ;;  %v2492_v52 = vsel %vm2490_vm8, %v2491_v51, %v2482_v5  ;;  %v2723_v2 = vand.u32 65535, %v2693_v0 }
 0x2a7   : > { %v2600_v40 = vsel %vm2598_vm10, %v2599_v7, %v2597_v59  ;;  %v7788_v31 = vmul.u32 %v2724_v20, %v2699_v38  ;;  %v2960_v42 = vand.u32 2147483647, %v7750_v60  ;;  %v2705_v41 = vmul.u32 %v2701_v9, %v2700_v16 }
 0x2a8   : > { %v2489_v6 = vsel %vm2487_vm9, %v2474_v22, %v2488_v58  ;;  %v2601_v11 = vclz %v2600_v40  ;;  %v2704_v61 = vmul.u32 %v2702_v55, %v2699_v38  ;;  %v2963_v26 = vand.u32 2139095040, %v7750_v60 }
 0x2a9   : > { %v2493_v44 = vsel %vm2486_vm7, %v2489_v6, %v2492_v52  ;;  %vm2497_vm11 = vcmp.lt.s32.totalorder %v7546_v4, 0  ;;  %v2589_v8 = vadd.s32 %v7723_v36, %v7721_v32  ;;  %v2619_v18 = vsub.s32 4, %v7755_v12 }
 0x2aa   : > { %v2494_v3 = vsel %vm2483_vm6, nan, %v2493_v44  ;;  %v5722_v29 = vadd.s32 4294967294, %v2601_v11  ;;  %v2666_v21 = vshrl.u32 %v5956_v33, %v7716_v47  ;;  %v2703_v63 = vmul.u32 %v2701_v9, %v2699_v38 }
 0x2ab   : > { %5452 = vst [vmem:[%s6343_s10 + $0x60] sm:$0xff] %v2494_v3  ;;  %v2707_v54 = vshll.u32 %v2704_v61, 16  ;;  %v2725_v28 = vmul.u32 %v2723_v2, %v2699_v38  ;;  %v2727_v1 = vmul.u32 %v2723_v2, %v2700_v16  ;;  %v2706_v48 = vmul.u32 %v2702_v55, %v2700_v16 }
 0x2ac   : > { %vm5723_vm13 = vcmp.lt.s32.totalorder %v5722_v29, 0  ;;  %v2708_v13 = vshrl.u32 %v2704_v61, 16  ;;  %v2729_v62 = vshll.u32 %v7788_v31, 16  ;;  %v2709_v15 = vshll.u32 %v2705_v41, 16 }
 0x2ad   : > { %v2604_v34 = vsel %vm5723_vm13, 0, %v5722_v29  ;;  %vm2711_vm12 = vc.u32 %v2703_v63, %v2707_v54  ;;  %v2713_v32 = vadd.s32 %v2707_v54, %v2703_v63  ;;  %vm7804_vm14 = vcmp.le.f32.partialorder %v2495_v46, 0.7853982 }
 0x2ae   : > { %v2605_v47 = vsub.s32 32, %v2604_v34  ;;  %v2609_v22 = vsub.s32 4294967266, %v2604_v34  ;;  %v2712_v14 = vsel %vm2711_vm12, 1, %v5962_v27  ;;  %v2728_v57 = vmul.u32 %v2724_v20, %v2700_v16 }
 0x2af   : > { %v2606_v24 = vshll.u32 %v2597_v59, %v2604_v34  ;;  %v2714_v0 = vadd.s32 %v2712_v14, %v2706_v48  ;;  %vm2715_vm15 = vc.u32 %v2713_v32, %v2709_v15  ;;  %vm2733_vm1 = vc.u32 %v2725_v28, %v2729_v62 }
 0x2b0   : > { %v2607_v49 = vshrl.u32 %v2589_v8, %v2605_v47  ;;  %v2610_v5 = vadd.s32 127, %v2609_v22  ;;  %v2716_v51 = vsel %vm2715_vm15, 1, %v5962_v27  ;;  %v2734_v23 = vsel %vm2733_vm1, 1, %v5962_v27 }
 0x2b1   : > { %v2718_v58 = vadd.s32 %v2716_v51, %v2714_v0  ;;  %v2731_v46 = vshll.u32 %v2727_v1, 16  ;;  %v2735_v7 = vadd.s32 %v2729_v62, %v2725_v28  ;;  %v2736_v38 = vadd.s32 %v2734_v23, %v2728_v57 }
 0x2b2   : > { %v2608_v9 = vor.u32 %v2607_v49, %v2606_v24  ;;  %v2611_v55 = vshll.u32 %v2610_v5, 23  ;;  %v2687_v20 = vsel %vm2685_vm4, %v7745_v30, 2102212464  ;;  %v2808_v59 = vand.u32 2139095040, %v7774_v10 }
 0x2b3   : > { %v2620_v16 = vsel %vm2497_vm11, %v2619_v18, %v7755_v12  ;;  %v2719_v6 = vadd.s32 %v2718_v58, %v2708_v13  ;;  %vm2737_vm0 = vc.u32 %v2735_v7, %v2731_v46  ;;  %v2805_v52 = vand.u32 2147483647, %v7774_v10 }
 0x2b4   : > { %v2612_v40 = vor.u32 4788187, %v2611_v55  ;;  %v2710_v2 = vshrl.u32 %v2705_v41, 16  ;;  %v2738_v44 = vsel %vm2737_vm0, 1, %v5962_v27  ;;  %v2809_v11 = vshrl.u32 %v2808_v59, 23 }
 0x2b5   : > { %v2686_v3 = vsel %vm2682_vm2, %v2666_v21, %v7735_v25  ;;  %v2688_v30 = vsel %vm2684_vm3, %v7737_v56, %v2687_v20  ;;  %v2730_v61 = vshrl.u32 %v7788_v31, 16  ;;  %v2740_v12 = vadd.s32 %v2738_v44, %v2736_v38 }
 0x2b6   : > { %v2613_v8 = vand.u32 2147483647, %v2612_v40  ;;  %v2615_v29 = vcvt.s32.f32 %v2608_v9  ;;  %v2720_v18 = vadd.s32 %v2719_v6, %v2710_v2  ;;  %v5727_v63 = vadd.s32 4294967169, %v2809_v11 }
 0x2b7   : > { %v2622_v41 = vsel %vm7804_vm14, 0, %v2620_v16  ;;  %v2732_v54 = vshrl.u32 %v2727_v1, 16  ;;  %v2741_v28 = vadd.s32 %v2740_v12, %v2730_v61  ;;  %v2812_v48 = vand.u32 8388607, %v2805_v52 }
 0x2b8   : > { %v2616_v25 = vmul.f32 %v2615_v29, %v2613_v8  ;;  %v2739_v21 = vadd.s32 %v2735_v7, %v2731_v46  ;;  %v2815_v13 = vadd.s32 1, %v5727_v63  ;;  %v2964_v62 = vshrl.u32 %v2963_v26, 23 }
 0x2b9   : > { %v2689_v56 = vsel %vm2683_vm5, %v2686_v3, %v2688_v30  ;;  %v2742_v31 = vadd.s32 %v2741_v28, %v2732_v54  ;;  %v2639_v15 = vadd.s32 3, %v2622_v41  ;;  %v2813_v47 = vor.u32 8388608, %v2812_v48 }
 0x2ba   : > { %v2617_v34 = vxor.u32 2147483648, %v2616_v25  ;;  %vm2745_vm2 = vc.u32 %v2720_v18, %v2739_v21  ;;  %vm2816_vm3 = vcmp.gt.s32.totalorder %v2815_v13, 0  ;;  %v7835_v1 = vand.u32 8388607, %v2960_v42 }
 0x2bb   : > { %v2746_v32 = vadd.s32 1, %v2742_v31  ;;  %v2817_v22 = vsel %vm2816_vm3, %v2815_v13, 0  ;;  %v2743_v26 = vmul.u32 %v7780_v19, %v2689_v56  ;;  %v5730_v17 = vadd.s32 4294967169, %v2964_v62 }
 0x2bc   : > { %v2618_v14 = vsel %vm2497_vm11, %v2617_v34, %v2616_v25  ;;  %v2819_v57 = vand.u32 31, %v2817_v22  ;;  %v7849_v23 = vand.u32 3, %v2639_v15  ;;  %v7851_v58 = vadd.s32 %v2739_v21, %v2720_v18 }
 0x2bd   : > { %v7843_v24 = vsel %vm7804_vm14, %v7546_v4, %v2618_v14  ;;  %v2747_v0 = vsel %vm2745_vm2, %v2746_v32, %v2742_v31  ;;  %v7853_v46 = vshll.u32 %v2813_v47, 8  ;;  %v2968_v19 = vor.u32 8388608, %v7835_v1 }
 0x2be   : > { %v2623_v49 = vmul.f32 %v7843_v24, %v7843_v24  ;;  %v2748_v5 = vadd.s32 %v2747_v0, %v2743_v26  ;;  %v7847_v51 = vsub.s32 32, %v2819_v57  ;;  %v2970_v9 = vadd.s32 1, %v5730_v17 }
 0x2bf   : > { %v7856_v55 = vshrl.u32 %v2817_v22, 5  ;;  %v2822_v44 = vshll.u32 %v5956_v33, %v2819_v57  ;;  %v2825_v11 = vshll.u32 %v5957_v35, %v2819_v57  ;;  %v2831_v30 = vshll.u32 %v5959_v39, %v2819_v57 }
 0x2c0   : > { %v2624_v7 = vmul.f32 -0.001358992, %v2623_v49  ;;  %v2631_v38 = vmul.f32 -0.00019511016, %v2623_v49  ;;  %v2749_v36 = vadd.s32 536870912, %v2748_v5  ;;  %v2823_v20 = vshrl.u32 %v5957_v35, %v7847_v51 }
 0x2c1   : > { %v2826_v59 = vshrl.u32 %v5958_v37, %v7847_v51  ;;  %v2832_v16 = vshrl.u32 %v5960_v43, %v7847_v51  ;;  %v2829_v3 = vshrl.u32 %v5959_v39, %v7847_v51  ;;  %v2835_v61 = vshrl.u32 %v5961_v50, %v7847_v51 }
 0x2c2   : > { %v2625_v6 = vadd.f32 0.041655596, %v2624_v7  ;;  %v2632_v40 = vadd.f32 0.008332121, %v2631_v38  ;;  %v2750_v2 = vshrl.u32 %v2749_v36, 30  ;;  %v2828_v18 = vshll.u32 %v5958_v37, %v2819_v57 }
 0x2c3   : > { %vm2652_vm4 = vcmp.lt.s32.totalorder %v7560_v53, 0  ;;  %v7873_v63 = vor.u32 %v2823_v20, %v2822_v44  ;;  %v7875_v41 = vor.u32 %v2826_v59, %v2825_v11  ;;  %v2833_v54 = vor.u32 %v2832_v16, %v2831_v30 }
 0x2c4   : > { %v2626_v12 = vmul.f32 %v2625_v6, %v2623_v49  ;;  %v2633_v8 = vmul.f32 %v2632_v40, %v2623_v49  ;;  %v2751_v29 = vshll.u32 %v2750_v2, 30  ;;  %v2834_v28 = vshll.u32 %v5960_v43, %v2819_v57 }
 0x2c5   : > { %vm2645_vm5 = vcmp.eq.s32.totalorder %v7849_v23, 2  ;;  %v7882_v13 = vand.u32 65535, %v7853_v46  ;;  %vm2642_vm6 = vcmp.eq.s32.totalorder %v7849_v23, 0  ;;  %v2830_v62 = vor.u32 %v2829_v3, %v2828_v18 }
 0x2c6   : > { %v2627_v48 = vadd.f32 -0.4999988, %v2626_v12  ;;  %v2634_v25 = vadd.f32 -0.16666654, %v2633_v8  ;;  %v7879_v21 = vsub.s32 %v2748_v5, %v2751_v29  ;;  %v2836_v56 = vor.u32 %v2835_v61, %v2834_v28 }
 0x2c7   : > { %vm2837_vm7 = vcmp.lt.s32.totalorder %v7856_v55, 1  ;;  %vm2840_vm9 = vcmp.lt.s32.totalorder %v7856_v55, 4  ;;  %vm2641_vm8 = vcmp.lt.s32.totalorder %v7849_v23, 2  ;;  %vm2638_vm11 = vweird.f32 %v7546_v4 }
 0x2c8   : > { %v2628_v31 = vmul.f32 %v2627_v48, %v2623_v49  ;;  %v2635_v34 = vmul.f32 %v2634_v25, %v2623_v49  ;;  %vm2753_vm10 = vcmp.lt.s32.totalorder %v7879_v21, 0  ;;  %v2754_v15 = vsub.s32 0, %v7879_v21 }
 0x2c9   : > { %vm7893_vm13 = vcmp.le.f32.partialorder %v2650_v45, 0.7853982  ;;  %v2774_v47 = vsub.s32 4, %v2750_v2  ;;  %v2845_v22 = vsel %vm2837_vm7, %v7873_v63, %v7875_v41  ;;  %v2846_v14 = vsel %vm2840_vm9, %v2833_v54, 920167782 }
 0x2ca   : > { %vm2971_vm12 = vcmp.gt.s32.totalorder %v2970_v9, 0  ;;  %v2629_v26 = vadd.f32 1.0, %v2628_v31  ;;  %v2636_v57 = vadd.f32 1.0, %v2635_v34  ;;  %v2755_v17 = vsel %vm2753_vm10, %v2754_v15, %v7879_v21 }
 0x2cb   : > { %vm2839_vm14 = vcmp.lt.s32.totalorder %v7856_v55, 3  ;;  %v2756_v45 = vclz %v2755_v17  ;;  %vm2838_vm15 = vcmp.lt.s32.totalorder %v7856_v55, 2  ;;  %v2849_v49 = vsel %vm2837_vm7, %v7875_v41, %v2830_v62 }
 0x2cc   : > { %v2847_v0 = vsel %vm2839_vm14, %v2830_v62, %v2846_v14  ;;  %v2637_v5 = vmul.f32 %v2636_v57, %v7843_v24  ;;  %v2646_v7 = vxor.u32 2147483648, %v2629_v26  ;;  %v2850_v36 = vsel %vm2840_vm9, %v2836_v56, 1326507024 }
 0x2cd   : > { %v2848_v38 = vsel %vm2838_vm15, %v2845_v22, %v2847_v0  ;;  %v5725_v20 = vadd.s32 4294967294, %v2756_v45  ;;  %v2821_v59 = vshrl.u32 %v5956_v33, %v7847_v51  ;;  %v2855_v16 = vshrl.u32 %v7853_v46, 16 }
 0x2ce   : > { %v7920_v6 = vsel %vm2971_vm12, %v2970_v9, 0  ;;  %v2643_v40 = vxor.u32 2147483648, %v2637_v5  ;;  %v2775_v24 = vsel %vm2652_vm4, %v2774_v47, %v2750_v2  ;;  %v2842_v44 = vsel %vm2840_vm9, %v2830_v62, 2102212464 }
 0x2cf   : > { %v2851_v11 = vsel %vm2839_vm14, %v2833_v54, %v2850_v36  ;;  %v2647_v3 = vsel %vm2645_vm5, %v2646_v7, %v2637_v5  ;;  %vm5726_vm1 = vcmp.lt.s32.totalorder %v5725_v20, 0  ;;  %v2878_v30 = vand.u32 65535, %v2848_v38 }
 0x2d0   : > { %v2852_v51 = vsel %vm2838_vm15, %v2849_v49, %v2851_v11  ;;  %v2644_v9 = vsel %vm2642_vm6, %v2629_v26, %v2643_v40  ;;  %v2759_v61 = vsel %vm5726_vm1, 0, %v5725_v20  ;;  %v2879_v54 = vshrl.u32 %v2848_v38, 16 }
 0x2d1   : > { %v2856_v2 = vand.u32 65535, %v2852_v51  ;;  %v2857_v12 = vshrl.u32 %v2852_v51, 16  ;;  %v2648_v8 = vsel %vm2641_vm8, %v2644_v9, %v2647_v3  ;;  %v2760_v29 = vsub.s32 32, %v2759_v61 }
 0x2d2   : > { %v2764_v18 = vsub.s32 4294967266, %v2759_v61  ;;  %v2649_v28 = vsel %vm2638_vm11, nan, %v2648_v8  ;;  %v2777_v48 = vsel %vm7893_vm13, 0, %v2775_v24  ;;  %v2761_v56 = vshll.u32 %v7879_v21, %v2759_v61 }
 0x2d3   : > { %v2859_v25 = vmul.u32 %v2857_v12, %v7882_v13  ;;  %v2860_v62 = vmul.u32 %v2856_v2, %v2855_v16  ;;  %v2762_v31 = vshrl.u32 %v7851_v58, %v2760_v29  ;;  %v2841_v23 = vsel %vm2837_vm7, %v2821_v59, %v7873_v63  ;;  %5453 = vst [vmem:[%s6343_s10 + $0x68] sm:$0xff] %v2649_v28 }
 0x2d4   : > { %v2765_v34 = vadd.s32 127, %v2764_v18  ;;  %v2843_v4 = vsel %vm2839_vm14, %v7875_v41, %v2842_v44  ;;  %v2858_v15 = vmul.u32 %v2856_v2, %v7882_v13  ;;  %v2861_v47 = vmul.u32 %v2857_v12, %v2855_v16 }
 0x2d5   : > { %v2862_v22 = vshll.u32 %v2859_v25, 16  ;;  %v2763_v14 = vor.u32 %v2762_v31, %v2761_v56  ;;  %v2881_v21 = vmul.u32 %v2879_v54, %v7882_v13  ;;  %v2882_v57 = vmul.u32 %v2878_v30, %v2855_v16 }
 0x2d6   : > { %v2766_v26 = vshll.u32 %v2765_v34, 23  ;;  %v2864_v58 = vshll.u32 %v2860_v62, 16  ;;  %v2880_v45 = vmul.u32 %v2878_v30, %v7882_v13  ;;  %v2863_v0 = vshrl.u32 %v2859_v25, 16 }
 0x2d7   : > { %vm2866_vm0 = vc.u32 %v2858_v15, %v2862_v22  ;;  %v2868_v17 = vadd.s32 %v2862_v22, %v2858_v15  ;;  %v2884_v5 = vshll.u32 %v2881_v21, 16  ;;  %v2770_v41 = vcvt.s32.f32 %v2763_v14 }
 0x2d8   : > { %v2767_v63 = vor.u32 4788187, %v2766_v26  ;;  %v2867_v49 = vsel %vm2866_vm0, 1, %v5962_v27  ;;  %v2883_v38 = vmul.u32 %v2879_v54, %v2855_v16  ;;  %v2886_v59 = vshll.u32 %v2882_v57, 16 }
 0x2d9   : > { %v2869_v7 = vadd.s32 %v2867_v49, %v2861_v47  ;;  %vm2870_vm2 = vc.u32 %v2868_v17, %v2864_v58  ;;  %vm2888_vm3 = vc.u32 %v2880_v45, %v2884_v5  ;;  %v2890_v44 = vadd.s32 %v2884_v5, %v2880_v45 }
 0x2da   : > { %v2768_v36 = vand.u32 2147483647, %v2767_v63  ;;  %v2871_v20 = vsel %vm2870_vm2, 1, %v5962_v27  ;;  %v2889_v24 = vsel %vm2888_vm3, 1, %v5962_v27  ;;  %v2974_v13 = vand.u32 31, %v7920_v6 }
 0x2db   : > { %v2873_v40 = vadd.s32 %v2871_v20, %v2869_v7  ;;  %v2794_v3 = vadd.s32 3, %v2777_v48  ;;  %v2844_v51 = vsel %vm2838_vm15, %v2841_v23, %v2843_v4  ;;  %v2891_v30 = vadd.s32 %v2889_v24, %v2883_v38 }
 0x2dc   : > { %v2771_v11 = vmul.f32 %v2770_v41, %v2768_v36  ;;  %v2865_v9 = vshrl.u32 %v2860_v62, 16  ;;  %vm2892_vm5 = vc.u32 %v2890_v44, %v2886_v59  ;;  %v7959_v16 = vsub.s32 32, %v2974_v13 }
 0x2dd   : > { %v2874_v61 = vadd.s32 %v2873_v40, %v2863_v0  ;;  %v2885_v12 = vshrl.u32 %v2881_v21, 16  ;;  %v2893_v8 = vsel %vm2892_vm5, 1, %v5962_v27  ;;  %v7963_v29 = vshrl.u32 %v7920_v6, 5 }
 0x2de   : > { %v2772_v2 = vxor.u32 2147483648, %v2771_v11  ;;  %v2887_v54 = vshrl.u32 %v2882_v57, 16  ;;  %v2895_v28 = vadd.s32 %v2893_v8, %v2891_v30  ;;  %v2978_v55 = vshrl.u32 %v5957_v35, %v7959_v16 }
 0x2df   : > { %v7965_v18 = vadd.s32 %v2874_v61, %v2865_v9  ;;  %v7971_v25 = vadd.s32 %v2890_v44, %v2886_v59  ;;  %v2977_v62 = vshll.u32 %v5956_v33, %v2974_v13  ;;  %v2981_v56 = vshrl.u32 %v5958_v37, %v7959_v16 }
 0x2e0   : > { %v2773_v48 = vsel %vm2652_vm4, %v2772_v2, %v2771_v11  ;;  %v2896_v31 = vadd.s32 %v2895_v28, %v2885_v12  ;;  %v2980_v34 = vshll.u32 %v5957_v35, %v2974_v13  ;;  %v2984_v23 = vshrl.u32 %v5959_v39, %v7959_v16 }
 0x2e1   : > { %v2776_v6 = vsel %vm7893_vm13, %v7560_v53, %v2773_v48  ;;  %vm2900_vm4 = vc.u32 %v7965_v18, %v7971_v25  ;;  %v7984_v15 = vor.u32 %v2978_v55, %v2977_v62  ;;  %v2983_v47 = vshll.u32 %v5958_v37, %v2974_v13 }
 0x2e2   : > { %v2778_v4 = vmul.f32 %v2776_v6, %v2776_v6  ;;  %v2897_v22 = vadd.s32 %v2896_v31, %v2887_v54  ;;  %v7987_v14 = vor.u32 %v2981_v56, %v2980_v34  ;;  %v2986_v32 = vshll.u32 %v5959_v39, %v2974_v13 }
 0x2e3   : > { %v2987_v26 = vshrl.u32 %v5960_v43, %v7959_v16  ;;  %v2989_v58 = vshll.u32 %v5960_v43, %v2974_v13  ;;  %v2990_v17 = vshrl.u32 %v5961_v50, %v7959_v16  ;;  %v2898_v45 = vmul.u32 %v7853_v46, %v2844_v51  ;;  %v442_v51 = vpop.f32.mrf.mxu2 }
 0x2e4   : > { %v2779_v21 = vmul.f32 -0.001358992, %v2778_v4  ;;  %v2786_v57 = vmul.f32 -0.00019511016, %v2778_v4  ;;  %v2901_v63 = vadd.s32 1, %v2897_v22  ;;  %v7996_v0 = vor.u32 %v2984_v23, %v2983_v47 }
 0x2e5   : > { %v2988_v49 = vor.u32 %v2987_v26, %v2986_v32  ;;  %v2991_v7 = vor.u32 %v2990_v17, %v2989_v58  ;;  %vm2995_vm6 = vcmp.lt.s32.totalorder %v7963_v29, 4  ;;  %vm2992_vm7 = vcmp.lt.s32.totalorder %v7963_v29, 1 }
 0x2e6   : > { %v2780_v5 = vadd.f32 0.041655596, %v2779_v21  ;;  %v2787_v41 = vadd.f32 0.008332121, %v2786_v57  ;;  %v2902_v38 = vsel %vm2900_vm4, %v2901_v63, %v2897_v22  ;;  %vm2994_vm9 = vcmp.lt.s32.totalorder %v7963_v29, 3 }
 0x2e7   : > { %v3001_v46 = vsel %vm2995_vm6, %v2988_v49, 920167782  ;;  %v2903_v59 = vadd.s32 %v2902_v38, %v2898_v45  ;;  %v3000_v40 = vsel %vm2992_vm7, %v7984_v15, %v7987_v14  ;;  %v3004_v44 = vsel %vm2992_vm7, %v7987_v14, %v7996_v0 }
 0x2e8   : > { %v2781_v36 = vmul.f32 %v2780_v5, %v2778_v4  ;;  %v2788_v20 = vmul.f32 %v2787_v41, %v2778_v4  ;;  %v3002_v24 = vsel %vm2994_vm9, %v7996_v0, %v3001_v46  ;;  %v3005_v13 = vsel %vm2995_vm6, %v2991_v7, 1326507024 }
 0x2e9   : > { %v8021_v11 = vshll.u32 %v2968_v19, 8  ;;  %v2904_v61 = vadd.s32 536870912, %v2903_v59  ;;  %vm2993_vm8 = vcmp.lt.s32.totalorder %v7963_v29, 2  ;;  %v2795_v2 = vand.u32 3, %v2794_v3 }
 0x2ea   : > { %v2782_v30 = vadd.f32 -0.4999988, %v2781_v36  ;;  %v2789_v9 = vadd.f32 -0.16666654, %v2788_v20  ;;  %v8026_v12 = vsel %vm2993_vm8, %v3000_v40, %v3002_v24  ;;  %v3006_v8 = vsel %vm2994_vm9, %v2988_v49, %v3005_v13  ;;  %v8049_v13 = vld [vmem:[%s9896_s2] ss:$0 sm:$0xff] }
 0x2eb   : > { %v8030_v55 = vshrl.u32 %v2904_v61, 30  ;;  %v3007_v1 = vsel %vm2993_vm8, %v3004_v44, %v3006_v8  ;;  %v3009_v19 = vand.u32 65535, %v8021_v11  ;;  %v3010_v48 = vshrl.u32 %v8021_v11, 16  ;;  %v445_v7 = vpop.f32.mrf.mxu2 }
 0x2ec   : > { %v2783_v54 = vmul.f32 %v2782_v30, %v2778_v4  ;;  %v2790_v28 = vmul.f32 %v2789_v9, %v2778_v4  ;;  %v3011_v62 = vand.u32 65535, %v3007_v1  ;;  %v3012_v3 = vshrl.u32 %v3007_v1, 16 }
 0x2ed   : > { %v2906_v34 = vshll.u32 %v8030_v55, 30  ;;  %vm2796_vm10 = vcmp.lt.s32.totalorder %v2795_v2, 2  ;;  %vm2797_vm11 = vcmp.eq.s32.totalorder %v2795_v2, 0  ;;  %v3034_v26 = vshrl.u32 %v8026_v12, 16 }
 0x2ee   : > { %v2784_v56 = vadd.f32 1.0, %v2783_v54  ;;  %v2791_v31 = vadd.f32 1.0, %v2790_v28  ;;  %v3014_v23 = vmul.u32 %v3012_v3, %v3009_v19  ;;  %v8037_v47 = vmul.u32 %v3011_v62, %v3010_v48 }
 0x2ef   : > { %v2907_v32 = vsub.s32 %v2903_v59, %v2906_v34  ;;  %vm2800_vm13 = vcmp.eq.s32.totalorder %v2795_v2, 2  ;;  %v3013_v21 = vmul.u32 %v3011_v62, %v3009_v19  ;;  %v3033_v58 = vand.u32 65535, %v8026_v12 }
 0x2f0   : > { %v2792_v4 = vmul.f32 %v2791_v31, %v2776_v6  ;;  %v2801_v22 = vxor.u32 2147483648, %v2784_v56  ;;  %v3017_v57 = vshll.u32 %v3014_v23, 16  ;;  %v3016_v63 = vmul.u32 %v3012_v3, %v3010_v48 }
 0x2f1   : > { %vm2908_vm12 = vcmp.lt.s32.totalorder %v2907_v32, 0  ;;  %v2909_v45 = vsub.s32 0, %v2907_v32  ;;  %v3019_v5 = vshll.u32 %v8037_v47, 16  ;;  %v3036_v36 = vmul.u32 %v3034_v26, %v3009_v19 }
 0x2f2   : > { %v2798_v17 = vxor.u32 2147483648, %v2792_v4  ;;  %v2802_v49 = vsel %vm2800_vm13, %v2801_v22, %v2792_v4  ;;  %vm3021_vm14 = vc.u32 %v3013_v21, %v3017_v57  ;;  %v3023_v41 = vadd.s32 %v3017_v57, %v3013_v21 }
 0x2f3   : > { %v2910_v38 = vsel %vm2908_vm12, %v2909_v45, %v2907_v32  ;;  %v3022_v46 = vsel %vm3021_vm14, 1, %v5962_v27  ;;  %vm2793_vm15 = vweird.f32 %v7560_v53  ;;  %v3037_v44 = vmul.u32 %v3033_v58, %v3010_v48 }
 0x2f4   : > { %v2799_v6 = vsel %vm2797_vm11, %v2784_v56, %v2798_v17  ;;  %v2911_v59 = vclz %v2910_v38  ;;  %v3024_v40 = vadd.s32 %v3022_v46, %v3016_v63  ;;  %vm3025_vm1 = vc.u32 %v3023_v41, %v3019_v5 }
 0x2f5   : > { %v2803_v20 = vsel %vm2796_vm10, %v2799_v6, %v2802_v49  ;;  %v8052_v30 = vadd.f32 %v8049_v13, %v442_v51  ;;  %v8055_v9 = vadd.f32 %v8049_v13, %v445_v7  ;;  %v2976_v53 = vshrl.u32 %v5956_v33, %v7959_v16 }
 0x2f6   : > { %v2804_v24 = vsel %vm2793_vm15, nan, %v2803_v20  ;;  %v5728_v61 = vadd.s32 4294967294, %v2911_v59  ;;  %vm2807_vm0 = vcmp.lt.s32.totalorder %v7774_v10, 0  ;;  %v2899_v2 = vadd.s32 %v7971_v25, %v7965_v18 }
 0x2f7   : > { %5454 = vst [vmem:[%s6343_s10 + $0x70] sm:$0xff] %v2804_v24  ;;  %v3026_v12 = vsel %vm3025_vm1, 1, %v5962_v27  ;;  %v3035_v8 = vmul.u32 %v3033_v58, %v3009_v19  ;;  %v3039_v54 = vshll.u32 %v3036_v36, 16  ;;  %v2997_v51 = vsel %vm2995_vm6, %v7996_v0, 2102212464 }
 0x2f8   : > { %vm5729_vm2 = vcmp.lt.s32.totalorder %v5728_v61, 0  ;;  %v3018_v28 = vshrl.u32 %v3014_v23, 16  ;;  %v3028_v1 = vadd.s32 %v3026_v12, %v3024_v40  ;;  %v3041_v3 = vshll.u32 %v3037_v44, 16 }
 0x2f9   : > { %v2914_v62 = vsel %vm5729_vm2, 0, %v5728_v61  ;;  %vm3043_vm3 = vc.u32 %v3035_v8, %v3039_v54  ;;  %v3045_v16 = vadd.s32 %v3039_v54, %v3035_v8  ;;  %v2929_v34 = vsub.s32 4, %v8030_v55 }
 0x2fa   : > { %v2915_v56 = vsub.s32 32, %v2914_v62  ;;  %v2919_v31 = vsub.s32 4294967266, %v2914_v62  ;;  %v3038_v18 = vmul.u32 %v3034_v26, %v3010_v48  ;;  %v3029_v25 = vadd.s32 %v3028_v1, %v3018_v28 }
 0x2fb   : > { %v3044_v19 = vsel %vm3043_vm3, 1, %v5962_v27  ;;  %vm3047_vm5 = vc.u32 %v3045_v16, %v3041_v3  ;;  %v3115_v4 = vand.u32 2147483647, %v8052_v30  ;;  %v2916_v22 = vshll.u32 %v2907_v32, %v2914_v62 }
 0x2fc   : > { %v2917_v21 = vshrl.u32 %v2899_v2, %v2915_v56  ;;  %v2920_v0 = vadd.s32 127, %v2919_v31  ;;  %v3046_v23 = vadd.s32 %v3044_v19, %v3038_v18  ;;  %v2996_v57 = vsel %vm2992_vm7, %v2976_v53, %v7984_v15 }
 0x2fd   : > { %v3020_v58 = vshrl.u32 %v8037_v47, 16  ;;  %v3048_v17 = vsel %vm3047_vm5, 1, %v5962_v27  ;;  %v3118_v48 = vand.u32 2139095040, %v8052_v30  ;;  %v3040_v63 = vshrl.u32 %v3036_v36, 16 }
 0x2fe   : > { %v2918_v26 = vor.u32 %v2917_v21, %v2916_v22  ;;  %v2921_v45 = vshll.u32 %v2920_v0, 23  ;;  %v3050_v49 = vadd.s32 %v3048_v17, %v3046_v23  ;;  %v2998_v32 = vsel %vm2994_vm9, %v7987_v14, %v2997_v51 }
 0x2ff   : > { %v3030_v5 = vadd.s32 %v3029_v25, %v3020_v58  ;;  %v3119_v41 = vshrl.u32 %v3118_v48, 23  ;;  %v3122_v7 = vand.u32 8388607, %v3115_v4  ;;  %v2930_v47 = vsel %vm2807_vm0, %v2929_v34, %v8030_v55 }
 0x300   : > { %v2922_v15 = vor.u32 4788187, %v2921_v45  ;;  %v3042_v6 = vshrl.u32 %v3037_v44, 16  ;;  %v3051_v38 = vadd.s32 %v3050_v49, %v3040_v63  ;;  %vm8086_vm4 = vcmp.le.f32.partialorder %v2805_v52, 0.7853982 }
 0x301   : > { %v3049_v36 = vadd.s32 %v3045_v16, %v3041_v3  ;;  %v5733_v14 = vadd.s32 4294967169, %v3119_v41  ;;  %v2925_v59 = vcvt.s32.f32 %v2918_v26  ;;  %v2999_v40 = vsel %vm2993_vm8, %v2996_v57, %v2998_v32 }
 0x302   : > { %v2923_v20 = vand.u32 2147483647, %v2922_v15  ;;  %v3052_v24 = vadd.s32 %v3051_v38, %v3042_v6  ;;  %v2932_v61 = vsel %vm8086_vm4, 0, %v2930_v47  ;;  %v3123_v55 = vor.u32 8388608, %v3122_v7 }
 0x303   : > { %vm3055_vm6 = vc.u32 %v3030_v5, %v3049_v36  ;;  %v3125_v44 = vadd.s32 1, %v5733_v14  ;;  %v3273_v52 = vand.u32 2139095040, %v8055_v9  ;;  %v3053_v12 = vmul.u32 %v8021_v11, %v2999_v40 }
 0x304   : > { %v2926_v53 = vmul.f32 %v2925_v59, %v2923_v20  ;;  %v3056_v2 = vadd.s32 1, %v3052_v24  ;;  %v2949_v54 = vadd.s32 3, %v2932_v61  ;;  %v8096_v62 = vshll.u32 %v3123_v55, 8 }
 0x305   : > { %vm3126_vm7 = vcmp.gt.s32.totalorder %v3125_v44, 0  ;;  %v3274_v16 = vshrl.u32 %v3273_v52, 23  ;;  %v8109_v18 = vadd.s32 %v3049_v36, %v3030_v5  ;;  %vm2962_vm9 = vcmp.lt.s32.totalorder %v7750_v60, 0 }
 0x306   : > { %v2927_v8 = vxor.u32 2147483648, %v2926_v53  ;;  %v3057_v51 = vsel %vm3055_vm6, %v3056_v2, %v3052_v24  ;;  %v3127_v28 = vsel %vm3126_vm7, %v3125_v44, 0  ;;  %v8107_v34 = vand.u32 3, %v2949_v54 }
 0x307   : > { %v3058_v29 = vadd.s32 %v3057_v51, %v3053_v12  ;;  %v3129_v1 = vand.u32 31, %v3127_v28  ;;  %v8113_v22 = vand.u32 65535, %v8096_v62  ;;  %v8116_v21 = vshrl.u32 %v8096_v62, 16 }
 0x308   : > { %v2928_v3 = vsel %vm2807_vm0, %v2927_v8, %v2926_v53  ;;  %v3270_v0 = vand.u32 2147483647, %v8055_v9  ;;  %v8119_v58 = vshrl.u32 %v3127_v28, 5  ;;  %v8121_v17 = vadd.s32 4294967169, %v3274_v16 }
 0x309   : > { %v8103_v56 = vsel %vm8086_vm4, %v7774_v10, %v2928_v3  ;;  %v3059_v31 = vadd.s32 536870912, %v3058_v29  ;;  %v3130_v25 = vsub.s32 32, %v3129_v1  ;;  %v3132_v26 = vshll.u32 %v5956_v33, %v3129_v1 }
 0x30a   : > { %v2933_v11 = vmul.f32 %v8103_v56, %v8103_v56  ;;  %v3135_v45 = vshll.u32 %v5957_v35, %v3129_v1  ;;  %v3138_v63 = vshll.u32 %v5958_v37, %v3129_v1  ;;  %v3141_v14 = vshll.u32 %v5959_v39, %v3129_v1 }
 0x30b   : > { %v3060_v19 = vshrl.u32 %v3059_v31, 30  ;;  %v3133_v5 = vshrl.u32 %v5957_v35, %v3130_v25  ;;  %v3136_v41 = vshrl.u32 %v5958_v37, %v3130_v25  ;;  %v3139_v15 = vshrl.u32 %v5959_v39, %v3130_v25 }
 0x30c   : > { %v2934_v23 = vmul.f32 -0.001358992, %v2933_v11  ;;  %v2941_v57 = vmul.f32 -0.00019511016, %v2933_v11  ;;  %v3142_v47 = vshrl.u32 %v5960_v43, %v3130_v25  ;;  %v3145_v6 = vshrl.u32 %v5961_v50, %v3130_v25 }
 0x30d   : > { %v3061_v48 = vshll.u32 %v3060_v19, 30  ;;  %v3084_v36 = vsub.s32 4, %v3060_v19  ;;  %vm2955_vm8 = vcmp.eq.s32.totalorder %v8107_v34, 2  ;;  %v3131_v59 = vshrl.u32 %v5956_v33, %v3130_v25 }
 0x30e   : > { %v2935_v49 = vadd.f32 0.041655596, %v2934_v23  ;;  %v2942_v32 = vadd.f32 0.008332121, %v2941_v57  ;;  %v3144_v40 = vshll.u32 %v5960_v43, %v3129_v1  ;;  %v3134_v55 = vor.u32 %v3133_v5, %v3132_v26 }
 0x30f   : > { %v8128_v7 = vsub.s32 %v3058_v29, %v3061_v48  ;;  %v3137_v44 = vor.u32 %v3136_v41, %v3135_v45  ;;  %vm2952_vm11 = vcmp.eq.s32.totalorder %v8107_v34, 0  ;;  %v3140_v2 = vor.u32 %v3139_v15, %v3138_v63 }
 0x310   : > { %v2936_v38 = vmul.f32 %v2935_v49, %v2933_v11  ;;  %v2943_v46 = vmul.f32 %v2942_v32, %v2933_v11  ;;  %v3143_v52 = vor.u32 %v3142_v47, %v3141_v14  ;;  %v3146_v12 = vor.u32 %v3145_v6, %v3144_v40 }
 0x311   : > { %vm3063_vm10 = vcmp.lt.s32.totalorder %v8128_v7, 0  ;;  %v3064_v20 = vsub.s32 0, %v8128_v7  ;;  %vm2951_vm13 = vcmp.lt.s32.totalorder %v8107_v34, 2  ;;  %v8144_v28 = vsel %vm2962_vm9, %v3084_v36, %v3060_v19 }
 0x312   : > { %v2937_v24 = vadd.f32 -0.4999988, %v2936_v38  ;;  %v2944_v61 = vadd.f32 -0.16666654, %v2943_v46  ;;  %vm2948_vm12 = vweird.f32 %v7774_v10  ;;  %vm3147_vm14 = vcmp.lt.s32.totalorder %v8119_v58, 1 }
 0x313   : > { %v3065_v53 = vsel %vm3063_vm10, %v3064_v20, %v8128_v7  ;;  %vm3148_vm15 = vcmp.lt.s32.totalorder %v8119_v58, 2  ;;  %vm3149_vm1 = vcmp.lt.s32.totalorder %v8119_v58, 3  ;;  %vm3150_vm0 = vcmp.lt.s32.totalorder %v8119_v58, 4 }
 0x314   : > { %v2938_v8 = vmul.f32 %v2937_v24, %v2933_v11  ;;  %v2945_v54 = vmul.f32 %v2944_v61, %v2933_v11  ;;  %v3066_v51 = vclz %v3065_v53  ;;  %vm8153_vm2 = vcmp.le.f32.partialorder %v2960_v42, 0.7853982 }
 0x315   : > { %v3151_v31 = vsel %vm3147_vm14, %v3131_v59, %v3134_v55  ;;  %v3155_v11 = vsel %vm3147_vm14, %v3134_v55, %v3137_v44  ;;  %v3156_v25 = vsel %vm3150_vm0, %v3143_v52, 920167782  ;;  %v3159_v19 = vsel %vm3147_vm14, %v3137_v44, %v3140_v2 }
 0x316   : > { %v2939_v29 = vadd.f32 1.0, %v2938_v8  ;;  %v2946_v1 = vadd.f32 1.0, %v2945_v54  ;;  %v5731_v16 = vadd.s32 4294967294, %v3066_v51  ;;  %v3160_v23 = vsel %vm3150_vm0, %v3146_v12, 1326507024 }
 0x317   : > { %v3157_v26 = vsel %vm3149_vm1, %v3140_v2, %v3156_v25  ;;  %v3152_v63 = vsel %vm3150_vm0, %v3140_v2, 2102212464  ;;  %v3161_v49 = vsel %vm3149_vm1, %v3143_v52, %v3160_v23  ;;  %v3280_v2 = vadd.s32 1, %v8121_v17 }
 0x318   : > { %v2947_v57 = vmul.f32 %v2946_v1, %v8103_v56  ;;  %v2956_v48 = vxor.u32 2147483648, %v2939_v29  ;;  %vm5732_vm3 = vcmp.lt.s32.totalorder %v5731_v16, 0  ;;  %v3158_v42 = vsel %vm3148_vm15, %v3155_v11, %v3157_v26 }
 0x319   : > { %v3069_v45 = vsel %vm5732_vm3, 0, %v5731_v16  ;;  %v3162_v47 = vsel %vm3148_vm15, %v3159_v19, %v3161_v49  ;;  %v3188_v6 = vand.u32 65535, %v3158_v42  ;;  %v3189_v38 = vshrl.u32 %v3158_v42, 16 }
 0x31a   : > { %v2953_v32 = vxor.u32 2147483648, %v2947_v57  ;;  %v2957_v5 = vsel %vm2955_vm8, %v2956_v48, %v2947_v57  ;;  %v3070_v41 = vsub.s32 32, %v3069_v45  ;;  %v3071_v56 = vshll.u32 %v8128_v7, %v3069_v45 }
 0x31b   : > { %v3074_v15 = vsub.s32 4294967266, %v3069_v45  ;;  %v3166_v14 = vand.u32 65535, %v3162_v47  ;;  %v3167_v20 = vshrl.u32 %v3162_v47, 16  ;;  %v3153_v7 = vsel %vm3149_vm1, %v3137_v44, %v3152_v63 }
 0x31c   : > { %v2954_v46 = vsel %vm2952_vm11, %v2939_v29, %v2953_v32  ;;  %v3072_v36 = vshrl.u32 %v8109_v18, %v3070_v41  ;;  %v3191_v24 = vmul.u32 %v3189_v38, %v8113_v22  ;;  %v3087_v34 = vsel %vm8153_vm2, 0, %v8144_v28 }
 0x31d   : > { %v2958_v59 = vsel %vm2951_vm13, %v2954_v46, %v2957_v5  ;;  %v3075_v40 = vadd.s32 127, %v3074_v15  ;;  %v3169_v53 = vmul.u32 %v3167_v20, %v8113_v22  ;;  %v3170_v52 = vmul.u32 %v3166_v14, %v8116_v21 }
 0x31e   : > { %v2959_v61 = vsel %vm2948_vm12, nan, %v2958_v59  ;;  %v3073_v55 = vor.u32 %v3072_v36, %v3071_v56  ;;  %v3192_v12 = vmul.u32 %v3188_v6, %v8116_v21  ;;  %v8189_v44 = vsel %vm3148_vm15, %v3151_v31, %v3153_v7 }
 0x31f   : > { %v3076_v18 = vshll.u32 %v3075_v40, 23  ;;  %5455 = vst [vmem:[%s6343_s10 + $0x78] sm:$0xff] %v2959_v61  ;;  %v3168_v10 = vmul.u32 %v3166_v14, %v8113_v22  ;;  %v3172_v8 = vshll.u32 %v3169_v53, 16  ;;  %v3190_v54 = vmul.u32 %v3188_v6, %v8113_v22 }
 0x320   : > { %v3080_v51 = vcvt.s32.f32 %v3073_v55  ;;  %v3171_v29 = vmul.u32 %v3167_v20, %v8116_v21  ;;  %v3194_v1 = vshll.u32 %v3191_v24, 16  ;;  %v3174_v28 = vshll.u32 %v3170_v52, 16 }
 0x321   : > { %v3077_v17 = vor.u32 4788187, %v3076_v18  ;;  %vm3176_vm5 = vc.u32 %v3168_v10, %v3172_v8  ;;  %v3178_v16 = vadd.s32 %v3172_v8, %v3168_v10  ;;  %v3193_v11 = vmul.u32 %v3189_v38, %v8116_v21 }
 0x322   : > { %v3177_v58 = vsel %vm3176_vm5, 1, %v5962_v27  ;;  %v3196_v31 = vshll.u32 %v3192_v12, 16  ;;  %vm3198_vm4 = vc.u32 %v3190_v54, %v3194_v1  ;;  %v3200_v22 = vadd.s32 %v3194_v1, %v3190_v54 }
 0x323   : > { %v3078_v25 = vand.u32 2147483647, %v3077_v17  ;;  %v3179_v19 = vadd.s32 %v3177_v58, %v3171_v29  ;;  %vm3180_vm6 = vc.u32 %v3178_v16, %v3174_v28  ;;  %v3199_v23 = vsel %vm3198_vm4, 1, %v5962_v27 }
 0x324   : > { %v3181_v48 = vsel %vm3180_vm6, 1, %v5962_v27  ;;  %v3201_v26 = vadd.s32 %v3199_v23, %v3193_v11  ;;  %vm3281_vm7 = vcmp.gt.s32.totalorder %v3280_v2, 0  ;;  %v3173_v45 = vshrl.u32 %v3169_v53, 16  ;;  %v447_v23 = vpop.f32.mrf.mxu2 }
 0x325   : > { %v3081_v57 = vmul.f32 %v3080_v51, %v3078_v25  ;;  %v3183_v63 = vadd.s32 %v3181_v48, %v3179_v19  ;;  %vm3202_vm8 = vc.u32 %v3200_v22, %v3196_v31  ;;  %v3282_v42 = vsel %vm3281_vm7, %v3280_v2, 0 }
 0x326   : > { %v3203_v49 = vsel %vm3202_vm8, 1, %v5962_v27  ;;  %v3277_v32 = vand.u32 8388607, %v3270_v0  ;;  %v3284_v5 = vand.u32 31, %v3282_v42  ;;  %v3175_v41 = vshrl.u32 %v3170_v52, 16 }
 0x327   : > { %v3082_v21 = vxor.u32 2147483648, %v3081_v57  ;;  %v3184_v56 = vadd.s32 %v3183_v63, %v3173_v45  ;;  %v3195_v15 = vshrl.u32 %v3191_v24, 16  ;;  %v3205_v47 = vadd.s32 %v3203_v49, %v3201_v26 }
 0x328   : > { %v3104_v38 = vadd.s32 3, %v3087_v34  ;;  %v3208_v46 = vmul.u32 %v8096_v62, %v8189_v44  ;;  %v8205_v36 = vsub.s32 32, %v3284_v5  ;;  %v3197_v59 = vshrl.u32 %v3192_v12, 16 }
 0x329   : > { %v3083_v6 = vsel %vm2962_vm9, %v3082_v21, %v3081_v57  ;;  %v8210_v20 = vadd.s32 %v3184_v56, %v3175_v41  ;;  %v3206_v40 = vadd.s32 %v3205_v47, %v3195_v15  ;;  %v8212_v24 = vadd.s32 %v3200_v22, %v3196_v31 }
 0x32a   : > { %v3086_v14 = vsel %vm8153_vm2, %v7750_v60, %v3083_v6  ;;  %v8214_v61 = vshrl.u32 %v3282_v42, 5  ;;  %v3287_v55 = vshll.u32 %v5956_v33, %v3284_v5  ;;  %v3290_v62 = vshll.u32 %v5957_v35, %v3284_v5 }
 0x32b   : > { %v3088_v7 = vmul.f32 %v3086_v14, %v3086_v14  ;;  %v3207_v53 = vadd.s32 %v3206_v40, %v3197_v59  ;;  %v3291_v2 = vshrl.u32 %v5958_v37, %v8205_v36  ;;  %v3294_v3 = vshrl.u32 %v5959_v39, %v8205_v36 }
 0x32c   : > { %vm3210_vm9 = vc.u32 %v8210_v20, %v8212_v24  ;;  %v3293_v52 = vshll.u32 %v5958_v37, %v3284_v5  ;;  %v3288_v44 = vshrl.u32 %v5957_v35, %v8205_v36  ;;  %v3296_v10 = vshll.u32 %v5959_v39, %v3284_v5 }
 0x32d   : > { %v3089_v18 = vmul.f32 -0.001358992, %v3088_v7  ;;  %v3096_v34 = vmul.f32 -0.00019511016, %v3088_v7  ;;  %v3211_v12 = vadd.s32 1, %v3207_v53  ;;  %v3297_v8 = vshrl.u32 %v5960_v43, %v8205_v36 }
 0x32e   : > { %v3299_v51 = vshll.u32 %v5960_v43, %v3284_v5  ;;  %v3300_v29 = vshrl.u32 %v5961_v50, %v8205_v36  ;;  %v8233_v28 = vor.u32 %v3291_v2, %v3290_v62  ;;  %v8235_v16 = vor.u32 %v3294_v3, %v3293_v52 }
 0x32f   : > { %v3090_v54 = vadd.f32 0.041655596, %v3089_v18  ;;  %v3097_v17 = vadd.f32 0.008332121, %v3096_v34  ;;  %v3212_v1 = vsel %vm3210_vm9, %v3211_v12, %v3207_v53  ;;  %v3298_v11 = vor.u32 %v3297_v8, %v3296_v10  ;;  %v450_v10 = vpop.f32.mrf.mxu2 }
 0x330   : > { %v3213_v31 = vadd.s32 %v3212_v1, %v3208_v46  ;;  %v3301_v19 = vor.u32 %v3300_v29, %v3299_v51  ;;  %v3105_v22 = vand.u32 3, %v3104_v38  ;;  %v3278_v57 = vor.u32 8388608, %v3277_v32 }
 0x331   : > { %v3091_v25 = vmul.f32 %v3090_v54, %v3088_v7  ;;  %v3098_v58 = vmul.f32 %v3097_v17, %v3088_v7  ;;  %v8237_v48 = vor.u32 %v3288_v44, %v3287_v55  ;;  %vm3305_vm10 = vcmp.lt.s32.totalorder %v8214_v61, 4 }
 0x332   : > { %v3214_v63 = vadd.s32 536870912, %v3213_v31  ;;  %vm3302_vm11 = vcmp.lt.s32.totalorder %v8214_v61, 1  ;;  %vm3304_vm13 = vcmp.lt.s32.totalorder %v8214_v61, 3  ;;  %v3311_v42 = vsel %vm3305_vm10, %v3298_v11, 920167782 }
 0x333   : > { %v3092_v26 = vadd.f32 -0.4999988, %v3091_v25  ;;  %v3099_v45 = vadd.f32 -0.16666654, %v3098_v58  ;;  %v3315_v21 = vsel %vm3305_vm10, %v3301_v19, 1326507024  ;;  %v3314_v41 = vsel %vm3302_vm11, %v8233_v28, %v8235_v16 }
 0x334   : > { %v8246_v32 = vshrl.u32 %v3214_v63, 30  ;;  %vm3303_vm12 = vcmp.lt.s32.totalorder %v8214_v61, 2  ;;  %v3310_v56 = vsel %vm3302_vm11, %v8237_v48, %v8233_v28  ;;  %v3316_v15 = vsel %vm3304_vm13, %v3298_v11, %v3315_v21 }
 0x335   : > { %v3093_v49 = vmul.f32 %v3092_v26, %v3088_v7  ;;  %v3100_v5 = vmul.f32 %v3099_v45, %v3088_v7  ;;  %v8259_v47 = vshll.u32 %v3278_v57, 8  ;;  %v3312_v59 = vsel %vm3304_vm13, %v8235_v16, %v3311_v42 }
 0x336   : > { %v3216_v46 = vshll.u32 %v8246_v32, 30  ;;  %v8266_v40 = vadd.f32 %v8049_v13, %v447_v23  ;;  %vm3103_vm14 = vweird.f32 %v7750_v60  ;;  %v3317_v7 = vsel %vm3303_vm12, %v3314_v41, %v3316_v15 }
 0x337   : > { %v3094_v6 = vadd.f32 1.0, %v3093_v49  ;;  %v3101_v38 = vadd.f32 1.0, %v3100_v5  ;;  %vm3110_vm15 = vcmp.eq.s32.totalorder %v3105_v22, 2  ;;  %v3313_v2 = vsel %vm3303_vm12, %v3310_v56, %v3312_v59 }
 0x338   : > { %v3217_v62 = vsub.s32 %v3213_v31, %v3216_v46  ;;  %v3319_v3 = vand.u32 65535, %v8259_v47  ;;  %v3321_v18 = vand.u32 65535, %v3317_v7  ;;  %v3322_v34 = vshrl.u32 %v3317_v7, 16 }
 0x339   : > { %v3102_v55 = vmul.f32 %v3101_v38, %v3086_v14  ;;  %v3111_v53 = vxor.u32 2147483648, %v3094_v6  ;;  %v3320_v44 = vshrl.u32 %v8259_v47, 16  ;;  %vm3106_vm0 = vcmp.lt.s32.totalorder %v3105_v22, 2 }
 0x33a   : > { %vm3218_vm1 = vcmp.lt.s32.totalorder %v3217_v62, 0  ;;  %v3219_v12 = vsub.s32 0, %v3217_v62  ;;  %vm3107_vm2 = vcmp.eq.s32.totalorder %v3105_v22, 0  ;;  %v3324_v14 = vmul.u32 %v3322_v34, %v3319_v3 }
 0x33b   : > { %v3108_v52 = vxor.u32 2147483648, %v3102_v55  ;;  %v3112_v8 = vsel %vm3110_vm15, %v3111_v53, %v3102_v55  ;;  %v3325_v51 = vmul.u32 %v3321_v18, %v3320_v44  ;;  %v3344_v29 = vshrl.u32 %v3313_v2, 16 }
 0x33c   : > { %v3220_v17 = vsel %vm3218_vm1, %v3219_v12, %v3217_v62  ;;  %v3327_v25 = vshll.u32 %v3324_v14, 16  ;;  %v3343_v58 = vand.u32 65535, %v3313_v2  ;;  %v8276_v31 = vadd.f32 %v8049_v13, %v450_v10 }
 0x33d   : > { %v3109_v54 = vsel %vm3107_vm2, %v3094_v6, %v3108_v52  ;;  %v3221_v11 = vclz %v3220_v17  ;;  %v3286_v23 = vshrl.u32 %v5956_v33, %v8205_v36  ;;  %v3323_v22 = vmul.u32 %v3321_v18, %v3319_v3 }
 0x33e   : > { %v3113_v1 = vsel %vm3106_vm0, %v3109_v54, %v3112_v8  ;;  %v3209_v57 = vadd.s32 %v8212_v24, %v8210_v20  ;;  %v3307_v45 = vsel %vm3305_vm10, %v8235_v16, 2102212464  ;;  %v3326_v63 = vmul.u32 %v3322_v34, %v3320_v44 }
 0x33f   : > { %v3114_v19 = vsel %vm3103_vm14, nan, %v3113_v1  ;;  %v5734_v26 = vadd.s32 4294967294, %v3221_v11  ;;  %v3329_v42 = vshll.u32 %v3325_v51, 16  ;;  %vm3331_vm3 = vc.u32 %v3323_v22, %v3327_v25 }
 0x340   : > { %5456 = vst [vmem:[%s6343_s10 + $0x80] sm:$0xff] %v3114_v19  ;;  %v3333_v21 = vadd.s32 %v3327_v25, %v3323_v22  ;;  %v3346_v49 = vmul.u32 %v3344_v29, %v3319_v3  ;;  %vm3117_vm5 = vcmp.lt.s32.totalorder %v8052_v30, 0  ;;  %v3328_v60 = vshrl.u32 %v3324_v14, 16 }
 0x341   : > { %vm5735_vm4 = vcmp.lt.s32.totalorder %v5734_v26, 0  ;;  %v3332_v36 = vsel %vm3331_vm3, 1, %v5962_v27  ;;  %v3347_v5 = vmul.u32 %v3343_v58, %v3320_v44  ;;  %v3345_v6 = vmul.u32 %v3343_v58, %v3319_v3 }
 0x342   : > { %v3224_v41 = vsel %vm5735_vm4, 0, %v5734_v26  ;;  %v3334_v20 = vadd.s32 %v3332_v36, %v3326_v63  ;;  %vm3335_vm6 = vc.u32 %v3333_v21, %v3329_v42  ;;  %v3349_v24 = vshll.u32 %v3346_v49, 16 }
 0x343   : > { %v3225_v56 = vsub.s32 32, %v3224_v41  ;;  %v3229_v15 = vsub.s32 4294967266, %v3224_v41  ;;  %v3336_v16 = vsel %vm3335_vm6, 1, %v5962_v27  ;;  %v3226_v38 = vshll.u32 %v3217_v62, %v3224_v41 }
 0x344   : > { %v3338_v46 = vadd.s32 %v3336_v16, %v3334_v20  ;;  %v3348_v59 = vmul.u32 %v3344_v29, %v3320_v44  ;;  %v3351_v7 = vshll.u32 %v3347_v5, 16  ;;  %vm3353_vm7 = vc.u32 %v3345_v6, %v3349_v24 }
 0x345   : > { %v3227_v55 = vshrl.u32 %v3209_v57, %v3225_v56  ;;  %v3230_v53 = vadd.s32 127, %v3229_v15  ;;  %v3355_v2 = vadd.s32 %v3349_v24, %v3345_v6  ;;  %v3239_v18 = vsub.s32 4, %v8246_v32 }
 0x346   : > { %v3339_v34 = vadd.s32 %v3338_v46, %v3328_v60  ;;  %v3354_v52 = vsel %vm3353_vm7, 1, %v5962_v27  ;;  %v3425_v12 = vand.u32 2147483647, %v8266_v40  ;;  %v3306_v62 = vsel %vm3302_vm11, %v3286_v23, %v8237_v48 }
 0x347   : > { %v3228_v10 = vor.u32 %v3227_v55, %v3226_v38  ;;  %v3231_v8 = vshll.u32 %v3230_v53, 23  ;;  %v3356_v14 = vadd.s32 %v3354_v52, %v3348_v59  ;;  %vm3357_vm8 = vc.u32 %v3355_v2, %v3351_v7 }
 0x348   : > { %v3308_v3 = vsel %vm3304_vm13, %v8233_v28, %v3307_v45  ;;  %v3330_v44 = vshrl.u32 %v3325_v51, 16  ;;  %v3358_v54 = vsel %vm3357_vm8, 1, %v5962_v27  ;;  %v3350_v29 = vshrl.u32 %v3346_v49, 16 }
 0x349   : > { %v3232_v17 = vor.u32 4788187, %v3231_v8  ;;  %v3360_v1 = vadd.s32 %v3358_v54, %v3356_v14  ;;  %v3428_v11 = vand.u32 2139095040, %v8266_v40  ;;  %v3235_v25 = vcvt.s32.f32 %v3228_v10 }
 0x34a   : > { %v3240_v58 = vsel %vm3117_vm5, %v3239_v18, %v8246_v32  ;;  %v3340_v19 = vadd.s32 %v3339_v34, %v3330_v44  ;;  %v3352_v22 = vshrl.u32 %v3347_v5, 16  ;;  %v3432_v28 = vand.u32 8388607, %v3425_v12 }
 0x34b   : > { %v3233_v48 = vand.u32 2147483647, %v3232_v17  ;;  %v3361_v23 = vadd.s32 %v3360_v1, %v3350_v29  ;;  %v3429_v57 = vshrl.u32 %v3428_v11, 23  ;;  %vm8309_vm9 = vcmp.le.f32.partialorder %v3115_v4, 0.7853982 }
 0x34c   : > { %v3359_v26 = vadd.s32 %v3355_v2, %v3351_v7  ;;  %v3583_v45 = vand.u32 2139095040, %v8276_v31  ;;  %v3309_v32 = vsel %vm3303_vm12, %v3306_v62, %v3308_v3  ;;  %v3242_v49 = vsel %vm8309_vm9, 0, %v3240_v58 }
 0x34d   : > { %v3236_v63 = vmul.f32 %v3235_v25, %v3233_v48  ;;  %v3362_v42 = vadd.s32 %v3361_v23, %v3352_v22  ;;  %v5739_v21 = vadd.s32 4294967169, %v3429_v57  ;;  %v3433_v5 = vor.u32 8388608, %v3432_v28 }
 0x34e   : > { %vm3365_vm10 = vc.u32 %v3340_v19, %v3359_v26  ;;  %v3363_v41 = vmul.u32 %v8259_v47, %v3309_v32  ;;  %v3584_v20 = vshrl.u32 %v3583_v45, 23  ;;  %v3259_v15 = vadd.s32 3, %v3242_v49 }
 0x34f   : > { %v3237_v60 = vxor.u32 2147483648, %v3236_v63  ;;  %v3366_v36 = vadd.s32 1, %v3362_v42  ;;  %v3435_v4 = vadd.s32 1, %v5739_v21  ;;  %v8328_v59 = vshll.u32 %v3433_v5, 8 }
 0x350   : > { %v5742_v7 = vadd.s32 4294967169, %v3584_v20  ;;  %vm3272_vm13 = vcmp.lt.s32.totalorder %v8055_v9, 0  ;;  %v8331_v18 = vand.u32 3, %v3259_v15  ;;  %v8333_v34 = vadd.s32 %v3359_v26, %v3340_v19 }
 0x351   : > { %v3238_v24 = vsel %vm3117_vm5, %v3237_v60, %v3236_v63  ;;  %v3367_v56 = vsel %vm3365_vm10, %v3366_v36, %v3362_v42  ;;  %vm3436_vm11 = vcmp.gt.s32.totalorder %v3435_v4, 0  ;;  %v3580_v10 = vand.u32 2147483647, %v8276_v31 }
 0x352   : > { %v8324_v61 = vsel %vm8309_vm9, %v8052_v30, %v3238_v24  ;;  %v3368_v16 = vadd.s32 %v3367_v56, %v3363_v41  ;;  %v3437_v6 = vsel %vm3436_vm11, %v3435_v4, 0  ;;  %vm8338_vm12 = vcmp.le.f32.partialorder %v3270_v0, 0.7853982 }
 0x353   : > { %v3243_v38 = vmul.f32 %v8324_v61, %v8324_v61  ;;  %v3439_v46 = vand.u32 31, %v3437_v6  ;;  %v8343_v3 = vand.u32 65535, %v8328_v59  ;;  %v8346_v44 = vshrl.u32 %v8328_v59, 16 }
 0x354   : > { %v3369_v47 = vadd.s32 536870912, %v3368_v16  ;;  %v8348_v17 = vshrl.u32 %v3437_v6, 5  ;;  %v8351_v1 = vadd.s32 1, %v5742_v7  ;;  %vm3262_vm14 = vcmp.eq.s32.totalorder %v8331_v18, 0 }
 0x355   : > { %v3244_v55 = vmul.f32 -0.001358992, %v3243_v38  ;;  %v3251_v53 = vmul.f32 -0.00019511016, %v3243_v38  ;;  %v3440_v2 = vsub.s32 32, %v3439_v46  ;;  %v3442_v0 = vshll.u32 %v5956_v33, %v3439_v46 }
 0x356   : > { %v3370_v52 = vshrl.u32 %v3369_v47, 30  ;;  %v3445_v22 = vshll.u32 %v5957_v35, %v3439_v46  ;;  %v3448_v51 = vshll.u32 %v5958_v37, %v3439_v46  ;;  %vm3265_vm15 = vcmp.eq.s32.totalorder %v8331_v18, 2 }
 0x357   : > { %v3245_v8 = vadd.f32 0.041655596, %v3244_v55  ;;  %v3252_v14 = vadd.f32 0.008332121, %v3251_v53  ;;  %v3443_v29 = vshrl.u32 %v5957_v35, %v3440_v2  ;;  %v3446_v48 = vshrl.u32 %v5958_v37, %v3440_v2 }
 0x358   : > { %v3371_v54 = vshll.u32 %v3370_v52, 30  ;;  %v3394_v58 = vsub.s32 4, %v3370_v52  ;;  %v3452_v23 = vshrl.u32 %v5960_v43, %v3440_v2  ;;  %v3449_v26 = vshrl.u32 %v5959_v39, %v3440_v2 }
 0x359   : > { %v3246_v11 = vmul.f32 %v3245_v8, %v3243_v38  ;;  %v3253_v25 = vmul.f32 %v3252_v14, %v3243_v38  ;;  %v3444_v63 = vor.u32 %v3443_v29, %v3442_v0  ;;  %v3451_v32 = vshll.u32 %v5959_v39, %v3439_v46 }
 0x35a   : > { %v8354_v19 = vsub.s32 %v3368_v16, %v3371_v54  ;;  %vm3261_vm0 = vcmp.lt.s32.totalorder %v8331_v18, 2  ;;  %v3395_v49 = vsel %vm3272_vm13, %v3394_v58, %v3370_v52  ;;  %v3455_v60 = vshrl.u32 %v5961_v50, %v3440_v2 }
 0x35b   : > { %v3247_v57 = vadd.f32 -0.4999988, %v3246_v11  ;;  %v3254_v28 = vadd.f32 -0.16666654, %v3253_v25  ;;  %vm3258_vm2 = vweird.f32 %v8052_v30  ;;  %v3447_v5 = vor.u32 %v3446_v48, %v3445_v22  ;;  %v452_v22 = vpop.f32.mrf.mxu2 }
 0x35c   : > { %vm3373_vm1 = vcmp.lt.s32.totalorder %v8354_v19, 0  ;;  %v3374_v45 = vsub.s32 0, %v8354_v19  ;;  %v3453_v4 = vor.u32 %v3452_v23, %v3451_v32  ;;  %v3454_v41 = vshll.u32 %v5960_v43, %v3439_v46 }
 0x35d   : > { %v3248_v42 = vmul.f32 %v3247_v57, %v3243_v38  ;;  %v3255_v21 = vmul.f32 %v3254_v28, %v3243_v38  ;;  %v3450_v15 = vor.u32 %v3449_v26, %v3448_v51  ;;  %v3397_v16 = vsel %vm8338_vm12, 0, %v3395_v49 }
 0x35e   : > { %v3375_v36 = vsel %vm3373_vm1, %v3374_v45, %v8354_v19  ;;  %v3441_v6 = vshrl.u32 %v5956_v33, %v3440_v2  ;;  %v3456_v38 = vor.u32 %v3455_v60, %v3454_v41  ;;  %vm3457_vm3 = vcmp.lt.s32.totalorder %v8348_v17, 1 }
 0x35f   : > { %v3249_v20 = vadd.f32 1.0, %v3248_v42  ;;  %v3256_v24 = vadd.f32 1.0, %v3255_v21  ;;  %v3376_v56 = vclz %v3375_v36  ;;  %vm3591_vm5 = vcmp.gt.s32.totalorder %v8351_v1, 0 }
 0x360   : > { %vm3460_vm4 = vcmp.lt.s32.totalorder %v8348_v17, 4  ;;  %vm3458_vm6 = vcmp.lt.s32.totalorder %v8348_v17, 2  ;;  %vm3459_vm7 = vcmp.lt.s32.totalorder %v8348_v17, 3  ;;  %v3461_v46 = vsel %vm3457_vm3, %v3441_v6, %v3444_v63 }
 0x361   : > { %v3257_v47 = vmul.f32 %v3256_v24, %v8324_v61  ;;  %v3266_v7 = vxor.u32 2147483648, %v3249_v20  ;;  %v5737_v55 = vadd.s32 4294967294, %v3376_v56  ;;  %v3466_v53 = vsel %vm3460_vm4, %v3453_v4, 920167782 }
 0x362   : > { %v3462_v52 = vsel %vm3460_vm4, %v3450_v15, 2102212464  ;;  %v3465_v8 = vsel %vm3457_vm3, %v3444_v63, %v3447_v5  ;;  %v3467_v61 = vsel %vm3459_vm7, %v3450_v15, %v3466_v53  ;;  %v3469_v54 = vsel %vm3457_vm3, %v3447_v5, %v3450_v15 }
 0x363   : > { %v3263_v2 = vxor.u32 2147483648, %v3257_v47  ;;  %vm5738_vm8 = vcmp.lt.s32.totalorder %v5737_v55, 0  ;;  %v3470_v29 = vsel %vm3460_vm4, %v3456_v38, 1326507024  ;;  %v3267_v25 = vsel %vm3265_vm15, %v3266_v7, %v3257_v47 }
 0x364   : > { %v3379_v14 = vsel %vm5738_vm8, 0, %v5737_v55  ;;  %v3468_v57 = vsel %vm3458_vm6, %v3465_v8, %v3467_v61  ;;  %v3471_v28 = vsel %vm3459_vm7, %v3453_v4, %v3470_v29  ;;  %v3463_v18 = vsel %vm3459_vm7, %v3447_v5, %v3462_v52 }
 0x365   : > { %v3264_v11 = vsel %vm3262_vm14, %v3249_v20, %v3263_v2  ;;  %v3380_v58 = vsub.s32 32, %v3379_v14  ;;  %v3384_v0 = vsub.s32 4294967266, %v3379_v14  ;;  %v3381_v23 = vshll.u32 %v8354_v19, %v3379_v14 }
 0x366   : > { %v3268_v48 = vsel %vm3261_vm0, %v3264_v11, %v3267_v25  ;;  %v3472_v63 = vsel %vm3458_vm6, %v3469_v54, %v3471_v28  ;;  %v3499_v42 = vshrl.u32 %v3468_v57, 16  ;;  %v8410_v21 = vadd.f32 %v8049_v13, %v452_v22 }
 0x367   : > { %v3269_v51 = vsel %vm3258_vm2, nan, %v3268_v48  ;;  %v3382_v26 = vshrl.u32 %v8333_v34, %v3380_v58  ;;  %v3385_v45 = vadd.s32 127, %v3384_v0  ;;  %v3476_v32 = vand.u32 65535, %v3472_v63 }
 0x368   : > { %v3477_v19 = vshrl.u32 %v3472_v63, 16  ;;  %5457 = vst [vmem:[%s6343_s10 + $0x88] sm:$0xff] %v3269_v51  ;;  %v3498_v30 = vand.u32 65535, %v3468_v57  ;;  %v8412_v36 = vadd.s32 3, %v3397_v16  ;;  %v8418_v41 = vand.u32 8388607, %v3580_v10 }
 0x369   : > { %v3383_v49 = vor.u32 %v3382_v26, %v3381_v23  ;;  %v3386_v60 = vshll.u32 %v3385_v45, 23  ;;  %v3480_v4 = vmul.u32 %v3476_v32, %v8346_v44  ;;  %v8422_v20 = vsel %vm3458_vm6, %v3461_v46, %v3463_v18 }
 0x36a   : > { %v3479_v34 = vmul.u32 %v3477_v19, %v8343_v3  ;;  %v3501_v13 = vmul.u32 %v3499_v42, %v8343_v3  ;;  %v3592_v24 = vsel %vm3591_vm5, %v8351_v1, 0  ;;  %v3478_v15 = vmul.u32 %v3476_v32, %v8343_v3 }
 0x36b   : > { %v3387_v5 = vor.u32 4788187, %v3386_v60  ;;  %v3390_v56 = vcvt.s32.f32 %v3383_v49  ;;  %v3481_v16 = vmul.u32 %v3477_v19, %v8346_v44  ;;  %v3500_v47 = vmul.u32 %v3498_v30, %v8343_v3 }
 0x36c   : > { %v3482_v6 = vshll.u32 %v3479_v34, 16  ;;  %v3502_v7 = vmul.u32 %v3498_v30, %v8346_v44  ;;  %v3504_v17 = vshll.u32 %v3501_v13, 16  ;;  %v3483_v55 = vshrl.u32 %v3479_v34, 16 }
 0x36d   : > { %v3388_v38 = vand.u32 2147483647, %v3387_v5  ;;  %v3484_v46 = vshll.u32 %v3480_v4, 16  ;;  %v3503_v1 = vmul.u32 %v3499_v42, %v8346_v44  ;;  %v3594_v11 = vand.u32 31, %v3592_v24 }
 0x36e   : > { %vm3486_vm9 = vc.u32 %v3478_v15, %v3482_v6  ;;  %v3488_v53 = vadd.s32 %v3482_v6, %v3478_v15  ;;  %v3506_v8 = vshll.u32 %v3502_v7, 16  ;;  %vm3508_vm11 = vc.u32 %v3500_v47, %v3504_v17 }
 0x36f   : > { %v3391_v2 = vmul.f32 %v3390_v56, %v3388_v38  ;;  %v3487_v52 = vsel %vm3486_vm9, 1, %v5962_v27  ;;  %v3510_v61 = vadd.s32 %v3504_v17, %v3500_v47  ;;  %v3509_v29 = vsel %vm3508_vm11, 1, %v5962_v27 }
 0x370   : > { %v3489_v14 = vadd.s32 %v3487_v52, %v3481_v16  ;;  %vm3490_vm10 = vc.u32 %v3488_v53, %v3484_v46  ;;  %v3485_v25 = vshrl.u32 %v3480_v4, 16  ;;  %v3511_v0 = vadd.s32 %v3509_v29, %v3503_v1 }
 0x371   : > { %v3392_v54 = vxor.u32 2147483648, %v3391_v2  ;;  %v3491_v3 = vsel %vm3490_vm10, 1, %v5962_v27  ;;  %vm3512_vm14 = vc.u32 %v3510_v61, %v3506_v8  ;;  %v3505_v48 = vshrl.u32 %v3501_v13, 16 }
 0x372   : > { %v3493_v58 = vadd.s32 %v3491_v3, %v3489_v14  ;;  %v3513_v44 = vsel %vm3512_vm14, 1, %v5962_v27  ;;  %v8439_v23 = vsub.s32 32, %v3594_v11  ;;  %v8444_v26 = vshrl.u32 %v3592_v24, 5 }
 0x373   : > { %v3393_v22 = vsel %vm3272_vm13, %v3392_v54, %v3391_v2  ;;  %v3515_v51 = vadd.s32 %v3513_v44, %v3511_v0  ;;  %v3507_v63 = vshrl.u32 %v3502_v7, 16  ;;  %v8446_v18 = vadd.s32 %v3510_v61, %v3506_v8 }
 0x374   : > { %v3396_v57 = vsel %vm8338_vm12, %v8055_v9, %v3393_v22  ;;  %v3494_v28 = vadd.s32 %v3493_v58, %v3483_v55  ;;  %v3598_v32 = vshrl.u32 %v5957_v35, %v8439_v23  ;;  %v3597_v49 = vshll.u32 %v5956_v33, %v3594_v11 }
 0x375   : > { %v3398_v45 = vmul.f32 %v3396_v57, %v3396_v57  ;;  %v3516_v42 = vadd.s32 %v3515_v51, %v3505_v48  ;;  %v3601_v62 = vshrl.u32 %v5958_v37, %v8439_v23  ;;  %v3600_v34 = vshll.u32 %v5957_v35, %v3594_v11 }
 0x376   : > { %v8450_v19 = vadd.s32 %v3494_v28, %v3485_v25  ;;  %v3603_v4 = vshll.u32 %v5958_v37, %v3594_v11  ;;  %v8459_v13 = vor.u32 %v3598_v32, %v3597_v49  ;;  %v3604_v24 = vshrl.u32 %v5959_v39, %v8439_v23 }
 0x377   : > { %v3399_v60 = vmul.f32 -0.001358992, %v3398_v45  ;;  %v3406_v30 = vmul.f32 -0.00019511016, %v3398_v45  ;;  %v3517_v5 = vadd.s32 %v3516_v42, %v3507_v63  ;;  %v3606_v16 = vshll.u32 %v5959_v39, %v3594_v11 }
 0x378   : > { %vm3520_vm13 = vc.u32 %v8450_v19, %v8446_v18  ;;  %v3607_v6 = vshrl.u32 %v5960_v43, %v8439_v23  ;;  %v8466_v47 = vor.u32 %v3601_v62, %v3600_v34  ;;  %v3609_v7 = vshll.u32 %v5960_v43, %v3594_v11  ;;  %v455_v11 = vpop.f32.mrf.mxu2 }
 0x379   : > { %v3400_v56 = vadd.f32 0.041655596, %v3399_v60  ;;  %v3407_v15 = vadd.f32 0.008332121, %v3406_v30  ;;  %v3521_v38 = vadd.s32 1, %v3517_v5  ;;  %v3610_v17 = vshrl.u32 %v5961_v50, %v8439_v23 }
 0x37a   : > { %v3518_v53 = vmul.u32 %v8328_v59, %v8422_v20  ;;  %v3608_v2 = vor.u32 %v3607_v6, %v3606_v16  ;;  %v3605_v1 = vor.u32 %v3604_v24, %v3603_v4  ;;  %vm3612_vm12 = vcmp.lt.s32.totalorder %v8444_v26, 1 }
 0x37b   : > { %v3401_v55 = vmul.f32 %v3400_v56, %v3398_v45  ;;  %v3408_v46 = vmul.f32 %v3407_v15, %v3398_v45  ;;  %v3522_v52 = vsel %vm3520_vm13, %v3521_v38, %v3517_v5  ;;  %v3611_v8 = vor.u32 %v3610_v17, %v3609_v7 }
 0x37c   : > { %v3523_v54 = vadd.s32 %v3522_v52, %v3518_v53  ;;  %vm3615_vm15 = vcmp.lt.s32.totalorder %v8444_v26, 4  ;;  %v3415_v3 = vand.u32 3, %v8412_v36  ;;  %v3588_v29 = vor.u32 8388608, %v8418_v41 }
 0x37d   : > { %v3402_v14 = vadd.f32 -0.4999988, %v3401_v55  ;;  %v3409_v61 = vadd.f32 -0.16666654, %v3408_v46  ;;  %v3620_v59 = vsel %vm3612_vm12, %v8459_v13, %v8466_v47  ;;  %v3621_v20 = vsel %vm3615_vm15, %v3608_v2, 920167782 }
 0x37e   : > { %v3524_v0 = vadd.s32 536870912, %v3523_v54  ;;  %vm3614_vm1 = vcmp.lt.s32.totalorder %v8444_v26, 3  ;;  %vm3613_vm0 = vcmp.lt.s32.totalorder %v8444_v26, 2  ;;  %v3624_v41 = vsel %vm3612_vm12, %v8466_v47, %v3605_v1 }
 0x37f   : > { %v3403_v25 = vmul.f32 %v3402_v14, %v3398_v45  ;;  %v3410_v58 = vmul.f32 %v3409_v61, %v3398_v45  ;;  %v3622_v36 = vsel %vm3614_vm1, %v3605_v1, %v3621_v20  ;;  %v3625_v22 = vsel %vm3615_vm15, %v3611_v8, 1326507024  ;;  %v8499_v45 = vld [vmem:[%s9896_s2] ss:$0 sm:$0xff] }
 0x380   : > { %v8492_v28 = vshrl.u32 %v3524_v0, 30  ;;  %v3623_v51 = vsel %vm3613_vm0, %v3620_v59, %v3622_v36  ;;  %v8502_v63 = vadd.f32 %v8499_v45, %v455_v11  ;;  %vm3413_vm2 = vweird.f32 %v8055_v9 }
 0x381   : > { %v3404_v48 = vadd.f32 1.0, %v3403_v25  ;;  %v3411_v44 = vadd.f32 1.0, %v3410_v58  ;;  %v3626_v32 = vsel %vm3614_vm1, %v3608_v2, %v3625_v22  ;;  %v8507_v42 = vshll.u32 %v3588_v29, 8 }
 0x382   : > { %vm3416_vm3 = vcmp.lt.s32.totalorder %v3415_v3, 2  ;;  %v3526_v60 = vshll.u32 %v8492_v28, 30  ;;  %vm3417_vm5 = vcmp.eq.s32.totalorder %v3415_v3, 0  ;;  %vm3420_vm4 = vcmp.eq.s32.totalorder %v3415_v3, 2 }
 0x383   : > { %v3412_v49 = vmul.f32 %v3411_v44, %v3396_v57  ;;  %v3421_v62 = vxor.u32 2147483648, %v3404_v48  ;;  %v3627_v30 = vsel %vm3613_vm0, %v3624_v41, %v3626_v32  ;;  %v3654_v34 = vshrl.u32 %v3623_v51, 16 }
 0x384   : > { %v3527_v5 = vsub.s32 %v3523_v54, %v3526_v60  ;;  %v3596_v24 = vshrl.u32 %v5956_v33, %v8439_v23  ;;  %v3653_v56 = vand.u32 65535, %v3623_v51  ;;  %v3629_v15 = vand.u32 65535, %v8507_v42 }
 0x385   : > { %v3418_v4 = vxor.u32 2147483648, %v3412_v49  ;;  %v3630_v57 = vshrl.u32 %v8507_v42, 16  ;;  %v3631_v16 = vand.u32 65535, %v3627_v30  ;;  %v3632_v6 = vshrl.u32 %v3627_v30, 16 }
 0x386   : > { %v3422_v7 = vsel %vm3420_vm4, %v3421_v62, %v3412_v49  ;;  %vm3528_vm6 = vcmp.lt.s32.totalorder %v3527_v5, 0  ;;  %v3529_v17 = vsub.s32 0, %v3527_v5  ;;  %v3656_v2 = vmul.u32 %v3654_v34, %v3629_v15 }
 0x387   : > { %v3419_v38 = vsel %vm3417_vm5, %v3404_v48, %v3418_v4  ;;  %v3634_v46 = vmul.u32 %v3632_v6, %v3629_v15  ;;  %v3635_v53 = vmul.u32 %v3631_v16, %v3630_v57  ;;  %v3519_v52 = vadd.s32 %v8446_v18, %v8450_v19 }
 0x388   : > { %v3423_v55 = vsel %vm3416_vm3, %v3419_v38, %v3422_v7  ;;  %v3530_v8 = vsel %vm3528_vm6, %v3529_v17, %v3527_v5  ;;  %v3657_v14 = vmul.u32 %v3653_v56, %v3630_v57  ;;  %v3617_v54 = vsel %vm3615_vm15, %v3605_v1, 2102212464 }
 0x389   : > { %v3424_v23 = vsel %vm3413_vm2, nan, %v3423_v55  ;;  %v3531_v61 = vclz %v3530_v8  ;;  %v3633_v29 = vmul.u32 %v3631_v16, %v3629_v15  ;;  %v3637_v59 = vshll.u32 %v3634_v46, 16 }
 0x38a   : > { %5458 = vst [vmem:[%s6343_s10 + $0x90] sm:$0xff] %v3424_v23  ;;  %v3616_v3 = vsel %vm3612_vm12, %v3596_v24, %v8459_v13  ;;  %v3636_v20 = vmul.u32 %v3632_v6, %v3630_v57  ;;  %v3639_v11 = vshll.u32 %v3635_v53, 16  ;;  %v3655_v9 = vmul.u32 %v3653_v56, %v3629_v15 }
 0x38b   : > { %v5740_v25 = vadd.s32 4294967294, %v3531_v61  ;;  %vm3641_vm7 = vc.u32 %v3633_v29, %v3637_v59  ;;  %v3643_v58 = vadd.s32 %v3637_v59, %v3633_v29  ;;  %v3659_v18 = vshll.u32 %v3656_v2, 16 }
 0x38c   : > { %v3618_v19 = vsel %vm3614_vm1, %v8466_v47, %v3617_v54  ;;  %v3642_v1 = vsel %vm3641_vm7, 1, %v5962_v27  ;;  %v3658_v0 = vmul.u32 %v3654_v34, %v3630_v57  ;;  %v3661_v36 = vshll.u32 %v3657_v14, 16 }
 0x38d   : > { %vm5741_vm8 = vcmp.lt.s32.totalorder %v5740_v25, 0  ;;  %v3644_v41 = vadd.s32 %v3642_v1, %v3636_v20  ;;  %vm3645_vm9 = vc.u32 %v3643_v58, %v3639_v11  ;;  %vm3663_vm10 = vc.u32 %v3655_v9, %v3659_v18 }
 0x38e   : > { %v3534_v13 = vsel %vm5741_vm8, 0, %v5740_v25  ;;  %v3646_v22 = vsel %vm3645_vm9, 1, %v5962_v27  ;;  %v3664_v48 = vsel %vm3663_vm10, 1, %v5962_v27  ;;  %v3665_v44 = vadd.s32 %v3659_v18, %v3655_v9 }
 0x38f   : > { %v3535_v51 = vsub.s32 32, %v3534_v13  ;;  %v3539_v32 = vsub.s32 4294967266, %v3534_v13  ;;  %v3638_v49 = vshrl.u32 %v3634_v46, 16  ;;  %v3648_v62 = vadd.s32 %v3646_v22, %v3644_v41 }
 0x390   : > { %v3536_v60 = vshll.u32 %v3527_v5, %v3534_v13  ;;  %v3640_v47 = vshrl.u32 %v3635_v53, 16  ;;  %v3666_v30 = vadd.s32 %v3664_v48, %v3658_v0  ;;  %vm3667_vm11 = vc.u32 %v3665_v44, %v3661_v36 }
 0x391   : > { %v3537_v34 = vshrl.u32 %v3519_v52, %v3535_v51  ;;  %v3540_v4 = vadd.s32 127, %v3539_v32  ;;  %v3649_v24 = vadd.s32 %v3648_v62, %v3638_v49  ;;  %v3668_v56 = vsel %vm3667_vm11, 1, %v5962_v27 }
 0x392   : > { %v3549_v15 = vsub.s32 4, %v8492_v28  ;;  %v3660_v57 = vshrl.u32 %v3656_v2, 16  ;;  %v3670_v16 = vadd.s32 %v3668_v56, %v3666_v30  ;;  %v3735_v6 = vand.u32 2147483647, %v8410_v21 }
 0x393   : > { %v3538_v38 = vor.u32 %v3537_v34, %v3536_v60  ;;  %v3541_v7 = vshll.u32 %v3540_v4, 23  ;;  %v3650_v17 = vadd.s32 %v3649_v24, %v3640_v47  ;;  %v3738_v55 = vand.u32 2139095040, %v8410_v21 }
 0x394   : > { %v3662_v5 = vshrl.u32 %v3657_v14, 16  ;;  %v3671_v46 = vadd.s32 %v3670_v16, %v3660_v57  ;;  %vm3427_vm14 = vcmp.lt.s32.totalorder %v8266_v40, 0  ;;  %v3619_v23 = vsel %vm3613_vm0, %v3616_v3, %v3618_v19 }
 0x395   : > { %v3542_v53 = vor.u32 4788187, %v3541_v7  ;;  %v3669_v52 = vadd.s32 %v3665_v44, %v3661_v36  ;;  %v3550_v2 = vsel %vm3427_vm14, %v3549_v15, %v8492_v28  ;;  %v3739_v61 = vshrl.u32 %v3738_v55, 23 }
 0x396   : > { %v3672_v8 = vadd.s32 %v3671_v46, %v3662_v5  ;;  %v3742_v54 = vand.u32 8388607, %v3735_v6  ;;  %v3545_v59 = vcvt.s32.f32 %v3538_v38  ;;  %v3893_v14 = vand.u32 2139095040, %v8502_v63 }
 0x397   : > { %v3543_v29 = vand.u32 2147483647, %v3542_v53  ;;  %vm3675_vm13 = vc.u32 %v3650_v17, %v3669_v52  ;;  %vm8548_vm12 = vcmp.le.f32.partialorder %v3425_v12, 0.7853982  ;;  %v5745_v20 = vadd.s32 4294967169, %v3739_v61  ;;  %v460_v12 = vpop.f32.mrf.mxu3 }
 0x398   : > { %v3676_v3 = vadd.s32 1, %v3672_v8  ;;  %v3552_v28 = vsel %vm8548_vm12, 0, %v3550_v2  ;;  %v3673_v9 = vmul.u32 %v8507_v42, %v3619_v23  ;;  %v3743_v58 = vor.u32 8388608, %v3742_v54 }
 0x399   : > { %v3546_v11 = vmul.f32 %v3545_v59, %v3543_v29  ;;  %v3745_v18 = vadd.s32 1, %v5745_v20  ;;  %v3890_v19 = vand.u32 2147483647, %v8502_v63  ;;  %v3894_v36 = vshrl.u32 %v3893_v14, 23 }
 0x39a   : > { %v3677_v25 = vsel %vm3675_vm13, %v3676_v3, %v3672_v8  ;;  %v3569_v41 = vadd.s32 3, %v3552_v28  ;;  %v8563_v51 = vshll.u32 %v3743_v58, 8  ;;  %v8570_v49 = vadd.f32 %v8499_v45, %v460_v12 }
 0x39b   : > { %v3547_v1 = vxor.u32 2147483648, %v3546_v11  ;;  %v3678_v0 = vadd.s32 %v3677_v25, %v3673_v9  ;;  %vm3746_vm15 = vcmp.gt.s32.totalorder %v3745_v18, 0  ;;  %v8567_v32 = vand.u32 8388607, %v3890_v19 }
 0x39c   : > { %v3747_v48 = vsel %vm3746_vm15, %v3745_v18, 0  ;;  %v5748_v47 = vadd.s32 4294967169, %v3894_v36  ;;  %v8574_v30 = vand.u32 3, %v3569_v41  ;;  %vm8578_vm1 = vcmp.le.f32.partialorder %v3580_v10, 0.7853982 }
 0x39d   : > { %v3548_v13 = vsel %vm3427_vm14, %v3547_v1, %v3546_v11  ;;  %v3679_v22 = vadd.s32 536870912, %v3678_v0  ;;  %v3749_v44 = vand.u32 31, %v3747_v48  ;;  %vm3582_vm0 = vcmp.lt.s32.totalorder %v8276_v31, 0 }
 0x39e   : > { %v8561_v42 = vsel %vm8548_vm12, %v8266_v40, %v3548_v13  ;;  %v3674_v16 = vadd.s32 %v3669_v52, %v3650_v17  ;;  %v8584_v38 = vand.u32 65535, %v8563_v51  ;;  %v8587_v7 = vshrl.u32 %v8563_v51, 16 }
 0x39f   : > { %v3553_v62 = vmul.f32 %v8561_v42, %v8561_v42  ;;  %v3680_v60 = vshrl.u32 %v3679_v22, 30  ;;  %v3750_v4 = vsub.s32 32, %v3749_v44  ;;  %v3898_v55 = vor.u32 8388608, %v8567_v32  ;;  %v457_v32 = vpop.f32.mrf.mxu2 }
 0x3a0   : > { %v8592_v53 = vadd.s32 1, %v5748_v47  ;;  %v8598_v2 = vshrl.u32 %v3747_v48, 5  ;;  %v3752_v17 = vshll.u32 %v5956_v33, %v3749_v44  ;;  %v3755_v29 = vshll.u32 %v5957_v35, %v3749_v44 }
 0x3a1   : > { %v3554_v24 = vmul.f32 -0.001358992, %v3553_v62  ;;  %v3561_v56 = vmul.f32 -0.00019511016, %v3553_v62  ;;  %v3681_v15 = vshll.u32 %v3680_v60, 30  ;;  %v3704_v57 = vsub.s32 4, %v3680_v60 }
 0x3a2   : > { %v3753_v52 = vshrl.u32 %v5957_v35, %v3750_v4  ;;  %v3756_v59 = vshrl.u32 %v5958_v37, %v3750_v4  ;;  %v3758_v14 = vshll.u32 %v5958_v37, %v3749_v44  ;;  %v3759_v26 = vshrl.u32 %v5959_v39, %v3750_v4 }
 0x3a3   : > { %v3555_v10 = vadd.f32 0.041655596, %v3554_v24  ;;  %v3562_v5 = vadd.f32 0.008332121, %v3561_v56  ;;  %v8590_v46 = vsub.s32 %v3678_v0, %v3681_v15  ;;  %v8596_v23 = vsel %vm3582_vm0, %v3704_v57, %v3680_v60 }
 0x3a4   : > { %v3762_v28 = vshrl.u32 %v5960_v43, %v3750_v4  ;;  %vm3572_vm3 = vcmp.eq.s32.totalorder %v8574_v30, 0  ;;  %vm3575_vm5 = vcmp.eq.s32.totalorder %v8574_v30, 2  ;;  %v3707_v25 = vsel %vm8578_vm1, 0, %v8596_v23 }
 0x3a5   : > { %v3556_v8 = vmul.f32 %v3555_v10, %v3553_v62  ;;  %v3563_v61 = vmul.f32 %v3562_v5, %v3553_v62  ;;  %vm3683_vm2 = vcmp.lt.s32.totalorder %v8590_v46, 0  ;;  %v3684_v54 = vsub.s32 0, %v8590_v46 }
 0x3a6   : > { %v3751_v58 = vshrl.u32 %v5956_v33, %v3750_v4  ;;  %v3765_v18 = vshrl.u32 %v5961_v50, %v3750_v4  ;;  %vm3571_vm4 = vcmp.lt.s32.totalorder %v8574_v30, 2  ;;  %v3754_v36 = vor.u32 %v3753_v52, %v3752_v17 }
 0x3a7   : > { %v3557_v3 = vadd.f32 -0.4999988, %v3556_v8  ;;  %v3564_v20 = vadd.f32 -0.16666654, %v3563_v61  ;;  %v3685_v11 = vsel %vm3683_vm2, %v3684_v54, %v8590_v46  ;;  %v3761_v12 = vshll.u32 %v5959_v39, %v3749_v44 }
 0x3a8   : > { %v3686_v9 = vclz %v3685_v11  ;;  %vm3568_vm6 = vweird.f32 %v8266_v40  ;;  %v3757_v13 = vor.u32 %v3756_v59, %v3755_v29  ;;  %v3760_v22 = vor.u32 %v3759_v26, %v3758_v14 }
 0x3a9   : > { %v3558_v1 = vmul.f32 %v3557_v3, %v3553_v62  ;;  %v3565_v0 = vmul.f32 %v3564_v20, %v3553_v62  ;;  %v3764_v48 = vshll.u32 %v5960_v43, %v3749_v44  ;;  %v3763_v24 = vor.u32 %v3762_v28, %v3761_v12 }
 0x3aa   : > { %v5743_v41 = vadd.s32 4294967294, %v3686_v9  ;;  %vm3767_vm7 = vcmp.lt.s32.totalorder %v8598_v2, 1  ;;  %vm3768_vm9 = vcmp.lt.s32.totalorder %v8598_v2, 2  ;;  %vm3769_vm10 = vcmp.lt.s32.totalorder %v8598_v2, 3 }
 0x3ab   : > { %v3559_v60 = vadd.f32 1.0, %v3558_v1  ;;  %v3566_v47 = vadd.f32 1.0, %v3565_v0  ;;  %v3766_v4 = vor.u32 %v3765_v18, %v3764_v48  ;;  %vm3770_vm11 = vcmp.lt.s32.totalorder %v8598_v2, 4 }
 0x3ac   : > { %vm5744_vm8 = vcmp.lt.s32.totalorder %v5743_v41, 0  ;;  %v3772_v44 = vsel %vm3770_vm11, %v3760_v22, 2102212464  ;;  %v3775_v5 = vsel %vm3767_vm7, %v3754_v36, %v3757_v13  ;;  %v3776_v52 = vsel %vm3770_vm11, %v3763_v24, 920167782 }
 0x3ad   : > { %v3567_v62 = vmul.f32 %v3566_v47, %v8561_v42  ;;  %v3576_v56 = vxor.u32 2147483648, %v3559_v60  ;;  %v3689_v15 = vsel %vm5744_vm8, 0, %v5743_v41  ;;  %v3779_v8 = vsel %vm3767_vm7, %v3757_v13, %v3760_v22 }
 0x3ae   : > { %v3690_v57 = vsub.s32 32, %v3689_v15  ;;  %v3694_v10 = vsub.s32 4294967266, %v3689_v15  ;;  %v3691_v17 = vshll.u32 %v8590_v46, %v3689_v15  ;;  %v3777_v42 = vsel %vm3769_vm10, %v3760_v22, %v3776_v52 }
 0x3af   : > { %v3573_v23 = vxor.u32 2147483648, %v3567_v62  ;;  %v3780_v29 = vsel %vm3770_vm11, %v3766_v4, 1326507024  ;;  %v3577_v14 = vsel %vm3575_vm5, %v3576_v56, %v3567_v62  ;;  %v3778_v46 = vsel %vm3768_vm9, %v3775_v5, %v3777_v42 }
 0x3b0   : > { %v3692_v61 = vshrl.u32 %v3674_v16, %v3690_v57  ;;  %v3695_v54 = vadd.s32 127, %v3694_v10  ;;  %v3781_v26 = vsel %vm3769_vm10, %v3763_v24, %v3780_v29  ;;  %v3808_v1 = vand.u32 65535, %v3778_v46 }
 0x3b1   : > { %v3574_v59 = vsel %vm3572_vm3, %v3559_v60, %v3573_v23  ;;  %v3782_v11 = vsel %vm3768_vm9, %v3779_v8, %v3781_v26  ;;  %v3771_v12 = vsel %vm3767_vm7, %v3751_v58, %v3754_v36  ;;  %v3773_v41 = vsel %vm3769_vm10, %v3757_v13, %v3772_v44 }
 0x3b2   : > { %v3578_v16 = vsel %vm3571_vm4, %v3574_v59, %v3577_v14  ;;  %v3693_v3 = vor.u32 %v3692_v61, %v3691_v17  ;;  %v3696_v20 = vshll.u32 %v3695_v54, 23  ;;  %v3786_v9 = vand.u32 65535, %v3782_v11 }
 0x3b3   : > { %v3579_v28 = vsel %vm3568_vm6, nan, %v3578_v16  ;;  %v3787_v18 = vshrl.u32 %v3782_v11, 16  ;;  %v3809_v30 = vshrl.u32 %v3778_v46, 16  ;;  %v8652_v22 = vadd.s32 3, %v3707_v25 }
 0x3b4   : > { %v3697_v0 = vor.u32 4788187, %v3696_v20  ;;  %5459 = vst [vmem:[%s6343_s10 + $0x98] sm:$0xff] %v3579_v28  ;;  %v3790_v60 = vmul.u32 %v3786_v9, %v8587_v7  ;;  %vm3901_vm14 = vcmp.gt.s32.totalorder %v8592_v53, 0  ;;  %v3700_v47 = vcvt.s32.f32 %v3693_v3 }
 0x3b5   : > { %v3789_v48 = vmul.u32 %v3787_v18, %v8584_v38  ;;  %v3811_v24 = vmul.u32 %v3809_v30, %v8584_v38  ;;  %v3812_v4 = vmul.u32 %v3808_v1, %v8587_v7  ;;  %v8661_v58 = vsel %vm3768_vm9, %v3771_v12, %v3773_v41 }
 0x3b6   : > { %v3698_v40 = vand.u32 2147483647, %v3697_v0  ;;  %v3788_v36 = vmul.u32 %v3786_v9, %v8584_v38  ;;  %v3791_v25 = vmul.u32 %v3787_v18, %v8587_v7  ;;  %v3794_v56 = vshll.u32 %v3790_v60, 16 }
 0x3b7   : > { %v3792_v13 = vshll.u32 %v3789_v48, 16  ;;  %v3810_v15 = vmul.u32 %v3808_v1, %v8584_v38  ;;  %v3814_v57 = vshll.u32 %v3811_v24, 16  ;;  %v3813_v44 = vmul.u32 %v3809_v30, %v8587_v7 }
 0x3b8   : > { %v3701_v62 = vmul.f32 %v3700_v47, %v3698_v40  ;;  %v3816_v5 = vshll.u32 %v3812_v4, 16  ;;  %v3902_v61 = vsel %vm3901_vm14, %v8592_v53, 0  ;;  %v3793_v29 = vshrl.u32 %v3789_v48, 16 }
 0x3b9   : > { %vm3796_vm13 = vc.u32 %v3788_v36, %v3792_v13  ;;  %v3798_v10 = vadd.s32 %v3792_v13, %v3788_v36  ;;  %vm3818_vm12 = vc.u32 %v3810_v15, %v3814_v57  ;;  %v3820_v17 = vadd.s32 %v3814_v57, %v3810_v15 }
 0x3ba   : > { %v3702_v23 = vxor.u32 2147483648, %v3701_v62  ;;  %v3797_v2 = vsel %vm3796_vm13, 1, %v5962_v27  ;;  %v3819_v8 = vsel %vm3818_vm12, 1, %v5962_v27  ;;  %v3815_v26 = vshrl.u32 %v3811_v24, 16 }
 0x3bb   : > { %v3799_v52 = vadd.s32 %v3797_v2, %v3791_v25  ;;  %vm3800_vm15 = vc.u32 %v3798_v10, %v3794_v56  ;;  %v3821_v7 = vadd.s32 %v3819_v8, %v3813_v44  ;;  %vm3822_vm2 = vc.u32 %v3820_v17, %v3816_v5 }
 0x3bc   : > { %v3703_v38 = vsel %vm3582_vm0, %v3702_v23, %v3701_v62  ;;  %v3801_v54 = vsel %vm3800_vm15, 1, %v5962_v27  ;;  %v3823_v14 = vsel %vm3822_vm2, 1, %v5962_v27  ;;  %v3904_v3 = vand.u32 31, %v3902_v61 }
 0x3bd   : > { %v3706_v42 = vsel %vm8578_vm1, %v8276_v31, %v3703_v38  ;;  %v3803_v59 = vadd.s32 %v3801_v54, %v3799_v52  ;;  %v3825_v16 = vadd.s32 %v3823_v14, %v3821_v7  ;;  %v3795_v53 = vshrl.u32 %v3790_v60, 16 }
 0x3be   : > { %v3708_v46 = vmul.f32 %v3706_v42, %v3706_v42  ;;  %v3817_v11 = vshrl.u32 %v3812_v4, 16  ;;  %v3828_v28 = vmul.u32 %v8563_v51, %v8661_v58  ;;  %v8681_v0 = vsub.s32 32, %v3904_v3 }
 0x3bf   : > { %v3804_v20 = vadd.s32 %v3803_v59, %v3793_v29  ;;  %v3826_v1 = vadd.s32 %v3825_v16, %v3815_v26  ;;  %v8685_v12 = vadd.s32 %v3820_v17, %v3816_v5  ;;  %v8687_v41 = vshrl.u32 %v3902_v61, 5 }
 0x3c0   : > { %v3709_v9 = vmul.f32 -0.001358992, %v3708_v46  ;;  %v3716_v18 = vmul.f32 -0.00019511016, %v3708_v46  ;;  %v3907_v30 = vshll.u32 %v5956_v33, %v3904_v3  ;;  %v3910_v47 = vshll.u32 %v5957_v35, %v3904_v3 }
 0x3c1   : > { %v8683_v34 = vadd.s32 %v3804_v20, %v3795_v53  ;;  %v3827_v40 = vadd.s32 %v3826_v1, %v3817_v11  ;;  %v3908_v51 = vshrl.u32 %v5957_v35, %v8681_v0  ;;  %v3911_v24 = vshrl.u32 %v5958_v37, %v8681_v0 }
 0x3c2   : > { %v3710_v48 = vadd.f32 0.041655596, %v3709_v9  ;;  %v3717_v60 = vadd.f32 0.008332121, %v3716_v18  ;;  %v3913_v4 = vshll.u32 %v5958_v37, %v3904_v3  ;;  %v3914_v13 = vshrl.u32 %v5959_v39, %v8681_v0 }
 0x3c3   : > { %vm3830_vm1 = vc.u32 %v8683_v34, %v8685_v12  ;;  %v3831_v25 = vadd.s32 1, %v3827_v40  ;;  %v8700_v62 = vor.u32 %v3908_v51, %v3907_v30  ;;  %v8702_v56 = vor.u32 %v3911_v24, %v3910_v47 }
 0x3c4   : > { %v3711_v58 = vmul.f32 %v3710_v48, %v3708_v46  ;;  %v3718_v36 = vmul.f32 %v3717_v60, %v3708_v46  ;;  %v3916_v15 = vshll.u32 %v5959_v39, %v3904_v3  ;;  %v3917_v57 = vshrl.u32 %v5960_v43, %v8681_v0 }
 0x3c5   : > { %v3832_v5 = vsel %vm3830_vm1, %v3831_v25, %v3827_v40  ;;  %v8707_v23 = vor.u32 %v3914_v13, %v3913_v4  ;;  %v3919_v52 = vshll.u32 %v5960_v43, %v3904_v3  ;;  %v3920_v8 = vshrl.u32 %v5961_v50, %v8681_v0 }
 0x3c6   : > { %v3712_v10 = vadd.f32 -0.4999988, %v3711_v58  ;;  %v3719_v44 = vadd.f32 -0.16666654, %v3718_v36  ;;  %v3833_v2 = vadd.s32 %v3832_v5, %v3828_v28  ;;  %v3918_v17 = vor.u32 %v3917_v57, %v3916_v15 }
 0x3c7   : > { %v3725_v54 = vand.u32 3, %v8652_v22  ;;  %vm3922_vm0 = vcmp.lt.s32.totalorder %v8687_v41, 1  ;;  %v3921_v29 = vor.u32 %v3920_v8, %v3919_v52  ;;  %vm3923_vm3 = vcmp.lt.s32.totalorder %v8687_v41, 2 }
 0x3c8   : > { %v3713_v61 = vmul.f32 %v3712_v10, %v3708_v46  ;;  %v3720_v38 = vmul.f32 %v3719_v44, %v3708_v46  ;;  %v3834_v7 = vadd.s32 536870912, %v3833_v2  ;;  %vm3925_vm5 = vcmp.lt.s32.totalorder %v8687_v41, 4 }
 0x3c9   : > { %vm3924_vm4 = vcmp.lt.s32.totalorder %v8687_v41, 3  ;;  %v3931_v26 = vsel %vm3925_vm5, %v3918_v17, 920167782  ;;  %v3930_v22 = vsel %vm3922_vm0, %v8700_v62, %v8702_v56  ;;  %v3934_v46 = vsel %vm3922_vm0, %v8702_v56, %v8707_v23 }
 0x3ca   : > { %v3714_v59 = vadd.f32 1.0, %v3713_v61  ;;  %v3721_v14 = vadd.f32 1.0, %v3720_v38  ;;  %v8719_v16 = vshrl.u32 %v3834_v7, 30  ;;  %v3935_v3 = vsel %vm3925_vm5, %v3921_v29, 1326507024 }
 0x3cb   : > { %v3932_v11 = vsel %vm3924_vm4, %v8707_v23, %v3931_v26  ;;  %v3936_v28 = vsel %vm3924_vm4, %v3918_v17, %v3935_v3  ;;  %vm3723_vm6 = vweird.f32 %v8276_v31  ;;  %v8742_v1 = vshll.u32 %v3898_v55, 8 }
 0x3cc   : > { %v3722_v53 = vmul.f32 %v3721_v14, %v3706_v42  ;;  %v3731_v20 = vxor.u32 2147483648, %v3714_v59  ;;  %v3836_v9 = vshll.u32 %v8719_v16, 30  ;;  %v3937_v18 = vsel %vm3923_vm3, %v3934_v46, %v3936_v28 }
 0x3cd   : > { %vm3726_vm7 = vcmp.lt.s32.totalorder %v3725_v54, 2  ;;  %v3941_v30 = vand.u32 65535, %v3937_v18  ;;  %v3942_v48 = vshrl.u32 %v3937_v18, 16  ;;  %vm3727_vm8 = vcmp.eq.s32.totalorder %v3725_v54, 0 }
 0x3ce   : > { %v3728_v42 = vxor.u32 2147483648, %v3722_v53  ;;  %vm3730_vm9 = vcmp.eq.s32.totalorder %v3725_v54, 2  ;;  %v3837_v60 = vsub.s32 %v3833_v2, %v3836_v9  ;;  %v3933_v40 = vsel %vm3923_vm3, %v3930_v22, %v3932_v11 }
 0x3cf   : > { %v3732_v51 = vsel %vm3730_vm9, %v3731_v20, %v3722_v53  ;;  %v3939_v24 = vand.u32 65535, %v8742_v1  ;;  %v3940_v4 = vshrl.u32 %v8742_v1, 16  ;;  %v4203_v36 = vand.u32 2139095040, %v8570_v49 }
 0x3d0   : > { %v3729_v47 = vsel %vm3727_vm8, %v3714_v59, %v3728_v42  ;;  %vm3838_vm10 = vcmp.lt.s32.totalorder %v3837_v60, 0  ;;  %v3839_v58 = vsub.s32 0, %v3837_v60  ;;  %v3964_v57 = vshrl.u32 %v3933_v40, 16 }
 0x3d1   : > { %v3733_v55 = vsel %vm3726_vm7, %v3729_v47, %v3732_v51  ;;  %v3944_v13 = vmul.u32 %v3942_v48, %v3939_v24  ;;  %v3945_v15 = vmul.u32 %v3941_v30, %v3940_v4  ;;  %v3963_v44 = vand.u32 65535, %v3933_v40 }
 0x3d2   : > { %v3734_v25 = vsel %vm3723_vm6, nan, %v3733_v55  ;;  %v3840_v10 = vsel %vm3838_vm10, %v3839_v58, %v3837_v60  ;;  %v8753_v5 = vadd.f32 %v8499_v45, %v457_v32  ;;  %v3943_v17 = vmul.u32 %v3941_v30, %v3939_v24 }
 0x3d3   : > { %5460 = vst [vmem:[%s6343_s10 + $0xa0] sm:$0xff] %v3734_v25  ;;  %v3841_v2 = vclz %v3840_v10  ;;  %v3947_v52 = vshll.u32 %v3944_v13, 16  ;;  %v3906_v8 = vshrl.u32 %v5956_v33, %v8681_v0  ;;  %v3946_v61 = vmul.u32 %v3942_v48, %v3940_v4 }
 0x3d4   : > { %v3949_v38 = vshll.u32 %v3945_v15, 16  ;;  %v4204_v54 = vshrl.u32 %v4203_v36, 23  ;;  %v3966_v29 = vmul.u32 %v3964_v57, %v3939_v24  ;;  %vm3737_vm14 = vcmp.lt.s32.totalorder %v8410_v21, 0 }
 0x3d5   : > { %v5746_v31 = vadd.s32 4294967294, %v3841_v2  ;;  %vm3951_vm11 = vc.u32 %v3943_v17, %v3947_v52  ;;  %v3953_v7 = vadd.s32 %v3947_v52, %v3943_v17  ;;  %v3829_v59 = vadd.s32 %v8685_v12, %v8683_v34 }
 0x3d6   : > { %v3859_v45 = vsub.s32 4, %v8719_v16  ;;  %v3952_v14 = vsel %vm3951_vm11, 1, %v5962_v27  ;;  %v3967_v26 = vmul.u32 %v3963_v44, %v3940_v4  ;;  %v3969_v0 = vshll.u32 %v3966_v29, 16 }
 0x3d7   : > { %vm5747_vm13 = vcmp.lt.s32.totalorder %v5746_v31, 0  ;;  %v3954_v22 = vadd.s32 %v3952_v14, %v3946_v61  ;;  %vm3955_vm12 = vc.u32 %v3953_v7, %v3949_v38  ;;  %v3948_v3 = vshrl.u32 %v3944_v13, 16 }
 0x3d8   : > { %v3844_v46 = vsel %vm5747_vm13, 0, %v5746_v31  ;;  %v3956_v53 = vsel %vm3955_vm12, 1, %v5962_v27  ;;  %v3965_v20 = vmul.u32 %v3963_v44, %v3939_v24  ;;  %v3968_v18 = vmul.u32 %v3964_v57, %v3940_v4 }
 0x3d9   : > { %v3845_v11 = vsub.s32 32, %v3844_v46  ;;  %v3849_v28 = vsub.s32 4294967266, %v3844_v46  ;;  %v3958_v9 = vadd.s32 %v3956_v53, %v3954_v22  ;;  %v3846_v42 = vshll.u32 %v3837_v60, %v3844_v46 }
 0x3da   : > { %v3971_v34 = vshll.u32 %v3967_v26, 16  ;;  %vm3973_vm15 = vc.u32 %v3965_v20, %v3969_v0  ;;  %v3975_v12 = vadd.s32 %v3969_v0, %v3965_v20  ;;  %v3927_v51 = vsel %vm3925_vm5, %v8707_v23, 2102212464 }
 0x3db   : > { %v3847_v30 = vshrl.u32 %v3829_v59, %v3845_v11  ;;  %v3850_v48 = vadd.s32 127, %v3849_v28  ;;  %v3959_v40 = vadd.s32 %v3958_v9, %v3948_v3  ;;  %v3974_v47 = vsel %vm3973_vm15, 1, %v5962_v27 }
 0x3dc   : > { %v3976_v32 = vadd.s32 %v3974_v47, %v3968_v18  ;;  %vm3977_vm2 = vc.u32 %v3975_v12, %v3971_v34  ;;  %v4045_v24 = vand.u32 2147483647, %v8753_v5  ;;  %v3950_v4 = vshrl.u32 %v3945_v15, 16 }
 0x3dd   : > { %v3848_v55 = vor.u32 %v3847_v30, %v3846_v42  ;;  %v3851_v58 = vshll.u32 %v3850_v48, 23  ;;  %v3978_v60 = vsel %vm3977_vm2, 1, %v5962_v27  ;;  %v3926_v36 = vsel %vm3922_vm0, %v3906_v8, %v8700_v62 }
 0x3de   : > { %v3970_v25 = vshrl.u32 %v3966_v29, 16  ;;  %v3980_v13 = vadd.s32 %v3978_v60, %v3976_v32  ;;  %v4048_v57 = vand.u32 2139095040, %v8753_v5  ;;  %v3860_v23 = vsel %vm3737_vm14, %v3859_v45, %v8719_v16 }
 0x3df   : > { %v3852_v10 = vor.u32 4788187, %v3851_v58  ;;  %v3928_v44 = vsel %vm3924_vm4, %v8702_v56, %v3927_v51  ;;  %v3960_v15 = vadd.s32 %v3959_v40, %v3950_v4  ;;  %v3972_v2 = vshrl.u32 %v3967_v26, 16 }
 0x3e0   : > { %v3981_v17 = vadd.s32 %v3980_v13, %v3970_v25  ;;  %v4049_v52 = vshrl.u32 %v4048_v57, 23  ;;  %v4052_v62 = vand.u32 8388607, %v4045_v24  ;;  %v3855_v61 = vcvt.s32.f32 %v3848_v55 }
 0x3e1   : > { %v3853_v8 = vand.u32 2147483647, %v3852_v10  ;;  %v3979_v38 = vadd.s32 %v3975_v12, %v3971_v34  ;;  %v5754_v31 = vadd.s32 4294967169, %v4204_v54  ;;  %vm8783_vm1 = vcmp.le.f32.partialorder %v3735_v6, 0.7853982 }
 0x3e2   : > { %v3929_v56 = vsel %vm3923_vm3, %v3926_v36, %v3928_v44  ;;  %v3982_v16 = vadd.s32 %v3981_v17, %v3972_v2  ;;  %v5751_v29 = vadd.s32 4294967169, %v4049_v52  ;;  %v3862_v45 = vsel %vm8783_vm1, 0, %v3860_v23 }
 0x3e3   : > { %v3856_v59 = vmul.f32 %v3855_v61, %v3853_v8  ;;  %vm3985_vm0 = vc.u32 %v3960_v15, %v3979_v38  ;;  %v4210_v14 = vadd.s32 1, %v5754_v31  ;;  %v4053_v22 = vor.u32 8388608, %v4052_v62 }
 0x3e4   : > { %v3986_v26 = vadd.s32 1, %v3982_v16  ;;  %v4055_v54 = vadd.s32 1, %v5751_v29  ;;  %v3983_v6 = vmul.u32 %v8742_v1, %v3929_v56  ;;  %v3879_v46 = vadd.s32 3, %v3862_v45 }
 0x3e5   : > { %v3857_v0 = vxor.u32 2147483648, %v3856_v59  ;;  %vm4211_vm3 = vcmp.gt.s32.totalorder %v4210_v14, 0  ;;  %v8799_v9 = vshll.u32 %v4053_v22, 8  ;;  %v4200_v18 = vand.u32 2147483647, %v8570_v49 }
 0x3e6   : > { %v3987_v3 = vsel %vm3985_vm0, %v3986_v26, %v3982_v16  ;;  %vm4056_vm5 = vcmp.gt.s32.totalorder %v4055_v54, 0  ;;  %v8804_v34 = vand.u32 3, %v3879_v46  ;;  %v4212_v30 = vsel %vm4211_vm3, %v4210_v14, 0 }
 0x3e7   : > { %v3858_v41 = vsel %vm3737_vm14, %v3857_v0, %v3856_v59  ;;  %v3988_v53 = vadd.s32 %v3987_v3, %v3983_v6  ;;  %v4057_v20 = vsel %vm4056_vm5, %v4055_v54, 0  ;;  %v8806_v47 = vadd.s32 %v3979_v38, %v3960_v15 }
 0x3e8   : > { %v8797_v11 = vsel %vm8783_vm1, %v8410_v21, %v3858_v41  ;;  %v4059_v28 = vand.u32 31, %v4057_v20  ;;  %vm3892_vm4 = vcmp.lt.s32.totalorder %v8502_v63, 0  ;;  %v8809_v32 = vshrl.u32 %v4057_v20, 5 }
 0x3e9   : > { %v3863_v1 = vmul.f32 %v8797_v11, %v8797_v11  ;;  %v3989_v42 = vadd.s32 536870912, %v3988_v53  ;;  %v8812_v55 = vand.u32 65535, %v8799_v9  ;;  %v8815_v58 = vshrl.u32 %v8799_v9, 16 }
 0x3ea   : > { %v4060_v12 = vsub.s32 32, %v4059_v28  ;;  %v8819_v4 = vand.u32 8388607, %v4200_v18  ;;  %v8821_v13 = vshrl.u32 %v4212_v30, 5  ;;  %v4062_v57 = vshll.u32 %v5956_v33, %v4059_v28 }
 0x3eb   : > { %v3864_v48 = vmul.f32 -0.001358992, %v3863_v1  ;;  %v3871_v40 = vmul.f32 -0.00019511016, %v3863_v1  ;;  %v3990_v51 = vshrl.u32 %v3989_v42, 30  ;;  %v8826_v44 = vand.u32 31, %v4212_v30 }
 0x3ec   : > { %v4063_v10 = vshrl.u32 %v5957_v35, %v4060_v12  ;;  %v4066_v23 = vshrl.u32 %v5958_v37, %v4060_v12  ;;  %v4072_v52 = vshrl.u32 %v5960_v43, %v4060_v12  ;;  %vm3885_vm6 = vcmp.eq.s32.totalorder %v8804_v34, 2 }
 0x3ed   : > { %v3865_v60 = vadd.f32 0.041655596, %v3864_v48  ;;  %v3872_v36 = vadd.f32 0.008332121, %v3871_v40  ;;  %v3991_v25 = vshll.u32 %v3990_v51, 30  ;;  %v4014_v62 = vsub.s32 4, %v3990_v51 }
 0x3ee   : > { %v4065_v8 = vshll.u32 %v5957_v35, %v4059_v28  ;;  %v4069_v61 = vshrl.u32 %v5959_v39, %v4060_v12  ;;  %v4071_v38 = vshll.u32 %v5959_v39, %v4059_v28  ;;  %vm3882_vm8 = vcmp.eq.s32.totalorder %v8804_v34, 0 }
 0x3ef   : > { %v3866_v15 = vmul.f32 %v3865_v60, %v3863_v1  ;;  %v3873_v2 = vmul.f32 %v3872_v36, %v3863_v1  ;;  %v8828_v17 = vsub.s32 %v3988_v53, %v3991_v25  ;;  %v4064_v16 = vor.u32 %v4063_v10, %v4062_v57 }
 0x3f0   : > { %v4067_v29 = vor.u32 %v4066_v23, %v4065_v8  ;;  %v4068_v59 = vshll.u32 %v5958_v37, %v4059_v28  ;;  %v4075_v45 = vshrl.u32 %v5961_v50, %v4060_v12  ;;  %vm3881_vm9 = vcmp.lt.s32.totalorder %v8804_v34, 2 }
 0x3f1   : > { %v3867_v31 = vadd.f32 -0.4999988, %v3866_v15  ;;  %v3874_v7 = vadd.f32 -0.16666654, %v3873_v2  ;;  %vm3993_vm7 = vcmp.lt.s32.totalorder %v8828_v17, 0  ;;  %v3994_v56 = vsub.s32 0, %v8828_v17 }
 0x3f2   : > { %v4073_v54 = vor.u32 %v4072_v52, %v4071_v38  ;;  %vm3878_vm10 = vweird.f32 %v8410_v21  ;;  %v4061_v6 = vshrl.u32 %v5956_v33, %v4060_v12  ;;  %v4070_v46 = vor.u32 %v4069_v61, %v4068_v59 }
 0x3f3   : > { %v3868_v14 = vmul.f32 %v3867_v31, %v3863_v1  ;;  %v3875_v26 = vmul.f32 %v3874_v7, %v3863_v1  ;;  %v3995_v22 = vsel %vm3993_vm7, %v3994_v56, %v8828_v17  ;;  %v4074_v3 = vshll.u32 %v5960_v43, %v4059_v28 }
 0x3f4   : > { %v3996_v0 = vclz %v3995_v22  ;;  %v8847_v20 = vsel %vm3892_vm4, %v4014_v62, %v3990_v51  ;;  %vm4077_vm11 = vcmp.lt.s32.totalorder %v8809_v32, 1  ;;  %vm8852_vm14 = vcmp.le.f32.partialorder %v3890_v19, 0.7853982 }
 0x3f5   : > { %v3869_v41 = vadd.f32 1.0, %v3868_v14  ;;  %v3876_v53 = vadd.f32 1.0, %v3875_v26  ;;  %v4076_v30 = vor.u32 %v4075_v45, %v4074_v3  ;;  %vm4080_vm13 = vcmp.lt.s32.totalorder %v8809_v32, 4 }
 0x3f6   : > { %v5749_v42 = vadd.s32 4294967294, %v3996_v0  ;;  %v4085_v28 = vsel %vm4077_vm11, %v4064_v16, %v4067_v29  ;;  %vm4079_vm12 = vcmp.lt.s32.totalorder %v8809_v32, 3  ;;  %v4086_v40 = vsel %vm4080_vm13, %v4073_v54, 920167782 }
 0x3f7   : > { %v3877_v12 = vmul.f32 %v3876_v53, %v8797_v11  ;;  %v3886_v48 = vxor.u32 2147483648, %v3869_v41  ;;  %vm4078_vm2 = vcmp.lt.s32.totalorder %v8809_v32, 2  ;;  %v4087_v19 = vsel %vm4079_vm12, %v4070_v46, %v4086_v40 }
 0x3f8   : > { %vm5750_vm15 = vcmp.lt.s32.totalorder %v5749_v42, 0  ;;  %v4089_v51 = vsel %vm4077_vm11, %v4067_v29, %v4070_v46  ;;  %v4088_v25 = vsel %vm4078_vm2, %v4085_v28, %v4087_v19  ;;  %v4090_v15 = vsel %vm4080_vm13, %v4076_v30, 1326507024 }
 0x3f9   : > { %v3883_v60 = vxor.u32 2147483648, %v3877_v12  ;;  %v3887_v36 = vsel %vm3885_vm6, %v3886_v48, %v3877_v12  ;;  %v3999_v11 = vsel %vm5750_vm15, 0, %v5749_v42  ;;  %v4091_v52 = vsel %vm4079_vm12, %v4073_v54, %v4090_v15 }
 0x3fa   : > { %v4000_v57 = vsub.s32 32, %v3999_v11  ;;  %v4001_v10 = vshll.u32 %v8828_v17, %v3999_v11  ;;  %v4004_v23 = vsub.s32 4294967266, %v3999_v11  ;;  %v4118_v62 = vand.u32 65535, %v4088_v25 }
 0x3fb   : > { %v3884_v2 = vsel %vm3882_vm8, %v3869_v41, %v3883_v60  ;;  %v4119_v8 = vshrl.u32 %v4088_v25, 16  ;;  %v4092_v17 = vsel %vm4078_vm2, %v4089_v51, %v4091_v52  ;;  %v4082_v56 = vsel %vm4080_vm13, %v4070_v46, 2102212464 }
 0x3fc   : > { %v3888_v61 = vsel %vm3881_vm9, %v3884_v2, %v3887_v36  ;;  %v4002_v38 = vshrl.u32 %v8806_v47, %v4000_v57  ;;  %v4005_v31 = vadd.s32 127, %v4004_v23  ;;  %v4096_v59 = vand.u32 65535, %v4092_v17 }
 0x3fd   : > { %v3889_v7 = vsel %vm3878_vm10, nan, %v3888_v61  ;;  %v4097_v45 = vshrl.u32 %v4092_v17, 16  ;;  %v4121_v22 = vmul.u32 %v4119_v8, %v8812_v55  ;;  %v4122_v34 = vmul.u32 %v4118_v62, %v8815_v58 }
 0x3fe   : > { %v4003_v14 = vor.u32 %v4002_v38, %v4001_v10  ;;  %v4006_v26 = vshll.u32 %v4005_v31, 23  ;;  %5461 = vst [vmem:[%s6343_s10 + $0xa8] sm:$0xff] %v3889_v7  ;;  %v4017_v47 = vsel %vm8852_vm14, 0, %v8847_v20  ;;  %v4081_v21 = vsel %vm4077_vm11, %v4061_v6, %v4064_v16 }
 0x3ff   : > { %v4099_v54 = vmul.u32 %v4097_v45, %v8812_v55  ;;  %v4100_v0 = vmul.u32 %v4096_v59, %v8815_v58  ;;  %v4083_v3 = vsel %vm4079_vm12, %v4067_v29, %v4082_v56  ;;  %v4120_v41 = vmul.u32 %v4118_v62, %v8812_v55 }
 0x400   : > { %v4007_v46 = vor.u32 4788187, %v4006_v26  ;;  %v4124_v53 = vshll.u32 %v4121_v22, 16  ;;  %v4010_v42 = vcvt.s32.f32 %v4003_v14  ;;  %v4098_v30 = vmul.u32 %v4096_v59, %v8812_v55 }
 0x401   : > { %v4101_v28 = vmul.u32 %v4097_v45, %v8815_v58  ;;  %v4102_v20 = vshll.u32 %v4099_v54, 16  ;;  %v4104_v48 = vshll.u32 %v4100_v0, 16  ;;  %v4123_v16 = vmul.u32 %v4119_v8, %v8815_v58 }
 0x402   : > { %v4008_v12 = vand.u32 2147483647, %v4007_v46  ;;  %v4126_v6 = vshll.u32 %v4122_v34, 16  ;;  %vm4128_vm0 = vc.u32 %v4120_v41, %v4124_v53  ;;  %v4130_v19 = vadd.s32 %v4124_v53, %v4120_v41 }
 0x403   : > { %vm4106_vm1 = vc.u32 %v4098_v30, %v4102_v20  ;;  %v4108_v40 = vadd.s32 %v4102_v20, %v4098_v30  ;;  %v4084_v29 = vsel %vm4078_vm2, %v4081_v21, %v4083_v3  ;;  %v4129_v55 = vsel %vm4128_vm0, 1, %v5962_v27 }
 0x404   : > { %v4011_v51 = vmul.f32 %v4010_v42, %v4008_v12  ;;  %v4107_v60 = vsel %vm4106_vm1, 1, %v5962_v27  ;;  %v4131_v11 = vadd.s32 %v4129_v55, %v4123_v16  ;;  %vm4132_vm3 = vc.u32 %v4130_v19, %v4126_v6 }
 0x405   : > { %v4109_v36 = vadd.s32 %v4107_v60, %v4101_v28  ;;  %vm4110_vm5 = vc.u32 %v4108_v40, %v4104_v48  ;;  %v4103_v57 = vshrl.u32 %v4099_v54, 16  ;;  %v4133_v10 = vsel %vm4132_vm3, 1, %v5962_v27 }
 0x406   : > { %v4012_v25 = vxor.u32 2147483648, %v4011_v51  ;;  %v4111_v58 = vsel %vm4110_vm5, 1, %v5962_v27  ;;  %v4125_v15 = vshrl.u32 %v4121_v22, 16  ;;  %v4135_v2 = vadd.s32 %v4133_v10, %v4131_v11 }
 0x407   : > { %v4113_v23 = vadd.s32 %v4111_v58, %v4109_v36  ;;  %v8911_v32 = vsub.s32 32, %v8826_v44  ;;  %v4034_v62 = vadd.s32 3, %v4017_v47  ;;  %v4105_v8 = vshrl.u32 %v4100_v0, 16 }
 0x408   : > { %v4013_v52 = vsel %vm3892_vm4, %v4012_v25, %v4011_v51  ;;  %v4127_v61 = vshrl.u32 %v4122_v34, 16  ;;  %v4136_v17 = vadd.s32 %v4135_v2, %v4125_v15  ;;  %v4138_v7 = vmul.u32 %v8799_v9, %v4084_v29  ;;  %v462_v51 = vpop.f32.mrf.mxu3 }
 0x409   : > { %v4016_v38 = vsel %vm8852_vm14, %v8502_v63, %v4013_v52  ;;  %v4114_v31 = vadd.s32 %v4113_v23, %v4103_v57  ;;  %v8919_v59 = vadd.s32 %v4130_v19, %v4126_v6  ;;  %v4217_v45 = vshll.u32 %v5956_v33, %v8826_v44 }
 0x40a   : > { %v4018_v56 = vmul.f32 %v4016_v38, %v4016_v38  ;;  %v4221_v14 = vshrl.u32 %v5958_v37, %v8911_v32  ;;  %v4137_v22 = vadd.s32 %v4136_v17, %v4127_v61  ;;  %v4224_v1 = vshrl.u32 %v5959_v39, %v8911_v32  ;;  %v8981_v17 = vld [vmem:[%s9896_s2] ss:$0 sm:$0xff] }
 0x40b   : > { %v8925_v26 = vadd.s32 %v4114_v31, %v4105_v8  ;;  %v4227_v34 = vshrl.u32 %v5960_v43, %v8911_v32  ;;  %v4220_v21 = vshll.u32 %v5957_v35, %v8826_v44  ;;  %v4223_v54 = vshll.u32 %v5958_v37, %v8826_v44 }
 0x40c   : > { %v4019_v47 = vmul.f32 -0.001358992, %v4018_v56  ;;  %v4026_v9 = vmul.f32 -0.00019511016, %v4018_v56  ;;  %v4141_v0 = vadd.s32 1, %v4137_v22  ;;  %v4218_v46 = vshrl.u32 %v5957_v35, %v8911_v32 }
 0x40d   : > { %vm4140_vm4 = vc.u32 %v8925_v26, %v8919_v59  ;;  %v4226_v3 = vshll.u32 %v5959_v39, %v8826_v44  ;;  %v4229_v42 = vshll.u32 %v5960_v43, %v8826_v44  ;;  %v4230_v30 = vshrl.u32 %v5961_v50, %v8911_v32 }
 0x40e   : > { %v4020_v41 = vadd.f32 0.041655596, %v4019_v47  ;;  %v4027_v53 = vadd.f32 0.008332121, %v4026_v9  ;;  %v4142_v28 = vsel %vm4140_vm4, %v4141_v0, %v4137_v22  ;;  %v8945_v20 = vor.u32 %v4221_v14, %v4220_v21 }
 0x40f   : > { %v8947_v12 = vor.u32 %v4224_v1, %v4223_v54  ;;  %v4228_v48 = vor.u32 %v4227_v34, %v4226_v3  ;;  %v4143_v40 = vadd.s32 %v4142_v28, %v4138_v7  ;;  %v4231_v19 = vor.u32 %v4230_v30, %v4229_v42 }
 0x410   : > { %v4021_v16 = vmul.f32 %v4020_v41, %v4018_v56  ;;  %v4028_v6 = vmul.f32 %v4027_v53, %v4018_v56  ;;  %v4035_v29 = vand.u32 3, %v4034_v62  ;;  %v4208_v60 = vor.u32 8388608, %v8819_v4 }
 0x411   : > { %v8950_v55 = vor.u32 %v4218_v46, %v4217_v45  ;;  %v4144_v11 = vadd.s32 536870912, %v4143_v40  ;;  %vm4235_vm6 = vcmp.lt.s32.totalorder %v8821_v13, 4  ;;  %vm4232_vm7 = vcmp.lt.s32.totalorder %v8821_v13, 1  ;;  %v465_v46 = vpop.f32.mrf.mxu3 }
 0x412   : > { %v4022_v44 = vadd.f32 -0.4999988, %v4021_v16  ;;  %v4029_v36 = vadd.f32 -0.16666654, %v4028_v6  ;;  %vm4234_vm8 = vcmp.lt.s32.totalorder %v8821_v13, 3  ;;  %v4244_v23 = vsel %vm4232_vm7, %v8945_v20, %v8947_v12 }
 0x413   : > { %v4241_v25 = vsel %vm4235_vm6, %v4228_v48, 920167782  ;;  %v4245_v57 = vsel %vm4235_vm6, %v4231_v19, 1326507024  ;;  %v8959_v4 = vshrl.u32 %v4144_v11, 30  ;;  %vm4233_vm9 = vcmp.lt.s32.totalorder %v8821_v13, 2 }
 0x414   : > { %v4023_v58 = vmul.f32 %v4022_v44, %v4018_v56  ;;  %v4030_v10 = vmul.f32 %v4029_v36, %v4018_v56  ;;  %v4240_v15 = vsel %vm4232_vm7, %v8950_v55, %v8945_v20  ;;  %v4246_v2 = vsel %vm4234_vm8, %v4228_v48, %v4245_v57 }
 0x415   : > { %v8972_v52 = vshll.u32 %v4208_v60, 8  ;;  %v4146_v61 = vshll.u32 %v8959_v4, 30  ;;  %v4242_v31 = vsel %vm4234_vm8, %v8947_v12, %v4241_v25  ;;  %v8984_v7 = vadd.f32 %v8981_v17, %v462_v51 }
 0x416   : > { %v4024_v62 = vadd.f32 1.0, %v4023_v58  ;;  %v4031_v8 = vadd.f32 1.0, %v4030_v10  ;;  %vm4033_vm10 = vweird.f32 %v8502_v63  ;;  %v4247_v56 = vsel %vm4233_vm9, %v4244_v23, %v4246_v2 }
 0x417   : > { %vm4040_vm11 = vcmp.eq.s32.totalorder %v4035_v29, 2  ;;  %v4147_v22 = vsub.s32 %v4143_v40, %v4146_v61  ;;  %v4243_v1 = vsel %vm4233_vm9, %v4240_v15, %v4242_v31  ;;  %v4249_v34 = vand.u32 65535, %v8972_v52 }
 0x418   : > { %v4032_v45 = vmul.f32 %v4031_v8, %v4016_v38  ;;  %v4041_v14 = vxor.u32 2147483648, %v4024_v62  ;;  %v4251_v47 = vand.u32 65535, %v4247_v56  ;;  %v4252_v9 = vshrl.u32 %v4247_v56, 16 }
 0x419   : > { %vm4148_vm14 = vcmp.lt.s32.totalorder %v4147_v22, 0  ;;  %v4149_v54 = vsub.s32 0, %v4147_v22  ;;  %v4250_v0 = vshrl.u32 %v8972_v52, 16  ;;  %vm4036_vm13 = vcmp.lt.s32.totalorder %v4035_v29, 2 }
 0x41a   : > { %v4038_v21 = vxor.u32 2147483648, %v4032_v45  ;;  %vm4037_vm12 = vcmp.eq.s32.totalorder %v4035_v29, 0  ;;  %v4042_v3 = vsel %vm4040_vm11, %v4041_v14, %v4032_v45  ;;  %v4254_v38 = vmul.u32 %v4252_v9, %v4249_v34 }
 0x41b   : > { %v4150_v53 = vsel %vm4148_vm14, %v4149_v54, %v4147_v22  ;;  %v4255_v42 = vmul.u32 %v4251_v47, %v4250_v0  ;;  %v4274_v30 = vshrl.u32 %v4243_v1, 16  ;;  %v4273_v6 = vand.u32 65535, %v4243_v1 }
 0x41c   : > { %v4039_v41 = vsel %vm4037_vm12, %v4024_v62, %v4038_v21  ;;  %v4151_v48 = vclz %v4150_v53  ;;  %v4257_v16 = vshll.u32 %v4254_v38, 16  ;;  %v8994_v40 = vadd.f32 %v8981_v17, %v465_v46 }
 0x41d   : > { %v4043_v28 = vsel %vm4036_vm13, %v4039_v41, %v4042_v3  ;;  %v4216_v51 = vshrl.u32 %v5956_v33, %v8911_v32  ;;  %v4253_v29 = vmul.u32 %v4251_v47, %v4249_v34  ;;  %v4139_v60 = vadd.s32 %v8919_v59, %v8925_v26 }
 0x41e   : > { %v4044_v19 = vsel %vm4033_vm10, nan, %v4043_v28  ;;  %v5752_v44 = vadd.s32 4294967294, %v4151_v48  ;;  %v4237_v36 = vsel %vm4235_vm6, %v8947_v12, 2102212464  ;;  %v4256_v11 = vmul.u32 %v4252_v9, %v4250_v0 }
 0x41f   : > { %5462 = vst [vmem:[%s6343_s10 + $0xb0] sm:$0xff] %v4044_v19  ;;  %v4259_v25 = vshll.u32 %v4255_v42, 16  ;;  %vm4261_vm15 = vc.u32 %v4253_v29, %v4257_v16  ;;  %v4263_v57 = vadd.s32 %v4257_v16, %v4253_v29  ;;  %v4276_v58 = vmul.u32 %v4274_v30, %v4249_v34 }
 0x420   : > { %vm4047_vm2 = vcmp.lt.s32.totalorder %v8753_v5, 0  ;;  %vm5753_vm1 = vcmp.lt.s32.totalorder %v5752_v44, 0  ;;  %v4258_v63 = vshrl.u32 %v4254_v38, 16  ;;  %v4262_v32 = vsel %vm4261_vm15, 1, %v5962_v27 }
 0x421   : > { %v4277_v10 = vmul.u32 %v4273_v6, %v4250_v0  ;;  %v4154_v23 = vsel %vm5753_vm1, 0, %v5752_v44  ;;  %v4264_v59 = vadd.s32 %v4262_v32, %v4256_v11  ;;  %vm4265_vm0 = vc.u32 %v4263_v57, %v4259_v25 }
 0x422   : > { %v4279_v26 = vshll.u32 %v4276_v58, 16  ;;  %v4155_v15 = vsub.s32 32, %v4154_v23  ;;  %v4159_v2 = vsub.s32 4294967266, %v4154_v23  ;;  %v4266_v12 = vsel %vm4265_vm0, 1, %v5962_v27 }
 0x423   : > { %v4275_v62 = vmul.u32 %v4273_v6, %v4249_v34  ;;  %v4156_v8 = vshll.u32 %v4147_v22, %v4154_v23  ;;  %v4268_v61 = vadd.s32 %v4266_v12, %v4264_v59  ;;  %v4278_v31 = vmul.u32 %v4274_v30, %v4250_v0 }
 0x424   : > { %v4281_v56 = vshll.u32 %v4277_v10, 16  ;;  %v4157_v45 = vshrl.u32 %v4139_v60, %v4155_v15  ;;  %v4160_v14 = vadd.s32 127, %v4159_v2  ;;  %v4169_v47 = vsub.s32 4, %v8959_v4 }
 0x425   : > { %vm4283_vm5 = vc.u32 %v4275_v62, %v4279_v26  ;;  %v4285_v1 = vadd.s32 %v4279_v26, %v4275_v62  ;;  %v4269_v9 = vadd.s32 %v4268_v61, %v4258_v63  ;;  %v4355_v54 = vand.u32 2147483647, %v8984_v7 }
 0x426   : > { %v4284_v21 = vsel %vm4283_vm5, 1, %v5962_v27  ;;  %v4158_v46 = vor.u32 %v4157_v45, %v4156_v8  ;;  %v4161_v3 = vshll.u32 %v4160_v14, 23  ;;  %v4236_v22 = vsel %vm4232_vm7, %v4216_v51, %v8950_v55 }
 0x427   : > { %v4286_v38 = vadd.s32 %v4284_v21, %v4278_v31  ;;  %vm4287_vm3 = vc.u32 %v4285_v1, %v4281_v56  ;;  %v4238_v34 = vsel %vm4234_vm8, %v8945_v20, %v4237_v36  ;;  %v4260_v0 = vshrl.u32 %v4255_v42, 16 }
 0x428   : > { %v4288_v41 = vsel %vm4287_vm3, 1, %v5962_v27  ;;  %v4162_v53 = vor.u32 4788187, %v4161_v3  ;;  %v4280_v30 = vshrl.u32 %v4276_v58, 16  ;;  %v4358_v48 = vand.u32 2139095040, %v8984_v7 }
 0x429   : > { %v4290_v28 = vadd.s32 %v4288_v41, %v4286_v38  ;;  %v4165_v16 = vcvt.s32.f32 %v4158_v46  ;;  %v4170_v6 = vsel %vm4047_vm2, %v4169_v47, %v8959_v4  ;;  %v4270_v19 = vadd.s32 %v4269_v9, %v4260_v0 }
 0x42a   : > { %v4282_v29 = vshrl.u32 %v4277_v10, 16  ;;  %v4163_v55 = vand.u32 2147483647, %v4162_v53  ;;  %v4359_v60 = vshrl.u32 %v4358_v48, 23  ;;  %v4362_v20 = vand.u32 8388607, %v4355_v54 }
 0x42b   : > { %v4291_v51 = vadd.s32 %v4290_v28, %v4280_v30  ;;  %vm9027_vm4 = vcmp.le.f32.partialorder %v4045_v24, 0.7853982  ;;  %v4289_v44 = vadd.s32 %v4285_v1, %v4281_v56  ;;  %v4513_v36 = vand.u32 2139095040, %v8994_v40 }
 0x42c   : > { %v4166_v11 = vmul.f32 %v4165_v16, %v4163_v55  ;;  %v4239_v4 = vsel %vm4233_vm9, %v4236_v22, %v4238_v34  ;;  %v5757_v57 = vadd.s32 4294967169, %v4359_v60  ;;  %v4172_v58 = vsel %vm9027_vm4, 0, %v4170_v6 }
 0x42d   : > { %v4292_v25 = vadd.s32 %v4291_v51, %v4282_v29  ;;  %vm4295_vm6 = vc.u32 %v4270_v19, %v4289_v44  ;;  %v4363_v10 = vor.u32 8388608, %v4362_v20  ;;  %v4293_v23 = vmul.u32 %v8972_v52, %v4239_v4 }
 0x42e   : > { %v4167_v63 = vxor.u32 2147483648, %v4166_v11  ;;  %v4365_v24 = vadd.s32 1, %v5757_v57  ;;  %v4514_v59 = vshrl.u32 %v4513_v36, 23  ;;  %v4189_v2 = vadd.s32 3, %v4172_v58 }
 0x42f   : > { %v4296_v32 = vadd.s32 1, %v4292_v25  ;;  %v9046_v31 = vshll.u32 %v4363_v10, 8  ;;  %vm4202_vm8 = vcmp.lt.s32.totalorder %v8570_v49, 0  ;;  %v9051_v9 = vadd.s32 %v4289_v44, %v4270_v19 }
 0x430   : > { %v4168_v26 = vsel %vm4047_vm2, %v4167_v63, %v4166_v11  ;;  %vm4366_vm7 = vcmp.gt.s32.totalorder %v4365_v24, 0  ;;  %v5760_v56 = vadd.s32 4294967169, %v4514_v59  ;;  %v9049_v47 = vand.u32 3, %v4189_v2 }
 0x431   : > { %v4297_v15 = vsel %vm4295_vm6, %v4296_v32, %v4292_v25  ;;  %v9042_v13 = vsel %vm9027_vm4, %v8753_v5, %v4168_v26  ;;  %v4367_v62 = vsel %vm4366_vm7, %v4365_v24, 0  ;;  %v4510_v46 = vand.u32 2147483647, %v8994_v40 }
 0x432   : > { %v4298_v12 = vadd.s32 %v4297_v15, %v4293_v23  ;;  %v4173_v8 = vmul.f32 %v9042_v13, %v9042_v13  ;;  %v4369_v61 = vand.u32 31, %v4367_v62  ;;  %vm9056_vm9 = vcmp.le.f32.partialorder %v4200_v18, 0.7853982 }
 0x433   : > { %v9061_v34 = vand.u32 65535, %v9046_v31  ;;  %v9064_v0 = vshrl.u32 %v9046_v31, 16  ;;  %v9066_v53 = vshrl.u32 %v4367_v62, 5  ;;  %v9069_v28 = vadd.s32 1, %v5760_v56 }
 0x434   : > { %v4299_v52 = vadd.s32 536870912, %v4298_v12  ;;  %v4174_v45 = vmul.f32 -0.001358992, %v4173_v8  ;;  %v4181_v14 = vmul.f32 -0.00019511016, %v4173_v8  ;;  %v4370_v1 = vsub.s32 32, %v4369_v61 }
 0x435   : > { %v4372_v18 = vshll.u32 %v5956_v33, %v4369_v61  ;;  %v4375_v29 = vshll.u32 %v5957_v35, %v4369_v61  ;;  %v4378_v42 = vshll.u32 %v5958_v37, %v4369_v61  ;;  %vm4192_vm10 = vcmp.eq.s32.totalorder %v9049_v47, 0 }
 0x436   : > { %v4300_v21 = vshrl.u32 %v4299_v52, 30  ;;  %v4175_v3 = vadd.f32 0.041655596, %v4174_v45  ;;  %v4182_v38 = vadd.f32 0.008332121, %v4181_v14  ;;  %v4373_v30 = vshrl.u32 %v5957_v35, %v4370_v1 }
 0x437   : > { %v4376_v55 = vshrl.u32 %v5958_v37, %v4370_v1  ;;  %v4382_v51 = vshrl.u32 %v5960_v43, %v4370_v1  ;;  %v4379_v44 = vshrl.u32 %v5959_v39, %v4370_v1  ;;  %vm4195_vm11 = vcmp.eq.s32.totalorder %v9049_v47, 2 }
 0x438   : > { %v4301_v41 = vshll.u32 %v4300_v21, 30  ;;  %v4176_v48 = vmul.f32 %v4175_v3, %v4173_v8  ;;  %v4183_v16 = vmul.f32 %v4182_v38, %v4173_v8  ;;  %v4324_v6 = vsub.s32 4, %v4300_v21 }
 0x439   : > { %v4374_v11 = vor.u32 %v4373_v30, %v4372_v18  ;;  %v4381_v4 = vshll.u32 %v5959_v39, %v4369_v61  ;;  %vm4191_vm13 = vcmp.lt.s32.totalorder %v9049_v47, 2  ;;  %v4385_v63 = vshrl.u32 %v5961_v50, %v4370_v1 }
 0x43a   : > { %v9072_v19 = vsub.s32 %v4298_v12, %v4301_v41  ;;  %v4177_v60 = vadd.f32 -0.4999988, %v4176_v48  ;;  %v4184_v20 = vadd.f32 -0.16666654, %v4183_v16  ;;  %v4325_v58 = vsel %vm4202_vm8, %v4324_v6, %v4300_v21 }
 0x43b   : > { %vm4188_vm12 = vweird.f32 %v8753_v5  ;;  %v4377_v10 = vor.u32 %v4376_v55, %v4375_v29  ;;  %v4383_v24 = vor.u32 %v4382_v51, %v4381_v4  ;;  %v4384_v23 = vshll.u32 %v5960_v43, %v4369_v61  ;;  %v467_v29 = vpop.f32.mrf.mxu3 }
 0x43c   : > { %vm4303_vm14 = vcmp.lt.s32.totalorder %v9072_v19, 0  ;;  %v4304_v36 = vsub.s32 0, %v9072_v19  ;;  %v4178_v25 = vmul.f32 %v4177_v60, %v4173_v8  ;;  %v4185_v57 = vmul.f32 %v4184_v20, %v4173_v8 }
 0x43d   : > { %v4380_v2 = vor.u32 %v4379_v44, %v4378_v42  ;;  %v4327_v12 = vsel %vm9056_vm9, 0, %v4325_v58  ;;  %v4371_v62 = vshrl.u32 %v5956_v33, %v4370_v1  ;;  %v4386_v8 = vor.u32 %v4385_v63, %v4384_v23 }
 0x43e   : > { %v4305_v32 = vsel %vm4303_vm14, %v4304_v36, %v9072_v19  ;;  %v4179_v59 = vadd.f32 1.0, %v4178_v25  ;;  %v4186_v26 = vadd.f32 1.0, %v4185_v57  ;;  %vm4387_vm15 = vcmp.lt.s32.totalorder %v9066_v53, 1 }
 0x43f   : > { %v4306_v15 = vclz %v4305_v32  ;;  %vm4521_vm2 = vcmp.gt.s32.totalorder %v9069_v28, 0  ;;  %vm4390_vm1 = vcmp.lt.s32.totalorder %v9066_v53, 4  ;;  %vm4388_vm0 = vcmp.lt.s32.totalorder %v9066_v53, 2 }
 0x440   : > { %v4187_v52 = vmul.f32 %v4186_v26, %v9042_v13  ;;  %v4196_v56 = vxor.u32 2147483648, %v4179_v59  ;;  %vm4389_vm5 = vcmp.lt.s32.totalorder %v9066_v53, 3  ;;  %v4391_v61 = vsel %vm4387_vm15, %v4371_v62, %v4374_v11 }
 0x441   : > { %v5755_v45 = vadd.s32 4294967294, %v4306_v15  ;;  %v4396_v14 = vsel %vm4390_vm1, %v4383_v24, 920167782  ;;  %v4392_v21 = vsel %vm4390_vm1, %v4380_v2, 2102212464  ;;  %v4395_v3 = vsel %vm4387_vm15, %v4374_v11, %v4377_v10 }
 0x442   : > { %v4193_v1 = vxor.u32 2147483648, %v4187_v52  ;;  %v4397_v13 = vsel %vm4389_vm5, %v4380_v2, %v4396_v14  ;;  %v4399_v41 = vsel %vm4387_vm15, %v4377_v10, %v4380_v2  ;;  %v4400_v30 = vsel %vm4390_vm1, %v4386_v8, 1326507024 }
 0x443   : > { %vm5756_vm3 = vcmp.lt.s32.totalorder %v5755_v45, 0  ;;  %v4197_v16 = vsel %vm4195_vm11, %v4196_v56, %v4187_v52  ;;  %v4398_v60 = vsel %vm4388_vm0, %v4395_v3, %v4397_v13  ;;  %v4401_v20 = vsel %vm4389_vm5, %v4383_v24, %v4400_v30 }
 0x444   : > { %v4309_v38 = vsel %vm5756_vm3, 0, %v5755_v45  ;;  %v4194_v48 = vsel %vm4192_vm10, %v4179_v59, %v4193_v1  ;;  %v4402_v11 = vsel %vm4388_vm0, %v4399_v41, %v4401_v20  ;;  %v4393_v47 = vsel %vm4389_vm5, %v4377_v10, %v4392_v21 }
 0x445   : > { %v4310_v6 = vsub.s32 32, %v4309_v38  ;;  %v4314_v18 = vsub.s32 4294967266, %v4309_v38  ;;  %v4198_v55 = vsel %vm4191_vm13, %v4194_v48, %v4197_v16  ;;  %v4311_v51 = vshll.u32 %v9072_v19, %v4309_v38 }
 0x446   : > { %v4199_v42 = vsel %vm4188_vm12, nan, %v4198_v55  ;;  %v4406_v4 = vand.u32 65535, %v4402_v11  ;;  %v4407_v19 = vshrl.u32 %v4402_v11, 16  ;;  %v4429_v25 = vshrl.u32 %v4398_v60, 16 }
 0x447   : > { %v4312_v44 = vshrl.u32 %v9051_v9, %v4310_v6  ;;  %v4315_v36 = vadd.s32 127, %v4314_v18  ;;  %5463 = vst [vmem:[%s6343_s10 + $0xb8] sm:$0xff] %v4199_v42  ;;  %v9128_v57 = vadd.f32 %v8981_v17, %v467_v29  ;;  %v4428_v5 = vand.u32 65535, %v4398_v60 }
 0x448   : > { %v9130_v32 = vadd.s32 3, %v4327_v12  ;;  %v4409_v9 = vmul.u32 %v4407_v19, %v9061_v34  ;;  %v4410_v24 = vmul.u32 %v4406_v4, %v9064_v0  ;;  %v9136_v23 = vand.u32 8388607, %v4510_v46 }
 0x449   : > { %v4313_v58 = vor.u32 %v4312_v44, %v4311_v51  ;;  %v4316_v63 = vshll.u32 %v4315_v36, 23  ;;  %v9140_v59 = vsel %vm4388_vm0, %v4391_v61, %v4393_v47  ;;  %v4431_v26 = vmul.u32 %v4429_v25, %v9061_v34 }
 0x44a   : > { %v4522_v15 = vsel %vm4521_vm2, %v9069_v28, 0  ;;  %v4408_v12 = vmul.u32 %v4406_v4, %v9061_v34  ;;  %v4411_v62 = vmul.u32 %v4407_v19, %v9064_v0  ;;  %v4412_v8 = vshll.u32 %v4409_v9, 16 }
 0x44b   : > { %v4317_v10 = vor.u32 4788187, %v4316_v63  ;;  %v4320_v2 = vcvt.s32.f32 %v4313_v58  ;;  %v4430_v56 = vmul.u32 %v4428_v5, %v9061_v34  ;;  %v4432_v45 = vmul.u32 %v4428_v5, %v9064_v0 }
 0x44c   : > { %v4434_v53 = vshll.u32 %v4431_v26, 16  ;;  %v4413_v61 = vshrl.u32 %v4409_v9, 16  ;;  %v4414_v14 = vshll.u32 %v4410_v24, 16  ;;  %vm4416_vm4 = vc.u32 %v4408_v12, %v4412_v8 }
 0x44d   : > { %v4318_v52 = vand.u32 2147483647, %v4317_v10  ;;  %v4418_v1 = vadd.s32 %v4412_v8, %v4408_v12  ;;  %v4417_v3 = vsel %vm4416_vm4, 1, %v5962_v27  ;;  %v4433_v28 = vmul.u32 %v4429_v25, %v9064_v0 }
 0x44e   : > { %v4436_v38 = vshll.u32 %v4432_v45, 16  ;;  %v4419_v13 = vadd.s32 %v4417_v3, %v4411_v62  ;;  %vm4438_vm7 = vc.u32 %v4430_v56, %v4434_v53  ;;  %v4440_v41 = vadd.s32 %v4434_v53, %v4430_v56 }
 0x44f   : > { %v4321_v21 = vmul.f32 %v4320_v2, %v4318_v52  ;;  %vm4420_vm6 = vc.u32 %v4418_v1, %v4414_v14  ;;  %v4439_v48 = vsel %vm4438_vm7, 1, %v5962_v27  ;;  %v4524_v16 = vand.u32 31, %v4522_v15 }
 0x450   : > { %v4421_v34 = vsel %vm4420_vm6, 1, %v5962_v27  ;;  %v4415_v6 = vshrl.u32 %v4410_v24, 16  ;;  %v4441_v29 = vadd.s32 %v4439_v48, %v4433_v28  ;;  %vm4442_vm10 = vc.u32 %v4440_v41, %v4436_v38 }
 0x451   : > { %v4322_v30 = vxor.u32 2147483648, %v4321_v21  ;;  %v4423_v18 = vadd.s32 %v4421_v34, %v4419_v13  ;;  %v4435_v51 = vshrl.u32 %v4431_v26, 16  ;;  %v4443_v0 = vsel %vm4442_vm10, 1, %v5962_v27 }
 0x452   : > { %v9157_v60 = vsub.s32 32, %v4524_v16  ;;  %v4445_v44 = vadd.s32 %v4443_v0, %v4441_v29  ;;  %v9162_v36 = vshrl.u32 %v4522_v15, 5  ;;  %v4437_v47 = vshrl.u32 %v4432_v45, 16 }
 0x453   : > { %v4323_v55 = vsel %vm4202_vm8, %v4322_v30, %v4321_v21  ;;  %v4424_v42 = vadd.s32 %v4423_v18, %v4413_v61  ;;  %v9164_v4 = vadd.s32 %v4440_v41, %v4436_v38  ;;  %v4527_v63 = vshll.u32 %v5956_v33, %v4524_v16 }
 0x454   : > { %v4326_v20 = vsel %vm9056_vm9, %v8570_v49, %v4323_v55  ;;  %v4528_v19 = vshrl.u32 %v5957_v35, %v9157_v60  ;;  %v4446_v58 = vadd.s32 %v4445_v44, %v4435_v51  ;;  %v4531_v22 = vshrl.u32 %v5958_v37, %v9157_v60 }
 0x455   : > { %v4328_v11 = vmul.f32 %v4326_v20, %v4326_v20  ;;  %v9168_v25 = vadd.s32 %v4424_v42, %v4415_v6  ;;  %v4530_v24 = vshll.u32 %v5957_v35, %v4524_v16  ;;  %v4533_v10 = vshll.u32 %v5958_v37, %v4524_v16  ;;  %v470_v6 = vpop.f32.mrf.mxu3 }
 0x456   : > { %v4447_v26 = vadd.s32 %v4446_v58, %v4437_v47  ;;  %v9177_v15 = vor.u32 %v4528_v19, %v4527_v63  ;;  %v4534_v2 = vshrl.u32 %v5959_v39, %v9157_v60  ;;  %v4536_v8 = vshll.u32 %v5959_v39, %v4524_v16 }
 0x457   : > { %v4329_v5 = vmul.f32 -0.001358992, %v4328_v11  ;;  %v4336_v9 = vmul.f32 -0.00019511016, %v4328_v11  ;;  %vm4450_vm8 = vc.u32 %v9168_v25, %v9164_v4  ;;  %v4537_v52 = vshrl.u32 %v5960_v43, %v9157_v60 }
 0x458   : > { %v4451_v56 = vadd.s32 1, %v4447_v26  ;;  %v9184_v45 = vor.u32 %v4531_v22, %v4530_v24  ;;  %v4539_v53 = vshll.u32 %v5960_v43, %v4524_v16  ;;  %v4540_v61 = vshrl.u32 %v5961_v50, %v9157_v60 }
 0x459   : > { %v4330_v12 = vadd.f32 0.041655596, %v4329_v5  ;;  %v4337_v62 = vadd.f32 0.008332121, %v4336_v9  ;;  %v4448_v21 = vmul.u32 %v9046_v31, %v9140_v59  ;;  %v4538_v3 = vor.u32 %v4537_v52, %v4536_v8 }
 0x45a   : > { %v4452_v28 = vsel %vm4450_vm8, %v4451_v56, %v4447_v26  ;;  %v4535_v38 = vor.u32 %v4534_v2, %v4533_v10  ;;  %v4541_v13 = vor.u32 %v4540_v61, %v4539_v53  ;;  %vm4542_vm9 = vcmp.lt.s32.totalorder %v9162_v36, 1 }
 0x45b   : > { %v4331_v14 = vmul.f32 %v4330_v12, %v4328_v11  ;;  %v4338_v1 = vmul.f32 %v4337_v62, %v4328_v11  ;;  %v4453_v34 = vadd.s32 %v4452_v28, %v4448_v21  ;;  %vm4545_vm11 = vcmp.lt.s32.totalorder %v9162_v36, 4 }
 0x45c   : > { %v4345_v48 = vand.u32 3, %v9130_v32  ;;  %v4518_v16 = vor.u32 8388608, %v9136_v23  ;;  %v4550_v31 = vsel %vm4542_vm9, %v9177_v15, %v9184_v45  ;;  %v4551_v59 = vsel %vm4545_vm11, %v4538_v3, 920167782 }
 0x45d   : > { %v4332_v41 = vadd.f32 -0.4999988, %v4331_v14  ;;  %v4339_v30 = vadd.f32 -0.16666654, %v4338_v1  ;;  %v4454_v55 = vadd.s32 536870912, %v4453_v34  ;;  %vm4544_vm14 = vcmp.lt.s32.totalorder %v9162_v36, 3 }
 0x45e   : > { %vm4543_vm13 = vcmp.lt.s32.totalorder %v9162_v36, 2  ;;  %v4552_v32 = vsel %vm4544_vm14, %v4535_v38, %v4551_v59  ;;  %v4554_v23 = vsel %vm4542_vm9, %v9184_v45, %v4535_v38  ;;  %v4555_v51 = vsel %vm4545_vm11, %v4541_v13, 1326507024 }
 0x45f   : > { %v4333_v18 = vmul.f32 %v4332_v41, %v4328_v11  ;;  %v4340_v29 = vmul.f32 %v4339_v30, %v4328_v11  ;;  %v9210_v44 = vshrl.u32 %v4454_v55, 30  ;;  %v4553_v11 = vsel %vm4543_vm13, %v4550_v31, %v4552_v32 }
 0x460   : > { %v9215_v47 = vadd.f32 %v8981_v17, %v470_v6  ;;  %vm4343_vm12 = vweird.f32 %v8570_v49  ;;  %v4556_v19 = vsel %vm4544_vm14, %v4538_v3, %v4555_v51  ;;  %v9220_v58 = vshll.u32 %v4518_v16, 8 }
 0x461   : > { %v4334_v0 = vadd.f32 1.0, %v4333_v18  ;;  %v4341_v42 = vadd.f32 1.0, %v4340_v29  ;;  %vm4346_vm15 = vcmp.lt.s32.totalorder %v4345_v48, 2  ;;  %v4456_v5 = vshll.u32 %v9210_v44, 30 }
 0x462   : > { %vm4347_vm2 = vcmp.eq.s32.totalorder %v4345_v48, 0  ;;  %vm4350_vm1 = vcmp.eq.s32.totalorder %v4345_v48, 2  ;;  %v4557_v9 = vsel %vm4543_vm13, %v4554_v23, %v4556_v19  ;;  %v4584_v24 = vshrl.u32 %v4553_v11, 16 }
 0x463   : > { %v4342_v63 = vmul.f32 %v4341_v42, %v4326_v20  ;;  %v4351_v22 = vxor.u32 2147483648, %v4334_v0  ;;  %v4457_v10 = vsub.s32 %v4453_v34, %v4456_v5  ;;  %v4526_v26 = vshrl.u32 %v5956_v33, %v9157_v60 }
 0x464   : > { %v4583_v2 = vand.u32 65535, %v4553_v11  ;;  %v4559_v12 = vand.u32 65535, %v9220_v58  ;;  %v4560_v20 = vshrl.u32 %v9220_v58, 16  ;;  %v4561_v62 = vand.u32 65535, %v4557_v9 }
 0x465   : > { %v4348_v17 = vxor.u32 2147483648, %v4342_v63  ;;  %v4562_v8 = vshrl.u32 %v4557_v9, 16  ;;  %v4352_v56 = vsel %vm4350_vm1, %v4351_v22, %v4342_v63  ;;  %vm4458_vm0 = vcmp.lt.s32.totalorder %v4457_v10, 0 }
 0x466   : > { %v4459_v53 = vsub.s32 0, %v4457_v10  ;;  %v4565_v1 = vmul.u32 %v4561_v62, %v4560_v20  ;;  %v4586_v21 = vmul.u32 %v4584_v24, %v4559_v12  ;;  %v4449_v3 = vadd.s32 %v9164_v4, %v9168_v25 }
 0x467   : > { %v4349_v52 = vsel %vm4347_vm2, %v4334_v0, %v4348_v17  ;;  %v4564_v14 = vmul.u32 %v4562_v8, %v4559_v12  ;;  %v4587_v13 = vmul.u32 %v4583_v2, %v4560_v20  ;;  %v4547_v30 = vsel %vm4545_vm11, %v4535_v38, 2102212464 }
 0x468   : > { %v4353_v61 = vsel %vm4346_vm15, %v4349_v52, %v4352_v56  ;;  %v4460_v28 = vsel %vm4458_vm0, %v4459_v53, %v4457_v10  ;;  %v4563_v34 = vmul.u32 %v4561_v62, %v4559_v12  ;;  %v4546_v48 = vsel %vm4542_vm9, %v4526_v26, %v9177_v15 }
 0x469   : > { %v4354_v60 = vsel %vm4343_vm12, nan, %v4353_v61  ;;  %v4461_v41 = vclz %v4460_v28  ;;  %v4567_v16 = vshll.u32 %v4564_v14, 16  ;;  %v4566_v31 = vmul.u32 %v4562_v8, %v4560_v20 }
 0x46a   : > { %5464 = vst [vmem:[%s6343_s10 + $0xc0] sm:$0xff] %v4354_v60  ;;  %v4569_v59 = vshll.u32 %v4565_v1, 16  ;;  %v4585_v49 = vmul.u32 %v4583_v2, %v4559_v12  ;;  %v4589_v4 = vshll.u32 %v4586_v21, 16  ;;  %v4548_v25 = vsel %vm4544_vm14, %v9184_v45, %v4547_v30 }
 0x46b   : > { %v5758_v6 = vadd.s32 4294967294, %v4461_v41  ;;  %vm4571_vm5 = vc.u32 %v4563_v34, %v4567_v16  ;;  %v4573_v18 = vadd.s32 %v4567_v16, %v4563_v34  ;;  %v4588_v29 = vmul.u32 %v4584_v24, %v4560_v20 }
 0x46c   : > { %v4572_v38 = vsel %vm4571_vm5, 1, %v5962_v27  ;;  %v4591_v55 = vshll.u32 %v4587_v13, 16  ;;  %vm4593_vm6 = vc.u32 %v4585_v49, %v4589_v4  ;;  %v4595_v0 = vadd.s32 %v4589_v4, %v4585_v49 }
 0x46d   : > { %vm5759_vm3 = vcmp.lt.s32.totalorder %v5758_v6, 0  ;;  %v4574_v32 = vadd.s32 %v4572_v38, %v4566_v31  ;;  %vm4575_vm4 = vc.u32 %v4573_v18, %v4569_v59  ;;  %v4594_v51 = vsel %vm4593_vm6, 1, %v5962_v27 }
 0x46e   : > { %v4464_v15 = vsel %vm5759_vm3, 0, %v5758_v6  ;;  %v4576_v23 = vsel %vm4575_vm4, 1, %v5962_v27  ;;  %v4568_v19 = vshrl.u32 %v4564_v14, 16  ;;  %v4570_v45 = vshrl.u32 %v4565_v1, 16 }
 0x46f   : > { %v4465_v42 = vsub.s32 32, %v4464_v15  ;;  %v4469_v11 = vsub.s32 4294967266, %v4464_v15  ;;  %v4578_v63 = vadd.s32 %v4576_v23, %v4574_v32  ;;  %v4466_v22 = vshll.u32 %v4457_v10, %v4464_v15 }
 0x470   : > { %v4596_v5 = vadd.s32 %v4594_v51, %v4588_v29  ;;  %vm4597_vm7 = vc.u32 %v4595_v0, %v4591_v55  ;;  %v4479_v2 = vsub.s32 4, %v9210_v44  ;;  %v4590_v12 = vshrl.u32 %v4586_v21, 16 }
 0x471   : > { %v4467_v9 = vshrl.u32 %v4449_v3, %v4465_v42  ;;  %v4470_v24 = vadd.s32 127, %v4469_v11  ;;  %v4579_v17 = vadd.s32 %v4578_v63, %v4568_v19  ;;  %v4598_v26 = vsel %vm4597_vm7, 1, %v5962_v27 }
 0x472   : > { %v4600_v20 = vadd.s32 %v4598_v26, %v4596_v5  ;;  %v4665_v62 = vand.u32 2147483647, %v9128_v57  ;;  %v4668_v53 = vand.u32 2139095040, %v9128_v57  ;;  %v4592_v10 = vshrl.u32 %v4587_v13, 16 }
 0x473   : > { %v4468_v8 = vor.u32 %v4467_v9, %v4466_v22  ;;  %v4471_v52 = vshll.u32 %v4470_v24, 23  ;;  %v4580_v56 = vadd.s32 %v4579_v17, %v4570_v45  ;;  %vm4357_vm10 = vcmp.lt.s32.totalorder %v8984_v7, 0 }
 0x474   : > { %v4601_v61 = vadd.s32 %v4600_v20, %v4590_v12  ;;  %v4549_v1 = vsel %vm4543_vm13, %v4546_v48, %v4548_v25  ;;  %v4599_v60 = vadd.s32 %v4595_v0, %v4591_v55  ;;  %v4480_v21 = vsel %vm4357_vm10, %v4479_v2, %v9210_v44 }
 0x475   : > { %v4472_v14 = vor.u32 4788187, %v4471_v52  ;;  %v4669_v28 = vshrl.u32 %v4668_v53, 23  ;;  %v4672_v41 = vand.u32 8388607, %v4665_v62  ;;  %v4475_v34 = vcvt.s32.f32 %v4468_v8 }
 0x476   : > { %v4602_v3 = vadd.s32 %v4601_v61, %v4592_v10  ;;  %vm4605_vm8 = vc.u32 %v4580_v56, %v4599_v60  ;;  %v4823_v13 = vand.u32 2139095040, %v9215_v47  ;;  %vm9261_vm9 = vcmp.le.f32.partialorder %v4355_v54, 0.7853982 }
 0x477   : > { %v4473_v30 = vand.u32 2147483647, %v4472_v14  ;;  %v5763_v48 = vadd.s32 4294967169, %v4669_v28  ;;  %v4482_v44 = vsel %vm9261_vm9, 0, %v4480_v21  ;;  %v4603_v59 = vmul.u32 %v9220_v58, %v4549_v1 }
 0x478   : > { %v4606_v16 = vadd.s32 1, %v4602_v3  ;;  %v4673_v6 = vor.u32 8388608, %v4672_v41  ;;  %v4820_v4 = vand.u32 2147483647, %v9215_v47  ;;  %v4824_v29 = vshrl.u32 %v4823_v13, 23 }
 0x479   : > { %v4476_v31 = vmul.f32 %v4475_v34, %v4473_v30  ;;  %v4675_v18 = vadd.s32 1, %v5763_v48  ;;  %v4499_v54 = vadd.s32 3, %v4482_v44  ;;  %vm9288_vm14 = vcmp.le.f32.partialorder %v4510_v46, 0.7853982 }
 0x47a   : > { %v4607_v49 = vsel %vm4605_vm8, %v4606_v16, %v4602_v3  ;;  %v9276_v51 = vshll.u32 %v4673_v6, 8  ;;  %v9280_v0 = vand.u32 8388607, %v4820_v4  ;;  %v5766_v19 = vadd.s32 4294967169, %v4824_v29 }
 0x47b   : > { %v4477_v25 = vxor.u32 2147483648, %v4476_v31  ;;  %v4608_v38 = vadd.s32 %v4607_v49, %v4603_v59  ;;  %vm4676_vm11 = vcmp.gt.s32.totalorder %v4675_v18, 0  ;;  %v9284_v63 = vand.u32 3, %v4499_v54 }
 0x47c   : > { %v4677_v15 = vsel %vm4676_vm11, %v4675_v18, 0  ;;  %vm4512_vm13 = vcmp.lt.s32.totalorder %v8994_v40, 0  ;;  %v4604_v26 = vadd.s32 %v4599_v60, %v4580_v56  ;;  %v9294_v2 = vand.u32 65535, %v9276_v51 }
 0x47d   : > { %v4478_v55 = vsel %vm4357_vm10, %v4477_v25, %v4476_v31  ;;  %v4609_v32 = vadd.s32 536870912, %v4608_v38  ;;  %v4679_v58 = vand.u32 31, %v4677_v15  ;;  %v9297_v12 = vshrl.u32 %v9276_v51, 16 }
 0x47e   : > { %v9274_v23 = vsel %vm9261_vm9, %v8984_v7, %v4478_v55  ;;  %v4828_v20 = vor.u32 8388608, %v9280_v0  ;;  %v9302_v53 = vadd.s32 1, %v5766_v19  ;;  %v9308_v61 = vshrl.u32 %v4677_v15, 5 }
 0x47f   : > { %v4483_v42 = vmul.f32 %v9274_v23, %v9274_v23  ;;  %v4610_v11 = vshrl.u32 %v4609_v32, 30  ;;  %v4680_v45 = vsub.s32 32, %v4679_v58  ;;  %v4682_v56 = vshll.u32 %v5956_v33, %v4679_v58 }
 0x480   : > { %v4685_v3 = vshll.u32 %v5957_v35, %v4679_v58  ;;  %v4688_v41 = vshll.u32 %v5958_v37, %v4679_v58  ;;  %vm4502_vm15 = vcmp.eq.s32.totalorder %v9284_v63, 0  ;;  %vm4505_vm2 = vcmp.eq.s32.totalorder %v9284_v63, 2 }
 0x481   : > { %v4484_v5 = vmul.f32 -0.001358992, %v4483_v42  ;;  %v4491_v9 = vmul.f32 -0.00019511016, %v4483_v42  ;;  %v4611_v24 = vshll.u32 %v4610_v11, 30  ;;  %v4634_v17 = vsub.s32 4, %v4610_v11 }
 0x482   : > { %v4683_v14 = vshrl.u32 %v5957_v35, %v4680_v45  ;;  %v4686_v28 = vshrl.u32 %v5958_v37, %v4680_v45  ;;  %v4689_v30 = vshrl.u32 %v5959_v39, %v4680_v45  ;;  %v4692_v16 = vshrl.u32 %v5960_v43, %v4680_v45 }
 0x483   : > { %v4485_v46 = vadd.f32 0.041655596, %v4484_v5  ;;  %v4492_v8 = vadd.f32 0.008332121, %v4491_v9  ;;  %v9300_v52 = vsub.s32 %v4608_v38, %v4611_v24  ;;  %v9306_v10 = vsel %vm4512_vm13, %v4634_v17, %v4610_v11 }
 0x484   : > { %v4637_v31 = vsel %vm9288_vm14, 0, %v9306_v10  ;;  %v4681_v44 = vshrl.u32 %v5956_v33, %v4680_v45  ;;  %v4695_v59 = vshrl.u32 %v5961_v50, %v4680_v45  ;;  %vm4501_vm1 = vcmp.lt.s32.totalorder %v9284_v63, 2 }
 0x485   : > { %v4486_v1 = vmul.f32 %v4485_v46, %v4483_v42  ;;  %v4493_v60 = vmul.f32 %v4492_v8, %v4483_v42  ;;  %vm4613_vm12 = vcmp.lt.s32.totalorder %v9300_v52, 0  ;;  %v4614_v21 = vsub.s32 0, %v9300_v52 }
 0x486   : > { %v4684_v18 = vor.u32 %v4683_v14, %v4682_v56  ;;  %v4691_v25 = vshll.u32 %v5959_v39, %v4679_v58  ;;  %vm4498_vm0 = vweird.f32 %v8984_v7  ;;  %v4687_v29 = vor.u32 %v4686_v28, %v4685_v3 }
 0x487   : > { %v4487_v34 = vadd.f32 -0.4999988, %v4486_v1  ;;  %v4494_v13 = vadd.f32 -0.16666654, %v4493_v60  ;;  %v4615_v36 = vsel %vm4613_vm12, %v4614_v21, %v9300_v52  ;;  %v4690_v54 = vor.u32 %v4689_v30, %v4688_v41 }
 0x488   : > { %v4616_v48 = vclz %v4615_v36  ;;  %v4694_v55 = vshll.u32 %v5960_v43, %v4679_v58  ;;  %v4693_v11 = vor.u32 %v4692_v16, %v4691_v25  ;;  %vm4697_vm5 = vcmp.lt.s32.totalorder %v9308_v61, 1 }
 0x489   : > { %v4488_v49 = vmul.f32 %v4487_v34, %v4483_v42  ;;  %v4495_v6 = vmul.f32 %v4494_v13, %v4483_v42  ;;  %vm4698_vm4 = vcmp.lt.s32.totalorder %v9308_v61, 2  ;;  %vm4699_vm6 = vcmp.lt.s32.totalorder %v9308_v61, 3 }
 0x48a   : > { %v5761_v38 = vadd.s32 4294967294, %v4616_v48  ;;  %v4696_v19 = vor.u32 %v4695_v59, %v4694_v55  ;;  %vm4700_vm7 = vcmp.lt.s32.totalorder %v9308_v61, 4  ;;  %v4705_v17 = vsel %vm4697_vm5, %v4684_v18, %v4687_v29 }
 0x48b   : > { %v4489_v32 = vadd.f32 1.0, %v4488_v49  ;;  %v4496_v15 = vadd.f32 1.0, %v4495_v6  ;;  %v4702_v58 = vsel %vm4700_vm7, %v4690_v54, 2102212464  ;;  %v4706_v10 = vsel %vm4700_vm7, %v4693_v11, 920167782 }
 0x48c   : > { %vm5762_vm3 = vcmp.lt.s32.totalorder %v5761_v38, 0  ;;  %v4709_v56 = vsel %vm4697_vm5, %v4687_v29, %v4690_v54  ;;  %v4710_v60 = vsel %vm4700_vm7, %v4696_v19, 1326507024  ;;  %v4701_v49 = vsel %vm4697_vm5, %v4681_v44, %v4684_v18 }
 0x48d   : > { %v4497_v42 = vmul.f32 %v4496_v15, %v9274_v23  ;;  %v4506_v45 = vxor.u32 2147483648, %v4489_v32  ;;  %v4619_v5 = vsel %vm5762_vm3, 0, %v5761_v38  ;;  %v4707_v23 = vsel %vm4699_vm6, %v4690_v54, %v4706_v10 }
 0x48e   : > { %v4620_v9 = vsub.s32 32, %v4619_v5  ;;  %v4624_v24 = vsub.s32 4294967266, %v4619_v5  ;;  %v4621_v8 = vshll.u32 %v9300_v52, %v4619_v5  ;;  %v4708_v52 = vsel %vm4698_vm4, %v4705_v17, %v4707_v23 }
 0x48f   : > { %v4503_v46 = vxor.u32 2147483648, %v4497_v42  ;;  %v4507_v3 = vsel %vm4505_vm2, %v4506_v45, %v4497_v42  ;;  %v4711_v28 = vsel %vm4699_vm6, %v4693_v11, %v4710_v60  ;;  %v4738_v48 = vand.u32 65535, %v4708_v52 }
 0x490   : > { %v4622_v14 = vshrl.u32 %v4604_v26, %v4620_v9  ;;  %v4625_v1 = vadd.s32 127, %v4624_v24  ;;  %v4712_v34 = vsel %vm4698_vm4, %v4709_v56, %v4711_v28  ;;  %v4703_v6 = vsel %vm4699_vm6, %v4687_v29, %v4702_v58 }
 0x491   : > { %v4504_v21 = vsel %vm4502_vm15, %v4489_v32, %v4503_v46  ;;  %v4716_v36 = vand.u32 65535, %v4712_v34  ;;  %v4717_v16 = vshrl.u32 %v4712_v34, 16  ;;  %v4739_v63 = vshrl.u32 %v4708_v52, 16 }
 0x492   : > { %v4508_v26 = vsel %vm4501_vm1, %v4504_v21, %v4507_v3  ;;  %v4623_v41 = vor.u32 %v4622_v14, %v4621_v8  ;;  %v4626_v30 = vshll.u32 %v4625_v1, 23  ;;  %v9362_v25 = vadd.s32 3, %v4637_v31 }
 0x493   : > { %v4509_v13 = vsel %vm4498_vm0, nan, %v4508_v26  ;;  %v4719_v38 = vmul.u32 %v4717_v16, %v9294_v2  ;;  %v4720_v54 = vmul.u32 %v4716_v36, %v9297_v12  ;;  %vm4831_vm10 = vcmp.gt.s32.totalorder %v9302_v53, 0 }
 0x494   : > { %v4627_v59 = vor.u32 4788187, %v4626_v30  ;;  %5465 = vst [vmem:[%s6343_s10 + $0xc8] sm:$0xff] %v4509_v13  ;;  %v4630_v55 = vcvt.s32.f32 %v4623_v41  ;;  %v4741_v32 = vmul.u32 %v4739_v63, %v9294_v2  ;;  %v4742_v15 = vmul.u32 %v4738_v48, %v9297_v12 }
 0x495   : > { %v9371_v44 = vsel %vm4698_vm4, %v4701_v49, %v4703_v6  ;;  %v4718_v18 = vmul.u32 %v4716_v36, %v9294_v2  ;;  %v4721_v31 = vmul.u32 %v4717_v16, %v9297_v12  ;;  %v4722_v29 = vshll.u32 %v4719_v38, 16 }
 0x496   : > { %v4628_v7 = vand.u32 2147483647, %v4627_v59  ;;  %v4724_v19 = vshll.u32 %v4720_v54, 16  ;;  %v4740_v42 = vmul.u32 %v4738_v48, %v9294_v2  ;;  %v4744_v45 = vshll.u32 %v4741_v32, 16 }
 0x497   : > { %vm4726_vm8 = vc.u32 %v4718_v18, %v4722_v29  ;;  %v4728_v5 = vadd.s32 %v4722_v29, %v4718_v18  ;;  %v4743_v9 = vmul.u32 %v4739_v63, %v9297_v12  ;;  %v4746_v24 = vshll.u32 %v4742_v15, 16 }
 0x498   : > { %v4631_v11 = vmul.f32 %v4630_v55, %v4628_v7  ;;  %v4727_v61 = vsel %vm4726_vm8, 1, %v5962_v27  ;;  %vm4748_vm9 = vc.u32 %v4740_v42, %v4744_v45  ;;  %v4750_v17 = vadd.s32 %v4744_v45, %v4740_v42 }
 0x499   : > { %v4729_v46 = vadd.s32 %v4727_v61, %v4721_v31  ;;  %vm4730_vm11 = vc.u32 %v4728_v5, %v4724_v19  ;;  %v4749_v8 = vsel %vm4748_vm9, 1, %v5962_v27  ;;  %v4832_v10 = vsel %vm4831_vm10, %v9302_v53, 0 }
 0x49a   : > { %v4632_v58 = vxor.u32 2147483648, %v4631_v11  ;;  %v4731_v56 = vsel %vm4730_vm11, 1, %v5962_v27  ;;  %v4751_v12 = vadd.s32 %v4749_v8, %v4743_v9  ;;  %vm4752_vm12 = vc.u32 %v4750_v17, %v4746_v24 }
 0x49b   : > { %v4723_v1 = vshrl.u32 %v4719_v38, 16  ;;  %v4733_v23 = vadd.s32 %v4731_v56, %v4729_v46  ;;  %v4753_v60 = vsel %vm4752_vm12, 1, %v5962_v27  ;;  %v4745_v3 = vshrl.u32 %v4741_v32, 16  ;;  %v472_v46 = vpop.f32.mrf.mxu3 }
 0x49c   : > { %v4633_v2 = vsel %vm4512_vm13, %v4632_v58, %v4631_v11  ;;  %v4755_v52 = vadd.s32 %v4753_v60, %v4751_v12  ;;  %v4834_v28 = vand.u32 31, %v4832_v10  ;;  %v4725_v53 = vshrl.u32 %v4720_v54, 16 }
 0x49d   : > { %v4636_v14 = vsel %vm9288_vm14, %v8994_v40, %v4633_v2  ;;  %v4734_v26 = vadd.s32 %v4733_v23, %v4723_v1  ;;  %v4747_v41 = vshrl.u32 %v4742_v15, 16  ;;  %v4758_v30 = vmul.u32 %v9276_v51, %v9371_v44 }
 0x49e   : > { %v4638_v21 = vmul.f32 %v4636_v14, %v4636_v14  ;;  %v4756_v36 = vadd.s32 %v4755_v52, %v4745_v3  ;;  %v9391_v16 = vsub.s32 32, %v4834_v28  ;;  %v9395_v48 = vadd.s32 %v4750_v17, %v4746_v24 }
 0x49f   : > { %v9393_v22 = vadd.s32 %v4734_v26, %v4725_v53  ;;  %v9397_v59 = vshrl.u32 %v4832_v10, 5  ;;  %v4837_v49 = vshll.u32 %v5956_v33, %v4834_v28  ;;  %v4840_v54 = vshll.u32 %v5957_v35, %v4834_v28 }
 0x4a0   : > { %v4639_v34 = vmul.f32 -0.001358992, %v4638_v21  ;;  %v4646_v13 = vmul.f32 -0.00019511016, %v4638_v21  ;;  %v4757_v38 = vadd.s32 %v4756_v36, %v4747_v41  ;;  %v4838_v51 = vshrl.u32 %v5957_v35, %v9391_v16 }
 0x4a1   : > { %vm4760_vm14 = vc.u32 %v9393_v22, %v9395_v48  ;;  %v4841_v7 = vshrl.u32 %v5958_v37, %v9391_v16  ;;  %v4843_v55 = vshll.u32 %v5958_v37, %v4834_v28  ;;  %v4844_v18 = vshrl.u32 %v5959_v39, %v9391_v16 }
 0x4a2   : > { %v4640_v6 = vadd.f32 0.041655596, %v4639_v34  ;;  %v4647_v63 = vadd.f32 0.008332121, %v4646_v13  ;;  %v4761_v44 = vadd.s32 1, %v4757_v38  ;;  %v9410_v31 = vor.u32 %v4838_v51, %v4837_v49 }
 0x4a3   : > { %v9412_v29 = vor.u32 %v4841_v7, %v4840_v54  ;;  %v4846_v11 = vshll.u32 %v5959_v39, %v4834_v28  ;;  %v4847_v19 = vshrl.u32 %v5960_v43, %v9391_v16  ;;  %v9417_v9 = vor.u32 %v4844_v18, %v4843_v55  ;;  %v475_v55 = vpop.f32.mrf.mxu3 }
 0x4a4   : > { %v4641_v32 = vmul.f32 %v4640_v6, %v4638_v21  ;;  %v4648_v15 = vmul.f32 %v4647_v63, %v4638_v21  ;;  %v4762_v5 = vsel %vm4760_vm14, %v4761_v44, %v4757_v38  ;;  %v4849_v61 = vshll.u32 %v5960_v43, %v4834_v28 }
 0x4a5   : > { %v4763_v24 = vadd.s32 %v4762_v5, %v4758_v30  ;;  %v4848_v58 = vor.u32 %v4847_v19, %v4846_v11  ;;  %v4850_v17 = vshrl.u32 %v5961_v50, %v9391_v16  ;;  %v4655_v2 = vand.u32 3, %v9362_v25 }
 0x4a6   : > { %v4642_v42 = vadd.f32 -0.4999988, %v4641_v32  ;;  %v4649_v45 = vadd.f32 -0.16666654, %v4648_v15  ;;  %vm4852_vm13 = vcmp.lt.s32.totalorder %v9397_v59, 1  ;;  %vm4853_vm15 = vcmp.lt.s32.totalorder %v9397_v59, 2 }
 0x4a7   : > { %v4764_v56 = vadd.s32 536870912, %v4763_v24  ;;  %v4851_v12 = vor.u32 %v4850_v17, %v4849_v61  ;;  %vm4855_vm2 = vcmp.lt.s32.totalorder %v9397_v59, 4  ;;  %vm4854_vm1 = vcmp.lt.s32.totalorder %v9397_v59, 3 }
 0x4a8   : > { %v4643_v8 = vmul.f32 %v4642_v42, %v4638_v21  ;;  %v4650_v10 = vmul.f32 %v4649_v45, %v4638_v21  ;;  %v4861_v60 = vsel %vm4855_vm2, %v4848_v58, 920167782  ;;  %v4860_v25 = vsel %vm4852_vm13, %v9410_v31, %v9412_v29  ;;  %v9462_v42 = vld [vmem:[%s9896_s2] ss:$0 sm:$0xff] }
 0x4a9   : > { %v9429_v3 = vshrl.u32 %v4764_v56, 30  ;;  %v4864_v21 = vsel %vm4852_vm13, %v9412_v29, %v9417_v9  ;;  %v4865_v52 = vsel %vm4855_vm2, %v4851_v12, 1326507024  ;;  %v4862_v26 = vsel %vm4854_vm1, %v9417_v9, %v4861_v60 }
 0x4aa   : > { %v4644_v1 = vadd.f32 1.0, %v4643_v8  ;;  %v4651_v23 = vadd.f32 1.0, %v4650_v10  ;;  %v4866_v41 = vsel %vm4854_vm1, %v4848_v58, %v4865_v52  ;;  %v9451_v13 = vshll.u32 %v4828_v20, 8 }
 0x4ab   : > { %v4766_v30 = vshll.u32 %v9429_v3, 30  ;;  %v4867_v34 = vsel %vm4853_vm15, %v4864_v21, %v4866_v41  ;;  %vm4656_vm0 = vcmp.lt.s32.totalorder %v4655_v2, 2  ;;  %vm4657_vm5 = vcmp.eq.s32.totalorder %v4655_v2, 0 }
 0x4ac   : > { %v4652_v28 = vmul.f32 %v4651_v23, %v4636_v14  ;;  %v4661_v53 = vxor.u32 2147483648, %v4644_v1  ;;  %v4871_v14 = vand.u32 65535, %v4867_v34  ;;  %v4872_v49 = vshrl.u32 %v4867_v34, 16 }
 0x4ad   : > { %vm4660_vm3 = vcmp.eq.s32.totalorder %v4655_v2, 2  ;;  %v4767_v6 = vsub.s32 %v4763_v24, %v4766_v30  ;;  %v4863_v63 = vsel %vm4853_vm15, %v4860_v25, %v4862_v26  ;;  %v4869_v51 = vand.u32 65535, %v9451_v13 }
 0x4ae   : > { %v4658_v36 = vxor.u32 2147483648, %v4652_v28  ;;  %v4662_v54 = vsel %vm4660_vm3, %v4661_v53, %v4652_v28  ;;  %v4870_v7 = vshrl.u32 %v9451_v13, 16  ;;  %vm4653_vm4 = vweird.f32 %v8994_v40 }
 0x4af   : > { %vm4768_vm6 = vcmp.lt.s32.totalorder %v4767_v6, 0  ;;  %v4769_v20 = vsub.s32 0, %v4767_v6  ;;  %v4874_v15 = vmul.u32 %v4872_v49, %v4869_v51  ;;  %v4894_v18 = vshrl.u32 %v4863_v63, 16 }
 0x4b0   : > { %v4659_v38 = vsel %vm4657_vm5, %v4644_v1, %v4658_v36  ;;  %v4875_v44 = vmul.u32 %v4871_v14, %v4870_v7  ;;  %v4893_v19 = vand.u32 65535, %v4863_v63  ;;  %v9465_v45 = vadd.f32 %v9462_v42, %v472_v46 }
 0x4b1   : > { %v4663_v0 = vsel %vm4656_vm0, %v4659_v38, %v4662_v54  ;;  %v4770_v11 = vsel %vm4768_vm6, %v4769_v20, %v4767_v6  ;;  %v4873_v5 = vmul.u32 %v4871_v14, %v4869_v51  ;;  %v4877_v24 = vshll.u32 %v4874_v15, 16 }
 0x4b2   : > { %v4664_v32 = vsel %vm4653_vm4, nan, %v4663_v0  ;;  %v4771_v40 = vclz %v4770_v11  ;;  %v9468_v58 = vadd.f32 %v9462_v42, %v475_v55  ;;  %v4836_v61 = vshrl.u32 %v5956_v33, %v9391_v16 }
 0x4b3   : > { %5466 = vst [vmem:[%s6343_s10 + $0xd0] sm:$0xff] %v4664_v32  ;;  %v4876_v17 = vmul.u32 %v4872_v49, %v4870_v7  ;;  %v4879_v8 = vshll.u32 %v4875_v44, 16  ;;  %vm4881_vm7 = vc.u32 %v4873_v5, %v4877_v24  ;;  %v4883_v2 = vadd.s32 %v4877_v24, %v4873_v5 }
 0x4b4   : > { %v5764_v10 = vadd.s32 4294967294, %v4771_v40  ;;  %v4896_v56 = vmul.u32 %v4894_v18, %v4869_v51  ;;  %vm4667_vm10 = vcmp.lt.s32.totalorder %v9128_v57, 0  ;;  %v4759_v46 = vadd.s32 %v9395_v48, %v9393_v22 }
 0x4b5   : > { %v4789_v12 = vsub.s32 4, %v9429_v3  ;;  %v4882_v1 = vsel %vm4881_vm7, 1, %v5962_v27  ;;  %v4897_v23 = vmul.u32 %v4893_v19, %v4870_v7  ;;  %vm4885_vm9 = vc.u32 %v4883_v2, %v4879_v8 }
 0x4b6   : > { %vm5765_vm8 = vcmp.lt.s32.totalorder %v5764_v10, 0  ;;  %v4884_v60 = vadd.s32 %v4882_v1, %v4876_v17  ;;  %v4899_v16 = vshll.u32 %v4896_v56, 16  ;;  %v4878_v21 = vshrl.u32 %v4874_v15, 16 }
 0x4b7   : > { %v4774_v25 = vsel %vm5765_vm8, 0, %v5764_v10  ;;  %v4886_v52 = vsel %vm4885_vm9, 1, %v5962_v27  ;;  %v4895_v28 = vmul.u32 %v4893_v19, %v4869_v51  ;;  %v4898_v30 = vmul.u32 %v4894_v18, %v4870_v7 }
 0x4b8   : > { %v4775_v53 = vsub.s32 32, %v4774_v25  ;;  %v4779_v26 = vsub.s32 4294967266, %v4774_v25  ;;  %v4888_v41 = vadd.s32 %v4886_v52, %v4884_v60  ;;  %v4776_v34 = vshll.u32 %v4767_v6, %v4774_v25 }
 0x4b9   : > { %v4901_v22 = vshll.u32 %v4897_v23, 16  ;;  %vm4903_vm11 = vc.u32 %v4895_v28, %v4899_v16  ;;  %v4905_v48 = vadd.s32 %v4899_v16, %v4895_v28  ;;  %v4857_v38 = vsel %vm4855_vm2, %v9417_v9, 2102212464 }
 0x4ba   : > { %v4777_v36 = vshrl.u32 %v4759_v46, %v4775_v53  ;;  %v4780_v14 = vadd.s32 127, %v4779_v26  ;;  %v4889_v49 = vadd.s32 %v4888_v41, %v4878_v21  ;;  %v4904_v63 = vsel %vm4903_vm11, 1, %v5962_v27 }
 0x4bb   : > { %v4906_v54 = vadd.s32 %v4904_v63, %v4898_v30  ;;  %vm4907_vm12 = vc.u32 %v4905_v48, %v4901_v22  ;;  %v4975_v51 = vand.u32 2147483647, %v9465_v45  ;;  %v4880_v7 = vshrl.u32 %v4875_v44, 16 }
 0x4bc   : > { %v4778_v0 = vor.u32 %v4777_v36, %v4776_v34  ;;  %v4781_v20 = vshll.u32 %v4780_v14, 23  ;;  %v4908_v6 = vsel %vm4907_vm12, 1, %v5962_v27  ;;  %v4856_v55 = vsel %vm4852_vm13, %v4836_v61, %v9410_v31 }
 0x4bd   : > { %v4900_v32 = vshrl.u32 %v4896_v56, 16  ;;  %v4910_v15 = vadd.s32 %v4908_v6, %v4906_v54  ;;  %v4978_v18 = vand.u32 2139095040, %v9465_v45  ;;  %v4790_v9 = vsel %vm4667_vm10, %v4789_v12, %v9429_v3 }
 0x4be   : > { %v4782_v11 = vor.u32 4788187, %v4781_v20  ;;  %v4858_v19 = vsel %vm4854_vm1, %v9412_v29, %v4857_v38  ;;  %v4890_v44 = vadd.s32 %v4889_v49, %v4880_v7  ;;  %v4902_v40 = vshrl.u32 %v4897_v23, 16 }
 0x4bf   : > { %v4911_v5 = vadd.s32 %v4910_v15, %v4900_v32  ;;  %v4979_v24 = vshrl.u32 %v4978_v18, 23  ;;  %v4982_v31 = vand.u32 8388607, %v4975_v51  ;;  %v4785_v17 = vcvt.s32.f32 %v4778_v0 }
 0x4c0   : > { %v4783_v61 = vand.u32 2147483647, %v4782_v11  ;;  %v4909_v8 = vadd.s32 %v4905_v48, %v4901_v22  ;;  %vm9498_vm14 = vcmp.le.f32.partialorder %v4665_v62, 0.7853982  ;;  %v4859_v3 = vsel %vm4853_vm15, %v4856_v55, %v4858_v19 }
 0x4c1   : > { %v4912_v29 = vadd.s32 %v4911_v5, %v4902_v40  ;;  %v5769_v2 = vadd.s32 4294967169, %v4979_v24  ;;  %v4792_v46 = vsel %vm9498_vm14, 0, %v4790_v9  ;;  %v4983_v1 = vor.u32 8388608, %v4982_v31 }
 0x4c2   : > { %v4786_v56 = vmul.f32 %v4785_v17, %v4783_v61  ;;  %vm4915_vm13 = vc.u32 %v4890_v44, %v4909_v8  ;;  %v5133_v60 = vand.u32 2139095040, %v9468_v58  ;;  %v4913_v62 = vmul.u32 %v9451_v13, %v4859_v3 }
 0x4c3   : > { %v4916_v12 = vadd.s32 1, %v4912_v29  ;;  %v4985_v23 = vadd.s32 1, %v5769_v2  ;;  %v4809_v21 = vadd.s32 3, %v4792_v46  ;;  %v9513_v41 = vshll.u32 %v4983_v1, 8 }
 0x4c4   : > { %v4787_v16 = vxor.u32 2147483648, %v4786_v56  ;;  %v5134_v30 = vshrl.u32 %v5133_v60, 23  ;;  %vm4822_vm15 = vcmp.lt.s32.totalorder %v9215_v47, 0  ;;  %v9520_v63 = vadd.s32 %v4909_v8, %v4890_v44 }
 0x4c5   : > { %v4917_v25 = vsel %vm4915_vm13, %v4916_v12, %v4912_v29  ;;  %vm4986_vm2 = vcmp.gt.s32.totalorder %v4985_v23, 0  ;;  %v9517_v14 = vand.u32 3, %v4809_v21  ;;  %v9523_v38 = vand.u32 65535, %v9513_v41 }
 0x4c6   : > { %v4788_v59 = vsel %vm4667_vm10, %v4787_v16, %v4786_v56  ;;  %v4918_v52 = vadd.s32 %v4917_v25, %v4913_v62  ;;  %v4987_v28 = vsel %vm4986_vm2, %v4985_v23, 0  ;;  %v5130_v54 = vand.u32 2147483647, %v9468_v58 }
 0x4c7   : > { %v4791_v53 = vsel %vm9498_vm14, %v9128_v57, %v4788_v59  ;;  %v4989_v26 = vand.u32 31, %v4987_v28  ;;  %v5772_v0 = vadd.s32 4294967169, %v5134_v30  ;;  %v9527_v55 = vshrl.u32 %v9513_v41, 16 }
 0x4c8   : > { %v4793_v34 = vmul.f32 %v4791_v53, %v4791_v53  ;;  %v4919_v22 = vadd.s32 536870912, %v4918_v52  ;;  %v9529_v32 = vshrl.u32 %v4987_v28, 5  ;;  %vm4815_vm1 = vcmp.eq.s32.totalorder %v9517_v14, 2 }
 0x4c9   : > { %v9515_v48 = vsub.s32 32, %v4989_v26  ;;  %v4992_v15 = vshll.u32 %v5956_v33, %v4989_v26  ;;  %v4995_v24 = vshll.u32 %v5957_v35, %v4989_v26  ;;  %v5001_v61 = vshll.u32 %v5959_v39, %v4989_v26 }
 0x4ca   : > { %v4794_v13 = vmul.f32 -0.001358992, %v4793_v34  ;;  %v4801_v36 = vmul.f32 -0.00019511016, %v4793_v34  ;;  %v4920_v49 = vshrl.u32 %v4919_v22, 30  ;;  %vm4812_vm5 = vcmp.eq.s32.totalorder %v9517_v14, 0 }
 0x4cb   : > { %v4993_v18 = vshrl.u32 %v5957_v35, %v9515_v48  ;;  %v4996_v11 = vshrl.u32 %v5958_v37, %v9515_v48  ;;  %v5002_v40 = vshrl.u32 %v5960_v43, %v9515_v48  ;;  %v4999_v31 = vshrl.u32 %v5959_v39, %v9515_v48 }
 0x4cc   : > { %v4795_v20 = vadd.f32 0.041655596, %v4794_v13  ;;  %v4802_v7 = vadd.f32 0.008332121, %v4801_v36  ;;  %v4921_v6 = vshll.u32 %v4920_v49, 30  ;;  %v4944_v5 = vsub.s32 4, %v4920_v49 }
 0x4cd   : > { %v4994_v3 = vor.u32 %v4993_v18, %v4992_v15  ;;  %v9548_v29 = vor.u32 %v4996_v11, %v4995_v24  ;;  %v4998_v2 = vshll.u32 %v5958_v37, %v4989_v26  ;;  %v5005_v56 = vshrl.u32 %v5961_v50, %v9515_v48 }
 0x4ce   : > { %v4796_v9 = vmul.f32 %v4795_v20, %v4793_v34  ;;  %v4803_v19 = vmul.f32 %v4802_v7, %v4793_v34  ;;  %v9536_v44 = vsub.s32 %v4918_v52, %v4921_v6  ;;  %vm4811_vm3 = vcmp.lt.s32.totalorder %v9517_v14, 2 }
 0x4cf   : > { %v5003_v23 = vor.u32 %v5002_v40, %v5001_v61  ;;  %vm4808_vm4 = vweird.f32 %v9128_v57  ;;  %v5000_v16 = vor.u32 %v4999_v31, %v4998_v2  ;;  %v5004_v62 = vshll.u32 %v5960_v43, %v4989_v26 }
 0x4d0   : > { %v4797_v17 = vadd.f32 -0.4999988, %v4796_v9  ;;  %v4804_v8 = vadd.f32 -0.16666654, %v4803_v19  ;;  %vm4923_vm0 = vcmp.lt.s32.totalorder %v9536_v44, 0  ;;  %v4924_v10 = vsub.s32 0, %v9536_v44 }
 0x4d1   : > { %v9557_v25 = vadd.s32 1, %v5772_v0  ;;  %v9561_v52 = vsel %vm4822_vm15, %v4944_v5, %v4920_v49  ;;  %vm5007_vm6 = vcmp.lt.s32.totalorder %v9529_v32, 1  ;;  %vm9566_vm7 = vcmp.le.f32.partialorder %v4820_v4, 0.7853982 }
 0x4d2   : > { %v4798_v46 = vmul.f32 %v4797_v17, %v4793_v34  ;;  %v4805_v12 = vmul.f32 %v4804_v8, %v4793_v34  ;;  %v4925_v1 = vsel %vm4923_vm0, %v4924_v10, %v9536_v44  ;;  %v5006_v34 = vor.u32 %v5005_v56, %v5004_v62 }
 0x4d3   : > { %v4926_v60 = vclz %v4925_v1  ;;  %vm5010_vm10 = vcmp.lt.s32.totalorder %v9529_v32, 4  ;;  %v5015_v26 = vsel %vm5007_vm6, %v4994_v3, %v9548_v29  ;;  %vm5009_vm8 = vcmp.lt.s32.totalorder %v9529_v32, 3 }
 0x4d4   : > { %v4799_v59 = vadd.f32 1.0, %v4798_v46  ;;  %v4806_v21 = vadd.f32 1.0, %v4805_v12  ;;  %v5016_v36 = vsel %vm5010_vm10, %v5003_v23, 920167782  ;;  %vm5008_vm11 = vcmp.lt.s32.totalorder %v9529_v32, 2 }
 0x4d5   : > { %v5767_v30 = vadd.s32 4294967294, %v4926_v60  ;;  %v5017_v4 = vsel %vm5009_vm8, %v5000_v16, %v5016_v36  ;;  %v5019_v49 = vsel %vm5007_vm6, %v9548_v29, %v5000_v16  ;;  %v5020_v11 = vsel %vm5010_vm10, %v5006_v34, 1326507024 }
 0x4d6   : > { %v4807_v22 = vmul.f32 %v4806_v21, %v4791_v53  ;;  %v4816_v13 = vxor.u32 2147483648, %v4799_v59  ;;  %v5018_v7 = vsel %vm5008_vm11, %v5015_v26, %v5017_v4  ;;  %v5021_v19 = vsel %vm5009_vm8, %v5003_v23, %v5020_v11 }
 0x4d7   : > { %vm5768_vm9 = vcmp.lt.s32.totalorder %v5767_v30, 0  ;;  %v5048_v40 = vand.u32 65535, %v5018_v7  ;;  %v5049_v5 = vshrl.u32 %v5018_v7, 16  ;;  %vm5141_vm12 = vcmp.gt.s32.totalorder %v9557_v25, 0 }
 0x4d8   : > { %v4813_v0 = vxor.u32 2147483648, %v4807_v22  ;;  %v4817_v53 = vsel %vm4815_vm1, %v4816_v13, %v4807_v22  ;;  %v4929_v20 = vsel %vm5768_vm9, 0, %v5767_v30  ;;  %v4991_v8 = vshrl.u32 %v5956_v33, %v9515_v48 }
 0x4d9   : > { %v4930_v6 = vsub.s32 32, %v4929_v20  ;;  %v4931_v15 = vshll.u32 %v9536_v44, %v4929_v20  ;;  %v4934_v18 = vsub.s32 4294967266, %v4929_v20  ;;  %v5022_v44 = vsel %vm5008_vm11, %v5019_v49, %v5021_v19 }
 0x4da   : > { %v4814_v9 = vsel %vm4812_vm5, %v4799_v59, %v4813_v0  ;;  %v5026_v10 = vand.u32 65535, %v5022_v44  ;;  %v5027_v2 = vshrl.u32 %v5022_v44, 16  ;;  %v5051_v14 = vmul.u32 %v5049_v5, %v9523_v38 }
 0x4db   : > { %v4818_v24 = vsel %vm4811_vm3, %v4814_v9, %v4817_v53  ;;  %v4932_v31 = vshrl.u32 %v9520_v63, %v4930_v6  ;;  %v4935_v61 = vadd.s32 127, %v4934_v18  ;;  %v5052_v63 = vmul.u32 %v5048_v40, %v9527_v55 }
 0x4dc   : > { %v4819_v17 = vsel %vm4808_vm4, nan, %v4818_v24  ;;  %v4947_v12 = vsel %vm9566_vm7, 0, %v9561_v52  ;;  %v5011_v57 = vsel %vm5007_vm6, %v4991_v8, %v4994_v3  ;;  %v5029_v1 = vmul.u32 %v5027_v2, %v9523_v38 }
 0x4dd   : > { %v4933_v56 = vor.u32 %v4932_v31, %v4931_v15  ;;  %v4936_v46 = vshll.u32 %v4935_v61, 23  ;;  %5467 = vst [vmem:[%s6343_s10 + $0xd8] sm:$0xff] %v4819_v17  ;;  %v5030_v48 = vmul.u32 %v5026_v10, %v9527_v55  ;;  %v5012_v60 = vsel %vm5010_vm10, %v5000_v16, 2102212464 }
 0x4de   : > { %v5050_v62 = vmul.u32 %v5048_v40, %v9523_v38  ;;  %v5054_v59 = vshll.u32 %v5051_v14, 16  ;;  %v5028_v30 = vmul.u32 %v5026_v10, %v9523_v38  ;;  %v5031_v34 = vmul.u32 %v5027_v2, %v9527_v55 }
 0x4df   : > { %v4937_v23 = vor.u32 4788187, %v4936_v46  ;;  %v4940_v21 = vcvt.s32.f32 %v4933_v56  ;;  %v5032_v52 = vshll.u32 %v5029_v1, 16  ;;  %v5034_v22 = vshll.u32 %v5030_v48, 16 }
 0x4e0   : > { %v5053_v3 = vmul.u32 %v5049_v5, %v9527_v55  ;;  %v5056_v13 = vshll.u32 %v5052_v63, 16  ;;  %vm5058_vm13 = vc.u32 %v5050_v62, %v5054_v59  ;;  %v5060_v4 = vadd.s32 %v5054_v59, %v5050_v62 }
 0x4e1   : > { %v4938_v26 = vand.u32 2147483647, %v4937_v23  ;;  %vm5036_vm14 = vc.u32 %v5028_v30, %v5032_v52  ;;  %v5038_v36 = vadd.s32 %v5032_v52, %v5028_v30  ;;  %v5013_v16 = vsel %vm5009_vm8, %v9548_v29, %v5012_v60 }
 0x4e2   : > { %v5037_v0 = vsel %vm5036_vm14, 1, %v5962_v27  ;;  %v5059_v38 = vsel %vm5058_vm13, 1, %v5962_v27  ;;  %vm5062_vm1 = vc.u32 %v5060_v4, %v5056_v13  ;;  %v5033_v55 = vshrl.u32 %v5029_v1, 16 }
 0x4e3   : > { %v4941_v49 = vmul.f32 %v4940_v21, %v4938_v26  ;;  %v5039_v53 = vadd.s32 %v5037_v0, %v5031_v34  ;;  %vm5040_vm2 = vc.u32 %v5038_v36, %v5034_v22  ;;  %v5061_v20 = vadd.s32 %v5059_v38, %v5053_v3 }
 0x4e4   : > { %v5041_v6 = vsel %vm5040_vm2, 1, %v5962_v27  ;;  %v5063_v15 = vsel %vm5062_vm1, 1, %v5962_v27  ;;  %v5055_v11 = vshrl.u32 %v5051_v14, 16  ;;  %v5142_v29 = vsel %vm5141_vm12, %v9557_v25, 0 }
 0x4e5   : > { %v4942_v7 = vxor.u32 2147483648, %v4941_v49  ;;  %v5043_v18 = vadd.s32 %v5041_v6, %v5039_v53  ;;  %v5065_v9 = vadd.s32 %v5063_v15, %v5061_v20  ;;  %v5014_v40 = vsel %vm5008_vm11, %v5011_v57, %v5013_v16 }
 0x4e6   : > { %v5035_v5 = vshrl.u32 %v5030_v48, 16  ;;  %v5144_v24 = vand.u32 31, %v5142_v29  ;;  %v5057_v44 = vshrl.u32 %v5052_v63, 16  ;;  %v5137_v10 = vand.u32 8388607, %v5130_v54 }
 0x4e7   : > { %v4943_v19 = vsel %vm4822_vm15, %v4942_v7, %v4941_v49  ;;  %v5044_v61 = vadd.s32 %v5043_v18, %v5033_v55  ;;  %v5066_v17 = vadd.s32 %v5065_v9, %v5055_v11  ;;  %v4964_v2 = vadd.s32 3, %v4947_v12 }
 0x4e8   : > { %v4946_v31 = vsel %vm9566_vm7, %v9215_v47, %v4943_v19  ;;  %v9639_v25 = vsub.s32 32, %v5144_v24  ;;  %v9643_v32 = vadd.s32 %v5060_v4, %v5056_v13  ;;  %v5068_v28 = vmul.u32 %v9513_v41, %v5014_v40 }
 0x4e9   : > { %v4948_v8 = vmul.f32 %v4946_v31, %v4946_v31  ;;  %v9641_v56 = vadd.s32 %v5044_v61, %v5035_v5  ;;  %v5067_v46 = vadd.s32 %v5066_v17, %v5057_v44  ;;  %v9646_v1 = vshrl.u32 %v5142_v29, 5 }
 0x4ea   : > { %v5147_v48 = vshll.u32 %v5956_v33, %v5144_v24  ;;  %v5151_v12 = vshrl.u32 %v5958_v37, %v9639_v25  ;;  %v5150_v62 = vshll.u32 %v5957_v35, %v5144_v24  ;;  %v5154_v59 = vshrl.u32 %v5959_v39, %v9639_v25 }
 0x4eb   : > { %v4949_v14 = vmul.f32 -0.001358992, %v4948_v8  ;;  %v4956_v57 = vmul.f32 -0.00019511016, %v4948_v8  ;;  %vm5070_vm15 = vc.u32 %v9641_v56, %v9643_v32  ;;  %v5071_v63 = vadd.s32 1, %v5067_v46 }
 0x4ec   : > { %v5148_v41 = vshrl.u32 %v5957_v35, %v9639_v25  ;;  %v5156_v30 = vshll.u32 %v5959_v39, %v5144_v24  ;;  %v5157_v34 = vshrl.u32 %v5960_v43, %v9639_v25  ;;  %v5153_v3 = vshll.u32 %v5958_v37, %v5144_v24 }
 0x4ed   : > { %v4950_v23 = vadd.f32 0.041655596, %v4949_v14  ;;  %v4957_v60 = vadd.f32 0.008332121, %v4956_v57  ;;  %v5072_v21 = vsel %vm5070_vm15, %v5071_v63, %v5067_v46  ;;  %v9662_v13 = vor.u32 %v5151_v12, %v5150_v62 }
 0x4ee   : > { %v5073_v22 = vadd.s32 %v5072_v21, %v5068_v28  ;;  %v5158_v36 = vor.u32 %v5157_v34, %v5156_v30  ;;  %v5159_v4 = vshll.u32 %v5960_v43, %v5144_v24  ;;  %v5160_v49 = vshrl.u32 %v5961_v50, %v9639_v25 }
 0x4ef   : > { %v4951_v52 = vmul.f32 %v4950_v23, %v4948_v8  ;;  %v4958_v26 = vmul.f32 %v4957_v60, %v4948_v8  ;;  %v9667_v53 = vor.u32 %v5154_v59, %v5153_v3  ;;  %v4965_v20 = vand.u32 3, %v4964_v2  ;;  %v477_v23 = vpop.f32.mrf.mxu3 }
 0x4f0   : > { %v5074_v38 = vadd.s32 536870912, %v5073_v22  ;;  %v5138_v7 = vor.u32 8388608, %v5137_v10  ;;  %v9669_v55 = vor.u32 %v5148_v41, %v5147_v48  ;;  %v5161_v6 = vor.u32 %v5160_v49, %v5159_v4 }
 0x4f1   : > { %v4952_v16 = vadd.f32 -0.4999988, %v4951_v52  ;;  %v4959_v0 = vadd.f32 -0.16666654, %v4958_v26  ;;  %vm5165_vm0 = vcmp.lt.s32.totalorder %v9646_v1, 4  ;;  %vm5162_vm5 = vcmp.lt.s32.totalorder %v9646_v1, 1 }
 0x4f2   : > { %v9671_v11 = vshrl.u32 %v5074_v38, 30  ;;  %vm5164_vm3 = vcmp.lt.s32.totalorder %v9646_v1, 3  ;;  %v5171_v9 = vsel %vm5165_vm0, %v5158_v36, 920167782  ;;  %v5175_v29 = vsel %vm5165_vm0, %v5161_v6, 1326507024 }
 0x4f3   : > { %v4953_v15 = vmul.f32 %v4952_v16, %v4948_v8  ;;  %v4960_v18 = vmul.f32 %v4959_v0, %v4948_v8  ;;  %v5174_v24 = vsel %vm5162_vm5, %v9662_v13, %v9667_v53  ;;  %v5170_v61 = vsel %vm5162_vm5, %v9669_v55, %v9662_v13 }
 0x4f4   : > { %v5076_v5 = vshll.u32 %v9671_v11, 30  ;;  %v5172_v44 = vsel %vm5164_vm3, %v9667_v53, %v5171_v9  ;;  %v5176_v17 = vsel %vm5164_vm3, %v5158_v36, %v5175_v29  ;;  %v9694_v8 = vshll.u32 %v5138_v7, 8 }
 0x4f5   : > { %v4954_v19 = vadd.f32 1.0, %v4953_v15  ;;  %v4961_v40 = vadd.f32 1.0, %v4960_v18  ;;  %vm5163_vm4 = vcmp.lt.s32.totalorder %v9646_v1, 2  ;;  %vm4966_vm6 = vcmp.lt.s32.totalorder %v4965_v20, 2 }
 0x4f6   : > { %v5077_v46 = vsub.s32 %v5073_v22, %v5076_v5  ;;  %vm4967_vm7 = vcmp.eq.s32.totalorder %v4965_v20, 0  ;;  %v5177_v14 = vsel %vm5163_vm4, %v5174_v24, %v5176_v17  ;;  %v5173_v63 = vsel %vm5163_vm4, %v5170_v61, %v5172_v44 }
 0x4f7   : > { %v4962_v10 = vmul.f32 %v4961_v40, %v4946_v31  ;;  %v4971_v2 = vxor.u32 2147483648, %v4954_v19  ;;  %vm4970_vm8 = vcmp.eq.s32.totalorder %v4965_v20, 2  ;;  %v5179_v48 = vand.u32 65535, %v9694_v8 }
 0x4f8   : > { %vm5078_vm10 = vcmp.lt.s32.totalorder %v5077_v46, 0  ;;  %v5079_v28 = vsub.s32 0, %v5077_v46  ;;  %v5181_v12 = vand.u32 65535, %v5177_v14  ;;  %v5182_v31 = vshrl.u32 %v5177_v14, 16 }
 0x4f9   : > { %v4968_v57 = vxor.u32 2147483648, %v4962_v10  ;;  %v4972_v62 = vsel %vm4970_vm8, %v4971_v2, %v4962_v10  ;;  %v5180_v21 = vshrl.u32 %v9694_v8, 16  ;;  %vm4963_vm9 = vweird.f32 %v9215_v47 }
 0x4fa   : > { %v5080_v59 = vsel %vm5078_vm10, %v5079_v28, %v5077_v46  ;;  %v5204_v34 = vshrl.u32 %v5173_v63, 16  ;;  %v5184_v26 = vmul.u32 %v5182_v31, %v5179_v48  ;;  %v5203_v3 = vand.u32 65535, %v5173_v63 }
 0x4fb   : > { %v4969_v60 = vsel %vm4967_vm7, %v4954_v19, %v4968_v57  ;;  %v5081_v30 = vclz %v5080_v59  ;;  %v5185_v22 = vmul.u32 %v5181_v12, %v5180_v21  ;;  %v9706_v36 = vadd.f32 %v9462_v42, %v477_v23 }
 0x4fc   : > { %v4973_v41 = vsel %vm4966_vm6, %v4969_v60, %v4972_v62  ;;  %v5069_v49 = vadd.s32 %v9643_v32, %v9641_v56  ;;  %v5183_v16 = vmul.u32 %v5181_v12, %v5179_v48  ;;  %v5186_v0 = vmul.u32 %v5182_v31, %v5180_v21 }
 0x4fd   : > { %v4974_v52 = vsel %vm4963_vm9, nan, %v4973_v41  ;;  %v5770_v4 = vadd.s32 4294967294, %v5081_v30  ;;  %v5187_v38 = vshll.u32 %v5184_v26, 16  ;;  %v5188_v47 = vshrl.u32 %v5184_v26, 16 }
 0x4fe   : > { %5468 = vst [vmem:[%s6343_s10 + $0xe0] sm:$0xff] %v4974_v52  ;;  %v5189_v20 = vshll.u32 %v5185_v22, 16  ;;  %v5206_v7 = vmul.u32 %v5204_v34, %v5179_v48  ;;  %v5207_v18 = vmul.u32 %v5203_v3, %v5180_v21  ;;  %v5205_v19 = vmul.u32 %v5203_v3, %v5179_v48 }
 0x4ff   : > { %vm5771_vm11 = vcmp.lt.s32.totalorder %v5770_v4, 0  ;;  %vm5191_vm12 = vc.u32 %v5183_v16, %v5187_v38  ;;  %v5193_v15 = vadd.s32 %v5187_v38, %v5183_v16  ;;  %v5208_v5 = vmul.u32 %v5204_v34, %v5180_v21 }
 0x500   : > { %v5084_v6 = vsel %vm5771_vm11, 0, %v5770_v4  ;;  %v5192_v42 = vsel %vm5191_vm12, 1, %v5962_v27  ;;  %v5209_v56 = vshll.u32 %v5206_v7, 16  ;;  %v5211_v10 = vshll.u32 %v5207_v18, 16 }
 0x501   : > { %v5085_v9 = vsub.s32 32, %v5084_v6  ;;  %v5089_v29 = vsub.s32 4294967266, %v5084_v6  ;;  %v5194_v40 = vadd.s32 %v5192_v42, %v5186_v0  ;;  %vm5195_vm14 = vc.u32 %v5193_v15, %v5189_v20 }
 0x502   : > { %v5086_v32 = vshll.u32 %v5077_v46, %v5084_v6  ;;  %v5196_v44 = vsel %vm5195_vm14, 1, %v5962_v27  ;;  %vm5213_vm13 = vc.u32 %v5205_v19, %v5209_v56  ;;  %v5215_v2 = vadd.s32 %v5209_v56, %v5205_v19 }
 0x503   : > { %v5087_v24 = vshrl.u32 %v5069_v49, %v5085_v9  ;;  %v5090_v61 = vadd.s32 127, %v5089_v29  ;;  %v5198_v17 = vadd.s32 %v5196_v44, %v5194_v40  ;;  %v5146_v28 = vshrl.u32 %v5956_v33, %v9639_v25 }
 0x504   : > { %v5214_v63 = vsel %vm5213_vm13, 1, %v5962_v27  ;;  %v5167_v48 = vsel %vm5165_vm0, %v9667_v53, 2102212464  ;;  %vm5217_vm2 = vc.u32 %v5215_v2, %v5211_v10  ;;  %v5190_v60 = vshrl.u32 %v5185_v22, 16 }
 0x505   : > { %v5088_v14 = vor.u32 %v5087_v24, %v5086_v32  ;;  %v5091_v57 = vshll.u32 %v5090_v61, 23  ;;  %v5199_v46 = vadd.s32 %v5198_v17, %v5188_v47  ;;  %v5216_v12 = vadd.s32 %v5214_v63, %v5208_v5 }
 0x506   : > { %v5166_v23 = vsel %vm5162_vm5, %v5146_v28, %v9669_v55  ;;  %v5218_v62 = vsel %vm5217_vm2, 1, %v5962_v27  ;;  %v5099_v59 = vsub.s32 4, %v9671_v11  ;;  %v5210_v25 = vshrl.u32 %v5206_v7, 16 }
 0x507   : > { %v5092_v31 = vor.u32 4788187, %v5091_v57  ;;  %v5220_v21 = vadd.s32 %v5218_v62, %v5216_v12  ;;  %v5288_v41 = vand.u32 2139095040, %v9706_v36  ;;  %v5095_v34 = vcvt.s32.f32 %v5088_v14 }
 0x508   : > { %v5168_v53 = vsel %vm5164_vm3, %v9662_v13, %v5167_v48  ;;  %v9728_v52 = vadd.s32 %v5199_v46, %v5190_v60  ;;  %v5212_v26 = vshrl.u32 %v5207_v18, 16  ;;  %vm4977_vm1 = vcmp.lt.s32.totalorder %v9465_v45, 0 }
 0x509   : > { %v5093_v30 = vand.u32 2147483647, %v5092_v31  ;;  %v5221_v3 = vadd.s32 %v5220_v21, %v5210_v25  ;;  %v5289_v55 = vshrl.u32 %v5288_v41, 23  ;;  %v9731_v4 = vadd.s32 %v5215_v2, %v5211_v10 }
 0x50a   : > { %v5285_v49 = vand.u32 2147483647, %v9706_v36  ;;  %v5100_v16 = vsel %vm4977_vm1, %v5099_v59, %v9671_v11  ;;  %v5169_v0 = vsel %vm5163_vm4, %v5166_v23, %v5168_v53  ;;  %vm4976_vm0 = vcmp.le.f32.partialorder %v4975_v51, 0.7853982 }
 0x50b   : > { %v5096_v22 = vmul.f32 %v5095_v34, %v5093_v30  ;;  %v5222_v38 = vadd.s32 %v5221_v3, %v5212_v26  ;;  %v5775_v47 = vadd.s32 4294967169, %v5289_v55  ;;  %vm5225_vm15 = vc.u32 %v9728_v52, %v9731_v4 }
 0x50c   : > { %v5102_v15 = vsel %vm4976_vm0, 0, %v5100_v16  ;;  %v5223_v18 = vmul.u32 %v9694_v8, %v5169_v0  ;;  %v5292_v11 = vand.u32 8388607, %v5285_v49  ;;  %vm5118_vm7 = vweird.f32 %v9465_v45 }
 0x50d   : > { %v5097_v13 = vxor.u32 2147483648, %v5096_v22  ;;  %v5226_v20 = vadd.s32 1, %v5222_v38  ;;  %v5295_v7 = vadd.s32 1, %v5775_v47  ;;  %v5119_v40 = vadd.s32 3, %v5102_v15 }
 0x50e   : > { %v5293_v24 = vor.u32 8388608, %v5292_v11  ;;  %vm5132_vm13 = vcmp.lt.s32.totalorder %v9468_v58, 0  ;;  %vm9814_vm2 = vcmp.le.f32.partialorder %v5130_v54, 0.7853982 }
 0x50f   : > { %v5098_v6 = vsel %vm4977_vm1, %v5097_v13, %v5096_v22  ;;  %v5227_v9 = vsel %vm5225_vm15, %v5226_v20, %v5222_v38  ;;  %vm5296_vm5 = vcmp.gt.s32.totalorder %v5295_v7, 0  ;;  %v5120_v10 = vand.u32 3, %v5119_v40 }
 0x510   : > { %v5101_v1 = vsel %vm4976_vm0, %v9465_v45, %v5098_v6  ;;  %v5228_v42 = vadd.s32 %v5227_v9, %v5223_v18  ;;  %v5297_v19 = vsel %vm5296_vm5, %v5295_v7, 0  ;;  %v9750_v28 = vshll.u32 %v5293_v24, 8 }
 0x511   : > { %v5103_v29 = vmul.f32 %v5101_v1, %v5101_v1  ;;  %v5299_v5 = vand.u32 31, %v5297_v19  ;;  %v9752_v63 = vshrl.u32 %v5297_v19, 5  ;;  %vm5122_vm3 = vcmp.eq.s32.totalorder %v5120_v10, 0 }
 0x512   : > { %v5229_v32 = vadd.s32 536870912, %v5228_v42  ;;  %vm5121_vm4 = vcmp.lt.s32.totalorder %v5120_v10, 2  ;;  %vm5125_vm10 = vcmp.eq.s32.totalorder %v5120_v10, 2 }
 0x513   : > { %v5104_v56 = vmul.f32 -0.001358992, %v5103_v29  ;;  %v5111_v51 = vmul.f32 -0.00019511016, %v5103_v29  ;;  %v9745_v61 = vsub.s32 32, %v5299_v5  ;;  %v5302_v62 = vshll.u32 %v5956_v33, %v5299_v5 }
 0x514   : > { %v9747_v17 = vshrl.u32 %v5229_v32, 30  ;;  %v5305_v59 = vshll.u32 %v5957_v35, %v5299_v5  ;;  %v5311_v21 = vshll.u32 %v5959_v39, %v5299_v5  ;;  %v5314_v0 = vshll.u32 %v5960_v43, %v5299_v5 }
 0x515   : > { %v5105_v44 = vadd.f32 0.041655596, %v5104_v56  ;;  %v5112_v8 = vadd.f32 0.008332121, %v5111_v51  ;;  %v5303_v48 = vshrl.u32 %v5957_v35, %v9745_v61  ;;  %v5306_v46 = vshrl.u32 %v5958_v37, %v9745_v61 }
 0x516   : > { %v5231_v57 = vshll.u32 %v9747_v17, 30  ;;  %v5312_v12 = vshrl.u32 %v5960_v43, %v9745_v61  ;;  %v5309_v25 = vshrl.u32 %v5959_v39, %v9745_v61  ;;  %v5315_v41 = vshrl.u32 %v5961_v50, %v9745_v61 }
 0x517   : > { %v5106_v2 = vmul.f32 %v5105_v44, %v5103_v29  ;;  %v5113_v14 = vmul.f32 %v5112_v8, %v5103_v29  ;;  %v9768_v26 = vor.u32 %v5303_v48, %v5302_v62  ;;  %v9770_v3 = vor.u32 %v5306_v46, %v5305_v59 }
 0x518   : > { %v5232_v60 = vsub.s32 %v5228_v42, %v5231_v57  ;;  %v5308_v35 = vshll.u32 %v5958_v37, %v5299_v5  ;;  %v5313_v55 = vor.u32 %v5312_v12, %v5311_v21  ;;  %v5224_v50 = vadd.s32 %v9731_v4, %v9728_v52 }
 0x519   : > { %v5107_v31 = vadd.f32 -0.4999988, %v5106_v2  ;;  %v5114_v23 = vadd.f32 -0.16666654, %v5113_v14  ;;  %v5316_v7 = vor.u32 %v5315_v41, %v5314_v0  ;;  %vm5317_vm8 = vcmp.lt.s32.totalorder %v9752_v63, 1 }
 0x51a   : > { %vm5233_vm6 = vcmp.lt.s32.totalorder %v5232_v60, 0  ;;  %v5234_v53 = vsub.s32 0, %v5232_v60  ;;  %v9776_v47 = vor.u32 %v5309_v25, %v5308_v35  ;;  %vm5320_vm9 = vcmp.lt.s32.totalorder %v9752_v63, 4 }
 0x51b   : > { %v5108_v30 = vmul.f32 %v5107_v31, %v5103_v29  ;;  %v5115_v34 = vmul.f32 %v5114_v23, %v5103_v29  ;;  %v5325_v37 = vsel %vm5317_vm8, %v9768_v26, %v9770_v3  ;;  %v5334_v43 = vand.u32 65535, %v9750_v28 }
 0x51c   : > { %v5235_v39 = vsel %vm5233_vm6, %v5234_v53, %v5232_v60  ;;  %vm5318_vm11 = vcmp.lt.s32.totalorder %v9752_v63, 2  ;;  %vm5319_vm12 = vcmp.lt.s32.totalorder %v9752_v63, 3  ;;  %v5326_v52 = vsel %vm5320_vm9, %v5313_v55, 920167782 }
 0x51d   : > { %v5109_v22 = vadd.f32 1.0, %v5108_v30  ;;  %v5116_v16 = vadd.f32 1.0, %v5115_v34  ;;  %v5236_v38 = vclz %v5235_v39  ;;  %v5327_v18 = vsel %vm5319_vm12, %v9776_v47, %v5326_v52 }
 0x51e   : > { %v5329_v11 = vsel %vm5317_vm8, %v9770_v3, %v9776_v47  ;;  %v5328_v29 = vsel %vm5318_vm11, %v5325_v37, %v5327_v18  ;;  %v5330_v42 = vsel %vm5320_vm9, %v5316_v7, 1326507024  ;;  %v5335_v56 = vshrl.u32 %v9750_v28, 16 }
 0x51f   : > { %v5117_v13 = vmul.f32 %v5116_v16, %v5101_v1  ;;  %v5126_v20 = vxor.u32 2147483648, %v5109_v22  ;;  %v5773_v6 = vadd.s32 4294967294, %v5236_v38  ;;  %v5331_v32 = vsel %vm5319_vm12, %v5313_v55, %v5330_v42 }
 0x520   : > { %v5358_v24 = vand.u32 65535, %v5328_v29  ;;  %v5359_v44 = vshrl.u32 %v5328_v29, 16  ;;  %v5332_v57 = vsel %vm5318_vm11, %v5329_v11, %v5331_v32  ;;  %v5301_v38 = vshrl.u32 %v5956_v33, %v9745_v61 }
 0x521   : > { %v5123_v15 = vxor.u32 2147483648, %v5117_v13  ;;  %v5127_v4 = vsel %vm5125_vm10, %v5126_v20, %v5117_v13  ;;  %vm5774_vm14 = vcmp.lt.s32.totalorder %v5773_v6, 0  ;;  %v5336_v10 = vand.u32 65535, %v5332_v57 }
 0x522   : > { %v5239_v9 = vsel %vm5774_vm14, 0, %v5773_v6  ;;  %v5337_v48 = vshrl.u32 %v5332_v57, 16  ;;  %v5361_v46 = vmul.u32 %v5359_v44, %v5334_v43  ;;  %v5362_v23 = vmul.u32 %v5358_v24, %v5335_v56 }
 0x523   : > { %v5124_v1 = vsel %vm5122_vm3, %v5109_v22, %v5123_v15  ;;  %v5240_v40 = vsub.s32 32, %v5239_v9  ;;  %v5244_v5 = vsub.s32 4294967266, %v5239_v9  ;;  %v5241_v8 = vshll.u32 %v5232_v60, %v5239_v9 }
 0x524   : > { %v5128_v19 = vsel %vm5121_vm4, %v5124_v1, %v5127_v4  ;;  %v5339_v45 = vmul.u32 %v5337_v48, %v5334_v43  ;;  %v5340_v62 = vmul.u32 %v5336_v10, %v5335_v56  ;;  %v5360_v25 = vmul.u32 %v5358_v24, %v5334_v43 }
 0x525   : > { %v5129_v51 = vsel %vm5118_vm7, nan, %v5128_v19  ;;  %v5242_v2 = vshrl.u32 %v5224_v50, %v5240_v40  ;;  %v5245_v14 = vadd.s32 127, %v5244_v5  ;;  %v5363_v21 = vmul.u32 %v5359_v44, %v5335_v56 }
 0x526   : > { %5469 = vst [vmem:[%s6343_s10 + $0xe8] sm:$0xff] %v5129_v51  ;;  %v5364_v41 = vshll.u32 %v5361_v46, 16  ;;  %v5338_v34 = vmul.u32 %v5336_v10, %v5334_v43  ;;  %v5341_v53 = vmul.u32 %v5337_v48, %v5335_v56  ;;  %v5342_v35 = vshll.u32 %v5339_v45, 16 }
 0x527   : > { %v5243_v12 = vor.u32 %v5242_v2, %v5241_v8  ;;  %v5246_v31 = vshll.u32 %v5245_v14, 23  ;;  %v5344_v22 = vshll.u32 %v5340_v62, 16  ;;  %v5366_v16 = vshll.u32 %v5362_v23, 16 }
 0x528   : > { %vm5368_vm1 = vc.u32 %v5360_v25, %v5364_v41  ;;  %vm5346_vm15 = vc.u32 %v5338_v34, %v5342_v35  ;;  %v5348_v39 = vadd.s32 %v5342_v35, %v5338_v34  ;;  %v5370_v54 = vadd.s32 %v5364_v41, %v5360_v25 }
 0x529   : > { %v5247_v59 = vor.u32 4788187, %v5246_v31  ;;  %v5250_v30 = vcvt.s32.f32 %v5243_v12  ;;  %v5369_v0 = vsel %vm5368_vm1, 1, %v5962_v27  ;;  %v5347_v13 = vsel %vm5346_vm15, 1, %v5962_v27 }
 0x52a   : > { %v5371_v20 = vadd.s32 %v5369_v0, %v5363_v21  ;;  %v5322_v7 = vsel %vm5320_vm9, %v9776_v47, 2102212464  ;;  %v5349_v6 = vadd.s32 %v5347_v13, %v5341_v53  ;;  %vm5350_vm0 = vc.u32 %v5348_v39, %v5344_v22 }
 0x52b   : > { %v5248_v55 = vand.u32 2147483647, %v5247_v59  ;;  %vm5372_vm5 = vc.u32 %v5370_v54, %v5366_v16  ;;  %v5254_v43 = vsub.s32 4, %v9747_v17  ;;  %v5351_v15 = vsel %vm5350_vm0, 1, %v5962_v27 }
 0x52c   : > { %v5373_v52 = vsel %vm5372_vm5, 1, %v5962_v27  ;;  %v5343_v4 = vshrl.u32 %v5339_v45, 16  ;;  %v5353_v18 = vadd.s32 %v5351_v15, %v5349_v6  ;;  %v5365_v33 = vshrl.u32 %v5361_v46, 16 }
 0x52d   : > { %v5251_v50 = vmul.f32 %v5250_v30, %v5248_v55  ;;  %v5375_v61 = vadd.s32 %v5373_v52, %v5371_v20  ;;  %v5321_v47 = vsel %vm5317_vm8, %v5301_v38, %v9768_v26  ;;  %v5323_v1 = vsel %vm5319_vm12, %v9770_v3, %v5322_v7 }
 0x52e   : > { %v5345_v9 = vshrl.u32 %v5340_v62, 16  ;;  %v5354_v29 = vadd.s32 %v5353_v18, %v5343_v4  ;;  %v5367_v42 = vshrl.u32 %v5362_v23, 16  ;;  %v5324_v5 = vsel %vm5318_vm11, %v5321_v47, %v5323_v1 }
 0x52f   : > { %v5252_v37 = vxor.u32 2147483648, %v5251_v50  ;;  %v5376_v19 = vadd.s32 %v5375_v61, %v5365_v33  ;;  %v5374_v51 = vadd.s32 %v5370_v54, %v5366_v16  ;;  %v5255_v3 = vsel %vm5132_vm13, %v5254_v43, %v9747_v17 }
 0x530   : > { %v5355_v56 = vadd.s32 %v5354_v29, %v5345_v9  ;;  %v5378_v14 = vmul.u32 %v9750_v28, %v5324_v5  ;;  %v5257_v63 = vsel %vm9814_vm2, 0, %v5255_v3  ;;  %vm5273_vm8 = vweird.f32 %v9468_v58 }
 0x531   : > { %v5253_v11 = vsel %vm5132_vm13, %v5252_v37, %v5251_v50  ;;  %v5377_v32 = vadd.s32 %v5376_v19, %v5367_v42  ;;  %v5274_v45 = vadd.s32 3, %v5257_v63  ;;  %vm5287_vm11 = vcmp.lt.s32.totalorder %v9706_v36, 0 }
 0x532   : > { %v5256_v27 = vsel %vm9814_vm2, %v9468_v58, %v5253_v11  ;;  %vm5380_vm3 = vc.u32 %v5355_v56, %v5374_v51  ;;  %v5379_v13 = vadd.s32 %v5374_v51, %v5355_v56  ;;  %vm5286_vm12 = vcmp.le.f32.partialorder %v5285_v49, 0.7853982 }
 0x533   : > { %v5258_v40 = vmul.f32 %v5256_v27, %v5256_v27  ;;  %v5381_v44 = vadd.s32 1, %v5377_v32  ;;  %v5275_v30 = vand.u32 3, %v5274_v45  ;;  %vm5428_vm1 = vweird.f32 %v9706_v36 }
 0x535   : > { %v5259_v26 = vmul.f32 -0.001358992, %v5258_v40  ;;  %v5266_v24 = vmul.f32 -0.00019511016, %v5258_v40  ;;  %v5382_v57 = vsel %vm5380_vm3, %v5381_v44, %v5377_v32  ;;  %vm5277_vm6 = vcmp.eq.s32.totalorder %v5275_v30, 0 }
 0x536   : > { %v5383_v46 = vadd.s32 %v5382_v57, %v5378_v14  ;;  %vm5280_vm7 = vcmp.eq.s32.totalorder %v5275_v30, 2  ;;  %vm5276_vm10 = vcmp.lt.s32.totalorder %v5275_v30, 2 }
 0x537   : > { %v5260_v8 = vadd.f32 0.041655596, %v5259_v26  ;;  %v5267_v2 = vadd.f32 0.008332121, %v5266_v24 }
 0x538   : > { %v5384_v23 = vadd.s32 536870912, %v5383_v46 }
 0x539   : > { %v5261_v10 = vmul.f32 %v5260_v8, %v5258_v40  ;;  %v5268_v48 = vmul.f32 %v5267_v2, %v5258_v40 }
 0x53a   : > { %v5385_v17 = vshrl.u32 %v5384_v23, 30 }
 0x53b   : > { %v5262_v12 = vadd.f32 -0.4999988, %v5261_v10  ;;  %v5269_v31 = vadd.f32 -0.16666654, %v5268_v48 }
 0x53c   : > { %v5386_v41 = vshll.u32 %v5385_v17, 30  ;;  %v5409_v47 = vsub.s32 4, %v5385_v17 }
 0x53d   : > { %v5263_v62 = vmul.f32 %v5262_v12, %v5258_v40  ;;  %v5270_v59 = vmul.f32 %v5269_v31, %v5258_v40 }
 0x53e   : > { %v5387_v53 = vsub.s32 %v5383_v46, %v5386_v41  ;;  %v5410_v42 = vsel %vm5287_vm11, %v5409_v47, %v5385_v17 }
 0x53f   : > { %v5264_v25 = vadd.f32 1.0, %v5263_v62  ;;  %v5271_v21 = vadd.f32 1.0, %v5270_v59  ;;  %v5412_v5 = vsel %vm5286_vm12, 0, %v5410_v42 }
 0x540   : > { %vm5388_vm4 = vcmp.lt.s32.totalorder %v5387_v53, 0  ;;  %v5389_v35 = vsub.s32 0, %v5387_v53  ;;  %v5429_v24 = vadd.s32 3, %v5412_v5 }
 0x541   : > { %v5272_v34 = vmul.f32 %v5271_v21, %v5256_v27  ;;  %v5281_v28 = vxor.u32 2147483648, %v5264_v25 }
 0x542   : > { %v5390_v16 = vsel %vm5388_vm4, %v5389_v35, %v5387_v53  ;;  %v5430_v2 = vand.u32 3, %v5429_v24 }
 0x543   : > { %v5278_v60 = vxor.u32 2147483648, %v5272_v34  ;;  %v5282_v22 = vsel %vm5280_vm7, %v5281_v28, %v5272_v34  ;;  %v5391_v0 = vclz %v5390_v16 }
 0x544   : > { %vm5432_vm14 = vcmp.eq.s32.totalorder %v5430_v2, 0  ;;  %vm5435_vm13 = vcmp.eq.s32.totalorder %v5430_v2, 2  ;;  %vm5431_vm2 = vcmp.lt.s32.totalorder %v5430_v2, 2 }
 0x545   : > { %v5279_v55 = vsel %vm5277_vm6, %v5264_v25, %v5278_v60  ;;  %v5776_v50 = vadd.s32 4294967294, %v5391_v0 }
 0x546   : > { %v5283_v39 = vsel %vm5276_vm10, %v5279_v55, %v5282_v22 }
 0x547   : > { %v5284_v54 = vsel %vm5273_vm8, nan, %v5283_v39  ;;  %vm5777_vm9 = vcmp.lt.s32.totalorder %v5776_v50, 0 }
 0x548   : > { %5470 = vst [vmem:[%s6343_s10 + $0xf0] sm:$0xff] %v5284_v54  ;;  %v5394_v38 = vsel %vm5777_vm9, 0, %v5776_v50 }
 0x549   : > { %v5395_v20 = vsub.s32 32, %v5394_v38  ;;  %v5399_v7 = vsub.s32 4294967266, %v5394_v38  ;;  %v5396_v6 = vshll.u32 %v5387_v53, %v5394_v38 }
 0x54b   : > { %v5397_v37 = vshrl.u32 %v5379_v13, %v5395_v20  ;;  %v5400_v43 = vadd.s32 127, %v5399_v7 }
 0x54d   : > { %v5398_v15 = vor.u32 %v5397_v37, %v5396_v6  ;;  %v5401_v52 = vshll.u32 %v5400_v43, 23 }
 0x54f   : > { %v5402_v4 = vor.u32 4788187, %v5401_v52  ;;  %v5405_v33 = vcvt.s32.f32 %v5398_v15 }
 0x551   : > { %v5403_v18 = vand.u32 2147483647, %v5402_v4 }
 0x553   : > { %v5406_v61 = vmul.f32 %v5405_v33, %v5403_v18 }
 0x555   : > { %v5407_v58 = vxor.u32 2147483648, %v5406_v61 }
 0x557   : > { %v5408_v11 = vsel %vm5287_vm11, %v5407_v58, %v5406_v61 }
 0x558   : > { %v5411_v1 = vsel %vm5286_vm12, %v9706_v36, %v5408_v11 }
 0x559   : > { %v5413_v9 = vmul.f32 %v5411_v1, %v5411_v1 }
 0x55b   : > { %v5414_v27 = vmul.f32 -0.001358992, %v5413_v9  ;;  %v5421_v29 = vmul.f32 -0.00019511016, %v5413_v9 }
 0x55d   : > { %v5415_v19 = vadd.f32 0.041655596, %v5414_v27  ;;  %v5422_v40 = vadd.f32 0.008332121, %v5421_v29 }
 0x55f   : > { %v5416_v56 = vmul.f32 %v5415_v19, %v5413_v9  ;;  %v5423_v51 = vmul.f32 %v5422_v40, %v5413_v9 }
 0x561   : > { %v5417_v32 = vadd.f32 -0.4999988, %v5416_v56  ;;  %v5424_v26 = vadd.f32 -0.16666654, %v5423_v51 }
 0x563   : > { %v5418_v49 = vmul.f32 %v5417_v32, %v5413_v9  ;;  %v5425_v3 = vmul.f32 %v5424_v26, %v5413_v9 }
 0x565   : > { %v5419_v44 = vadd.f32 1.0, %v5418_v49  ;;  %v5426_v8 = vadd.f32 1.0, %v5425_v3 }
 0x567   : > { %v5427_v14 = vmul.f32 %v5426_v8, %v5411_v1  ;;  %v5436_v57 = vxor.u32 2147483648, %v5419_v44 }
 0x569   : > { %v5433_v63 = vxor.u32 2147483648, %v5427_v14  ;;  %v5437_v48 = vsel %vm5435_vm13, %v5436_v57, %v5427_v14 }
 0x56b   : > { %v5434_v10 = vsel %vm5432_vm14, %v5419_v44, %v5433_v63 }
 0x56c   : > { %v5438_v46 = vsel %vm5431_vm2, %v5434_v10, %v5437_v48 }
 0x56d   : > { %v5439_v12 = vsel %vm5428_vm1, nan, %v5438_v46 }
 0x56e   : > { %5471 = vst [vmem:[%s6343_s10 + $0xf8] sm:$0xff] %v5439_v12 }
 0x56f   : > { %5903 = shalt.err (!%p5900_p5)
}
 0x570   : > { %s5963_s8 = smov 128   ;;  %s5964_s10 = smov 8  }
 0x571   : > { %5804 = dma.vmem_to_hbm [thread:$0]  (%p6025_p4), %s5487_s21, 4096, %s5489_s23, %s5473_s15, %s5963_s8, %s5963_s8, %s5964_s10  }
 0x572 PF: > { %p5810_p6 = scmp.ge.s32.totalorder %s5954_s17, 2  ;;  %s5503_s6 = sand.u32 1, %s5934_s12  }
 0x573   : > { %s5504_s7 = scalar_lea.sflag [#allocation3], %s5503_s6 }
 0x574   : > { %p5807_p7 = pnand %p5810_p6, %p6032_p8 }
 0x576   : > { %p5808_p9 = pneg %p5807_p7 }
 0x578   : > { %5929 = dma.done.wait (%p5808_p9), %s5504_s7, 4096  }
 0x579   : > { %5931 = vsyncadd (%p5808_p9), %s5504_s7, 4294963200  ;;  %s16_s17 = sadd.s32 1, %s5954_s17   ;;  %s9954_s12 = smov %s5938_s13 }
 0x57a   : > { %p13_p10 = scmp.ge.s32.totalorder %s16_s17, 6   ;;  %s9955_s13 = smov %s5942_s14 }
 0x57b   : > { %s9956_s14 = smov %s6038_s25  ;;  %s9957_s15 = smov %s5950_s16 }
 0x57c   : > { %s9958_s16 = smov %s9960_s20  ;;  %15 = sbr.rel (!%p13_p10) target bundleno = 4 (0x4), region = 73 }
 0x581   :  { %5510 = vsyncpa [#allocation3], 1 }
 0x582   :  { %5512 = vsyncpa [#allocation3 + $0x1], 1 }

</bundles_post_ra>
